<compile_context>
chip_gen: v7x
topology: tpu7x:2x2x1
jax: 0.10.0
libtpu: 0.0.40
codegen_flags: <defaults>
</compile_context>

<pallas_src>
import numpy as np

import jax
import jax.numpy as jnp
from jax.experimental import pallas as pl
from jax.experimental.pallas import tpu as pltpu


# -----------------------------------------------------------------------------
# Static model configuration (Python constants -> never traced)
# -----------------------------------------------------------------------------
INPUT_CHANNELS = 4
N_STAGES = 3
FEATURES = [8, 16, 32]
KERNEL = 3
STRIDES = [1, 2, 2]
N_CONV_PER_STAGE = 2
N_CONV_PER_STAGE_DEC = 2
NUM_CLASSES = 3
SEG_ROWS = 8                  # num_classes padded to a sublane multiple
IN_EPS = 1e-5
LRELU_SLOPE = 0.01
H0 = W0 = 16                  # example spatial size used by this script

assert KERNEL == 3 and STRIDES[0] == 1 and all(s in (1, 2) for s in STRIDES)
assert N_CONV_PER_STAGE == 2 and N_CONV_PER_STAGE_DEC == 2


def _round_up(v, m):
    return -(-v // m) * m


# -----------------------------------------------------------------------------
# Flattened padded-frame geometry
# -----------------------------------------------------------------------------
class _Geom:
    """Geometry of one resolution level.

    Activations are stored as (N, C, btot) bf16: the zero-padded frame
    (H+2)x(W+2), flattened row-major (length B), lives at lane offset `marg`
    and is surrounded by zero margins, so every 3x3 tap of a stride-1 "same"
    conv is a static contiguous lane slice of length B.
    """

    def __init__(self, h, w):
        self.H, self.W = h, w
        self.Hp, self.Wp = h + 2, w + 2
        self.B = self.Hp * self.Wp
        self.marg = self.Wp + 1
        self.btot = _round_up(self.B + 2 * self.marg, 128)
        self.hw = h * w

    def tap_offsets(self):
        return [(di - 1) * self.Wp + (dj - 1)
                for di in range(3) for dj in range(3)]


def _level_geoms():
    geoms, h, w = [], H0, W0
    for s in range(N_STAGES):
        h //= STRIDES[s]
        w //= STRIDES[s]
        geoms.append(_Geom(h, w))
    return geoms


# -----------------------------------------------------------------------------
# Constant helper matrices (built once with numpy at init time)
# -----------------------------------------------------------------------------
def _make_mask(g):
    """(1, B) f32: 1 at valid image positions of the frame, 0 at border/junk."""
    m = np.zeros((g.Hp, g.Wp), np.float32)
    m[1:g.H + 1, 1:g.W + 1] = 1.0
    return jnp.asarray(m.reshape(1, g.B))


def _make_decimation(g_in, g_out):
    """(B_in, B_out) f32 0/1: stride-2 conv output == stride-1 output at (2i,2j)."""
    d = np.zeros((g_in.B, g_out.B), np.float32)
    for io in range(g_out.H):
        for jo in range(g_out.W):
            d[(2 * io + 1) * g_in.Wp + (2 * jo + 1),
              (io + 1) * g_out.Wp + (jo + 1)] = 1.0
    return jnp.asarray(d)


def _make_up_scatter(g_c, g_f):
    """(4, B_c, btot_f) bf16 0/1: scatter per-phase ConvTranspose outputs
    (pixel shuffle) straight into the fine padded-frame-with-margins layout."""
    s = np.zeros((4, g_c.B, g_f.btot), np.float32)
    for a in range(2):
        for b in range(2):
            p = a * 2 + b
            for i in range(g_c.H):
                for j in range(g_c.W):
                    src = (i + 1) * g_c.Wp + (j + 1)
                    dst = g_f.marg + (2 * i + a + 1) * g_f.Wp + (2 * j + b + 1)
                    s[p, src, dst] = 1.0
    return jnp.asarray(s, jnp.bfloat16)


# -----------------------------------------------------------------------------
# In-kernel building blocks
# -----------------------------------------------------------------------------
def _in_lrelu(acc, gamma, beta, mask, hw):
    """InstanceNorm2d(affine) + LeakyReLU epilogue with masked statistics.
    Returns exact zeros at border/junk lanes so the result can directly feed
    the next conv's taps."""
    inv = 1.0 / float(hw)
    mean = jnp.sum(acc * mask, axis=1, keepdims=True) * inv
    d = (acc - mean) * mask
    var = jnp.sum(d * d, axis=1, keepdims=True) * inv
    z = d * jax.lax.rsqrt(var + IN_EPS) * gamma + beta
    z = jnp.where(z > 0.0, z, LRELU_SLOPE * z)
    return z * mask


def _tap_conv(w_ref, slab, offsets, marg, length):
    """3x3 conv = sum over 9 taps of  W[t] @ shifted_frame_slice(t)."""
    acc = None
    for t, off in enumerate(offsets):
        c = jnp.dot(w_ref[t], slab(marg + off, length),
                    preferred_element_type=jnp.float32)
        acc = c if acc is None else acc + c
    return acc


# -----------------------------------------------------------------------------
# Kernel factories
# -----------------------------------------------------------------------------
def _make_encoder_kernel(g_in, g_out, downsample):
    offs_in = g_in.tap_offsets()
    offs_out = g_out.tap_offsets()

    def kernel(*refs):
        if downsample:
            x_ref, w1_ref, d_ref, gb_ref, w2_ref, mask_ref, o_ref, ybuf_ref = refs
        else:
            x_ref, w1_ref, gb_ref, w2_ref, mask_ref, o_ref, ybuf_ref = refs
            d_ref = None
        mask = mask_ref[...]

        # conv1: 9 shifted GEMM taps over the padded-frame input (no HBM im2col)
        acc = _tap_conv(w1_ref, lambda s0, l: x_ref[0, :, s0:s0 + l],
                        offs_in, g_in.marg, g_in.B)
        if downsample:
            # TODO(synk): decimation via a 0/1 matmul recomputes 4x the needed
            # taps; switch to strided in-kernel reads for large inputs.
            acc = jnp.dot(acc, d_ref[...], preferred_element_type=jnp.float32)
        y1 = _in_lrelu(acc, gb_ref[:, 0:1], gb_ref[:, 1:2], mask, g_out.hw)

        # intermediate stays in VMEM scratch (never touches HBM)
        ybuf_ref[...] = jnp.zeros_like(ybuf_ref)
        ybuf_ref[:, g_out.marg:g_out.marg + g_out.B] = y1.astype(ybuf_ref.dtype)

        # conv2 (stride 1)
        acc2 = _tap_conv(w2_ref, lambda s0, l: ybuf_ref[:, s0:s0 + l],
                         offs_out, g_out.marg, g_out.B)
        y2 = _in_lrelu(acc2, gb_ref[:, 2:3], gb_ref[:, 3:4], mask, g_out.hw)

        o_ref[...] = jnp.zeros_like(o_ref)
        o_ref[0, :, g_out.marg:g_out.marg + g_out.B] = y2.astype(o_ref.dtype)

    return kernel


def _make_decoder_kernel(g_c, g_f, with_seg):
    offs_f = g_f.tap_offsets()

    def kernel(*refs):
        if with_seg:
            (below_ref, skip_ref, tw_ref, tb_ref, s_ref, w1u_ref, w1s_ref,
             gb_ref, w2_ref, mask_ref, wseg_ref, bseg_ref,
             out_ref, ubuf_ref, ybuf_ref) = refs
        else:
            (below_ref, skip_ref, tw_ref, tb_ref, s_ref, w1u_ref, w1s_ref,
             gb_ref, w2_ref, mask_ref,
             out_ref, ubuf_ref, ybuf_ref) = refs
        mask = mask_ref[...]

        # 1) ConvTranspose2d (kernel=stride=2, bias) fused with pixel shuffle:
        #    4 per-phase GEMMs scattered into the fine frame by constant 0/1 mats.
        below = below_ref[0, :, g_c.marg:g_c.marg + g_c.B]          # (Cb, B_c)
        up = None
        for p in range(4):
            yp = jnp.dot(tw_ref[p], below,
                         preferred_element_type=jnp.float32) + tb_ref[...]
            contrib = jnp.dot(yp.astype(jnp.bfloat16), s_ref[p],
                              preferred_element_type=jnp.float32)
            up = contrib if up is None else up + contrib
        ubuf_ref[...] = up.astype(ubuf_ref.dtype)

        # 2) decoder conv1: split GEMM over [upsampled, skip] channel groups
        #    (replaces torch.cat((up, skip), dim=1) + one big conv)
        acc = _tap_conv(w1u_ref, lambda s0, l: ubuf_ref[:, s0:s0 + l],
                        offs_f, g_f.marg, g_f.B)
        acc = acc + _tap_conv(w1s_ref, lambda s0, l: skip_ref[0, :, s0:s0 + l],
                              offs_f, g_f.marg, g_f.B)
        y1 = _in_lrelu(acc, gb_ref[:, 0:1], gb_ref[:, 1:2], mask, g_f.hw)

        ybuf_ref[...] = jnp.zeros_like(ybuf_ref)
        ybuf_ref[:, g_f.marg:g_f.marg + g_f.B] = y1.astype(ybuf_ref.dtype)

        # 3) decoder conv2
        acc2 = _tap_conv(w2_ref, lambda s0, l: ybuf_ref[:, s0:s0 + l],
                         offs_f, g_f.marg, g_f.B)
        y2 = _in_lrelu(acc2, gb_ref[:, 2:3], gb_ref[:, 3:4], mask, g_f.hw)

        if with_seg:
            # 4) fused 1x1 segmentation head (bias, no norm / nonlin), f32 out
            out_ref[0] = jnp.dot(wseg_ref[...], y2.astype(jnp.bfloat16),
                                 preferred_element_type=jnp.float32) + bseg_ref[...]
        else:
            out_ref[...] = jnp.zeros_like(out_ref)
            out_ref[0, :, g_f.marg:g_f.marg + g_f.B] = y2.astype(out_ref.dtype)

    return kernel


# -----------------------------------------------------------------------------
# pallas_call wrappers
# -----------------------------------------------------------------------------
def _const_spec(arr):
    zeros = (0,) * arr.ndim
    return pl.BlockSpec(arr.shape, lambda n, _z=zeros: _z)


def _act_spec(arr):
    blk = (1,) + arr.shape[1:]
    zeros = (0,) * (arr.ndim - 1)
    return pl.BlockSpec(blk, lambda n, _z=zeros: (n,) + _z)


def _encoder_stage(x_pf, p, *, g_in, g_out, downsample):
    n = x_pf.shape[0]
    co = p["w1"].shape[1]
    kernel = _make_encoder_kernel(g_in, g_out, downsample)
    args = [x_pf, p["w1"]]
    if downsample:
        args.append(p["D"])
    args += [p["gb"], p["w2"], p["mask"]]
    in_specs = [_act_spec(x_pf)] + [_const_spec(a) for a in args[1:]]
    return pl.pallas_call(
        kernel,
        grid=(n,),
        in_specs=in_specs,
        out_specs=pl.BlockSpec((1, co, g_out.btot), lambda i: (i, 0, 0)),
        out_shape=jax.ShapeDtypeStruct((n, co, g_out.btot), jnp.bfloat16),
        scratch_shapes=[pltpu.VMEM((co, g_out.btot), jnp.bfloat16)],
        compiler_params=pltpu.CompilerParams(
            dimension_semantics=("parallel",)),
    )(*args)


def _decoder_stage(below_pf, skip_pf, p, *, g_c, g_f, with_seg):
    n = below_pf.shape[0]
    cs = skip_pf.shape[1]
    co = p["w2"].shape[1]
    kernel = _make_decoder_kernel(g_c, g_f, with_seg)
    args = [below_pf, skip_pf, p["tw"], p["tb"], p["S"],
            p["w1u"], p["w1s"], p["gb"], p["w2"], p["mask"]]
    if with_seg:
        args += [p["wseg"], p["bseg"]]
    in_specs = [_act_spec(below_pf), _act_spec(skip_pf)]
    in_specs += [_const_spec(a) for a in args[2:]]
    if with_seg:
        out_shape = jax.ShapeDtypeStruct((n, SEG_ROWS, g_f.B), jnp.float32)
        out_specs = pl.BlockSpec((1, SEG_ROWS, g_f.B), lambda i: (i, 0, 0))
    else:
        out_shape = jax.ShapeDtypeStruct((n, co, g_f.btot), jnp.bfloat16)
        out_specs = pl.BlockSpec((1, co, g_f.btot), lambda i: (i, 0, 0))
    scratch = [pltpu.VMEM((cs, g_f.btot), jnp.bfloat16),   # upsampled frame
               pltpu.VMEM((co, g_f.btot), jnp.bfloat16)]   # intermediate conv
    return pl.pallas_call(
        kernel,
        grid=(n,),
        in_specs=in_specs,
        out_specs=out_specs,
        out_shape=out_shape,
        scratch_shapes=scratch,
        compiler_params=pltpu.CompilerParams(
            dimension_semantics=("parallel",)),
    )(*args)


# -----------------------------------------------------------------------------
# Parameter construction (kernel-ready layouts, built once)
# -----------------------------------------------------------------------------
def _conv3x3_taps(key, co, ci, scale=0.05):
    w = scale * jax.random.normal(key, (co, ci, 3, 3), jnp.float32)
    # tap index t = di*3 + dj matches _Geom.tap_offsets ordering
    return jnp.transpose(w, (2, 3, 0, 1)).reshape(9, co, ci).astype(jnp.bfloat16)


def _gamma_beta(co):
    # columns: [gamma_conv1, beta_conv1, gamma_conv2, beta_conv2]
    gb = jnp.zeros((co, 4), jnp.float32)
    return gb.at[:, 0].set(1.0).at[:, 2].set(1.0)


def _tconv_phases(key, ci, co, scale=0.05):
    kw, kb = jax.random.split(key)
    w = scale * jax.random.normal(kw, (ci, co, 2, 2), jnp.float32)
    b = scale * jax.random.normal(kb, (co,), jnp.float32)
    tw = jnp.transpose(w, (2, 3, 1, 0)).reshape(4, co, ci).astype(jnp.bfloat16)
    return tw, b.reshape(co, 1)


def _seg_params(key, ci, n_classes, scale=0.05):
    kw, kb = jax.random.split(key)
    w = scale * jax.random.normal(kw, (n_classes, ci), jnp.float32)
    b = scale * jax.random.normal(kb, (n_classes,), jnp.float32)
    wseg = jnp.zeros((SEG_ROWS, ci), jnp.bfloat16).at[:n_classes].set(
        w.astype(jnp.bfloat16))
    bseg = jnp.zeros((SEG_ROWS, 1), jnp.float32).at[:n_classes, 0].set(b)
    return wseg, bseg


def init_params(key):
    geoms = _level_geoms()
    params = {"encoder": [], "decoder": []}
    # --- encoder stages (conv bias dropped: cancelled exactly by InstanceNorm)
    in_ch = INPUT_CHANNELS
    for s in range(N_STAGES):
        co = FEATURES[s]
        g_in = geoms[s - 1] if s > 0 else geoms[0]
        g_out = geoms[s]
        key, k1, k2 = jax.random.split(key, 3)
        blk = {
            "w1": _conv3x3_taps(k1, co, in_ch),
            "w2": _conv3x3_taps(k2, co, co),
            "gb": _gamma_beta(co),
            "mask": _make_mask(g_out),
        }
        if STRIDES[s] != 1:
            blk["D"] = _make_decimation(g_in, g_out)
        params["encoder"].append(blk)
        in_ch = co
    # --- decoder stages (deepest first); seg head fused into the last one
    for d in range(N_STAGES - 1):
        lvl_below = N_STAGES - 1 - d
        lvl = lvl_below - 1
        cb, cs = FEATURES[lvl_below], FEATURES[lvl]
        g_c, g_f = geoms[lvl_below], geoms[lvl]
        key, kt, k1u, k1s, k2 = jax.random.split(key, 5)
        tw, tb = _tconv_phases(kt, cb, cs)
        blk = {
            "tw": tw, "tb": tb, "S": _make_up_scatter(g_c, g_f),
            "w1u": _conv3x3_taps(k1u, cs, cs),   # weights for upsampled channels
            "w1s": _conv3x3_taps(k1s, cs, cs),   # weights for skip channels
            "gb": _gamma_beta(cs),
            "w2": _conv3x3_taps(k2, cs, cs),
            "mask": _make_mask(g_f),
        }
        if d == N_STAGES - 2:
            key, ks = jax.random.split(key)
            blk["wseg"], blk["bseg"] = _seg_params(ks, cs, NUM_CLASSES)
        params["decoder"].append(blk)
    return params


# -----------------------------------------------------------------------------
# Forward pass (PlainConvEncoder skips -> UNetDecoder -> seg head)
# -----------------------------------------------------------------------------
def _to_frame(x, g):
    """NCHW f32 -> padded-frame-with-margins (N, C, btot) bf16."""
    n, c = x.shape[:2]
    xp = jnp.pad(x, ((0, 0), (0, 0), (1, 1), (1, 1))).reshape(n, c, g.B)
    xp = jnp.pad(xp, ((0, 0), (0, 0), (g.marg, g.btot - g.B - g.marg)))
    return xp.astype(jnp.bfloat16)


def plain_conv_unet_forward(params, x):
    geoms = _level_geoms()
    n = x.shape[0]

    # Encoder (return_skips=True)
    h = _to_frame(x, geoms[0])
    skips = []
    for s in range(N_STAGES):
        g_in = geoms[s - 1] if s > 0 else geoms[0]
        h = _encoder_stage(h, params["encoder"][s], g_in=g_in, g_out=geoms[s],
                           downsample=(STRIDES[s] != 1))
        skips.append(h)

    # Decoder (deep_supervision=False -> only the full-res seg output)
    lres = skips[-1]
    for d in range(N_STAGES - 1):
        lvl_below = N_STAGES - 1 - d
        lvl = lvl_below - 1
        with_seg = (d == N_STAGES - 2)
        lres = _decoder_stage(lres, skips[lvl], params["decoder"][d],
                              g_c=geoms[lvl_below], g_f=geoms[lvl],
                              with_seg=with_seg)

    # lres: (N, SEG_ROWS, B0) f32 segmentation frame -> NCHW logits
    g0 = geoms[0]
    seg = lres[:, :NUM_CLASSES, :].reshape(n, NUM_CLASSES, g0.Hp, g0.Wp)
    return seg[:, :, 1:g0.H + 1, 1:g0.W + 1]


# TODO(synk): for realistic nnU-Net input sizes, tile H*W per grid step and
# switch InstanceNorm to two-pass sum/sumsq accumulation (v7x has 64 MiB VMEM).

# -----------------------------------------------------------------------------
if __name__ == "__main__":
    key = jax.random.PRNGKey(0)
    key, kx = jax.random.split(key)
    x = jax.random.normal(kx, (2, INPUT_CHANNELS, H0, W0), jnp.float32)  # NCHW

    params = init_params(key)
    fwd = jax.jit(plain_conv_unet_forward)
    out = jax.block_until_ready(fwd(params, x))

    assert out.shape == (2, NUM_CLASSES, H0, W0), out.shape
    assert bool(jnp.all(jnp.isfinite(out)))
    print("KERNEL_OK")
</pallas_src>

<mosaic_0001>
module attributes {stable_mosaic.version = 11 : i64} {
  func.func @kernel(%arg0: i32, %arg1: memref<1x4x384xbf16, #tpu.memory_space<vmem>>, %arg2: memref<9x8x4xbf16, #tpu.memory_space<vmem>>, %arg3: memref<8x4xf32, #tpu.memory_space<vmem>>, %arg4: memref<9x8x8xbf16, #tpu.memory_space<vmem>>, %arg5: memref<1x324xf32, #tpu.memory_space<vmem>>, %arg6: memref<1x8x384xbf16, #tpu.memory_space<vmem>>, %arg7: memref<8x384xbf16, #tpu.memory_space<vmem>>) attributes {dimension_semantics = [#tpu.dimension_semantics<parallel>], iteration_bounds = array<i64: 2>, scalar_prefetch = 0 : i64, scratch_operands = 1 : i64, tpu.core_type = #tpu.core_type<tc>, window_params = [{transform_indices = @transform_0, window_bounds = array<i64: 1, 4, 384>}, {pipeline_mode = #tpu.pipeline_mode<synchronous>, transform_indices = @transform_1, window_bounds = array<i64: 9, 8, 4>}, {pipeline_mode = #tpu.pipeline_mode<synchronous>, transform_indices = @transform_2, window_bounds = array<i64: 8, 4>}, {pipeline_mode = #tpu.pipeline_mode<synchronous>, transform_indices = @transform_3, window_bounds = array<i64: 9, 8, 8>}, {pipeline_mode = #tpu.pipeline_mode<synchronous>, transform_indices = @transform_4, window_bounds = array<i64: 1, 324>}, {transform_indices = @transform_5, window_bounds = array<i64: 1, 8, 384>}]} {
    %c0 = arith.constant 0 : index
    %c0_0 = arith.constant 0 : index
    %0 = vector.load %arg5[%c0, %c0_0] : memref<1x324xf32, #tpu.memory_space<vmem>>, vector<1x324xf32>
    %c0_1 = arith.constant 0 : index
    %c0_2 = arith.constant 0 : index
    %c0_3 = arith.constant 0 : index
    %1 = vector.load %arg2[%c0_1, %c0_2, %c0_3] : memref<9x8x4xbf16, #tpu.memory_space<vmem>>, vector<1x8x4xbf16>
    %2 = vector.shape_cast %1 : vector<1x8x4xbf16> to vector<8x4xbf16>
    %c0_4 = arith.constant 0 : index
    %c0_5 = arith.constant 0 : index
    %c0_6 = arith.constant 0 : index
    %3 = vector.load %arg1[%c0_4, %c0_5, %c0_6] : memref<1x4x384xbf16, #tpu.memory_space<vmem>>, vector<1x4x324xbf16>
    %4 = vector.shape_cast %3 : vector<1x4x324xbf16> to vector<4x324xbf16>
    %cst = arith.constant dense<0.000000e+00> : vector<8x324xf32>
    %5 = tpu.matmul %2, %4, %cst {dimension_numbers = #tpu.dot_dimension_numbers<[1], [0], [0], [1], [0, 0, 1, 1], [], []>} : vector<8x4xbf16>, vector<4x324xbf16>, vector<8x324xf32> -> vector<8x324xf32>
    %c1 = arith.constant 1 : index
    %c0_7 = arith.constant 0 : index
    %c0_8 = arith.constant 0 : index
    %6 = vector.load %arg2[%c1, %c0_7, %c0_8] : memref<9x8x4xbf16, #tpu.memory_space<vmem>>, vector<1x8x4xbf16>
    %7 = vector.shape_cast %6 : vector<1x8x4xbf16> to vector<8x4xbf16>
    %c0_9 = arith.constant 0 : index
    %c0_10 = arith.constant 0 : index
    %c1_11 = arith.constant 1 : index
    %8 = vector.load %arg1[%c0_9, %c0_10, %c1_11] : memref<1x4x384xbf16, #tpu.memory_space<vmem>>, vector<1x4x324xbf16>
    %9 = vector.shape_cast %8 : vector<1x4x324xbf16> to vector<4x324xbf16>
    %cst_12 = arith.constant dense<0.000000e+00> : vector<8x324xf32>
    %10 = tpu.matmul %7, %9, %cst_12 {dimension_numbers = #tpu.dot_dimension_numbers<[1], [0], [0], [1], [0, 0, 1, 1], [], []>} : vector<8x4xbf16>, vector<4x324xbf16>, vector<8x324xf32> -> vector<8x324xf32>
    %11 = arith.addf %5, %10 : vector<8x324xf32>
    %c2 = arith.constant 2 : index
    %c0_13 = arith.constant 0 : index
    %c0_14 = arith.constant 0 : index
    %12 = vector.load %arg2[%c2, %c0_13, %c0_14] : memref<9x8x4xbf16, #tpu.memory_space<vmem>>, vector<1x8x4xbf16>
    %13 = vector.shape_cast %12 : vector<1x8x4xbf16> to vector<8x4xbf16>
    %c0_15 = arith.constant 0 : index
    %c0_16 = arith.constant 0 : index
    %c2_17 = arith.constant 2 : index
    %14 = vector.load %arg1[%c0_15, %c0_16, %c2_17] : memref<1x4x384xbf16, #tpu.memory_space<vmem>>, vector<1x4x324xbf16>
    %15 = vector.shape_cast %14 : vector<1x4x324xbf16> to vector<4x324xbf16>
    %cst_18 = arith.constant dense<0.000000e+00> : vector<8x324xf32>
    %16 = tpu.matmul %13, %15, %cst_18 {dimension_numbers = #tpu.dot_dimension_numbers<[1], [0], [0], [1], [0, 0, 1, 1], [], []>} : vector<8x4xbf16>, vector<4x324xbf16>, vector<8x324xf32> -> vector<8x324xf32>
    %17 = arith.addf %11, %16 : vector<8x324xf32>
    %c3 = arith.constant 3 : index
    %c0_19 = arith.constant 0 : index
    %c0_20 = arith.constant 0 : index
    %18 = vector.load %arg2[%c3, %c0_19, %c0_20] : memref<9x8x4xbf16, #tpu.memory_space<vmem>>, vector<1x8x4xbf16>
    %19 = vector.shape_cast %18 : vector<1x8x4xbf16> to vector<8x4xbf16>
    %c0_21 = arith.constant 0 : index
    %c0_22 = arith.constant 0 : index
    %c18 = arith.constant 18 : index
    %20 = vector.load %arg1[%c0_21, %c0_22, %c18] : memref<1x4x384xbf16, #tpu.memory_space<vmem>>, vector<1x4x324xbf16>
    %21 = vector.shape_cast %20 : vector<1x4x324xbf16> to vector<4x324xbf16>
    %cst_23 = arith.constant dense<0.000000e+00> : vector<8x324xf32>
    %22 = tpu.matmul %19, %21, %cst_23 {dimension_numbers = #tpu.dot_dimension_numbers<[1], [0], [0], [1], [0, 0, 1, 1], [], []>} : vector<8x4xbf16>, vector<4x324xbf16>, vector<8x324xf32> -> vector<8x324xf32>
    %23 = arith.addf %17, %22 : vector<8x324xf32>
    %c4 = arith.constant 4 : index
    %c0_24 = arith.constant 0 : index
    %c0_25 = arith.constant 0 : index
    %24 = vector.load %arg2[%c4, %c0_24, %c0_25] : memref<9x8x4xbf16, #tpu.memory_space<vmem>>, vector<1x8x4xbf16>
    %25 = vector.shape_cast %24 : vector<1x8x4xbf16> to vector<8x4xbf16>
    %c0_26 = arith.constant 0 : index
    %c0_27 = arith.constant 0 : index
    %c19 = arith.constant 19 : index
    %26 = vector.load %arg1[%c0_26, %c0_27, %c19] : memref<1x4x384xbf16, #tpu.memory_space<vmem>>, vector<1x4x324xbf16>
    %27 = vector.shape_cast %26 : vector<1x4x324xbf16> to vector<4x324xbf16>
    %cst_28 = arith.constant dense<0.000000e+00> : vector<8x324xf32>
    %28 = tpu.matmul %25, %27, %cst_28 {dimension_numbers = #tpu.dot_dimension_numbers<[1], [0], [0], [1], [0, 0, 1, 1], [], []>} : vector<8x4xbf16>, vector<4x324xbf16>, vector<8x324xf32> -> vector<8x324xf32>
    %29 = arith.addf %23, %28 : vector<8x324xf32>
    %c5 = arith.constant 5 : index
    %c0_29 = arith.constant 0 : index
    %c0_30 = arith.constant 0 : index
    %30 = vector.load %arg2[%c5, %c0_29, %c0_30] : memref<9x8x4xbf16, #tpu.memory_space<vmem>>, vector<1x8x4xbf16>
    %31 = vector.shape_cast %30 : vector<1x8x4xbf16> to vector<8x4xbf16>
    %c0_31 = arith.constant 0 : index
    %c0_32 = arith.constant 0 : index
    %c20 = arith.constant 20 : index
    %32 = vector.load %arg1[%c0_31, %c0_32, %c20] : memref<1x4x384xbf16, #tpu.memory_space<vmem>>, vector<1x4x324xbf16>
    %33 = vector.shape_cast %32 : vector<1x4x324xbf16> to vector<4x324xbf16>
    %cst_33 = arith.constant dense<0.000000e+00> : vector<8x324xf32>
    %34 = tpu.matmul %31, %33, %cst_33 {dimension_numbers = #tpu.dot_dimension_numbers<[1], [0], [0], [1], [0, 0, 1, 1], [], []>} : vector<8x4xbf16>, vector<4x324xbf16>, vector<8x324xf32> -> vector<8x324xf32>
    %35 = arith.addf %29, %34 : vector<8x324xf32>
    %c6 = arith.constant 6 : index
    %c0_34 = arith.constant 0 : index
    %c0_35 = arith.constant 0 : index
    %36 = vector.load %arg2[%c6, %c0_34, %c0_35] : memref<9x8x4xbf16, #tpu.memory_space<vmem>>, vector<1x8x4xbf16>
    %37 = vector.shape_cast %36 : vector<1x8x4xbf16> to vector<8x4xbf16>
    %c0_36 = arith.constant 0 : index
    %c0_37 = arith.constant 0 : index
    %c36 = arith.constant 36 : index
    %38 = vector.load %arg1[%c0_36, %c0_37, %c36] : memref<1x4x384xbf16, #tpu.memory_space<vmem>>, vector<1x4x324xbf16>
    %39 = vector.shape_cast %38 : vector<1x4x324xbf16> to vector<4x324xbf16>
    %cst_38 = arith.constant dense<0.000000e+00> : vector<8x324xf32>
    %40 = tpu.matmul %37, %39, %cst_38 {dimension_numbers = #tpu.dot_dimension_numbers<[1], [0], [0], [1], [0, 0, 1, 1], [], []>} : vector<8x4xbf16>, vector<4x324xbf16>, vector<8x324xf32> -> vector<8x324xf32>
    %41 = arith.addf %35, %40 : vector<8x324xf32>
    %c7 = arith.constant 7 : index
    %c0_39 = arith.constant 0 : index
    %c0_40 = arith.constant 0 : index
    %42 = vector.load %arg2[%c7, %c0_39, %c0_40] : memref<9x8x4xbf16, #tpu.memory_space<vmem>>, vector<1x8x4xbf16>
    %43 = vector.shape_cast %42 : vector<1x8x4xbf16> to vector<8x4xbf16>
    %c0_41 = arith.constant 0 : index
    %c0_42 = arith.constant 0 : index
    %c37 = arith.constant 37 : index
    %44 = vector.load %arg1[%c0_41, %c0_42, %c37] : memref<1x4x384xbf16, #tpu.memory_space<vmem>>, vector<1x4x324xbf16>
    %45 = vector.shape_cast %44 : vector<1x4x324xbf16> to vector<4x324xbf16>
    %cst_43 = arith.constant dense<0.000000e+00> : vector<8x324xf32>
    %46 = tpu.matmul %43, %45, %cst_43 {dimension_numbers = #tpu.dot_dimension_numbers<[1], [0], [0], [1], [0, 0, 1, 1], [], []>} : vector<8x4xbf16>, vector<4x324xbf16>, vector<8x324xf32> -> vector<8x324xf32>
    %47 = arith.addf %41, %46 : vector<8x324xf32>
    %c8 = arith.constant 8 : index
    %c0_44 = arith.constant 0 : index
    %c0_45 = arith.constant 0 : index
    %48 = vector.load %arg2[%c8, %c0_44, %c0_45] : memref<9x8x4xbf16, #tpu.memory_space<vmem>>, vector<1x8x4xbf16>
    %49 = vector.shape_cast %48 : vector<1x8x4xbf16> to vector<8x4xbf16>
    %c0_46 = arith.constant 0 : index
    %c0_47 = arith.constant 0 : index
    %c38 = arith.constant 38 : index
    %50 = vector.load %arg1[%c0_46, %c0_47, %c38] : memref<1x4x384xbf16, #tpu.memory_space<vmem>>, vector<1x4x324xbf16>
    %51 = vector.shape_cast %50 : vector<1x4x324xbf16> to vector<4x324xbf16>
    %cst_48 = arith.constant dense<0.000000e+00> : vector<8x324xf32>
    %52 = tpu.matmul %49, %51, %cst_48 {dimension_numbers = #tpu.dot_dimension_numbers<[1], [0], [0], [1], [0, 0, 1, 1], [], []>} : vector<8x4xbf16>, vector<4x324xbf16>, vector<8x324xf32> -> vector<8x324xf32>
    %53 = arith.addf %47, %52 : vector<8x324xf32>
    %c0_49 = arith.constant 0 : index
    %c0_50 = arith.constant 0 : index
    %54 = vector.load %arg3[%c0_49, %c0_50] : memref<8x4xf32, #tpu.memory_space<vmem>>, vector<8x1xf32>
    %c0_51 = arith.constant 0 : index
    %c1_52 = arith.constant 1 : index
    %55 = vector.load %arg3[%c0_51, %c1_52] : memref<8x4xf32, #tpu.memory_space<vmem>>, vector<8x1xf32>
    %56 = vector.broadcast %0 : vector<1x324xf32> to vector<8x324xf32>
    %57 = arith.mulf %53, %56 : vector<8x324xf32>
    %cst_53 = arith.constant dense<0.000000e+00> : vector<8xf32>
    %58 = vector.multi_reduction <add>, %57, %cst_53 [1] : vector<8x324xf32> to vector<8xf32>
    %59 = vector.shape_cast %58 : vector<8xf32> to vector<8x1xf32>
    %cst_54 = arith.constant 3.906250e-03 : f32
    %60 = vector.broadcast %cst_54 : f32 to vector<8x1xf32>
    %61 = arith.mulf %59, %60 : vector<8x1xf32>
    %62 = vector.broadcast %61 : vector<8x1xf32> to vector<8x324xf32>
    %63 = arith.subf %53, %62 : vector<8x324xf32>
    %64 = vector.broadcast %0 : vector<1x324xf32> to vector<8x324xf32>
    %65 = arith.mulf %63, %64 : vector<8x324xf32>
    %66 = arith.mulf %65, %65 : vector<8x324xf32>
    %cst_55 = arith.constant dense<0.000000e+00> : vector<8xf32>
    %67 = vector.multi_reduction <add>, %66, %cst_55 [1] : vector<8x324xf32> to vector<8xf32>
    %68 = vector.shape_cast %67 : vector<8xf32> to vector<8x1xf32>
    %cst_56 = arith.constant 3.906250e-03 : f32
    %69 = vector.broadcast %cst_56 : f32 to vector<8x1xf32>
    %70 = arith.mulf %68, %69 : vector<8x1xf32>
    %cst_57 = arith.constant 9.99999974E-6 : f32
    %71 = vector.broadcast %cst_57 : f32 to vector<8x1xf32>
    %72 = arith.addf %70, %71 : vector<8x1xf32>
    %73 = math.rsqrt %72 : vector<8x1xf32>
    %74 = vector.broadcast %73 : vector<8x1xf32> to vector<8x324xf32>
    %75 = arith.mulf %65, %74 : vector<8x324xf32>
    %76 = vector.broadcast %54 : vector<8x1xf32> to vector<8x324xf32>
    %77 = arith.mulf %75, %76 : vector<8x324xf32>
    %78 = vector.broadcast %55 : vector<8x1xf32> to vector<8x324xf32>
    %79 = arith.addf %77, %78 : vector<8x324xf32>
    %cst_58 = arith.constant 0.000000e+00 : f32
    %80 = vector.broadcast %cst_58 : f32 to vector<8x324xf32>
    %81 = arith.cmpf ogt, %79, %80 : vector<8x324xf32>
    %cst_59 = arith.constant 0.00999999977 : f32
    %82 = vector.broadcast %cst_59 : f32 to vector<8x324xf32>
    %83 = arith.mulf %82, %79 : vector<8x324xf32>
    %84 = arith.select %81, %79, %83 : vector<8x324xi1>, vector<8x324xf32>
    %85 = vector.broadcast %0 : vector<1x324xf32> to vector<8x324xf32>
    %86 = arith.mulf %84, %85 : vector<8x324xf32>
    %cst_60 = arith.constant 0.000000e+00 : bf16
    %87 = vector.broadcast %cst_60 : bf16 to vector<8x384xbf16>
    %c0_61 = arith.constant 0 : index
    %c0_62 = arith.constant 0 : index
    %88 = vector.load %arg7[%c0_61, %c0_62] : memref<8x384xbf16, #tpu.memory_space<vmem>>, vector<8x384xbf16>
    tpu.vector_store %arg7[%c0_61, %c0_62], %87 {strides = array<i32>} : memref<8x384xbf16, #tpu.memory_space<vmem>>, vector<8x384xbf16>,
    %89 = arith.truncf %86 : vector<8x324xf32> to vector<8x324xbf16>
    %c0_63 = arith.constant 0 : index
    %c19_64 = arith.constant 19 : index
    %90 = vector.load %arg7[%c0_63, %c19_64] : memref<8x384xbf16, #tpu.memory_space<vmem>>, vector<8x324xbf16>
    tpu.vector_store %arg7[%c0_63, %c19_64], %89 {strides = array<i32>} : memref<8x384xbf16, #tpu.memory_space<vmem>>, vector<8x324xbf16>,
    %c0_65 = arith.constant 0 : index
    %c0_66 = arith.constant 0 : index
    %c0_67 = arith.constant 0 : index
    %91 = vector.load %arg4[%c0_65, %c0_66, %c0_67] : memref<9x8x8xbf16, #tpu.memory_space<vmem>>, vector<1x8x8xbf16>
    %92 = vector.shape_cast %91 : vector<1x8x8xbf16> to vector<8x8xbf16>
    %c0_68 = arith.constant 0 : index
    %c0_69 = arith.constant 0 : index
    %93 = vector.load %arg7[%c0_68, %c0_69] : memref<8x384xbf16, #tpu.memory_space<vmem>>, vector<8x324xbf16>
    %cst_70 = arith.constant dense<0.000000e+00> : vector<8x324xf32>
    %94 = tpu.matmul %92, %93, %cst_70 {dimension_numbers = #tpu.dot_dimension_numbers<[1], [0], [0], [1], [0, 0, 1, 1], [], []>} : vector<8x8xbf16>, vector<8x324xbf16>, vector<8x324xf32> -> vector<8x324xf32>
    %c1_71 = arith.constant 1 : index
    %c0_72 = arith.constant 0 : index
    %c0_73 = arith.constant 0 : index
    %95 = vector.load %arg4[%c1_71, %c0_72, %c0_73] : memref<9x8x8xbf16, #tpu.memory_space<vmem>>, vector<1x8x8xbf16>
    %96 = vector.shape_cast %95 : vector<1x8x8xbf16> to vector<8x8xbf16>
    %c0_74 = arith.constant 0 : index
    %c1_75 = arith.constant 1 : index
    %97 = vector.load %arg7[%c0_74, %c1_75] : memref<8x384xbf16, #tpu.memory_space<vmem>>, vector<8x324xbf16>
    %cst_76 = arith.constant dense<0.000000e+00> : vector<8x324xf32>
    %98 = tpu.matmul %96, %97, %cst_76 {dimension_numbers = #tpu.dot_dimension_numbers<[1], [0], [0], [1], [0, 0, 1, 1], [], []>} : vector<8x8xbf16>, vector<8x324xbf16>, vector<8x324xf32> -> vector<8x324xf32>
    %99 = arith.addf %94, %98 : vector<8x324xf32>
    %c2_77 = arith.constant 2 : index
    %c0_78 = arith.constant 0 : index
    %c0_79 = arith.constant 0 : index
    %100 = vector.load %arg4[%c2_77, %c0_78, %c0_79] : memref<9x8x8xbf16, #tpu.memory_space<vmem>>, vector<1x8x8xbf16>
    %101 = vector.shape_cast %100 : vector<1x8x8xbf16> to vector<8x8xbf16>
    %c0_80 = arith.constant 0 : index
    %c2_81 = arith.constant 2 : index
    %102 = vector.load %arg7[%c0_80, %c2_81] : memref<8x384xbf16, #tpu.memory_space<vmem>>, vector<8x324xbf16>
    %cst_82 = arith.constant dense<0.000000e+00> : vector<8x324xf32>
    %103 = tpu.matmul %101, %102, %cst_82 {dimension_numbers = #tpu.dot_dimension_numbers<[1], [0], [0], [1], [0, 0, 1, 1], [], []>} : vector<8x8xbf16>, vector<8x324xbf16>, vector<8x324xf32> -> vector<8x324xf32>
    %104 = arith.addf %99, %103 : vector<8x324xf32>
    %c3_83 = arith.constant 3 : index
    %c0_84 = arith.constant 0 : index
    %c0_85 = arith.constant 0 : index
    %105 = vector.load %arg4[%c3_83, %c0_84, %c0_85] : memref<9x8x8xbf16, #tpu.memory_space<vmem>>, vector<1x8x8xbf16>
    %106 = vector.shape_cast %105 : vector<1x8x8xbf16> to vector<8x8xbf16>
    %c0_86 = arith.constant 0 : index
    %c18_87 = arith.constant 18 : index
    %107 = vector.load %arg7[%c0_86, %c18_87] : memref<8x384xbf16, #tpu.memory_space<vmem>>, vector<8x324xbf16>
    %cst_88 = arith.constant dense<0.000000e+00> : vector<8x324xf32>
    %108 = tpu.matmul %106, %107, %cst_88 {dimension_numbers = #tpu.dot_dimension_numbers<[1], [0], [0], [1], [0, 0, 1, 1], [], []>} : vector<8x8xbf16>, vector<8x324xbf16>, vector<8x324xf32> -> vector<8x324xf32>
    %109 = arith.addf %104, %108 : vector<8x324xf32>
    %c4_89 = arith.constant 4 : index
    %c0_90 = arith.constant 0 : index
    %c0_91 = arith.constant 0 : index
    %110 = vector.load %arg4[%c4_89, %c0_90, %c0_91] : memref<9x8x8xbf16, #tpu.memory_space<vmem>>, vector<1x8x8xbf16>
    %111 = vector.shape_cast %110 : vector<1x8x8xbf16> to vector<8x8xbf16>
    %c0_92 = arith.constant 0 : index
    %c19_93 = arith.constant 19 : index
    %112 = vector.load %arg7[%c0_92, %c19_93] : memref<8x384xbf16, #tpu.memory_space<vmem>>, vector<8x324xbf16>
    %cst_94 = arith.constant dense<0.000000e+00> : vector<8x324xf32>
    %113 = tpu.matmul %111, %112, %cst_94 {dimension_numbers = #tpu.dot_dimension_numbers<[1], [0], [0], [1], [0, 0, 1, 1], [], []>} : vector<8x8xbf16>, vector<8x324xbf16>, vector<8x324xf32> -> vector<8x324xf32>
    %114 = arith.addf %109, %113 : vector<8x324xf32>
    %c5_95 = arith.constant 5 : index
    %c0_96 = arith.constant 0 : index
    %c0_97 = arith.constant 0 : index
    %115 = vector.load %arg4[%c5_95, %c0_96, %c0_97] : memref<9x8x8xbf16, #tpu.memory_space<vmem>>, vector<1x8x8xbf16>
    %116 = vector.shape_cast %115 : vector<1x8x8xbf16> to vector<8x8xbf16>
    %c0_98 = arith.constant 0 : index
    %c20_99 = arith.constant 20 : index
    %117 = vector.load %arg7[%c0_98, %c20_99] : memref<8x384xbf16, #tpu.memory_space<vmem>>, vector<8x324xbf16>
    %cst_100 = arith.constant dense<0.000000e+00> : vector<8x324xf32>
    %118 = tpu.matmul %116, %117, %cst_100 {dimension_numbers = #tpu.dot_dimension_numbers<[1], [0], [0], [1], [0, 0, 1, 1], [], []>} : vector<8x8xbf16>, vector<8x324xbf16>, vector<8x324xf32> -> vector<8x324xf32>
    %119 = arith.addf %114, %118 : vector<8x324xf32>
    %c6_101 = arith.constant 6 : index
    %c0_102 = arith.constant 0 : index
    %c0_103 = arith.constant 0 : index
    %120 = vector.load %arg4[%c6_101, %c0_102, %c0_103] : memref<9x8x8xbf16, #tpu.memory_space<vmem>>, vector<1x8x8xbf16>
    %121 = vector.shape_cast %120 : vector<1x8x8xbf16> to vector<8x8xbf16>
    %c0_104 = arith.constant 0 : index
    %c36_105 = arith.constant 36 : index
    %122 = vector.load %arg7[%c0_104, %c36_105] : memref<8x384xbf16, #tpu.memory_space<vmem>>, vector<8x324xbf16>
    %cst_106 = arith.constant dense<0.000000e+00> : vector<8x324xf32>
    %123 = tpu.matmul %121, %122, %cst_106 {dimension_numbers = #tpu.dot_dimension_numbers<[1], [0], [0], [1], [0, 0, 1, 1], [], []>} : vector<8x8xbf16>, vector<8x324xbf16>, vector<8x324xf32> -> vector<8x324xf32>
    %124 = arith.addf %119, %123 : vector<8x324xf32>
    %c7_107 = arith.constant 7 : index
    %c0_108 = arith.constant 0 : index
    %c0_109 = arith.constant 0 : index
    %125 = vector.load %arg4[%c7_107, %c0_108, %c0_109] : memref<9x8x8xbf16, #tpu.memory_space<vmem>>, vector<1x8x8xbf16>
    %126 = vector.shape_cast %125 : vector<1x8x8xbf16> to vector<8x8xbf16>
    %c0_110 = arith.constant 0 : index
    %c37_111 = arith.constant 37 : index
    %127 = vector.load %arg7[%c0_110, %c37_111] : memref<8x384xbf16, #tpu.memory_space<vmem>>, vector<8x324xbf16>
    %cst_112 = arith.constant dense<0.000000e+00> : vector<8x324xf32>
    %128 = tpu.matmul %126, %127, %cst_112 {dimension_numbers = #tpu.dot_dimension_numbers<[1], [0], [0], [1], [0, 0, 1, 1], [], []>} : vector<8x8xbf16>, vector<8x324xbf16>, vector<8x324xf32> -> vector<8x324xf32>
    %129 = arith.addf %124, %128 : vector<8x324xf32>
    %c8_113 = arith.constant 8 : index
    %c0_114 = arith.constant 0 : index
    %c0_115 = arith.constant 0 : index
    %130 = vector.load %arg4[%c8_113, %c0_114, %c0_115] : memref<9x8x8xbf16, #tpu.memory_space<vmem>>, vector<1x8x8xbf16>
    %131 = vector.shape_cast %130 : vector<1x8x8xbf16> to vector<8x8xbf16>
    %c0_116 = arith.constant 0 : index
    %c38_117 = arith.constant 38 : index
    %132 = vector.load %arg7[%c0_116, %c38_117] : memref<8x384xbf16, #tpu.memory_space<vmem>>, vector<8x324xbf16>
    %cst_118 = arith.constant dense<0.000000e+00> : vector<8x324xf32>
    %133 = tpu.matmul %131, %132, %cst_118 {dimension_numbers = #tpu.dot_dimension_numbers<[1], [0], [0], [1], [0, 0, 1, 1], [], []>} : vector<8x8xbf16>, vector<8x324xbf16>, vector<8x324xf32> -> vector<8x324xf32>
    %134 = arith.addf %129, %133 : vector<8x324xf32>
    %c0_119 = arith.constant 0 : index
    %c2_120 = arith.constant 2 : index
    %135 = vector.load %arg3[%c0_119, %c2_120] : memref<8x4xf32, #tpu.memory_space<vmem>>, vector<8x1xf32>
    %c0_121 = arith.constant 0 : index
    %c3_122 = arith.constant 3 : index
    %136 = vector.load %arg3[%c0_121, %c3_122] : memref<8x4xf32, #tpu.memory_space<vmem>>, vector<8x1xf32>
    %137 = vector.broadcast %0 : vector<1x324xf32> to vector<8x324xf32>
    %138 = arith.mulf %134, %137 : vector<8x324xf32>
    %cst_123 = arith.constant dense<0.000000e+00> : vector<8xf32>
    %139 = vector.multi_reduction <add>, %138, %cst_123 [1] : vector<8x324xf32> to vector<8xf32>
    %140 = vector.shape_cast %139 : vector<8xf32> to vector<8x1xf32>
    %cst_124 = arith.constant 3.906250e-03 : f32
    %141 = vector.broadcast %cst_124 : f32 to vector<8x1xf32>
    %142 = arith.mulf %140, %141 : vector<8x1xf32>
    %143 = vector.broadcast %142 : vector<8x1xf32> to vector<8x324xf32>
    %144 = arith.subf %134, %143 : vector<8x324xf32>
    %145 = vector.broadcast %0 : vector<1x324xf32> to vector<8x324xf32>
    %146 = arith.mulf %144, %145 : vector<8x324xf32>
    %147 = arith.mulf %146, %146 : vector<8x324xf32>
    %cst_125 = arith.constant dense<0.000000e+00> : vector<8xf32>
    %148 = vector.multi_reduction <add>, %147, %cst_125 [1] : vector<8x324xf32> to vector<8xf32>
    %149 = vector.shape_cast %148 : vector<8xf32> to vector<8x1xf32>
    %cst_126 = arith.constant 3.906250e-03 : f32
    %150 = vector.broadcast %cst_126 : f32 to vector<8x1xf32>
    %151 = arith.mulf %149, %150 : vector<8x1xf32>
    %cst_127 = arith.constant 9.99999974E-6 : f32
    %152 = vector.broadcast %cst_127 : f32 to vector<8x1xf32>
    %153 = arith.addf %151, %152 : vector<8x1xf32>
    %154 = math.rsqrt %153 : vector<8x1xf32>
    %155 = vector.broadcast %154 : vector<8x1xf32> to vector<8x324xf32>
    %156 = arith.mulf %146, %155 : vector<8x324xf32>
    %157 = vector.broadcast %135 : vector<8x1xf32> to vector<8x324xf32>
    %158 = arith.mulf %156, %157 : vector<8x324xf32>
    %159 = vector.broadcast %136 : vector<8x1xf32> to vector<8x324xf32>
    %160 = arith.addf %158, %159 : vector<8x324xf32>
    %cst_128 = arith.constant 0.000000e+00 : f32
    %161 = vector.broadcast %cst_128 : f32 to vector<8x324xf32>
    %162 = arith.cmpf ogt, %160, %161 : vector<8x324xf32>
    %cst_129 = arith.constant 0.00999999977 : f32
    %163 = vector.broadcast %cst_129 : f32 to vector<8x324xf32>
    %164 = arith.mulf %163, %160 : vector<8x324xf32>
    %165 = arith.select %162, %160, %164 : vector<8x324xi1>, vector<8x324xf32>
    %166 = vector.broadcast %0 : vector<1x324xf32> to vector<8x324xf32>
    %167 = arith.mulf %165, %166 : vector<8x324xf32>
    %cst_130 = arith.constant 0.000000e+00 : bf16
    %168 = vector.broadcast %cst_130 : bf16 to vector<1x8x384xbf16>
    %c0_131 = arith.constant 0 : index
    %c0_132 = arith.constant 0 : index
    %c0_133 = arith.constant 0 : index
    %169 = vector.load %arg6[%c0_131, %c0_132, %c0_133] : memref<1x8x384xbf16, #tpu.memory_space<vmem>>, vector<1x8x384xbf16>
    tpu.vector_store %arg6[%c0_131, %c0_132, %c0_133], %168 {strides = array<i32>} : memref<1x8x384xbf16, #tpu.memory_space<vmem>>, vector<1x8x384xbf16>,
    %170 = arith.truncf %167 : vector<8x324xf32> to vector<8x324xbf16>
    %c0_134 = arith.constant 0 : index
    %c0_135 = arith.constant 0 : index
    %c19_136 = arith.constant 19 : index
    %171 = vector.load %arg6[%c0_134, %c0_135, %c19_136] : memref<1x8x384xbf16, #tpu.memory_space<vmem>>, vector<1x8x324xbf16>
    %172 = vector.shape_cast %171 : vector<1x8x324xbf16> to vector<8x324xbf16>
    %173 = vector.shape_cast %170 : vector<8x324xbf16> to vector<1x8x324xbf16>
    tpu.vector_store %arg6[%c0_134, %c0_135, %c19_136], %173 {strides = array<i32>} : memref<1x8x384xbf16, #tpu.memory_space<vmem>>, vector<1x8x324xbf16>,
    return
  }
  func.func @transform_0(%arg0: i32) -> (i32, i32, i32) {
    %c0_i32 = arith.constant 0 : i32
    %c0_i32_0 = arith.constant 0 : i32
    %c0_i32_1 = arith.constant 0 : i32
    return %arg0, %c0_i32, %c0_i32_0 : i32, i32, i32
  }
  func.func @transform_1(%arg0: i32) -> (i32, i32, i32) {
    %c0_i32 = arith.constant 0 : i32
    %c0_i32_0 = arith.constant 0 : i32
    %c0_i32_1 = arith.constant 0 : i32
    %c0_i32_2 = arith.constant 0 : i32
    return %c0_i32, %c0_i32_0, %c0_i32_1 : i32, i32, i32
  }
  func.func @transform_2(%arg0: i32) -> (i32, i32) {
    %c0_i32 = arith.constant 0 : i32
    %c0_i32_0 = arith.constant 0 : i32
    %c0_i32_1 = arith.constant 0 : i32
    return %c0_i32, %c0_i32_0 : i32, i32
  }
  func.func @transform_3(%arg0: i32) -> (i32, i32, i32) {
    %c0_i32 = arith.constant 0 : i32
    %c0_i32_0 = arith.constant 0 : i32
    %c0_i32_1 = arith.constant 0 : i32
    %c0_i32_2 = arith.constant 0 : i32
    return %c0_i32, %c0_i32_0, %c0_i32_1 : i32, i32, i32
  }
  func.func @transform_4(%arg0: i32) -> (i32, i32) {
    %c0_i32 = arith.constant 0 : i32
    %c0_i32_0 = arith.constant 0 : i32
    %c0_i32_1 = arith.constant 0 : i32
    return %c0_i32, %c0_i32_0 : i32, i32
  }
  func.func @transform_5(%arg0: i32) -> (i32, i32, i32) {
    %c0_i32 = arith.constant 0 : i32
    %c0_i32_0 = arith.constant 0 : i32
    %c0_i32_1 = arith.constant 0 : i32
    return %arg0, %c0_i32, %c0_i32_0 : i32, i32, i32
  }
}

module attributes {stable_mosaic.version = 11 : i64} {
  func.func @kernel(%arg0: i32, %arg1: memref<1x8x384xbf16, #tpu.memory_space<vmem>>, %arg2: memref<9x16x8xbf16, #tpu.memory_space<vmem>>, %arg3: memref<324x100xf32, #tpu.memory_space<vmem>>, %arg4: memref<16x4xf32, #tpu.memory_space<vmem>>, %arg5: memref<9x16x16xbf16, #tpu.memory_space<vmem>>, %arg6: memref<1x100xf32, #tpu.memory_space<vmem>>, %arg7: memref<1x16x128xbf16, #tpu.memory_space<vmem>>, %arg8: memref<16x128xbf16, #tpu.memory_space<vmem>>) attributes {dimension_semantics = [#tpu.dimension_semantics<parallel>], iteration_bounds = array<i64: 2>, scalar_prefetch = 0 : i64, scratch_operands = 1 : i64, tpu.core_type = #tpu.core_type<tc>, window_params = [{transform_indices = @transform_0, window_bounds = array<i64: 1, 8, 384>}, {pipeline_mode = #tpu.pipeline_mode<synchronous>, transform_indices = @transform_1, window_bounds = array<i64: 9, 16, 8>}, {pipeline_mode = #tpu.pipeline_mode<synchronous>, transform_indices = @transform_2, window_bounds = array<i64: 324, 100>}, {pipeline_mode = #tpu.pipeline_mode<synchronous>, transform_indices = @transform_3, window_bounds = array<i64: 16, 4>}, {pipeline_mode = #tpu.pipeline_mode<synchronous>, transform_indices = @transform_4, window_bounds = array<i64: 9, 16, 16>}, {pipeline_mode = #tpu.pipeline_mode<synchronous>, transform_indices = @transform_5, window_bounds = array<i64: 1, 100>}, {transform_indices = @transform_6, window_bounds = array<i64: 1, 16, 128>}]} {
    %c0 = arith.constant 0 : index
    %c0_0 = arith.constant 0 : index
    %0 = vector.load %arg6[%c0, %c0_0] : memref<1x100xf32, #tpu.memory_space<vmem>>, vector<1x100xf32>
    %c0_1 = arith.constant 0 : index
    %c0_2 = arith.constant 0 : index
    %c0_3 = arith.constant 0 : index
    %1 = vector.load %arg2[%c0_1, %c0_2, %c0_3] : memref<9x16x8xbf16, #tpu.memory_space<vmem>>, vector<1x16x8xbf16>
    %2 = vector.shape_cast %1 : vector<1x16x8xbf16> to vector<16x8xbf16>
    %c0_4 = arith.constant 0 : index
    %c0_5 = arith.constant 0 : index
    %c0_6 = arith.constant 0 : index
    %3 = vector.load %arg1[%c0_4, %c0_5, %c0_6] : memref<1x8x384xbf16, #tpu.memory_space<vmem>>, vector<1x8x324xbf16>
    %4 = vector.shape_cast %3 : vector<1x8x324xbf16> to vector<8x324xbf16>
    %cst = arith.constant dense<0.000000e+00> : vector<16x324xf32>
    %5 = tpu.matmul %2, %4, %cst {dimension_numbers = #tpu.dot_dimension_numbers<[1], [0], [0], [1], [0, 0, 1, 1], [], []>} : vector<16x8xbf16>, vector<8x324xbf16>, vector<16x324xf32> -> vector<16x324xf32>
    %c1 = arith.constant 1 : index
    %c0_7 = arith.constant 0 : index
    %c0_8 = arith.constant 0 : index
    %6 = vector.load %arg2[%c1, %c0_7, %c0_8] : memref<9x16x8xbf16, #tpu.memory_space<vmem>>, vector<1x16x8xbf16>
    %7 = vector.shape_cast %6 : vector<1x16x8xbf16> to vector<16x8xbf16>
    %c0_9 = arith.constant 0 : index
    %c0_10 = arith.constant 0 : index
    %c1_11 = arith.constant 1 : index
    %8 = vector.load %arg1[%c0_9, %c0_10, %c1_11] : memref<1x8x384xbf16, #tpu.memory_space<vmem>>, vector<1x8x324xbf16>
    %9 = vector.shape_cast %8 : vector<1x8x324xbf16> to vector<8x324xbf16>
    %cst_12 = arith.constant dense<0.000000e+00> : vector<16x324xf32>
    %10 = tpu.matmul %7, %9, %cst_12 {dimension_numbers = #tpu.dot_dimension_numbers<[1], [0], [0], [1], [0, 0, 1, 1], [], []>} : vector<16x8xbf16>, vector<8x324xbf16>, vector<16x324xf32> -> vector<16x324xf32>
    %11 = arith.addf %5, %10 : vector<16x324xf32>
    %c2 = arith.constant 2 : index
    %c0_13 = arith.constant 0 : index
    %c0_14 = arith.constant 0 : index
    %12 = vector.load %arg2[%c2, %c0_13, %c0_14] : memref<9x16x8xbf16, #tpu.memory_space<vmem>>, vector<1x16x8xbf16>
    %13 = vector.shape_cast %12 : vector<1x16x8xbf16> to vector<16x8xbf16>
    %c0_15 = arith.constant 0 : index
    %c0_16 = arith.constant 0 : index
    %c2_17 = arith.constant 2 : index
    %14 = vector.load %arg1[%c0_15, %c0_16, %c2_17] : memref<1x8x384xbf16, #tpu.memory_space<vmem>>, vector<1x8x324xbf16>
    %15 = vector.shape_cast %14 : vector<1x8x324xbf16> to vector<8x324xbf16>
    %cst_18 = arith.constant dense<0.000000e+00> : vector<16x324xf32>
    %16 = tpu.matmul %13, %15, %cst_18 {dimension_numbers = #tpu.dot_dimension_numbers<[1], [0], [0], [1], [0, 0, 1, 1], [], []>} : vector<16x8xbf16>, vector<8x324xbf16>, vector<16x324xf32> -> vector<16x324xf32>
    %17 = arith.addf %11, %16 : vector<16x324xf32>
    %c3 = arith.constant 3 : index
    %c0_19 = arith.constant 0 : index
    %c0_20 = arith.constant 0 : index
    %18 = vector.load %arg2[%c3, %c0_19, %c0_20] : memref<9x16x8xbf16, #tpu.memory_space<vmem>>, vector<1x16x8xbf16>
    %19 = vector.shape_cast %18 : vector<1x16x8xbf16> to vector<16x8xbf16>
    %c0_21 = arith.constant 0 : index
    %c0_22 = arith.constant 0 : index
    %c18 = arith.constant 18 : index
    %20 = vector.load %arg1[%c0_21, %c0_22, %c18] : memref<1x8x384xbf16, #tpu.memory_space<vmem>>, vector<1x8x324xbf16>
    %21 = vector.shape_cast %20 : vector<1x8x324xbf16> to vector<8x324xbf16>
    %cst_23 = arith.constant dense<0.000000e+00> : vector<16x324xf32>
    %22 = tpu.matmul %19, %21, %cst_23 {dimension_numbers = #tpu.dot_dimension_numbers<[1], [0], [0], [1], [0, 0, 1, 1], [], []>} : vector<16x8xbf16>, vector<8x324xbf16>, vector<16x324xf32> -> vector<16x324xf32>
    %23 = arith.addf %17, %22 : vector<16x324xf32>
    %c4 = arith.constant 4 : index
    %c0_24 = arith.constant 0 : index
    %c0_25 = arith.constant 0 : index
    %24 = vector.load %arg2[%c4, %c0_24, %c0_25] : memref<9x16x8xbf16, #tpu.memory_space<vmem>>, vector<1x16x8xbf16>
    %25 = vector.shape_cast %24 : vector<1x16x8xbf16> to vector<16x8xbf16>
    %c0_26 = arith.constant 0 : index
    %c0_27 = arith.constant 0 : index
    %c19 = arith.constant 19 : index
    %26 = vector.load %arg1[%c0_26, %c0_27, %c19] : memref<1x8x384xbf16, #tpu.memory_space<vmem>>, vector<1x8x324xbf16>
    %27 = vector.shape_cast %26 : vector<1x8x324xbf16> to vector<8x324xbf16>
    %cst_28 = arith.constant dense<0.000000e+00> : vector<16x324xf32>
    %28 = tpu.matmul %25, %27, %cst_28 {dimension_numbers = #tpu.dot_dimension_numbers<[1], [0], [0], [1], [0, 0, 1, 1], [], []>} : vector<16x8xbf16>, vector<8x324xbf16>, vector<16x324xf32> -> vector<16x324xf32>
    %29 = arith.addf %23, %28 : vector<16x324xf32>
    %c5 = arith.constant 5 : index
    %c0_29 = arith.constant 0 : index
    %c0_30 = arith.constant 0 : index
    %30 = vector.load %arg2[%c5, %c0_29, %c0_30] : memref<9x16x8xbf16, #tpu.memory_space<vmem>>, vector<1x16x8xbf16>
    %31 = vector.shape_cast %30 : vector<1x16x8xbf16> to vector<16x8xbf16>
    %c0_31 = arith.constant 0 : index
    %c0_32 = arith.constant 0 : index
    %c20 = arith.constant 20 : index
    %32 = vector.load %arg1[%c0_31, %c0_32, %c20] : memref<1x8x384xbf16, #tpu.memory_space<vmem>>, vector<1x8x324xbf16>
    %33 = vector.shape_cast %32 : vector<1x8x324xbf16> to vector<8x324xbf16>
    %cst_33 = arith.constant dense<0.000000e+00> : vector<16x324xf32>
    %34 = tpu.matmul %31, %33, %cst_33 {dimension_numbers = #tpu.dot_dimension_numbers<[1], [0], [0], [1], [0, 0, 1, 1], [], []>} : vector<16x8xbf16>, vector<8x324xbf16>, vector<16x324xf32> -> vector<16x324xf32>
    %35 = arith.addf %29, %34 : vector<16x324xf32>
    %c6 = arith.constant 6 : index
    %c0_34 = arith.constant 0 : index
    %c0_35 = arith.constant 0 : index
    %36 = vector.load %arg2[%c6, %c0_34, %c0_35] : memref<9x16x8xbf16, #tpu.memory_space<vmem>>, vector<1x16x8xbf16>
    %37 = vector.shape_cast %36 : vector<1x16x8xbf16> to vector<16x8xbf16>
    %c0_36 = arith.constant 0 : index
    %c0_37 = arith.constant 0 : index
    %c36 = arith.constant 36 : index
    %38 = vector.load %arg1[%c0_36, %c0_37, %c36] : memref<1x8x384xbf16, #tpu.memory_space<vmem>>, vector<1x8x324xbf16>
    %39 = vector.shape_cast %38 : vector<1x8x324xbf16> to vector<8x324xbf16>
    %cst_38 = arith.constant dense<0.000000e+00> : vector<16x324xf32>
    %40 = tpu.matmul %37, %39, %cst_38 {dimension_numbers = #tpu.dot_dimension_numbers<[1], [0], [0], [1], [0, 0, 1, 1], [], []>} : vector<16x8xbf16>, vector<8x324xbf16>, vector<16x324xf32> -> vector<16x324xf32>
    %41 = arith.addf %35, %40 : vector<16x324xf32>
    %c7 = arith.constant 7 : index
    %c0_39 = arith.constant 0 : index
    %c0_40 = arith.constant 0 : index
    %42 = vector.load %arg2[%c7, %c0_39, %c0_40] : memref<9x16x8xbf16, #tpu.memory_space<vmem>>, vector<1x16x8xbf16>
    %43 = vector.shape_cast %42 : vector<1x16x8xbf16> to vector<16x8xbf16>
    %c0_41 = arith.constant 0 : index
    %c0_42 = arith.constant 0 : index
    %c37 = arith.constant 37 : index
    %44 = vector.load %arg1[%c0_41, %c0_42, %c37] : memref<1x8x384xbf16, #tpu.memory_space<vmem>>, vector<1x8x324xbf16>
    %45 = vector.shape_cast %44 : vector<1x8x324xbf16> to vector<8x324xbf16>
    %cst_43 = arith.constant dense<0.000000e+00> : vector<16x324xf32>
    %46 = tpu.matmul %43, %45, %cst_43 {dimension_numbers = #tpu.dot_dimension_numbers<[1], [0], [0], [1], [0, 0, 1, 1], [], []>} : vector<16x8xbf16>, vector<8x324xbf16>, vector<16x324xf32> -> vector<16x324xf32>
    %47 = arith.addf %41, %46 : vector<16x324xf32>
    %c8 = arith.constant 8 : index
    %c0_44 = arith.constant 0 : index
    %c0_45 = arith.constant 0 : index
    %48 = vector.load %arg2[%c8, %c0_44, %c0_45] : memref<9x16x8xbf16, #tpu.memory_space<vmem>>, vector<1x16x8xbf16>
    %49 = vector.shape_cast %48 : vector<1x16x8xbf16> to vector<16x8xbf16>
    %c0_46 = arith.constant 0 : index
    %c0_47 = arith.constant 0 : index
    %c38 = arith.constant 38 : index
    %50 = vector.load %arg1[%c0_46, %c0_47, %c38] : memref<1x8x384xbf16, #tpu.memory_space<vmem>>, vector<1x8x324xbf16>
    %51 = vector.shape_cast %50 : vector<1x8x324xbf16> to vector<8x324xbf16>
    %cst_48 = arith.constant dense<0.000000e+00> : vector<16x324xf32>
    %52 = tpu.matmul %49, %51, %cst_48 {dimension_numbers = #tpu.dot_dimension_numbers<[1], [0], [0], [1], [0, 0, 1, 1], [], []>} : vector<16x8xbf16>, vector<8x324xbf16>, vector<16x324xf32> -> vector<16x324xf32>
    %53 = arith.addf %47, %52 : vector<16x324xf32>
    %c0_49 = arith.constant 0 : index
    %c0_50 = arith.constant 0 : index
    %54 = vector.load %arg3[%c0_49, %c0_50] : memref<324x100xf32, #tpu.memory_space<vmem>>, vector<324x100xf32>
    %cst_51 = arith.constant dense<0.000000e+00> : vector<16x100xf32>
    %55 = tpu.matmul %53, %54, %cst_51 {dimension_numbers = #tpu.dot_dimension_numbers<[1], [0], [0], [1], [0, 0, 1, 1], [], []>} : vector<16x324xf32>, vector<324x100xf32>, vector<16x100xf32> -> vector<16x100xf32>
    %c0_52 = arith.constant 0 : index
    %c0_53 = arith.constant 0 : index
    %56 = vector.load %arg4[%c0_52, %c0_53] : memref<16x4xf32, #tpu.memory_space<vmem>>, vector<16x1xf32>
    %c0_54 = arith.constant 0 : index
    %c1_55 = arith.constant 1 : index
    %57 = vector.load %arg4[%c0_54, %c1_55] : memref<16x4xf32, #tpu.memory_space<vmem>>, vector<16x1xf32>
    %58 = vector.broadcast %0 : vector<1x100xf32> to vector<16x100xf32>
    %59 = arith.mulf %55, %58 : vector<16x100xf32>
    %cst_56 = arith.constant dense<0.000000e+00> : vector<16xf32>
    %60 = vector.multi_reduction <add>, %59, %cst_56 [1] : vector<16x100xf32> to vector<16xf32>
    %61 = vector.shape_cast %60 : vector<16xf32> to vector<16x1xf32>
    %cst_57 = arith.constant 1.562500e-02 : f32
    %62 = vector.broadcast %cst_57 : f32 to vector<16x1xf32>
    %63 = arith.mulf %61, %62 : vector<16x1xf32>
    %64 = vector.broadcast %63 : vector<16x1xf32> to vector<16x100xf32>
    %65 = arith.subf %55, %64 : vector<16x100xf32>
    %66 = vector.broadcast %0 : vector<1x100xf32> to vector<16x100xf32>
    %67 = arith.mulf %65, %66 : vector<16x100xf32>
    %68 = arith.mulf %67, %67 : vector<16x100xf32>
    %cst_58 = arith.constant dense<0.000000e+00> : vector<16xf32>
    %69 = vector.multi_reduction <add>, %68, %cst_58 [1] : vector<16x100xf32> to vector<16xf32>
    %70 = vector.shape_cast %69 : vector<16xf32> to vector<16x1xf32>
    %cst_59 = arith.constant 1.562500e-02 : f32
    %71 = vector.broadcast %cst_59 : f32 to vector<16x1xf32>
    %72 = arith.mulf %70, %71 : vector<16x1xf32>
    %cst_60 = arith.constant 9.99999974E-6 : f32
    %73 = vector.broadcast %cst_60 : f32 to vector<16x1xf32>
    %74 = arith.addf %72, %73 : vector<16x1xf32>
    %75 = math.rsqrt %74 : vector<16x1xf32>
    %76 = vector.broadcast %75 : vector<16x1xf32> to vector<16x100xf32>
    %77 = arith.mulf %67, %76 : vector<16x100xf32>
    %78 = vector.broadcast %56 : vector<16x1xf32> to vector<16x100xf32>
    %79 = arith.mulf %77, %78 : vector<16x100xf32>
    %80 = vector.broadcast %57 : vector<16x1xf32> to vector<16x100xf32>
    %81 = arith.addf %79, %80 : vector<16x100xf32>
    %cst_61 = arith.constant 0.000000e+00 : f32
    %82 = vector.broadcast %cst_61 : f32 to vector<16x100xf32>
    %83 = arith.cmpf ogt, %81, %82 : vector<16x100xf32>
    %cst_62 = arith.constant 0.00999999977 : f32
    %84 = vector.broadcast %cst_62 : f32 to vector<16x100xf32>
    %85 = arith.mulf %84, %81 : vector<16x100xf32>
    %86 = arith.select %83, %81, %85 : vector<16x100xi1>, vector<16x100xf32>
    %87 = vector.broadcast %0 : vector<1x100xf32> to vector<16x100xf32>
    %88 = arith.mulf %86, %87 : vector<16x100xf32>
    %cst_63 = arith.constant 0.000000e+00 : bf16
    %89 = vector.broadcast %cst_63 : bf16 to vector<16x128xbf16>
    %c0_64 = arith.constant 0 : index
    %c0_65 = arith.constant 0 : index
    %90 = vector.load %arg8[%c0_64, %c0_65] : memref<16x128xbf16, #tpu.memory_space<vmem>>, vector<16x128xbf16>
    tpu.vector_store %arg8[%c0_64, %c0_65], %89 {strides = array<i32>} : memref<16x128xbf16, #tpu.memory_space<vmem>>, vector<16x128xbf16>,
    %91 = arith.truncf %88 : vector<16x100xf32> to vector<16x100xbf16>
    %c0_66 = arith.constant 0 : index
    %c11 = arith.constant 11 : index
    %92 = vector.load %arg8[%c0_66, %c11] : memref<16x128xbf16, #tpu.memory_space<vmem>>, vector<16x100xbf16>
    tpu.vector_store %arg8[%c0_66, %c11], %91 {strides = array<i32>} : memref<16x128xbf16, #tpu.memory_space<vmem>>, vector<16x100xbf16>,
    %c0_67 = arith.constant 0 : index
    %c0_68 = arith.constant 0 : index
    %c0_69 = arith.constant 0 : index
    %93 = vector.load %arg5[%c0_67, %c0_68, %c0_69] : memref<9x16x16xbf16, #tpu.memory_space<vmem>>, vector<1x16x16xbf16>
    %94 = vector.shape_cast %93 : vector<1x16x16xbf16> to vector<16x16xbf16>
    %c0_70 = arith.constant 0 : index
    %c0_71 = arith.constant 0 : index
    %95 = vector.load %arg8[%c0_70, %c0_71] : memref<16x128xbf16, #tpu.memory_space<vmem>>, vector<16x100xbf16>
    %cst_72 = arith.constant dense<0.000000e+00> : vector<16x100xf32>
    %96 = tpu.matmul %94, %95, %cst_72 {dimension_numbers = #tpu.dot_dimension_numbers<[1], [0], [0], [1], [0, 0, 1, 1], [], []>} : vector<16x16xbf16>, vector<16x100xbf16>, vector<16x100xf32> -> vector<16x100xf32>
    %c1_73 = arith.constant 1 : index
    %c0_74 = arith.constant 0 : index
    %c0_75 = arith.constant 0 : index
    %97 = vector.load %arg5[%c1_73, %c0_74, %c0_75] : memref<9x16x16xbf16, #tpu.memory_space<vmem>>, vector<1x16x16xbf16>
    %98 = vector.shape_cast %97 : vector<1x16x16xbf16> to vector<16x16xbf16>
    %c0_76 = arith.constant 0 : index
    %c1_77 = arith.constant 1 : index
    %99 = vector.load %arg8[%c0_76, %c1_77] : memref<16x128xbf16, #tpu.memory_space<vmem>>, vector<16x100xbf16>
    %cst_78 = arith.constant dense<0.000000e+00> : vector<16x100xf32>
    %100 = tpu.matmul %98, %99, %cst_78 {dimension_numbers = #tpu.dot_dimension_numbers<[1], [0], [0], [1], [0, 0, 1, 1], [], []>} : vector<16x16xbf16>, vector<16x100xbf16>, vector<16x100xf32> -> vector<16x100xf32>
    %101 = arith.addf %96, %100 : vector<16x100xf32>
    %c2_79 = arith.constant 2 : index
    %c0_80 = arith.constant 0 : index
    %c0_81 = arith.constant 0 : index
    %102 = vector.load %arg5[%c2_79, %c0_80, %c0_81] : memref<9x16x16xbf16, #tpu.memory_space<vmem>>, vector<1x16x16xbf16>
    %103 = vector.shape_cast %102 : vector<1x16x16xbf16> to vector<16x16xbf16>
    %c0_82 = arith.constant 0 : index
    %c2_83 = arith.constant 2 : index
    %104 = vector.load %arg8[%c0_82, %c2_83] : memref<16x128xbf16, #tpu.memory_space<vmem>>, vector<16x100xbf16>
    %cst_84 = arith.constant dense<0.000000e+00> : vector<16x100xf32>
    %105 = tpu.matmul %103, %104, %cst_84 {dimension_numbers = #tpu.dot_dimension_numbers<[1], [0], [0], [1], [0, 0, 1, 1], [], []>} : vector<16x16xbf16>, vector<16x100xbf16>, vector<16x100xf32> -> vector<16x100xf32>
    %106 = arith.addf %101, %105 : vector<16x100xf32>
    %c3_85 = arith.constant 3 : index
    %c0_86 = arith.constant 0 : index
    %c0_87 = arith.constant 0 : index
    %107 = vector.load %arg5[%c3_85, %c0_86, %c0_87] : memref<9x16x16xbf16, #tpu.memory_space<vmem>>, vector<1x16x16xbf16>
    %108 = vector.shape_cast %107 : vector<1x16x16xbf16> to vector<16x16xbf16>
    %c0_88 = arith.constant 0 : index
    %c10 = arith.constant 10 : index
    %109 = vector.load %arg8[%c0_88, %c10] : memref<16x128xbf16, #tpu.memory_space<vmem>>, vector<16x100xbf16>
    %cst_89 = arith.constant dense<0.000000e+00> : vector<16x100xf32>
    %110 = tpu.matmul %108, %109, %cst_89 {dimension_numbers = #tpu.dot_dimension_numbers<[1], [0], [0], [1], [0, 0, 1, 1], [], []>} : vector<16x16xbf16>, vector<16x100xbf16>, vector<16x100xf32> -> vector<16x100xf32>
    %111 = arith.addf %106, %110 : vector<16x100xf32>
    %c4_90 = arith.constant 4 : index
    %c0_91 = arith.constant 0 : index
    %c0_92 = arith.constant 0 : index
    %112 = vector.load %arg5[%c4_90, %c0_91, %c0_92] : memref<9x16x16xbf16, #tpu.memory_space<vmem>>, vector<1x16x16xbf16>
    %113 = vector.shape_cast %112 : vector<1x16x16xbf16> to vector<16x16xbf16>
    %c0_93 = arith.constant 0 : index
    %c11_94 = arith.constant 11 : index
    %114 = vector.load %arg8[%c0_93, %c11_94] : memref<16x128xbf16, #tpu.memory_space<vmem>>, vector<16x100xbf16>
    %cst_95 = arith.constant dense<0.000000e+00> : vector<16x100xf32>
    %115 = tpu.matmul %113, %114, %cst_95 {dimension_numbers = #tpu.dot_dimension_numbers<[1], [0], [0], [1], [0, 0, 1, 1], [], []>} : vector<16x16xbf16>, vector<16x100xbf16>, vector<16x100xf32> -> vector<16x100xf32>
    %116 = arith.addf %111, %115 : vector<16x100xf32>
    %c5_96 = arith.constant 5 : index
    %c0_97 = arith.constant 0 : index
    %c0_98 = arith.constant 0 : index
    %117 = vector.load %arg5[%c5_96, %c0_97, %c0_98] : memref<9x16x16xbf16, #tpu.memory_space<vmem>>, vector<1x16x16xbf16>
    %118 = vector.shape_cast %117 : vector<1x16x16xbf16> to vector<16x16xbf16>
    %c0_99 = arith.constant 0 : index
    %c12 = arith.constant 12 : index
    %119 = vector.load %arg8[%c0_99, %c12] : memref<16x128xbf16, #tpu.memory_space<vmem>>, vector<16x100xbf16>
    %cst_100 = arith.constant dense<0.000000e+00> : vector<16x100xf32>
    %120 = tpu.matmul %118, %119, %cst_100 {dimension_numbers = #tpu.dot_dimension_numbers<[1], [0], [0], [1], [0, 0, 1, 1], [], []>} : vector<16x16xbf16>, vector<16x100xbf16>, vector<16x100xf32> -> vector<16x100xf32>
    %121 = arith.addf %116, %120 : vector<16x100xf32>
    %c6_101 = arith.constant 6 : index
    %c0_102 = arith.constant 0 : index
    %c0_103 = arith.constant 0 : index
    %122 = vector.load %arg5[%c6_101, %c0_102, %c0_103] : memref<9x16x16xbf16, #tpu.memory_space<vmem>>, vector<1x16x16xbf16>
    %123 = vector.shape_cast %122 : vector<1x16x16xbf16> to vector<16x16xbf16>
    %c0_104 = arith.constant 0 : index
    %c20_105 = arith.constant 20 : index
    %124 = vector.load %arg8[%c0_104, %c20_105] : memref<16x128xbf16, #tpu.memory_space<vmem>>, vector<16x100xbf16>
    %cst_106 = arith.constant dense<0.000000e+00> : vector<16x100xf32>
    %125 = tpu.matmul %123, %124, %cst_106 {dimension_numbers = #tpu.dot_dimension_numbers<[1], [0], [0], [1], [0, 0, 1, 1], [], []>} : vector<16x16xbf16>, vector<16x100xbf16>, vector<16x100xf32> -> vector<16x100xf32>
    %126 = arith.addf %121, %125 : vector<16x100xf32>
    %c7_107 = arith.constant 7 : index
    %c0_108 = arith.constant 0 : index
    %c0_109 = arith.constant 0 : index
    %127 = vector.load %arg5[%c7_107, %c0_108, %c0_109] : memref<9x16x16xbf16, #tpu.memory_space<vmem>>, vector<1x16x16xbf16>
    %128 = vector.shape_cast %127 : vector<1x16x16xbf16> to vector<16x16xbf16>
    %c0_110 = arith.constant 0 : index
    %c21 = arith.constant 21 : index
    %129 = vector.load %arg8[%c0_110, %c21] : memref<16x128xbf16, #tpu.memory_space<vmem>>, vector<16x100xbf16>
    %cst_111 = arith.constant dense<0.000000e+00> : vector<16x100xf32>
    %130 = tpu.matmul %128, %129, %cst_111 {dimension_numbers = #tpu.dot_dimension_numbers<[1], [0], [0], [1], [0, 0, 1, 1], [], []>} : vector<16x16xbf16>, vector<16x100xbf16>, vector<16x100xf32> -> vector<16x100xf32>
    %131 = arith.addf %126, %130 : vector<16x100xf32>
    %c8_112 = arith.constant 8 : index
    %c0_113 = arith.constant 0 : index
    %c0_114 = arith.constant 0 : index
    %132 = vector.load %arg5[%c8_112, %c0_113, %c0_114] : memref<9x16x16xbf16, #tpu.memory_space<vmem>>, vector<1x16x16xbf16>
    %133 = vector.shape_cast %132 : vector<1x16x16xbf16> to vector<16x16xbf16>
    %c0_115 = arith.constant 0 : index
    %c22 = arith.constant 22 : index
    %134 = vector.load %arg8[%c0_115, %c22] : memref<16x128xbf16, #tpu.memory_space<vmem>>, vector<16x100xbf16>
    %cst_116 = arith.constant dense<0.000000e+00> : vector<16x100xf32>
    %135 = tpu.matmul %133, %134, %cst_116 {dimension_numbers = #tpu.dot_dimension_numbers<[1], [0], [0], [1], [0, 0, 1, 1], [], []>} : vector<16x16xbf16>, vector<16x100xbf16>, vector<16x100xf32> -> vector<16x100xf32>
    %136 = arith.addf %131, %135 : vector<16x100xf32>
    %c0_117 = arith.constant 0 : index
    %c2_118 = arith.constant 2 : index
    %137 = vector.load %arg4[%c0_117, %c2_118] : memref<16x4xf32, #tpu.memory_space<vmem>>, vector<16x1xf32>
    %c0_119 = arith.constant 0 : index
    %c3_120 = arith.constant 3 : index
    %138 = vector.load %arg4[%c0_119, %c3_120] : memref<16x4xf32, #tpu.memory_space<vmem>>, vector<16x1xf32>
    %139 = vector.broadcast %0 : vector<1x100xf32> to vector<16x100xf32>
    %140 = arith.mulf %136, %139 : vector<16x100xf32>
    %cst_121 = arith.constant dense<0.000000e+00> : vector<16xf32>
    %141 = vector.multi_reduction <add>, %140, %cst_121 [1] : vector<16x100xf32> to vector<16xf32>
    %142 = vector.shape_cast %141 : vector<16xf32> to vector<16x1xf32>
    %cst_122 = arith.constant 1.562500e-02 : f32
    %143 = vector.broadcast %cst_122 : f32 to vector<16x1xf32>
    %144 = arith.mulf %142, %143 : vector<16x1xf32>
    %145 = vector.broadcast %144 : vector<16x1xf32> to vector<16x100xf32>
    %146 = arith.subf %136, %145 : vector<16x100xf32>
    %147 = vector.broadcast %0 : vector<1x100xf32> to vector<16x100xf32>
    %148 = arith.mulf %146, %147 : vector<16x100xf32>
    %149 = arith.mulf %148, %148 : vector<16x100xf32>
    %cst_123 = arith.constant dense<0.000000e+00> : vector<16xf32>
    %150 = vector.multi_reduction <add>, %149, %cst_123 [1] : vector<16x100xf32> to vector<16xf32>
    %151 = vector.shape_cast %150 : vector<16xf32> to vector<16x1xf32>
    %cst_124 = arith.constant 1.562500e-02 : f32
    %152 = vector.broadcast %cst_124 : f32 to vector<16x1xf32>
    %153 = arith.mulf %151, %152 : vector<16x1xf32>
    %cst_125 = arith.constant 9.99999974E-6 : f32
    %154 = vector.broadcast %cst_125 : f32 to vector<16x1xf32>
    %155 = arith.addf %153, %154 : vector<16x1xf32>
    %156 = math.rsqrt %155 : vector<16x1xf32>
    %157 = vector.broadcast %156 : vector<16x1xf32> to vector<16x100xf32>
    %158 = arith.mulf %148, %157 : vector<16x100xf32>
    %159 = vector.broadcast %137 : vector<16x1xf32> to vector<16x100xf32>
    %160 = arith.mulf %158, %159 : vector<16x100xf32>
    %161 = vector.broadcast %138 : vector<16x1xf32> to vector<16x100xf32>
    %162 = arith.addf %160, %161 : vector<16x100xf32>
    %cst_126 = arith.constant 0.000000e+00 : f32
    %163 = vector.broadcast %cst_126 : f32 to vector<16x100xf32>
    %164 = arith.cmpf ogt, %162, %163 : vector<16x100xf32>
    %cst_127 = arith.constant 0.00999999977 : f32
    %165 = vector.broadcast %cst_127 : f32 to vector<16x100xf32>
    %166 = arith.mulf %165, %162 : vector<16x100xf32>
    %167 = arith.select %164, %162, %166 : vector<16x100xi1>, vector<16x100xf32>
    %168 = vector.broadcast %0 : vector<1x100xf32> to vector<16x100xf32>
    %169 = arith.mulf %167, %168 : vector<16x100xf32>
    %cst_128 = arith.constant 0.000000e+00 : bf16
    %170 = vector.broadcast %cst_128 : bf16 to vector<1x16x128xbf16>
    %c0_129 = arith.constant 0 : index
    %c0_130 = arith.constant 0 : index
    %c0_131 = arith.constant 0 : index
    %171 = vector.load %arg7[%c0_129, %c0_130, %c0_131] : memref<1x16x128xbf16, #tpu.memory_space<vmem>>, vector<1x16x128xbf16>
    tpu.vector_store %arg7[%c0_129, %c0_130, %c0_131], %170 {strides = array<i32>} : memref<1x16x128xbf16, #tpu.memory_space<vmem>>, vector<1x16x128xbf16>,
    %172 = arith.truncf %169 : vector<16x100xf32> to vector<16x100xbf16>
    %c0_132 = arith.constant 0 : index
    %c0_133 = arith.constant 0 : index
    %c11_134 = arith.constant 11 : index
    %173 = vector.load %arg7[%c0_132, %c0_133, %c11_134] : memref<1x16x128xbf16, #tpu.memory_space<vmem>>, vector<1x16x100xbf16>
    %174 = vector.shape_cast %173 : vector<1x16x100xbf16> to vector<16x100xbf16>
    %175 = vector.shape_cast %172 : vector<16x100xbf16> to vector<1x16x100xbf16>
    tpu.vector_store %arg7[%c0_132, %c0_133, %c11_134], %175 {strides = array<i32>} : memref<1x16x128xbf16, #tpu.memory_space<vmem>>, vector<1x16x100xbf16>,
    return
  }
  func.func @transform_0(%arg0: i32) -> (i32, i32, i32) {
    %c0_i32 = arith.constant 0 : i32
    %c0_i32_0 = arith.constant 0 : i32
    %c0_i32_1 = arith.constant 0 : i32
    return %arg0, %c0_i32, %c0_i32_0 : i32, i32, i32
  }
  func.func @transform_1(%arg0: i32) -> (i32, i32, i32) {
    %c0_i32 = arith.constant 0 : i32
    %c0_i32_0 = arith.constant 0 : i32
    %c0_i32_1 = arith.constant 0 : i32
    %c0_i32_2 = arith.constant 0 : i32
    return %c0_i32, %c0_i32_0, %c0_i32_1 : i32, i32, i32
  }
  func.func @transform_2(%arg0: i32) -> (i32, i32) {
    %c0_i32 = arith.constant 0 : i32
    %c0_i32_0 = arith.constant 0 : i32
    %c0_i32_1 = arith.constant 0 : i32
    return %c0_i32, %c0_i32_0 : i32, i32
  }
  func.func @transform_3(%arg0: i32) -> (i32, i32) {
    %c0_i32 = arith.constant 0 : i32
    %c0_i32_0 = arith.constant 0 : i32
    %c0_i32_1 = arith.constant 0 : i32
    return %c0_i32, %c0_i32_0 : i32, i32
  }
  func.func @transform_4(%arg0: i32) -> (i32, i32, i32) {
    %c0_i32 = arith.constant 0 : i32
    %c0_i32_0 = arith.constant 0 : i32
    %c0_i32_1 = arith.constant 0 : i32
    %c0_i32_2 = arith.constant 0 : i32
    return %c0_i32, %c0_i32_0, %c0_i32_1 : i32, i32, i32
  }
  func.func @transform_5(%arg0: i32) -> (i32, i32) {
    %c0_i32 = arith.constant 0 : i32
    %c0_i32_0 = arith.constant 0 : i32
    %c0_i32_1 = arith.constant 0 : i32
    return %c0_i32, %c0_i32_0 : i32, i32
  }
  func.func @transform_6(%arg0: i32) -> (i32, i32, i32) {
    %c0_i32 = arith.constant 0 : i32
    %c0_i32_0 = arith.constant 0 : i32
    %c0_i32_1 = arith.constant 0 : i32
    return %arg0, %c0_i32, %c0_i32_0 : i32, i32, i32
  }
}

module attributes {stable_mosaic.version = 11 : i64} {
  func.func @kernel(%arg0: i32, %arg1: memref<1x16x128xbf16, #tpu.memory_space<vmem>>, %arg2: memref<9x32x16xbf16, #tpu.memory_space<vmem>>, %arg3: memref<100x36xf32, #tpu.memory_space<vmem>>, %arg4: memref<32x4xf32, #tpu.memory_space<vmem>>, %arg5: memref<9x32x32xbf16, #tpu.memory_space<vmem>>, %arg6: memref<1x36xf32, #tpu.memory_space<vmem>>, %arg7: memref<1x32x128xbf16, #tpu.memory_space<vmem>>, %arg8: memref<32x128xbf16, #tpu.memory_space<vmem>>) attributes {dimension_semantics = [#tpu.dimension_semantics<parallel>], iteration_bounds = array<i64: 2>, scalar_prefetch = 0 : i64, scratch_operands = 1 : i64, tpu.core_type = #tpu.core_type<tc>, window_params = [{transform_indices = @transform_0, window_bounds = array<i64: 1, 16, 128>}, {pipeline_mode = #tpu.pipeline_mode<synchronous>, transform_indices = @transform_1, window_bounds = array<i64: 9, 32, 16>}, {pipeline_mode = #tpu.pipeline_mode<synchronous>, transform_indices = @transform_2, window_bounds = array<i64: 100, 36>}, {pipeline_mode = #tpu.pipeline_mode<synchronous>, transform_indices = @transform_3, window_bounds = array<i64: 32, 4>}, {pipeline_mode = #tpu.pipeline_mode<synchronous>, transform_indices = @transform_4, window_bounds = array<i64: 9, 32, 32>}, {pipeline_mode = #tpu.pipeline_mode<synchronous>, transform_indices = @transform_5, window_bounds = array<i64: 1, 36>}, {transform_indices = @transform_6, window_bounds = array<i64: 1, 32, 128>}]} {
    %c0 = arith.constant 0 : index
    %c0_0 = arith.constant 0 : index
    %0 = vector.load %arg6[%c0, %c0_0] : memref<1x36xf32, #tpu.memory_space<vmem>>, vector<1x36xf32>
    %c0_1 = arith.constant 0 : index
    %c0_2 = arith.constant 0 : index
    %c0_3 = arith.constant 0 : index
    %1 = vector.load %arg2[%c0_1, %c0_2, %c0_3] : memref<9x32x16xbf16, #tpu.memory_space<vmem>>, vector<1x32x16xbf16>
    %2 = vector.shape_cast %1 : vector<1x32x16xbf16> to vector<32x16xbf16>
    %c0_4 = arith.constant 0 : index
    %c0_5 = arith.constant 0 : index
    %c0_6 = arith.constant 0 : index
    %3 = vector.load %arg1[%c0_4, %c0_5, %c0_6] : memref<1x16x128xbf16, #tpu.memory_space<vmem>>, vector<1x16x100xbf16>
    %4 = vector.shape_cast %3 : vector<1x16x100xbf16> to vector<16x100xbf16>
    %cst = arith.constant dense<0.000000e+00> : vector<32x100xf32>
    %5 = tpu.matmul %2, %4, %cst {dimension_numbers = #tpu.dot_dimension_numbers<[1], [0], [0], [1], [0, 0, 1, 1], [], []>} : vector<32x16xbf16>, vector<16x100xbf16>, vector<32x100xf32> -> vector<32x100xf32>
    %c1 = arith.constant 1 : index
    %c0_7 = arith.constant 0 : index
    %c0_8 = arith.constant 0 : index
    %6 = vector.load %arg2[%c1, %c0_7, %c0_8] : memref<9x32x16xbf16, #tpu.memory_space<vmem>>, vector<1x32x16xbf16>
    %7 = vector.shape_cast %6 : vector<1x32x16xbf16> to vector<32x16xbf16>
    %c0_9 = arith.constant 0 : index
    %c0_10 = arith.constant 0 : index
    %c1_11 = arith.constant 1 : index
    %8 = vector.load %arg1[%c0_9, %c0_10, %c1_11] : memref<1x16x128xbf16, #tpu.memory_space<vmem>>, vector<1x16x100xbf16>
    %9 = vector.shape_cast %8 : vector<1x16x100xbf16> to vector<16x100xbf16>
    %cst_12 = arith.constant dense<0.000000e+00> : vector<32x100xf32>
    %10 = tpu.matmul %7, %9, %cst_12 {dimension_numbers = #tpu.dot_dimension_numbers<[1], [0], [0], [1], [0, 0, 1, 1], [], []>} : vector<32x16xbf16>, vector<16x100xbf16>, vector<32x100xf32> -> vector<32x100xf32>
    %11 = arith.addf %5, %10 : vector<32x100xf32>
    %c2 = arith.constant 2 : index
    %c0_13 = arith.constant 0 : index
    %c0_14 = arith.constant 0 : index
    %12 = vector.load %arg2[%c2, %c0_13, %c0_14] : memref<9x32x16xbf16, #tpu.memory_space<vmem>>, vector<1x32x16xbf16>
    %13 = vector.shape_cast %12 : vector<1x32x16xbf16> to vector<32x16xbf16>
    %c0_15 = arith.constant 0 : index
    %c0_16 = arith.constant 0 : index
    %c2_17 = arith.constant 2 : index
    %14 = vector.load %arg1[%c0_15, %c0_16, %c2_17] : memref<1x16x128xbf16, #tpu.memory_space<vmem>>, vector<1x16x100xbf16>
    %15 = vector.shape_cast %14 : vector<1x16x100xbf16> to vector<16x100xbf16>
    %cst_18 = arith.constant dense<0.000000e+00> : vector<32x100xf32>
    %16 = tpu.matmul %13, %15, %cst_18 {dimension_numbers = #tpu.dot_dimension_numbers<[1], [0], [0], [1], [0, 0, 1, 1], [], []>} : vector<32x16xbf16>, vector<16x100xbf16>, vector<32x100xf32> -> vector<32x100xf32>
    %17 = arith.addf %11, %16 : vector<32x100xf32>
    %c3 = arith.constant 3 : index
    %c0_19 = arith.constant 0 : index
    %c0_20 = arith.constant 0 : index
    %18 = vector.load %arg2[%c3, %c0_19, %c0_20] : memref<9x32x16xbf16, #tpu.memory_space<vmem>>, vector<1x32x16xbf16>
    %19 = vector.shape_cast %18 : vector<1x32x16xbf16> to vector<32x16xbf16>
    %c0_21 = arith.constant 0 : index
    %c0_22 = arith.constant 0 : index
    %c10 = arith.constant 10 : index
    %20 = vector.load %arg1[%c0_21, %c0_22, %c10] : memref<1x16x128xbf16, #tpu.memory_space<vmem>>, vector<1x16x100xbf16>
    %21 = vector.shape_cast %20 : vector<1x16x100xbf16> to vector<16x100xbf16>
    %cst_23 = arith.constant dense<0.000000e+00> : vector<32x100xf32>
    %22 = tpu.matmul %19, %21, %cst_23 {dimension_numbers = #tpu.dot_dimension_numbers<[1], [0], [0], [1], [0, 0, 1, 1], [], []>} : vector<32x16xbf16>, vector<16x100xbf16>, vector<32x100xf32> -> vector<32x100xf32>
    %23 = arith.addf %17, %22 : vector<32x100xf32>
    %c4 = arith.constant 4 : index
    %c0_24 = arith.constant 0 : index
    %c0_25 = arith.constant 0 : index
    %24 = vector.load %arg2[%c4, %c0_24, %c0_25] : memref<9x32x16xbf16, #tpu.memory_space<vmem>>, vector<1x32x16xbf16>
    %25 = vector.shape_cast %24 : vector<1x32x16xbf16> to vector<32x16xbf16>
    %c0_26 = arith.constant 0 : index
    %c0_27 = arith.constant 0 : index
    %c11 = arith.constant 11 : index
    %26 = vector.load %arg1[%c0_26, %c0_27, %c11] : memref<1x16x128xbf16, #tpu.memory_space<vmem>>, vector<1x16x100xbf16>
    %27 = vector.shape_cast %26 : vector<1x16x100xbf16> to vector<16x100xbf16>
    %cst_28 = arith.constant dense<0.000000e+00> : vector<32x100xf32>
    %28 = tpu.matmul %25, %27, %cst_28 {dimension_numbers = #tpu.dot_dimension_numbers<[1], [0], [0], [1], [0, 0, 1, 1], [], []>} : vector<32x16xbf16>, vector<16x100xbf16>, vector<32x100xf32> -> vector<32x100xf32>
    %29 = arith.addf %23, %28 : vector<32x100xf32>
    %c5 = arith.constant 5 : index
    %c0_29 = arith.constant 0 : index
    %c0_30 = arith.constant 0 : index
    %30 = vector.load %arg2[%c5, %c0_29, %c0_30] : memref<9x32x16xbf16, #tpu.memory_space<vmem>>, vector<1x32x16xbf16>
    %31 = vector.shape_cast %30 : vector<1x32x16xbf16> to vector<32x16xbf16>
    %c0_31 = arith.constant 0 : index
    %c0_32 = arith.constant 0 : index
    %c12 = arith.constant 12 : index
    %32 = vector.load %arg1[%c0_31, %c0_32, %c12] : memref<1x16x128xbf16, #tpu.memory_space<vmem>>, vector<1x16x100xbf16>
    %33 = vector.shape_cast %32 : vector<1x16x100xbf16> to vector<16x100xbf16>
    %cst_33 = arith.constant dense<0.000000e+00> : vector<32x100xf32>
    %34 = tpu.matmul %31, %33, %cst_33 {dimension_numbers = #tpu.dot_dimension_numbers<[1], [0], [0], [1], [0, 0, 1, 1], [], []>} : vector<32x16xbf16>, vector<16x100xbf16>, vector<32x100xf32> -> vector<32x100xf32>
    %35 = arith.addf %29, %34 : vector<32x100xf32>
    %c6 = arith.constant 6 : index
    %c0_34 = arith.constant 0 : index
    %c0_35 = arith.constant 0 : index
    %36 = vector.load %arg2[%c6, %c0_34, %c0_35] : memref<9x32x16xbf16, #tpu.memory_space<vmem>>, vector<1x32x16xbf16>
    %37 = vector.shape_cast %36 : vector<1x32x16xbf16> to vector<32x16xbf16>
    %c0_36 = arith.constant 0 : index
    %c0_37 = arith.constant 0 : index
    %c20 = arith.constant 20 : index
    %38 = vector.load %arg1[%c0_36, %c0_37, %c20] : memref<1x16x128xbf16, #tpu.memory_space<vmem>>, vector<1x16x100xbf16>
    %39 = vector.shape_cast %38 : vector<1x16x100xbf16> to vector<16x100xbf16>
    %cst_38 = arith.constant dense<0.000000e+00> : vector<32x100xf32>
    %40 = tpu.matmul %37, %39, %cst_38 {dimension_numbers = #tpu.dot_dimension_numbers<[1], [0], [0], [1], [0, 0, 1, 1], [], []>} : vector<32x16xbf16>, vector<16x100xbf16>, vector<32x100xf32> -> vector<32x100xf32>
    %41 = arith.addf %35, %40 : vector<32x100xf32>
    %c7 = arith.constant 7 : index
    %c0_39 = arith.constant 0 : index
    %c0_40 = arith.constant 0 : index
    %42 = vector.load %arg2[%c7, %c0_39, %c0_40] : memref<9x32x16xbf16, #tpu.memory_space<vmem>>, vector<1x32x16xbf16>
    %43 = vector.shape_cast %42 : vector<1x32x16xbf16> to vector<32x16xbf16>
    %c0_41 = arith.constant 0 : index
    %c0_42 = arith.constant 0 : index
    %c21 = arith.constant 21 : index
    %44 = vector.load %arg1[%c0_41, %c0_42, %c21] : memref<1x16x128xbf16, #tpu.memory_space<vmem>>, vector<1x16x100xbf16>
    %45 = vector.shape_cast %44 : vector<1x16x100xbf16> to vector<16x100xbf16>
    %cst_43 = arith.constant dense<0.000000e+00> : vector<32x100xf32>
    %46 = tpu.matmul %43, %45, %cst_43 {dimension_numbers = #tpu.dot_dimension_numbers<[1], [0], [0], [1], [0, 0, 1, 1], [], []>} : vector<32x16xbf16>, vector<16x100xbf16>, vector<32x100xf32> -> vector<32x100xf32>
    %47 = arith.addf %41, %46 : vector<32x100xf32>
    %c8 = arith.constant 8 : index
    %c0_44 = arith.constant 0 : index
    %c0_45 = arith.constant 0 : index
    %48 = vector.load %arg2[%c8, %c0_44, %c0_45] : memref<9x32x16xbf16, #tpu.memory_space<vmem>>, vector<1x32x16xbf16>
    %49 = vector.shape_cast %48 : vector<1x32x16xbf16> to vector<32x16xbf16>
    %c0_46 = arith.constant 0 : index
    %c0_47 = arith.constant 0 : index
    %c22 = arith.constant 22 : index
    %50 = vector.load %arg1[%c0_46, %c0_47, %c22] : memref<1x16x128xbf16, #tpu.memory_space<vmem>>, vector<1x16x100xbf16>
    %51 = vector.shape_cast %50 : vector<1x16x100xbf16> to vector<16x100xbf16>
    %cst_48 = arith.constant dense<0.000000e+00> : vector<32x100xf32>
    %52 = tpu.matmul %49, %51, %cst_48 {dimension_numbers = #tpu.dot_dimension_numbers<[1], [0], [0], [1], [0, 0, 1, 1], [], []>} : vector<32x16xbf16>, vector<16x100xbf16>, vector<32x100xf32> -> vector<32x100xf32>
    %53 = arith.addf %47, %52 : vector<32x100xf32>
    %c0_49 = arith.constant 0 : index
    %c0_50 = arith.constant 0 : index
    %54 = vector.load %arg3[%c0_49, %c0_50] : memref<100x36xf32, #tpu.memory_space<vmem>>, vector<100x36xf32>
    %cst_51 = arith.constant dense<0.000000e+00> : vector<32x36xf32>
    %55 = tpu.matmul %53, %54, %cst_51 {dimension_numbers = #tpu.dot_dimension_numbers<[1], [0], [0], [1], [0, 0, 1, 1], [], []>} : vector<32x100xf32>, vector<100x36xf32>, vector<32x36xf32> -> vector<32x36xf32>
    %c0_52 = arith.constant 0 : index
    %c0_53 = arith.constant 0 : index
    %56 = vector.load %arg4[%c0_52, %c0_53] : memref<32x4xf32, #tpu.memory_space<vmem>>, vector<32x1xf32>
    %c0_54 = arith.constant 0 : index
    %c1_55 = arith.constant 1 : index
    %57 = vector.load %arg4[%c0_54, %c1_55] : memref<32x4xf32, #tpu.memory_space<vmem>>, vector<32x1xf32>
    %58 = vector.broadcast %0 : vector<1x36xf32> to vector<32x36xf32>
    %59 = arith.mulf %55, %58 : vector<32x36xf32>
    %cst_56 = arith.constant dense<0.000000e+00> : vector<32xf32>
    %60 = vector.multi_reduction <add>, %59, %cst_56 [1] : vector<32x36xf32> to vector<32xf32>
    %61 = vector.shape_cast %60 : vector<32xf32> to vector<32x1xf32>
    %cst_57 = arith.constant 6.250000e-02 : f32
    %62 = vector.broadcast %cst_57 : f32 to vector<32x1xf32>
    %63 = arith.mulf %61, %62 : vector<32x1xf32>
    %64 = vector.broadcast %63 : vector<32x1xf32> to vector<32x36xf32>
    %65 = arith.subf %55, %64 : vector<32x36xf32>
    %66 = vector.broadcast %0 : vector<1x36xf32> to vector<32x36xf32>
    %67 = arith.mulf %65, %66 : vector<32x36xf32>
    %68 = arith.mulf %67, %67 : vector<32x36xf32>
    %cst_58 = arith.constant dense<0.000000e+00> : vector<32xf32>
    %69 = vector.multi_reduction <add>, %68, %cst_58 [1] : vector<32x36xf32> to vector<32xf32>
    %70 = vector.shape_cast %69 : vector<32xf32> to vector<32x1xf32>
    %cst_59 = arith.constant 6.250000e-02 : f32
    %71 = vector.broadcast %cst_59 : f32 to vector<32x1xf32>
    %72 = arith.mulf %70, %71 : vector<32x1xf32>
    %cst_60 = arith.constant 9.99999974E-6 : f32
    %73 = vector.broadcast %cst_60 : f32 to vector<32x1xf32>
    %74 = arith.addf %72, %73 : vector<32x1xf32>
    %75 = math.rsqrt %74 : vector<32x1xf32>
    %76 = vector.broadcast %75 : vector<32x1xf32> to vector<32x36xf32>
    %77 = arith.mulf %67, %76 : vector<32x36xf32>
    %78 = vector.broadcast %56 : vector<32x1xf32> to vector<32x36xf32>
    %79 = arith.mulf %77, %78 : vector<32x36xf32>
    %80 = vector.broadcast %57 : vector<32x1xf32> to vector<32x36xf32>
    %81 = arith.addf %79, %80 : vector<32x36xf32>
    %cst_61 = arith.constant 0.000000e+00 : f32
    %82 = vector.broadcast %cst_61 : f32 to vector<32x36xf32>
    %83 = arith.cmpf ogt, %81, %82 : vector<32x36xf32>
    %cst_62 = arith.constant 0.00999999977 : f32
    %84 = vector.broadcast %cst_62 : f32 to vector<32x36xf32>
    %85 = arith.mulf %84, %81 : vector<32x36xf32>
    %86 = arith.select %83, %81, %85 : vector<32x36xi1>, vector<32x36xf32>
    %87 = vector.broadcast %0 : vector<1x36xf32> to vector<32x36xf32>
    %88 = arith.mulf %86, %87 : vector<32x36xf32>
    %cst_63 = arith.constant 0.000000e+00 : bf16
    %89 = vector.broadcast %cst_63 : bf16 to vector<32x128xbf16>
    %c0_64 = arith.constant 0 : index
    %c0_65 = arith.constant 0 : index
    %90 = vector.load %arg8[%c0_64, %c0_65] : memref<32x128xbf16, #tpu.memory_space<vmem>>, vector<32x128xbf16>
    tpu.vector_store %arg8[%c0_64, %c0_65], %89 {strides = array<i32>} : memref<32x128xbf16, #tpu.memory_space<vmem>>, vector<32x128xbf16>,
    %91 = arith.truncf %88 : vector<32x36xf32> to vector<32x36xbf16>
    %c0_66 = arith.constant 0 : index
    %c7_67 = arith.constant 7 : index
    %92 = vector.load %arg8[%c0_66, %c7_67] : memref<32x128xbf16, #tpu.memory_space<vmem>>, vector<32x36xbf16>
    tpu.vector_store %arg8[%c0_66, %c7_67], %91 {strides = array<i32>} : memref<32x128xbf16, #tpu.memory_space<vmem>>, vector<32x36xbf16>,
    %c0_68 = arith.constant 0 : index
    %c0_69 = arith.constant 0 : index
    %c0_70 = arith.constant 0 : index
    %93 = vector.load %arg5[%c0_68, %c0_69, %c0_70] : memref<9x32x32xbf16, #tpu.memory_space<vmem>>, vector<1x32x32xbf16>
    %94 = vector.shape_cast %93 : vector<1x32x32xbf16> to vector<32x32xbf16>
    %c0_71 = arith.constant 0 : index
    %c0_72 = arith.constant 0 : index
    %95 = vector.load %arg8[%c0_71, %c0_72] : memref<32x128xbf16, #tpu.memory_space<vmem>>, vector<32x36xbf16>
    %cst_73 = arith.constant dense<0.000000e+00> : vector<32x36xf32>
    %96 = tpu.matmul %94, %95, %cst_73 {dimension_numbers = #tpu.dot_dimension_numbers<[1], [0], [0], [1], [0, 0, 1, 1], [], []>} : vector<32x32xbf16>, vector<32x36xbf16>, vector<32x36xf32> -> vector<32x36xf32>
    %c1_74 = arith.constant 1 : index
    %c0_75 = arith.constant 0 : index
    %c0_76 = arith.constant 0 : index
    %97 = vector.load %arg5[%c1_74, %c0_75, %c0_76] : memref<9x32x32xbf16, #tpu.memory_space<vmem>>, vector<1x32x32xbf16>
    %98 = vector.shape_cast %97 : vector<1x32x32xbf16> to vector<32x32xbf16>
    %c0_77 = arith.constant 0 : index
    %c1_78 = arith.constant 1 : index
    %99 = vector.load %arg8[%c0_77, %c1_78] : memref<32x128xbf16, #tpu.memory_space<vmem>>, vector<32x36xbf16>
    %cst_79 = arith.constant dense<0.000000e+00> : vector<32x36xf32>
    %100 = tpu.matmul %98, %99, %cst_79 {dimension_numbers = #tpu.dot_dimension_numbers<[1], [0], [0], [1], [0, 0, 1, 1], [], []>} : vector<32x32xbf16>, vector<32x36xbf16>, vector<32x36xf32> -> vector<32x36xf32>
    %101 = arith.addf %96, %100 : vector<32x36xf32>
    %c2_80 = arith.constant 2 : index
    %c0_81 = arith.constant 0 : index
    %c0_82 = arith.constant 0 : index
    %102 = vector.load %arg5[%c2_80, %c0_81, %c0_82] : memref<9x32x32xbf16, #tpu.memory_space<vmem>>, vector<1x32x32xbf16>
    %103 = vector.shape_cast %102 : vector<1x32x32xbf16> to vector<32x32xbf16>
    %c0_83 = arith.constant 0 : index
    %c2_84 = arith.constant 2 : index
    %104 = vector.load %arg8[%c0_83, %c2_84] : memref<32x128xbf16, #tpu.memory_space<vmem>>, vector<32x36xbf16>
    %cst_85 = arith.constant dense<0.000000e+00> : vector<32x36xf32>
    %105 = tpu.matmul %103, %104, %cst_85 {dimension_numbers = #tpu.dot_dimension_numbers<[1], [0], [0], [1], [0, 0, 1, 1], [], []>} : vector<32x32xbf16>, vector<32x36xbf16>, vector<32x36xf32> -> vector<32x36xf32>
    %106 = arith.addf %101, %105 : vector<32x36xf32>
    %c3_86 = arith.constant 3 : index
    %c0_87 = arith.constant 0 : index
    %c0_88 = arith.constant 0 : index
    %107 = vector.load %arg5[%c3_86, %c0_87, %c0_88] : memref<9x32x32xbf16, #tpu.memory_space<vmem>>, vector<1x32x32xbf16>
    %108 = vector.shape_cast %107 : vector<1x32x32xbf16> to vector<32x32xbf16>
    %c0_89 = arith.constant 0 : index
    %c6_90 = arith.constant 6 : index
    %109 = vector.load %arg8[%c0_89, %c6_90] : memref<32x128xbf16, #tpu.memory_space<vmem>>, vector<32x36xbf16>
    %cst_91 = arith.constant dense<0.000000e+00> : vector<32x36xf32>
    %110 = tpu.matmul %108, %109, %cst_91 {dimension_numbers = #tpu.dot_dimension_numbers<[1], [0], [0], [1], [0, 0, 1, 1], [], []>} : vector<32x32xbf16>, vector<32x36xbf16>, vector<32x36xf32> -> vector<32x36xf32>
    %111 = arith.addf %106, %110 : vector<32x36xf32>
    %c4_92 = arith.constant 4 : index
    %c0_93 = arith.constant 0 : index
    %c0_94 = arith.constant 0 : index
    %112 = vector.load %arg5[%c4_92, %c0_93, %c0_94] : memref<9x32x32xbf16, #tpu.memory_space<vmem>>, vector<1x32x32xbf16>
    %113 = vector.shape_cast %112 : vector<1x32x32xbf16> to vector<32x32xbf16>
    %c0_95 = arith.constant 0 : index
    %c7_96 = arith.constant 7 : index
    %114 = vector.load %arg8[%c0_95, %c7_96] : memref<32x128xbf16, #tpu.memory_space<vmem>>, vector<32x36xbf16>
    %cst_97 = arith.constant dense<0.000000e+00> : vector<32x36xf32>
    %115 = tpu.matmul %113, %114, %cst_97 {dimension_numbers = #tpu.dot_dimension_numbers<[1], [0], [0], [1], [0, 0, 1, 1], [], []>} : vector<32x32xbf16>, vector<32x36xbf16>, vector<32x36xf32> -> vector<32x36xf32>
    %116 = arith.addf %111, %115 : vector<32x36xf32>
    %c5_98 = arith.constant 5 : index
    %c0_99 = arith.constant 0 : index
    %c0_100 = arith.constant 0 : index
    %117 = vector.load %arg5[%c5_98, %c0_99, %c0_100] : memref<9x32x32xbf16, #tpu.memory_space<vmem>>, vector<1x32x32xbf16>
    %118 = vector.shape_cast %117 : vector<1x32x32xbf16> to vector<32x32xbf16>
    %c0_101 = arith.constant 0 : index
    %c8_102 = arith.constant 8 : index
    %119 = vector.load %arg8[%c0_101, %c8_102] : memref<32x128xbf16, #tpu.memory_space<vmem>>, vector<32x36xbf16>
    %cst_103 = arith.constant dense<0.000000e+00> : vector<32x36xf32>
    %120 = tpu.matmul %118, %119, %cst_103 {dimension_numbers = #tpu.dot_dimension_numbers<[1], [0], [0], [1], [0, 0, 1, 1], [], []>} : vector<32x32xbf16>, vector<32x36xbf16>, vector<32x36xf32> -> vector<32x36xf32>
    %121 = arith.addf %116, %120 : vector<32x36xf32>
    %c6_104 = arith.constant 6 : index
    %c0_105 = arith.constant 0 : index
    %c0_106 = arith.constant 0 : index
    %122 = vector.load %arg5[%c6_104, %c0_105, %c0_106] : memref<9x32x32xbf16, #tpu.memory_space<vmem>>, vector<1x32x32xbf16>
    %123 = vector.shape_cast %122 : vector<1x32x32xbf16> to vector<32x32xbf16>
    %c0_107 = arith.constant 0 : index
    %c12_108 = arith.constant 12 : index
    %124 = vector.load %arg8[%c0_107, %c12_108] : memref<32x128xbf16, #tpu.memory_space<vmem>>, vector<32x36xbf16>
    %cst_109 = arith.constant dense<0.000000e+00> : vector<32x36xf32>
    %125 = tpu.matmul %123, %124, %cst_109 {dimension_numbers = #tpu.dot_dimension_numbers<[1], [0], [0], [1], [0, 0, 1, 1], [], []>} : vector<32x32xbf16>, vector<32x36xbf16>, vector<32x36xf32> -> vector<32x36xf32>
    %126 = arith.addf %121, %125 : vector<32x36xf32>
    %c7_110 = arith.constant 7 : index
    %c0_111 = arith.constant 0 : index
    %c0_112 = arith.constant 0 : index
    %127 = vector.load %arg5[%c7_110, %c0_111, %c0_112] : memref<9x32x32xbf16, #tpu.memory_space<vmem>>, vector<1x32x32xbf16>
    %128 = vector.shape_cast %127 : vector<1x32x32xbf16> to vector<32x32xbf16>
    %c0_113 = arith.constant 0 : index
    %c13 = arith.constant 13 : index
    %129 = vector.load %arg8[%c0_113, %c13] : memref<32x128xbf16, #tpu.memory_space<vmem>>, vector<32x36xbf16>
    %cst_114 = arith.constant dense<0.000000e+00> : vector<32x36xf32>
    %130 = tpu.matmul %128, %129, %cst_114 {dimension_numbers = #tpu.dot_dimension_numbers<[1], [0], [0], [1], [0, 0, 1, 1], [], []>} : vector<32x32xbf16>, vector<32x36xbf16>, vector<32x36xf32> -> vector<32x36xf32>
    %131 = arith.addf %126, %130 : vector<32x36xf32>
    %c8_115 = arith.constant 8 : index
    %c0_116 = arith.constant 0 : index
    %c0_117 = arith.constant 0 : index
    %132 = vector.load %arg5[%c8_115, %c0_116, %c0_117] : memref<9x32x32xbf16, #tpu.memory_space<vmem>>, vector<1x32x32xbf16>
    %133 = vector.shape_cast %132 : vector<1x32x32xbf16> to vector<32x32xbf16>
    %c0_118 = arith.constant 0 : index
    %c14 = arith.constant 14 : index
    %134 = vector.load %arg8[%c0_118, %c14] : memref<32x128xbf16, #tpu.memory_space<vmem>>, vector<32x36xbf16>
    %cst_119 = arith.constant dense<0.000000e+00> : vector<32x36xf32>
    %135 = tpu.matmul %133, %134, %cst_119 {dimension_numbers = #tpu.dot_dimension_numbers<[1], [0], [0], [1], [0, 0, 1, 1], [], []>} : vector<32x32xbf16>, vector<32x36xbf16>, vector<32x36xf32> -> vector<32x36xf32>
    %136 = arith.addf %131, %135 : vector<32x36xf32>
    %c0_120 = arith.constant 0 : index
    %c2_121 = arith.constant 2 : index
    %137 = vector.load %arg4[%c0_120, %c2_121] : memref<32x4xf32, #tpu.memory_space<vmem>>, vector<32x1xf32>
    %c0_122 = arith.constant 0 : index
    %c3_123 = arith.constant 3 : index
    %138 = vector.load %arg4[%c0_122, %c3_123] : memref<32x4xf32, #tpu.memory_space<vmem>>, vector<32x1xf32>
    %139 = vector.broadcast %0 : vector<1x36xf32> to vector<32x36xf32>
    %140 = arith.mulf %136, %139 : vector<32x36xf32>
    %cst_124 = arith.constant dense<0.000000e+00> : vector<32xf32>
    %141 = vector.multi_reduction <add>, %140, %cst_124 [1] : vector<32x36xf32> to vector<32xf32>
    %142 = vector.shape_cast %141 : vector<32xf32> to vector<32x1xf32>
    %cst_125 = arith.constant 6.250000e-02 : f32
    %143 = vector.broadcast %cst_125 : f32 to vector<32x1xf32>
    %144 = arith.mulf %142, %143 : vector<32x1xf32>
    %145 = vector.broadcast %144 : vector<32x1xf32> to vector<32x36xf32>
    %146 = arith.subf %136, %145 : vector<32x36xf32>
    %147 = vector.broadcast %0 : vector<1x36xf32> to vector<32x36xf32>
    %148 = arith.mulf %146, %147 : vector<32x36xf32>
    %149 = arith.mulf %148, %148 : vector<32x36xf32>
    %cst_126 = arith.constant dense<0.000000e+00> : vector<32xf32>
    %150 = vector.multi_reduction <add>, %149, %cst_126 [1] : vector<32x36xf32> to vector<32xf32>
    %151 = vector.shape_cast %150 : vector<32xf32> to vector<32x1xf32>
    %cst_127 = arith.constant 6.250000e-02 : f32
    %152 = vector.broadcast %cst_127 : f32 to vector<32x1xf32>
    %153 = arith.mulf %151, %152 : vector<32x1xf32>
    %cst_128 = arith.constant 9.99999974E-6 : f32
    %154 = vector.broadcast %cst_128 : f32 to vector<32x1xf32>
    %155 = arith.addf %153, %154 : vector<32x1xf32>
    %156 = math.rsqrt %155 : vector<32x1xf32>
    %157 = vector.broadcast %156 : vector<32x1xf32> to vector<32x36xf32>
    %158 = arith.mulf %148, %157 : vector<32x36xf32>
    %159 = vector.broadcast %137 : vector<32x1xf32> to vector<32x36xf32>
    %160 = arith.mulf %158, %159 : vector<32x36xf32>
    %161 = vector.broadcast %138 : vector<32x1xf32> to vector<32x36xf32>
    %162 = arith.addf %160, %161 : vector<32x36xf32>
    %cst_129 = arith.constant 0.000000e+00 : f32
    %163 = vector.broadcast %cst_129 : f32 to vector<32x36xf32>
    %164 = arith.cmpf ogt, %162, %163 : vector<32x36xf32>
    %cst_130 = arith.constant 0.00999999977 : f32
    %165 = vector.broadcast %cst_130 : f32 to vector<32x36xf32>
    %166 = arith.mulf %165, %162 : vector<32x36xf32>
    %167 = arith.select %164, %162, %166 : vector<32x36xi1>, vector<32x36xf32>
    %168 = vector.broadcast %0 : vector<1x36xf32> to vector<32x36xf32>
    %169 = arith.mulf %167, %168 : vector<32x36xf32>
    %cst_131 = arith.constant 0.000000e+00 : bf16
    %170 = vector.broadcast %cst_131 : bf16 to vector<1x32x128xbf16>
    %c0_132 = arith.constant 0 : index
    %c0_133 = arith.constant 0 : index
    %c0_134 = arith.constant 0 : index
    %171 = vector.load %arg7[%c0_132, %c0_133, %c0_134] : memref<1x32x128xbf16, #tpu.memory_space<vmem>>, vector<1x32x128xbf16>
    tpu.vector_store %arg7[%c0_132, %c0_133, %c0_134], %170 {strides = array<i32>} : memref<1x32x128xbf16, #tpu.memory_space<vmem>>, vector<1x32x128xbf16>,
    %172 = arith.truncf %169 : vector<32x36xf32> to vector<32x36xbf16>
    %c0_135 = arith.constant 0 : index
    %c0_136 = arith.constant 0 : index
    %c7_137 = arith.constant 7 : index
    %173 = vector.load %arg7[%c0_135, %c0_136, %c7_137] : memref<1x32x128xbf16, #tpu.memory_space<vmem>>, vector<1x32x36xbf16>
    %174 = vector.shape_cast %173 : vector<1x32x36xbf16> to vector<32x36xbf16>
    %175 = vector.shape_cast %172 : vector<32x36xbf16> to vector<1x32x36xbf16>
    tpu.vector_store %arg7[%c0_135, %c0_136, %c7_137], %175 {strides = array<i32>} : memref<1x32x128xbf16, #tpu.memory_space<vmem>>, vector<1x32x36xbf16>,
    return
  }
  func.func @transform_0(%arg0: i32) -> (i32, i32, i32) {
    %c0_i32 = arith.constant 0 : i32
    %c0_i32_0 = arith.constant 0 : i32
    %c0_i32_1 = arith.constant 0 : i32
    return %arg0, %c0_i32, %c0_i32_0 : i32, i32, i32
  }
  func.func @transform_1(%arg0: i32) -> (i32, i32, i32) {
    %c0_i32 = arith.constant 0 : i32
    %c0_i32_0 = arith.constant 0 : i32
    %c0_i32_1 = arith.constant 0 : i32
    %c0_i32_2 = arith.constant 0 : i32
    return %c0_i32, %c0_i32_0, %c0_i32_1 : i32, i32, i32
  }
  func.func @transform_2(%arg0: i32) -> (i32, i32) {
    %c0_i32 = arith.constant 0 : i32
    %c0_i32_0 = arith.constant 0 : i32
    %c0_i32_1 = arith.constant 0 : i32
    return %c0_i32, %c0_i32_0 : i32, i32
  }
  func.func @transform_3(%arg0: i32) -> (i32, i32) {
    %c0_i32 = arith.constant 0 : i32
    %c0_i32_0 = arith.constant 0 : i32
    %c0_i32_1 = arith.constant 0 : i32
    return %c0_i32, %c0_i32_0 : i32, i32
  }
  func.func @transform_4(%arg0: i32) -> (i32, i32, i32) {
    %c0_i32 = arith.constant 0 : i32
    %c0_i32_0 = arith.constant 0 : i32
    %c0_i32_1 = arith.constant 0 : i32
    %c0_i32_2 = arith.constant 0 : i32
    return %c0_i32, %c0_i32_0, %c0_i32_1 : i32, i32, i32
  }
  func.func @transform_5(%arg0: i32) -> (i32, i32) {
    %c0_i32 = arith.constant 0 : i32
    %c0_i32_0 = arith.constant 0 : i32
    %c0_i32_1 = arith.constant 0 : i32
    return %c0_i32, %c0_i32_0 : i32, i32
  }
  func.func @transform_6(%arg0: i32) -> (i32, i32, i32) {
    %c0_i32 = arith.constant 0 : i32
    %c0_i32_0 = arith.constant 0 : i32
    %c0_i32_1 = arith.constant 0 : i32
    return %arg0, %c0_i32, %c0_i32_0 : i32, i32, i32
  }
}

module attributes {stable_mosaic.version = 11 : i64} {
  func.func @kernel(%arg0: i32, %arg1: memref<1x32x128xbf16, #tpu.memory_space<vmem>>, %arg2: memref<1x16x128xbf16, #tpu.memory_space<vmem>>, %arg3: memref<4x16x32xbf16, #tpu.memory_space<vmem>>, %arg4: memref<16x1xf32, #tpu.memory_space<vmem>>, %arg5: memref<4x36x128xbf16, #tpu.memory_space<vmem>>, %arg6: memref<9x16x16xbf16, #tpu.memory_space<vmem>>, %arg7: memref<9x16x16xbf16, #tpu.memory_space<vmem>>, %arg8: memref<16x4xf32, #tpu.memory_space<vmem>>, %arg9: memref<9x16x16xbf16, #tpu.memory_space<vmem>>, %arg10: memref<1x100xf32, #tpu.memory_space<vmem>>, %arg11: memref<1x16x128xbf16, #tpu.memory_space<vmem>>, %arg12: memref<16x128xbf16, #tpu.memory_space<vmem>>, %arg13: memref<16x128xbf16, #tpu.memory_space<vmem>>) attributes {dimension_semantics = [#tpu.dimension_semantics<parallel>], iteration_bounds = array<i64: 2>, scalar_prefetch = 0 : i64, scratch_operands = 2 : i64, tpu.core_type = #tpu.core_type<tc>, window_params = [{transform_indices = @transform_0, window_bounds = array<i64: 1, 32, 128>}, {transform_indices = @transform_1, window_bounds = array<i64: 1, 16, 128>}, {pipeline_mode = #tpu.pipeline_mode<synchronous>, transform_indices = @transform_2, window_bounds = array<i64: 4, 16, 32>}, {pipeline_mode = #tpu.pipeline_mode<synchronous>, transform_indices = @transform_3, window_bounds = array<i64: 16, 1>}, {pipeline_mode = #tpu.pipeline_mode<synchronous>, transform_indices = @transform_4, window_bounds = array<i64: 4, 36, 128>}, {pipeline_mode = #tpu.pipeline_mode<synchronous>, transform_indices = @transform_5, window_bounds = array<i64: 9, 16, 16>}, {pipeline_mode = #tpu.pipeline_mode<synchronous>, transform_indices = @transform_6, window_bounds = array<i64: 9, 16, 16>}, {pipeline_mode = #tpu.pipeline_mode<synchronous>, transform_indices = @transform_7, window_bounds = array<i64: 16, 4>}, {pipeline_mode = #tpu.pipeline_mode<synchronous>, transform_indices = @transform_8, window_bounds = array<i64: 9, 16, 16>}, {pipeline_mode = #tpu.pipeline_mode<synchronous>, transform_indices = @transform_9, window_bounds = array<i64: 1, 100>}, {transform_indices = @transform_10, window_bounds = array<i64: 1, 16, 128>}]} {
    %c0 = arith.constant 0 : index
    %c0_0 = arith.constant 0 : index
    %0 = vector.load %arg10[%c0, %c0_0] : memref<1x100xf32, #tpu.memory_space<vmem>>, vector<1x100xf32>
    %c0_1 = arith.constant 0 : index
    %c0_2 = arith.constant 0 : index
    %c7 = arith.constant 7 : index
    %1 = vector.load %arg1[%c0_1, %c0_2, %c7] : memref<1x32x128xbf16, #tpu.memory_space<vmem>>, vector<1x32x36xbf16>
    %2 = vector.shape_cast %1 : vector<1x32x36xbf16> to vector<32x36xbf16>
    %c0_3 = arith.constant 0 : index
    %c0_4 = arith.constant 0 : index
    %c0_5 = arith.constant 0 : index
    %3 = vector.load %arg3[%c0_3, %c0_4, %c0_5] : memref<4x16x32xbf16, #tpu.memory_space<vmem>>, vector<1x16x32xbf16>
    %4 = vector.shape_cast %3 : vector<1x16x32xbf16> to vector<16x32xbf16>
    %cst = arith.constant dense<0.000000e+00> : vector<16x36xf32>
    %5 = tpu.matmul %4, %2, %cst {dimension_numbers = #tpu.dot_dimension_numbers<[1], [0], [0], [1], [0, 0, 1, 1], [], []>} : vector<16x32xbf16>, vector<32x36xbf16>, vector<16x36xf32> -> vector<16x36xf32>
    %c0_6 = arith.constant 0 : index
    %c0_7 = arith.constant 0 : index
    %6 = vector.load %arg4[%c0_6, %c0_7] : memref<16x1xf32, #tpu.memory_space<vmem>>, vector<16x1xf32>
    %7 = vector.broadcast %6 : vector<16x1xf32> to vector<16x36xf32>
    %8 = arith.addf %5, %7 : vector<16x36xf32>
    %9 = arith.truncf %8 : vector<16x36xf32> to vector<16x36xbf16>
    %c0_8 = arith.constant 0 : index
    %c0_9 = arith.constant 0 : index
    %c0_10 = arith.constant 0 : index
    %10 = vector.load %arg5[%c0_8, %c0_9, %c0_10] : memref<4x36x128xbf16, #tpu.memory_space<vmem>>, vector<1x36x128xbf16>
    %11 = vector.shape_cast %10 : vector<1x36x128xbf16> to vector<36x128xbf16>
    %cst_11 = arith.constant dense<0.000000e+00> : vector<16x128xf32>
    %12 = tpu.matmul %9, %11, %cst_11 {dimension_numbers = #tpu.dot_dimension_numbers<[1], [0], [0], [1], [0, 0, 1, 1], [], []>} : vector<16x36xbf16>, vector<36x128xbf16>, vector<16x128xf32> -> vector<16x128xf32>
    %c1 = arith.constant 1 : index
    %c0_12 = arith.constant 0 : index
    %c0_13 = arith.constant 0 : index
    %13 = vector.load %arg3[%c1, %c0_12, %c0_13] : memref<4x16x32xbf16, #tpu.memory_space<vmem>>, vector<1x16x32xbf16>
    %14 = vector.shape_cast %13 : vector<1x16x32xbf16> to vector<16x32xbf16>
    %cst_14 = arith.constant dense<0.000000e+00> : vector<16x36xf32>
    %15 = tpu.matmul %14, %2, %cst_14 {dimension_numbers = #tpu.dot_dimension_numbers<[1], [0], [0], [1], [0, 0, 1, 1], [], []>} : vector<16x32xbf16>, vector<32x36xbf16>, vector<16x36xf32> -> vector<16x36xf32>
    %c0_15 = arith.constant 0 : index
    %c0_16 = arith.constant 0 : index
    %16 = vector.load %arg4[%c0_15, %c0_16] : memref<16x1xf32, #tpu.memory_space<vmem>>, vector<16x1xf32>
    %17 = vector.broadcast %16 : vector<16x1xf32> to vector<16x36xf32>
    %18 = arith.addf %15, %17 : vector<16x36xf32>
    %19 = arith.truncf %18 : vector<16x36xf32> to vector<16x36xbf16>
    %c1_17 = arith.constant 1 : index
    %c0_18 = arith.constant 0 : index
    %c0_19 = arith.constant 0 : index
    %20 = vector.load %arg5[%c1_17, %c0_18, %c0_19] : memref<4x36x128xbf16, #tpu.memory_space<vmem>>, vector<1x36x128xbf16>
    %21 = vector.shape_cast %20 : vector<1x36x128xbf16> to vector<36x128xbf16>
    %cst_20 = arith.constant dense<0.000000e+00> : vector<16x128xf32>
    %22 = tpu.matmul %19, %21, %cst_20 {dimension_numbers = #tpu.dot_dimension_numbers<[1], [0], [0], [1], [0, 0, 1, 1], [], []>} : vector<16x36xbf16>, vector<36x128xbf16>, vector<16x128xf32> -> vector<16x128xf32>
    %23 = arith.addf %12, %22 : vector<16x128xf32>
    %c2 = arith.constant 2 : index
    %c0_21 = arith.constant 0 : index
    %c0_22 = arith.constant 0 : index
    %24 = vector.load %arg3[%c2, %c0_21, %c0_22] : memref<4x16x32xbf16, #tpu.memory_space<vmem>>, vector<1x16x32xbf16>
    %25 = vector.shape_cast %24 : vector<1x16x32xbf16> to vector<16x32xbf16>
    %cst_23 = arith.constant dense<0.000000e+00> : vector<16x36xf32>
    %26 = tpu.matmul %25, %2, %cst_23 {dimension_numbers = #tpu.dot_dimension_numbers<[1], [0], [0], [1], [0, 0, 1, 1], [], []>} : vector<16x32xbf16>, vector<32x36xbf16>, vector<16x36xf32> -> vector<16x36xf32>
    %c0_24 = arith.constant 0 : index
    %c0_25 = arith.constant 0 : index
    %27 = vector.load %arg4[%c0_24, %c0_25] : memref<16x1xf32, #tpu.memory_space<vmem>>, vector<16x1xf32>
    %28 = vector.broadcast %27 : vector<16x1xf32> to vector<16x36xf32>
    %29 = arith.addf %26, %28 : vector<16x36xf32>
    %30 = arith.truncf %29 : vector<16x36xf32> to vector<16x36xbf16>
    %c2_26 = arith.constant 2 : index
    %c0_27 = arith.constant 0 : index
    %c0_28 = arith.constant 0 : index
    %31 = vector.load %arg5[%c2_26, %c0_27, %c0_28] : memref<4x36x128xbf16, #tpu.memory_space<vmem>>, vector<1x36x128xbf16>
    %32 = vector.shape_cast %31 : vector<1x36x128xbf16> to vector<36x128xbf16>
    %cst_29 = arith.constant dense<0.000000e+00> : vector<16x128xf32>
    %33 = tpu.matmul %30, %32, %cst_29 {dimension_numbers = #tpu.dot_dimension_numbers<[1], [0], [0], [1], [0, 0, 1, 1], [], []>} : vector<16x36xbf16>, vector<36x128xbf16>, vector<16x128xf32> -> vector<16x128xf32>
    %34 = arith.addf %23, %33 : vector<16x128xf32>
    %c3 = arith.constant 3 : index
    %c0_30 = arith.constant 0 : index
    %c0_31 = arith.constant 0 : index
    %35 = vector.load %arg3[%c3, %c0_30, %c0_31] : memref<4x16x32xbf16, #tpu.memory_space<vmem>>, vector<1x16x32xbf16>
    %36 = vector.shape_cast %35 : vector<1x16x32xbf16> to vector<16x32xbf16>
    %cst_32 = arith.constant dense<0.000000e+00> : vector<16x36xf32>
    %37 = tpu.matmul %36, %2, %cst_32 {dimension_numbers = #tpu.dot_dimension_numbers<[1], [0], [0], [1], [0, 0, 1, 1], [], []>} : vector<16x32xbf16>, vector<32x36xbf16>, vector<16x36xf32> -> vector<16x36xf32>
    %c0_33 = arith.constant 0 : index
    %c0_34 = arith.constant 0 : index
    %38 = vector.load %arg4[%c0_33, %c0_34] : memref<16x1xf32, #tpu.memory_space<vmem>>, vector<16x1xf32>
    %39 = vector.broadcast %38 : vector<16x1xf32> to vector<16x36xf32>
    %40 = arith.addf %37, %39 : vector<16x36xf32>
    %41 = arith.truncf %40 : vector<16x36xf32> to vector<16x36xbf16>
    %c3_35 = arith.constant 3 : index
    %c0_36 = arith.constant 0 : index
    %c0_37 = arith.constant 0 : index
    %42 = vector.load %arg5[%c3_35, %c0_36, %c0_37] : memref<4x36x128xbf16, #tpu.memory_space<vmem>>, vector<1x36x128xbf16>
    %43 = vector.shape_cast %42 : vector<1x36x128xbf16> to vector<36x128xbf16>
    %cst_38 = arith.constant dense<0.000000e+00> : vector<16x128xf32>
    %44 = tpu.matmul %41, %43, %cst_38 {dimension_numbers = #tpu.dot_dimension_numbers<[1], [0], [0], [1], [0, 0, 1, 1], [], []>} : vector<16x36xbf16>, vector<36x128xbf16>, vector<16x128xf32> -> vector<16x128xf32>
    %45 = arith.addf %34, %44 : vector<16x128xf32>
    %46 = arith.truncf %45 : vector<16x128xf32> to vector<16x128xbf16>
    %c0_39 = arith.constant 0 : index
    %c0_40 = arith.constant 0 : index
    %47 = vector.load %arg12[%c0_39, %c0_40] : memref<16x128xbf16, #tpu.memory_space<vmem>>, vector<16x128xbf16>
    tpu.vector_store %arg12[%c0_39, %c0_40], %46 {strides = array<i32>} : memref<16x128xbf16, #tpu.memory_space<vmem>>, vector<16x128xbf16>,
    %c0_41 = arith.constant 0 : index
    %c0_42 = arith.constant 0 : index
    %c0_43 = arith.constant 0 : index
    %48 = vector.load %arg6[%c0_41, %c0_42, %c0_43] : memref<9x16x16xbf16, #tpu.memory_space<vmem>>, vector<1x16x16xbf16>
    %49 = vector.shape_cast %48 : vector<1x16x16xbf16> to vector<16x16xbf16>
    %c0_44 = arith.constant 0 : index
    %c0_45 = arith.constant 0 : index
    %50 = vector.load %arg12[%c0_44, %c0_45] : memref<16x128xbf16, #tpu.memory_space<vmem>>, vector<16x100xbf16>
    %cst_46 = arith.constant dense<0.000000e+00> : vector<16x100xf32>
    %51 = tpu.matmul %49, %50, %cst_46 {dimension_numbers = #tpu.dot_dimension_numbers<[1], [0], [0], [1], [0, 0, 1, 1], [], []>} : vector<16x16xbf16>, vector<16x100xbf16>, vector<16x100xf32> -> vector<16x100xf32>
    %c1_47 = arith.constant 1 : index
    %c0_48 = arith.constant 0 : index
    %c0_49 = arith.constant 0 : index
    %52 = vector.load %arg6[%c1_47, %c0_48, %c0_49] : memref<9x16x16xbf16, #tpu.memory_space<vmem>>, vector<1x16x16xbf16>
    %53 = vector.shape_cast %52 : vector<1x16x16xbf16> to vector<16x16xbf16>
    %c0_50 = arith.constant 0 : index
    %c1_51 = arith.constant 1 : index
    %54 = vector.load %arg12[%c0_50, %c1_51] : memref<16x128xbf16, #tpu.memory_space<vmem>>, vector<16x100xbf16>
    %cst_52 = arith.constant dense<0.000000e+00> : vector<16x100xf32>
    %55 = tpu.matmul %53, %54, %cst_52 {dimension_numbers = #tpu.dot_dimension_numbers<[1], [0], [0], [1], [0, 0, 1, 1], [], []>} : vector<16x16xbf16>, vector<16x100xbf16>, vector<16x100xf32> -> vector<16x100xf32>
    %56 = arith.addf %51, %55 : vector<16x100xf32>
    %c2_53 = arith.constant 2 : index
    %c0_54 = arith.constant 0 : index
    %c0_55 = arith.constant 0 : index
    %57 = vector.load %arg6[%c2_53, %c0_54, %c0_55] : memref<9x16x16xbf16, #tpu.memory_space<vmem>>, vector<1x16x16xbf16>
    %58 = vector.shape_cast %57 : vector<1x16x16xbf16> to vector<16x16xbf16>
    %c0_56 = arith.constant 0 : index
    %c2_57 = arith.constant 2 : index
    %59 = vector.load %arg12[%c0_56, %c2_57] : memref<16x128xbf16, #tpu.memory_space<vmem>>, vector<16x100xbf16>
    %cst_58 = arith.constant dense<0.000000e+00> : vector<16x100xf32>
    %60 = tpu.matmul %58, %59, %cst_58 {dimension_numbers = #tpu.dot_dimension_numbers<[1], [0], [0], [1], [0, 0, 1, 1], [], []>} : vector<16x16xbf16>, vector<16x100xbf16>, vector<16x100xf32> -> vector<16x100xf32>
    %61 = arith.addf %56, %60 : vector<16x100xf32>
    %c3_59 = arith.constant 3 : index
    %c0_60 = arith.constant 0 : index
    %c0_61 = arith.constant 0 : index
    %62 = vector.load %arg6[%c3_59, %c0_60, %c0_61] : memref<9x16x16xbf16, #tpu.memory_space<vmem>>, vector<1x16x16xbf16>
    %63 = vector.shape_cast %62 : vector<1x16x16xbf16> to vector<16x16xbf16>
    %c0_62 = arith.constant 0 : index
    %c10 = arith.constant 10 : index
    %64 = vector.load %arg12[%c0_62, %c10] : memref<16x128xbf16, #tpu.memory_space<vmem>>, vector<16x100xbf16>
    %cst_63 = arith.constant dense<0.000000e+00> : vector<16x100xf32>
    %65 = tpu.matmul %63, %64, %cst_63 {dimension_numbers = #tpu.dot_dimension_numbers<[1], [0], [0], [1], [0, 0, 1, 1], [], []>} : vector<16x16xbf16>, vector<16x100xbf16>, vector<16x100xf32> -> vector<16x100xf32>
    %66 = arith.addf %61, %65 : vector<16x100xf32>
    %c4 = arith.constant 4 : index
    %c0_64 = arith.constant 0 : index
    %c0_65 = arith.constant 0 : index
    %67 = vector.load %arg6[%c4, %c0_64, %c0_65] : memref<9x16x16xbf16, #tpu.memory_space<vmem>>, vector<1x16x16xbf16>
    %68 = vector.shape_cast %67 : vector<1x16x16xbf16> to vector<16x16xbf16>
    %c0_66 = arith.constant 0 : index
    %c11 = arith.constant 11 : index
    %69 = vector.load %arg12[%c0_66, %c11] : memref<16x128xbf16, #tpu.memory_space<vmem>>, vector<16x100xbf16>
    %cst_67 = arith.constant dense<0.000000e+00> : vector<16x100xf32>
    %70 = tpu.matmul %68, %69, %cst_67 {dimension_numbers = #tpu.dot_dimension_numbers<[1], [0], [0], [1], [0, 0, 1, 1], [], []>} : vector<16x16xbf16>, vector<16x100xbf16>, vector<16x100xf32> -> vector<16x100xf32>
    %71 = arith.addf %66, %70 : vector<16x100xf32>
    %c5 = arith.constant 5 : index
    %c0_68 = arith.constant 0 : index
    %c0_69 = arith.constant 0 : index
    %72 = vector.load %arg6[%c5, %c0_68, %c0_69] : memref<9x16x16xbf16, #tpu.memory_space<vmem>>, vector<1x16x16xbf16>
    %73 = vector.shape_cast %72 : vector<1x16x16xbf16> to vector<16x16xbf16>
    %c0_70 = arith.constant 0 : index
    %c12 = arith.constant 12 : index
    %74 = vector.load %arg12[%c0_70, %c12] : memref<16x128xbf16, #tpu.memory_space<vmem>>, vector<16x100xbf16>
    %cst_71 = arith.constant dense<0.000000e+00> : vector<16x100xf32>
    %75 = tpu.matmul %73, %74, %cst_71 {dimension_numbers = #tpu.dot_dimension_numbers<[1], [0], [0], [1], [0, 0, 1, 1], [], []>} : vector<16x16xbf16>, vector<16x100xbf16>, vector<16x100xf32> -> vector<16x100xf32>
    %76 = arith.addf %71, %75 : vector<16x100xf32>
    %c6 = arith.constant 6 : index
    %c0_72 = arith.constant 0 : index
    %c0_73 = arith.constant 0 : index
    %77 = vector.load %arg6[%c6, %c0_72, %c0_73] : memref<9x16x16xbf16, #tpu.memory_space<vmem>>, vector<1x16x16xbf16>
    %78 = vector.shape_cast %77 : vector<1x16x16xbf16> to vector<16x16xbf16>
    %c0_74 = arith.constant 0 : index
    %c20 = arith.constant 20 : index
    %79 = vector.load %arg12[%c0_74, %c20] : memref<16x128xbf16, #tpu.memory_space<vmem>>, vector<16x100xbf16>
    %cst_75 = arith.constant dense<0.000000e+00> : vector<16x100xf32>
    %80 = tpu.matmul %78, %79, %cst_75 {dimension_numbers = #tpu.dot_dimension_numbers<[1], [0], [0], [1], [0, 0, 1, 1], [], []>} : vector<16x16xbf16>, vector<16x100xbf16>, vector<16x100xf32> -> vector<16x100xf32>
    %81 = arith.addf %76, %80 : vector<16x100xf32>
    %c7_76 = arith.constant 7 : index
    %c0_77 = arith.constant 0 : index
    %c0_78 = arith.constant 0 : index
    %82 = vector.load %arg6[%c7_76, %c0_77, %c0_78] : memref<9x16x16xbf16, #tpu.memory_space<vmem>>, vector<1x16x16xbf16>
    %83 = vector.shape_cast %82 : vector<1x16x16xbf16> to vector<16x16xbf16>
    %c0_79 = arith.constant 0 : index
    %c21 = arith.constant 21 : index
    %84 = vector.load %arg12[%c0_79, %c21] : memref<16x128xbf16, #tpu.memory_space<vmem>>, vector<16x100xbf16>
    %cst_80 = arith.constant dense<0.000000e+00> : vector<16x100xf32>
    %85 = tpu.matmul %83, %84, %cst_80 {dimension_numbers = #tpu.dot_dimension_numbers<[1], [0], [0], [1], [0, 0, 1, 1], [], []>} : vector<16x16xbf16>, vector<16x100xbf16>, vector<16x100xf32> -> vector<16x100xf32>
    %86 = arith.addf %81, %85 : vector<16x100xf32>
    %c8 = arith.constant 8 : index
    %c0_81 = arith.constant 0 : index
    %c0_82 = arith.constant 0 : index
    %87 = vector.load %arg6[%c8, %c0_81, %c0_82] : memref<9x16x16xbf16, #tpu.memory_space<vmem>>, vector<1x16x16xbf16>
    %88 = vector.shape_cast %87 : vector<1x16x16xbf16> to vector<16x16xbf16>
    %c0_83 = arith.constant 0 : index
    %c22 = arith.constant 22 : index
    %89 = vector.load %arg12[%c0_83, %c22] : memref<16x128xbf16, #tpu.memory_space<vmem>>, vector<16x100xbf16>
    %cst_84 = arith.constant dense<0.000000e+00> : vector<16x100xf32>
    %90 = tpu.matmul %88, %89, %cst_84 {dimension_numbers = #tpu.dot_dimension_numbers<[1], [0], [0], [1], [0, 0, 1, 1], [], []>} : vector<16x16xbf16>, vector<16x100xbf16>, vector<16x100xf32> -> vector<16x100xf32>
    %91 = arith.addf %86, %90 : vector<16x100xf32>
    %c0_85 = arith.constant 0 : index
    %c0_86 = arith.constant 0 : index
    %c0_87 = arith.constant 0 : index
    %92 = vector.load %arg7[%c0_85, %c0_86, %c0_87] : memref<9x16x16xbf16, #tpu.memory_space<vmem>>, vector<1x16x16xbf16>
    %93 = vector.shape_cast %92 : vector<1x16x16xbf16> to vector<16x16xbf16>
    %c0_88 = arith.constant 0 : index
    %c0_89 = arith.constant 0 : index
    %c0_90 = arith.constant 0 : index
    %94 = vector.load %arg2[%c0_88, %c0_89, %c0_90] : memref<1x16x128xbf16, #tpu.memory_space<vmem>>, vector<1x16x100xbf16>
    %95 = vector.shape_cast %94 : vector<1x16x100xbf16> to vector<16x100xbf16>
    %cst_91 = arith.constant dense<0.000000e+00> : vector<16x100xf32>
    %96 = tpu.matmul %93, %95, %cst_91 {dimension_numbers = #tpu.dot_dimension_numbers<[1], [0], [0], [1], [0, 0, 1, 1], [], []>} : vector<16x16xbf16>, vector<16x100xbf16>, vector<16x100xf32> -> vector<16x100xf32>
    %c1_92 = arith.constant 1 : index
    %c0_93 = arith.constant 0 : index
    %c0_94 = arith.constant 0 : index
    %97 = vector.load %arg7[%c1_92, %c0_93, %c0_94] : memref<9x16x16xbf16, #tpu.memory_space<vmem>>, vector<1x16x16xbf16>
    %98 = vector.shape_cast %97 : vector<1x16x16xbf16> to vector<16x16xbf16>
    %c0_95 = arith.constant 0 : index
    %c0_96 = arith.constant 0 : index
    %c1_97 = arith.constant 1 : index
    %99 = vector.load %arg2[%c0_95, %c0_96, %c1_97] : memref<1x16x128xbf16, #tpu.memory_space<vmem>>, vector<1x16x100xbf16>
    %100 = vector.shape_cast %99 : vector<1x16x100xbf16> to vector<16x100xbf16>
    %cst_98 = arith.constant dense<0.000000e+00> : vector<16x100xf32>
    %101 = tpu.matmul %98, %100, %cst_98 {dimension_numbers = #tpu.dot_dimension_numbers<[1], [0], [0], [1], [0, 0, 1, 1], [], []>} : vector<16x16xbf16>, vector<16x100xbf16>, vector<16x100xf32> -> vector<16x100xf32>
    %102 = arith.addf %96, %101 : vector<16x100xf32>
    %c2_99 = arith.constant 2 : index
    %c0_100 = arith.constant 0 : index
    %c0_101 = arith.constant 0 : index
    %103 = vector.load %arg7[%c2_99, %c0_100, %c0_101] : memref<9x16x16xbf16, #tpu.memory_space<vmem>>, vector<1x16x16xbf16>
    %104 = vector.shape_cast %103 : vector<1x16x16xbf16> to vector<16x16xbf16>
    %c0_102 = arith.constant 0 : index
    %c0_103 = arith.constant 0 : index
    %c2_104 = arith.constant 2 : index
    %105 = vector.load %arg2[%c0_102, %c0_103, %c2_104] : memref<1x16x128xbf16, #tpu.memory_space<vmem>>, vector<1x16x100xbf16>
    %106 = vector.shape_cast %105 : vector<1x16x100xbf16> to vector<16x100xbf16>
    %cst_105 = arith.constant dense<0.000000e+00> : vector<16x100xf32>
    %107 = tpu.matmul %104, %106, %cst_105 {dimension_numbers = #tpu.dot_dimension_numbers<[1], [0], [0], [1], [0, 0, 1, 1], [], []>} : vector<16x16xbf16>, vector<16x100xbf16>, vector<16x100xf32> -> vector<16x100xf32>
    %108 = arith.addf %102, %107 : vector<16x100xf32>
    %c3_106 = arith.constant 3 : index
    %c0_107 = arith.constant 0 : index
    %c0_108 = arith.constant 0 : index
    %109 = vector.load %arg7[%c3_106, %c0_107, %c0_108] : memref<9x16x16xbf16, #tpu.memory_space<vmem>>, vector<1x16x16xbf16>
    %110 = vector.shape_cast %109 : vector<1x16x16xbf16> to vector<16x16xbf16>
    %c0_109 = arith.constant 0 : index
    %c0_110 = arith.constant 0 : index
    %c10_111 = arith.constant 10 : index
    %111 = vector.load %arg2[%c0_109, %c0_110, %c10_111] : memref<1x16x128xbf16, #tpu.memory_space<vmem>>, vector<1x16x100xbf16>
    %112 = vector.shape_cast %111 : vector<1x16x100xbf16> to vector<16x100xbf16>
    %cst_112 = arith.constant dense<0.000000e+00> : vector<16x100xf32>
    %113 = tpu.matmul %110, %112, %cst_112 {dimension_numbers = #tpu.dot_dimension_numbers<[1], [0], [0], [1], [0, 0, 1, 1], [], []>} : vector<16x16xbf16>, vector<16x100xbf16>, vector<16x100xf32> -> vector<16x100xf32>
    %114 = arith.addf %108, %113 : vector<16x100xf32>
    %c4_113 = arith.constant 4 : index
    %c0_114 = arith.constant 0 : index
    %c0_115 = arith.constant 0 : index
    %115 = vector.load %arg7[%c4_113, %c0_114, %c0_115] : memref<9x16x16xbf16, #tpu.memory_space<vmem>>, vector<1x16x16xbf16>
    %116 = vector.shape_cast %115 : vector<1x16x16xbf16> to vector<16x16xbf16>
    %c0_116 = arith.constant 0 : index
    %c0_117 = arith.constant 0 : index
    %c11_118 = arith.constant 11 : index
    %117 = vector.load %arg2[%c0_116, %c0_117, %c11_118] : memref<1x16x128xbf16, #tpu.memory_space<vmem>>, vector<1x16x100xbf16>
    %118 = vector.shape_cast %117 : vector<1x16x100xbf16> to vector<16x100xbf16>
    %cst_119 = arith.constant dense<0.000000e+00> : vector<16x100xf32>
    %119 = tpu.matmul %116, %118, %cst_119 {dimension_numbers = #tpu.dot_dimension_numbers<[1], [0], [0], [1], [0, 0, 1, 1], [], []>} : vector<16x16xbf16>, vector<16x100xbf16>, vector<16x100xf32> -> vector<16x100xf32>
    %120 = arith.addf %114, %119 : vector<16x100xf32>
    %c5_120 = arith.constant 5 : index
    %c0_121 = arith.constant 0 : index
    %c0_122 = arith.constant 0 : index
    %121 = vector.load %arg7[%c5_120, %c0_121, %c0_122] : memref<9x16x16xbf16, #tpu.memory_space<vmem>>, vector<1x16x16xbf16>
    %122 = vector.shape_cast %121 : vector<1x16x16xbf16> to vector<16x16xbf16>
    %c0_123 = arith.constant 0 : index
    %c0_124 = arith.constant 0 : index
    %c12_125 = arith.constant 12 : index
    %123 = vector.load %arg2[%c0_123, %c0_124, %c12_125] : memref<1x16x128xbf16, #tpu.memory_space<vmem>>, vector<1x16x100xbf16>
    %124 = vector.shape_cast %123 : vector<1x16x100xbf16> to vector<16x100xbf16>
    %cst_126 = arith.constant dense<0.000000e+00> : vector<16x100xf32>
    %125 = tpu.matmul %122, %124, %cst_126 {dimension_numbers = #tpu.dot_dimension_numbers<[1], [0], [0], [1], [0, 0, 1, 1], [], []>} : vector<16x16xbf16>, vector<16x100xbf16>, vector<16x100xf32> -> vector<16x100xf32>
    %126 = arith.addf %120, %125 : vector<16x100xf32>
    %c6_127 = arith.constant 6 : index
    %c0_128 = arith.constant 0 : index
    %c0_129 = arith.constant 0 : index
    %127 = vector.load %arg7[%c6_127, %c0_128, %c0_129] : memref<9x16x16xbf16, #tpu.memory_space<vmem>>, vector<1x16x16xbf16>
    %128 = vector.shape_cast %127 : vector<1x16x16xbf16> to vector<16x16xbf16>
    %c0_130 = arith.constant 0 : index
    %c0_131 = arith.constant 0 : index
    %c20_132 = arith.constant 20 : index
    %129 = vector.load %arg2[%c0_130, %c0_131, %c20_132] : memref<1x16x128xbf16, #tpu.memory_space<vmem>>, vector<1x16x100xbf16>
    %130 = vector.shape_cast %129 : vector<1x16x100xbf16> to vector<16x100xbf16>
    %cst_133 = arith.constant dense<0.000000e+00> : vector<16x100xf32>
    %131 = tpu.matmul %128, %130, %cst_133 {dimension_numbers = #tpu.dot_dimension_numbers<[1], [0], [0], [1], [0, 0, 1, 1], [], []>} : vector<16x16xbf16>, vector<16x100xbf16>, vector<16x100xf32> -> vector<16x100xf32>
    %132 = arith.addf %126, %131 : vector<16x100xf32>
    %c7_134 = arith.constant 7 : index
    %c0_135 = arith.constant 0 : index
    %c0_136 = arith.constant 0 : index
    %133 = vector.load %arg7[%c7_134, %c0_135, %c0_136] : memref<9x16x16xbf16, #tpu.memory_space<vmem>>, vector<1x16x16xbf16>
    %134 = vector.shape_cast %133 : vector<1x16x16xbf16> to vector<16x16xbf16>
    %c0_137 = arith.constant 0 : index
    %c0_138 = arith.constant 0 : index
    %c21_139 = arith.constant 21 : index
    %135 = vector.load %arg2[%c0_137, %c0_138, %c21_139] : memref<1x16x128xbf16, #tpu.memory_space<vmem>>, vector<1x16x100xbf16>
    %136 = vector.shape_cast %135 : vector<1x16x100xbf16> to vector<16x100xbf16>
    %cst_140 = arith.constant dense<0.000000e+00> : vector<16x100xf32>
    %137 = tpu.matmul %134, %136, %cst_140 {dimension_numbers = #tpu.dot_dimension_numbers<[1], [0], [0], [1], [0, 0, 1, 1], [], []>} : vector<16x16xbf16>, vector<16x100xbf16>, vector<16x100xf32> -> vector<16x100xf32>
    %138 = arith.addf %132, %137 : vector<16x100xf32>
    %c8_141 = arith.constant 8 : index
    %c0_142 = arith.constant 0 : index
    %c0_143 = arith.constant 0 : index
    %139 = vector.load %arg7[%c8_141, %c0_142, %c0_143] : memref<9x16x16xbf16, #tpu.memory_space<vmem>>, vector<1x16x16xbf16>
    %140 = vector.shape_cast %139 : vector<1x16x16xbf16> to vector<16x16xbf16>
    %c0_144 = arith.constant 0 : index
    %c0_145 = arith.constant 0 : index
    %c22_146 = arith.constant 22 : index
    %141 = vector.load %arg2[%c0_144, %c0_145, %c22_146] : memref<1x16x128xbf16, #tpu.memory_space<vmem>>, vector<1x16x100xbf16>
    %142 = vector.shape_cast %141 : vector<1x16x100xbf16> to vector<16x100xbf16>
    %cst_147 = arith.constant dense<0.000000e+00> : vector<16x100xf32>
    %143 = tpu.matmul %140, %142, %cst_147 {dimension_numbers = #tpu.dot_dimension_numbers<[1], [0], [0], [1], [0, 0, 1, 1], [], []>} : vector<16x16xbf16>, vector<16x100xbf16>, vector<16x100xf32> -> vector<16x100xf32>
    %144 = arith.addf %138, %143 : vector<16x100xf32>
    %145 = arith.addf %91, %144 : vector<16x100xf32>
    %c0_148 = arith.constant 0 : index
    %c0_149 = arith.constant 0 : index
    %146 = vector.load %arg8[%c0_148, %c0_149] : memref<16x4xf32, #tpu.memory_space<vmem>>, vector<16x1xf32>
    %c0_150 = arith.constant 0 : index
    %c1_151 = arith.constant 1 : index
    %147 = vector.load %arg8[%c0_150, %c1_151] : memref<16x4xf32, #tpu.memory_space<vmem>>, vector<16x1xf32>
    %148 = vector.broadcast %0 : vector<1x100xf32> to vector<16x100xf32>
    %149 = arith.mulf %145, %148 : vector<16x100xf32>
    %cst_152 = arith.constant dense<0.000000e+00> : vector<16xf32>
    %150 = vector.multi_reduction <add>, %149, %cst_152 [1] : vector<16x100xf32> to vector<16xf32>
    %151 = vector.shape_cast %150 : vector<16xf32> to vector<16x1xf32>
    %cst_153 = arith.constant 1.562500e-02 : f32
    %152 = vector.broadcast %cst_153 : f32 to vector<16x1xf32>
    %153 = arith.mulf %151, %152 : vector<16x1xf32>
    %154 = vector.broadcast %153 : vector<16x1xf32> to vector<16x100xf32>
    %155 = arith.subf %145, %154 : vector<16x100xf32>
    %156 = vector.broadcast %0 : vector<1x100xf32> to vector<16x100xf32>
    %157 = arith.mulf %155, %156 : vector<16x100xf32>
    %158 = arith.mulf %157, %157 : vector<16x100xf32>
    %cst_154 = arith.constant dense<0.000000e+00> : vector<16xf32>
    %159 = vector.multi_reduction <add>, %158, %cst_154 [1] : vector<16x100xf32> to vector<16xf32>
    %160 = vector.shape_cast %159 : vector<16xf32> to vector<16x1xf32>
    %cst_155 = arith.constant 1.562500e-02 : f32
    %161 = vector.broadcast %cst_155 : f32 to vector<16x1xf32>
    %162 = arith.mulf %160, %161 : vector<16x1xf32>
    %cst_156 = arith.constant 9.99999974E-6 : f32
    %163 = vector.broadcast %cst_156 : f32 to vector<16x1xf32>
    %164 = arith.addf %162, %163 : vector<16x1xf32>
    %165 = math.rsqrt %164 : vector<16x1xf32>
    %166 = vector.broadcast %165 : vector<16x1xf32> to vector<16x100xf32>
    %167 = arith.mulf %157, %166 : vector<16x100xf32>
    %168 = vector.broadcast %146 : vector<16x1xf32> to vector<16x100xf32>
    %169 = arith.mulf %167, %168 : vector<16x100xf32>
    %170 = vector.broadcast %147 : vector<16x1xf32> to vector<16x100xf32>
    %171 = arith.addf %169, %170 : vector<16x100xf32>
    %cst_157 = arith.constant 0.000000e+00 : f32
    %172 = vector.broadcast %cst_157 : f32 to vector<16x100xf32>
    %173 = arith.cmpf ogt, %171, %172 : vector<16x100xf32>
    %cst_158 = arith.constant 0.00999999977 : f32
    %174 = vector.broadcast %cst_158 : f32 to vector<16x100xf32>
    %175 = arith.mulf %174, %171 : vector<16x100xf32>
    %176 = arith.select %173, %171, %175 : vector<16x100xi1>, vector<16x100xf32>
    %177 = vector.broadcast %0 : vector<1x100xf32> to vector<16x100xf32>
    %178 = arith.mulf %176, %177 : vector<16x100xf32>
    %cst_159 = arith.constant 0.000000e+00 : bf16
    %179 = vector.broadcast %cst_159 : bf16 to vector<16x128xbf16>
    %c0_160 = arith.constant 0 : index
    %c0_161 = arith.constant 0 : index
    %180 = vector.load %arg13[%c0_160, %c0_161] : memref<16x128xbf16, #tpu.memory_space<vmem>>, vector<16x128xbf16>
    tpu.vector_store %arg13[%c0_160, %c0_161], %179 {strides = array<i32>} : memref<16x128xbf16, #tpu.memory_space<vmem>>, vector<16x128xbf16>,
    %181 = arith.truncf %178 : vector<16x100xf32> to vector<16x100xbf16>
    %c0_162 = arith.constant 0 : index
    %c11_163 = arith.constant 11 : index
    %182 = vector.load %arg13[%c0_162, %c11_163] : memref<16x128xbf16, #tpu.memory_space<vmem>>, vector<16x100xbf16>
    tpu.vector_store %arg13[%c0_162, %c11_163], %181 {strides = array<i32>} : memref<16x128xbf16, #tpu.memory_space<vmem>>, vector<16x100xbf16>,
    %c0_164 = arith.constant 0 : index
    %c0_165 = arith.constant 0 : index
    %c0_166 = arith.constant 0 : index
    %183 = vector.load %arg9[%c0_164, %c0_165, %c0_166] : memref<9x16x16xbf16, #tpu.memory_space<vmem>>, vector<1x16x16xbf16>
    %184 = vector.shape_cast %183 : vector<1x16x16xbf16> to vector<16x16xbf16>
    %c0_167 = arith.constant 0 : index
    %c0_168 = arith.constant 0 : index
    %185 = vector.load %arg13[%c0_167, %c0_168] : memref<16x128xbf16, #tpu.memory_space<vmem>>, vector<16x100xbf16>
    %cst_169 = arith.constant dense<0.000000e+00> : vector<16x100xf32>
    %186 = tpu.matmul %184, %185, %cst_169 {dimension_numbers = #tpu.dot_dimension_numbers<[1], [0], [0], [1], [0, 0, 1, 1], [], []>} : vector<16x16xbf16>, vector<16x100xbf16>, vector<16x100xf32> -> vector<16x100xf32>
    %c1_170 = arith.constant 1 : index
    %c0_171 = arith.constant 0 : index
    %c0_172 = arith.constant 0 : index
    %187 = vector.load %arg9[%c1_170, %c0_171, %c0_172] : memref<9x16x16xbf16, #tpu.memory_space<vmem>>, vector<1x16x16xbf16>
    %188 = vector.shape_cast %187 : vector<1x16x16xbf16> to vector<16x16xbf16>
    %c0_173 = arith.constant 0 : index
    %c1_174 = arith.constant 1 : index
    %189 = vector.load %arg13[%c0_173, %c1_174] : memref<16x128xbf16, #tpu.memory_space<vmem>>, vector<16x100xbf16>
    %cst_175 = arith.constant dense<0.000000e+00> : vector<16x100xf32>
    %190 = tpu.matmul %188, %189, %cst_175 {dimension_numbers = #tpu.dot_dimension_numbers<[1], [0], [0], [1], [0, 0, 1, 1], [], []>} : vector<16x16xbf16>, vector<16x100xbf16>, vector<16x100xf32> -> vector<16x100xf32>
    %191 = arith.addf %186, %190 : vector<16x100xf32>
    %c2_176 = arith.constant 2 : index
    %c0_177 = arith.constant 0 : index
    %c0_178 = arith.constant 0 : index
    %192 = vector.load %arg9[%c2_176, %c0_177, %c0_178] : memref<9x16x16xbf16, #tpu.memory_space<vmem>>, vector<1x16x16xbf16>
    %193 = vector.shape_cast %192 : vector<1x16x16xbf16> to vector<16x16xbf16>
    %c0_179 = arith.constant 0 : index
    %c2_180 = arith.constant 2 : index
    %194 = vector.load %arg13[%c0_179, %c2_180] : memref<16x128xbf16, #tpu.memory_space<vmem>>, vector<16x100xbf16>
    %cst_181 = arith.constant dense<0.000000e+00> : vector<16x100xf32>
    %195 = tpu.matmul %193, %194, %cst_181 {dimension_numbers = #tpu.dot_dimension_numbers<[1], [0], [0], [1], [0, 0, 1, 1], [], []>} : vector<16x16xbf16>, vector<16x100xbf16>, vector<16x100xf32> -> vector<16x100xf32>
    %196 = arith.addf %191, %195 : vector<16x100xf32>
    %c3_182 = arith.constant 3 : index
    %c0_183 = arith.constant 0 : index
    %c0_184 = arith.constant 0 : index
    %197 = vector.load %arg9[%c3_182, %c0_183, %c0_184] : memref<9x16x16xbf16, #tpu.memory_space<vmem>>, vector<1x16x16xbf16>
    %198 = vector.shape_cast %197 : vector<1x16x16xbf16> to vector<16x16xbf16>
    %c0_185 = arith.constant 0 : index
    %c10_186 = arith.constant 10 : index
    %199 = vector.load %arg13[%c0_185, %c10_186] : memref<16x128xbf16, #tpu.memory_space<vmem>>, vector<16x100xbf16>
    %cst_187 = arith.constant dense<0.000000e+00> : vector<16x100xf32>
    %200 = tpu.matmul %198, %199, %cst_187 {dimension_numbers = #tpu.dot_dimension_numbers<[1], [0], [0], [1], [0, 0, 1, 1], [], []>} : vector<16x16xbf16>, vector<16x100xbf16>, vector<16x100xf32> -> vector<16x100xf32>
    %201 = arith.addf %196, %200 : vector<16x100xf32>
    %c4_188 = arith.constant 4 : index
    %c0_189 = arith.constant 0 : index
    %c0_190 = arith.constant 0 : index
    %202 = vector.load %arg9[%c4_188, %c0_189, %c0_190] : memref<9x16x16xbf16, #tpu.memory_space<vmem>>, vector<1x16x16xbf16>
    %203 = vector.shape_cast %202 : vector<1x16x16xbf16> to vector<16x16xbf16>
    %c0_191 = arith.constant 0 : index
    %c11_192 = arith.constant 11 : index
    %204 = vector.load %arg13[%c0_191, %c11_192] : memref<16x128xbf16, #tpu.memory_space<vmem>>, vector<16x100xbf16>
    %cst_193 = arith.constant dense<0.000000e+00> : vector<16x100xf32>
    %205 = tpu.matmul %203, %204, %cst_193 {dimension_numbers = #tpu.dot_dimension_numbers<[1], [0], [0], [1], [0, 0, 1, 1], [], []>} : vector<16x16xbf16>, vector<16x100xbf16>, vector<16x100xf32> -> vector<16x100xf32>
    %206 = arith.addf %201, %205 : vector<16x100xf32>
    %c5_194 = arith.constant 5 : index
    %c0_195 = arith.constant 0 : index
    %c0_196 = arith.constant 0 : index
    %207 = vector.load %arg9[%c5_194, %c0_195, %c0_196] : memref<9x16x16xbf16, #tpu.memory_space<vmem>>, vector<1x16x16xbf16>
    %208 = vector.shape_cast %207 : vector<1x16x16xbf16> to vector<16x16xbf16>
    %c0_197 = arith.constant 0 : index
    %c12_198 = arith.constant 12 : index
    %209 = vector.load %arg13[%c0_197, %c12_198] : memref<16x128xbf16, #tpu.memory_space<vmem>>, vector<16x100xbf16>
    %cst_199 = arith.constant dense<0.000000e+00> : vector<16x100xf32>
    %210 = tpu.matmul %208, %209, %cst_199 {dimension_numbers = #tpu.dot_dimension_numbers<[1], [0], [0], [1], [0, 0, 1, 1], [], []>} : vector<16x16xbf16>, vector<16x100xbf16>, vector<16x100xf32> -> vector<16x100xf32>
    %211 = arith.addf %206, %210 : vector<16x100xf32>
    %c6_200 = arith.constant 6 : index
    %c0_201 = arith.constant 0 : index
    %c0_202 = arith.constant 0 : index
    %212 = vector.load %arg9[%c6_200, %c0_201, %c0_202] : memref<9x16x16xbf16, #tpu.memory_space<vmem>>, vector<1x16x16xbf16>
    %213 = vector.shape_cast %212 : vector<1x16x16xbf16> to vector<16x16xbf16>
    %c0_203 = arith.constant 0 : index
    %c20_204 = arith.constant 20 : index
    %214 = vector.load %arg13[%c0_203, %c20_204] : memref<16x128xbf16, #tpu.memory_space<vmem>>, vector<16x100xbf16>
    %cst_205 = arith.constant dense<0.000000e+00> : vector<16x100xf32>
    %215 = tpu.matmul %213, %214, %cst_205 {dimension_numbers = #tpu.dot_dimension_numbers<[1], [0], [0], [1], [0, 0, 1, 1], [], []>} : vector<16x16xbf16>, vector<16x100xbf16>, vector<16x100xf32> -> vector<16x100xf32>
    %216 = arith.addf %211, %215 : vector<16x100xf32>
    %c7_206 = arith.constant 7 : index
    %c0_207 = arith.constant 0 : index
    %c0_208 = arith.constant 0 : index
    %217 = vector.load %arg9[%c7_206, %c0_207, %c0_208] : memref<9x16x16xbf16, #tpu.memory_space<vmem>>, vector<1x16x16xbf16>
    %218 = vector.shape_cast %217 : vector<1x16x16xbf16> to vector<16x16xbf16>
    %c0_209 = arith.constant 0 : index
    %c21_210 = arith.constant 21 : index
    %219 = vector.load %arg13[%c0_209, %c21_210] : memref<16x128xbf16, #tpu.memory_space<vmem>>, vector<16x100xbf16>
    %cst_211 = arith.constant dense<0.000000e+00> : vector<16x100xf32>
    %220 = tpu.matmul %218, %219, %cst_211 {dimension_numbers = #tpu.dot_dimension_numbers<[1], [0], [0], [1], [0, 0, 1, 1], [], []>} : vector<16x16xbf16>, vector<16x100xbf16>, vector<16x100xf32> -> vector<16x100xf32>
    %221 = arith.addf %216, %220 : vector<16x100xf32>
    %c8_212 = arith.constant 8 : index
    %c0_213 = arith.constant 0 : index
    %c0_214 = arith.constant 0 : index
    %222 = vector.load %arg9[%c8_212, %c0_213, %c0_214] : memref<9x16x16xbf16, #tpu.memory_space<vmem>>, vector<1x16x16xbf16>
    %223 = vector.shape_cast %222 : vector<1x16x16xbf16> to vector<16x16xbf16>
    %c0_215 = arith.constant 0 : index
    %c22_216 = arith.constant 22 : index
    %224 = vector.load %arg13[%c0_215, %c22_216] : memref<16x128xbf16, #tpu.memory_space<vmem>>, vector<16x100xbf16>
    %cst_217 = arith.constant dense<0.000000e+00> : vector<16x100xf32>
    %225 = tpu.matmul %223, %224, %cst_217 {dimension_numbers = #tpu.dot_dimension_numbers<[1], [0], [0], [1], [0, 0, 1, 1], [], []>} : vector<16x16xbf16>, vector<16x100xbf16>, vector<16x100xf32> -> vector<16x100xf32>
    %226 = arith.addf %221, %225 : vector<16x100xf32>
    %c0_218 = arith.constant 0 : index
    %c2_219 = arith.constant 2 : index
    %227 = vector.load %arg8[%c0_218, %c2_219] : memref<16x4xf32, #tpu.memory_space<vmem>>, vector<16x1xf32>
    %c0_220 = arith.constant 0 : index
    %c3_221 = arith.constant 3 : index
    %228 = vector.load %arg8[%c0_220, %c3_221] : memref<16x4xf32, #tpu.memory_space<vmem>>, vector<16x1xf32>
    %229 = vector.broadcast %0 : vector<1x100xf32> to vector<16x100xf32>
    %230 = arith.mulf %226, %229 : vector<16x100xf32>
    %cst_222 = arith.constant dense<0.000000e+00> : vector<16xf32>
    %231 = vector.multi_reduction <add>, %230, %cst_222 [1] : vector<16x100xf32> to vector<16xf32>
    %232 = vector.shape_cast %231 : vector<16xf32> to vector<16x1xf32>
    %cst_223 = arith.constant 1.562500e-02 : f32
    %233 = vector.broadcast %cst_223 : f32 to vector<16x1xf32>
    %234 = arith.mulf %232, %233 : vector<16x1xf32>
    %235 = vector.broadcast %234 : vector<16x1xf32> to vector<16x100xf32>
    %236 = arith.subf %226, %235 : vector<16x100xf32>
    %237 = vector.broadcast %0 : vector<1x100xf32> to vector<16x100xf32>
    %238 = arith.mulf %236, %237 : vector<16x100xf32>
    %239 = arith.mulf %238, %238 : vector<16x100xf32>
    %cst_224 = arith.constant dense<0.000000e+00> : vector<16xf32>
    %240 = vector.multi_reduction <add>, %239, %cst_224 [1] : vector<16x100xf32> to vector<16xf32>
    %241 = vector.shape_cast %240 : vector<16xf32> to vector<16x1xf32>
    %cst_225 = arith.constant 1.562500e-02 : f32
    %242 = vector.broadcast %cst_225 : f32 to vector<16x1xf32>
    %243 = arith.mulf %241, %242 : vector<16x1xf32>
    %cst_226 = arith.constant 9.99999974E-6 : f32
    %244 = vector.broadcast %cst_226 : f32 to vector<16x1xf32>
    %245 = arith.addf %243, %244 : vector<16x1xf32>
    %246 = math.rsqrt %245 : vector<16x1xf32>
    %247 = vector.broadcast %246 : vector<16x1xf32> to vector<16x100xf32>
    %248 = arith.mulf %238, %247 : vector<16x100xf32>
    %249 = vector.broadcast %227 : vector<16x1xf32> to vector<16x100xf32>
    %250 = arith.mulf %248, %249 : vector<16x100xf32>
    %251 = vector.broadcast %228 : vector<16x1xf32> to vector<16x100xf32>
    %252 = arith.addf %250, %251 : vector<16x100xf32>
    %cst_227 = arith.constant 0.000000e+00 : f32
    %253 = vector.broadcast %cst_227 : f32 to vector<16x100xf32>
    %254 = arith.cmpf ogt, %252, %253 : vector<16x100xf32>
    %cst_228 = arith.constant 0.00999999977 : f32
    %255 = vector.broadcast %cst_228 : f32 to vector<16x100xf32>
    %256 = arith.mulf %255, %252 : vector<16x100xf32>
    %257 = arith.select %254, %252, %256 : vector<16x100xi1>, vector<16x100xf32>
    %258 = vector.broadcast %0 : vector<1x100xf32> to vector<16x100xf32>
    %259 = arith.mulf %257, %258 : vector<16x100xf32>
    %cst_229 = arith.constant 0.000000e+00 : bf16
    %260 = vector.broadcast %cst_229 : bf16 to vector<1x16x128xbf16>
    %c0_230 = arith.constant 0 : index
    %c0_231 = arith.constant 0 : index
    %c0_232 = arith.constant 0 : index
    %261 = vector.load %arg11[%c0_230, %c0_231, %c0_232] : memref<1x16x128xbf16, #tpu.memory_space<vmem>>, vector<1x16x128xbf16>
    tpu.vector_store %arg11[%c0_230, %c0_231, %c0_232], %260 {strides = array<i32>} : memref<1x16x128xbf16, #tpu.memory_space<vmem>>, vector<1x16x128xbf16>,
    %262 = arith.truncf %259 : vector<16x100xf32> to vector<16x100xbf16>
    %c0_233 = arith.constant 0 : index
    %c0_234 = arith.constant 0 : index
    %c11_235 = arith.constant 11 : index
    %263 = vector.load %arg11[%c0_233, %c0_234, %c11_235] : memref<1x16x128xbf16, #tpu.memory_space<vmem>>, vector<1x16x100xbf16>
    %264 = vector.shape_cast %263 : vector<1x16x100xbf16> to vector<16x100xbf16>
    %265 = vector.shape_cast %262 : vector<16x100xbf16> to vector<1x16x100xbf16>
    tpu.vector_store %arg11[%c0_233, %c0_234, %c11_235], %265 {strides = array<i32>} : memref<1x16x128xbf16, #tpu.memory_space<vmem>>, vector<1x16x100xbf16>,
    return
  }
  func.func @transform_0(%arg0: i32) -> (i32, i32, i32) {
    %c0_i32 = arith.constant 0 : i32
    %c0_i32_0 = arith.constant 0 : i32
    %c0_i32_1 = arith.constant 0 : i32
    return %arg0, %c0_i32, %c0_i32_0 : i32, i32, i32
  }
  func.func @transform_1(%arg0: i32) -> (i32, i32, i32) {
    %c0_i32 = arith.constant 0 : i32
    %c0_i32_0 = arith.constant 0 : i32
    %c0_i32_1 = arith.constant 0 : i32
    return %arg0, %c0_i32, %c0_i32_0 : i32, i32, i32
  }
  func.func @transform_2(%arg0: i32) -> (i32, i32, i32) {
    %c0_i32 = arith.constant 0 : i32
    %c0_i32_0 = arith.constant 0 : i32
    %c0_i32_1 = arith.constant 0 : i32
    %c0_i32_2 = arith.constant 0 : i32
    return %c0_i32, %c0_i32_0, %c0_i32_1 : i32, i32, i32
  }
  func.func @transform_3(%arg0: i32) -> (i32, i32) {
    %c0_i32 = arith.constant 0 : i32
    %c0_i32_0 = arith.constant 0 : i32
    %c0_i32_1 = arith.constant 0 : i32
    return %c0_i32, %c0_i32_0 : i32, i32
  }
  func.func @transform_4(%arg0: i32) -> (i32, i32, i32) {
    %c0_i32 = arith.constant 0 : i32
    %c0_i32_0 = arith.constant 0 : i32
    %c0_i32_1 = arith.constant 0 : i32
    %c0_i32_2 = arith.constant 0 : i32
    return %c0_i32, %c0_i32_0, %c0_i32_1 : i32, i32, i32
  }
  func.func @transform_5(%arg0: i32) -> (i32, i32, i32) {
    %c0_i32 = arith.constant 0 : i32
    %c0_i32_0 = arith.constant 0 : i32
    %c0_i32_1 = arith.constant 0 : i32
    %c0_i32_2 = arith.constant 0 : i32
    return %c0_i32, %c0_i32_0, %c0_i32_1 : i32, i32, i32
  }
  func.func @transform_6(%arg0: i32) -> (i32, i32, i32) {
    %c0_i32 = arith.constant 0 : i32
    %c0_i32_0 = arith.constant 0 : i32
    %c0_i32_1 = arith.constant 0 : i32
    %c0_i32_2 = arith.constant 0 : i32
    return %c0_i32, %c0_i32_0, %c0_i32_1 : i32, i32, i32
  }
  func.func @transform_7(%arg0: i32) -> (i32, i32) {
    %c0_i32 = arith.constant 0 : i32
    %c0_i32_0 = arith.constant 0 : i32
    %c0_i32_1 = arith.constant 0 : i32
    return %c0_i32, %c0_i32_0 : i32, i32
  }
  func.func @transform_8(%arg0: i32) -> (i32, i32, i32) {
    %c0_i32 = arith.constant 0 : i32
    %c0_i32_0 = arith.constant 0 : i32
    %c0_i32_1 = arith.constant 0 : i32
    %c0_i32_2 = arith.constant 0 : i32
    return %c0_i32, %c0_i32_0, %c0_i32_1 : i32, i32, i32
  }
  func.func @transform_9(%arg0: i32) -> (i32, i32) {
    %c0_i32 = arith.constant 0 : i32
    %c0_i32_0 = arith.constant 0 : i32
    %c0_i32_1 = arith.constant 0 : i32
    return %c0_i32, %c0_i32_0 : i32, i32
  }
  func.func @transform_10(%arg0: i32) -> (i32, i32, i32) {
    %c0_i32 = arith.constant 0 : i32
    %c0_i32_0 = arith.constant 0 : i32
    %c0_i32_1 = arith.constant 0 : i32
    return %arg0, %c0_i32, %c0_i32_0 : i32, i32, i32
  }
}

module attributes {stable_mosaic.version = 11 : i64} {
  func.func @kernel(%arg0: i32, %arg1: memref<1x16x128xbf16, #tpu.memory_space<vmem>>, %arg2: memref<1x8x384xbf16, #tpu.memory_space<vmem>>, %arg3: memref<4x8x16xbf16, #tpu.memory_space<vmem>>, %arg4: memref<8x1xf32, #tpu.memory_space<vmem>>, %arg5: memref<4x100x384xbf16, #tpu.memory_space<vmem>>, %arg6: memref<9x8x8xbf16, #tpu.memory_space<vmem>>, %arg7: memref<9x8x8xbf16, #tpu.memory_space<vmem>>, %arg8: memref<8x4xf32, #tpu.memory_space<vmem>>, %arg9: memref<9x8x8xbf16, #tpu.memory_space<vmem>>, %arg10: memref<1x324xf32, #tpu.memory_space<vmem>>, %arg11: memref<8x8xbf16, #tpu.memory_space<vmem>>, %arg12: memref<8x1xf32, #tpu.memory_space<vmem>>, %arg13: memref<1x8x324xf32, #tpu.memory_space<vmem>>, %arg14: memref<8x384xbf16, #tpu.memory_space<vmem>>, %arg15: memref<8x384xbf16, #tpu.memory_space<vmem>>) attributes {dimension_semantics = [#tpu.dimension_semantics<parallel>], iteration_bounds = array<i64: 2>, scalar_prefetch = 0 : i64, scratch_operands = 2 : i64, tpu.core_type = #tpu.core_type<tc>, window_params = [{transform_indices = @transform_0, window_bounds = array<i64: 1, 16, 128>}, {transform_indices = @transform_1, window_bounds = array<i64: 1, 8, 384>}, {pipeline_mode = #tpu.pipeline_mode<synchronous>, transform_indices = @transform_2, window_bounds = array<i64: 4, 8, 16>}, {pipeline_mode = #tpu.pipeline_mode<synchronous>, transform_indices = @transform_3, window_bounds = array<i64: 8, 1>}, {pipeline_mode = #tpu.pipeline_mode<synchronous>, transform_indices = @transform_4, window_bounds = array<i64: 4, 100, 384>}, {pipeline_mode = #tpu.pipeline_mode<synchronous>, transform_indices = @transform_5, window_bounds = array<i64: 9, 8, 8>}, {pipeline_mode = #tpu.pipeline_mode<synchronous>, transform_indices = @transform_6, window_bounds = array<i64: 9, 8, 8>}, {pipeline_mode = #tpu.pipeline_mode<synchronous>, transform_indices = @transform_7, window_bounds = array<i64: 8, 4>}, {pipeline_mode = #tpu.pipeline_mode<synchronous>, transform_indices = @transform_8, window_bounds = array<i64: 9, 8, 8>}, {pipeline_mode = #tpu.pipeline_mode<synchronous>, transform_indices = @transform_9, window_bounds = array<i64: 1, 324>}, {pipeline_mode = #tpu.pipeline_mode<synchronous>, transform_indices = @transform_10, window_bounds = array<i64: 8, 8>}, {pipeline_mode = #tpu.pipeline_mode<synchronous>, transform_indices = @transform_11, window_bounds = array<i64: 8, 1>}, {transform_indices = @transform_12, window_bounds = array<i64: 1, 8, 324>}]} {
    %c0 = arith.constant 0 : index
    %c0_0 = arith.constant 0 : index
    %0 = vector.load %arg10[%c0, %c0_0] : memref<1x324xf32, #tpu.memory_space<vmem>>, vector<1x324xf32>
    %c0_1 = arith.constant 0 : index
    %c0_2 = arith.constant 0 : index
    %c11 = arith.constant 11 : index
    %1 = vector.load %arg1[%c0_1, %c0_2, %c11] : memref<1x16x128xbf16, #tpu.memory_space<vmem>>, vector<1x16x100xbf16>
    %2 = vector.shape_cast %1 : vector<1x16x100xbf16> to vector<16x100xbf16>
    %c0_3 = arith.constant 0 : index
    %c0_4 = arith.constant 0 : index
    %c0_5 = arith.constant 0 : index
    %3 = vector.load %arg3[%c0_3, %c0_4, %c0_5] : memref<4x8x16xbf16, #tpu.memory_space<vmem>>, vector<1x8x16xbf16>
    %4 = vector.shape_cast %3 : vector<1x8x16xbf16> to vector<8x16xbf16>
    %cst = arith.constant dense<0.000000e+00> : vector<8x100xf32>
    %5 = tpu.matmul %4, %2, %cst {dimension_numbers = #tpu.dot_dimension_numbers<[1], [0], [0], [1], [0, 0, 1, 1], [], []>} : vector<8x16xbf16>, vector<16x100xbf16>, vector<8x100xf32> -> vector<8x100xf32>
    %c0_6 = arith.constant 0 : index
    %c0_7 = arith.constant 0 : index
    %6 = vector.load %arg4[%c0_6, %c0_7] : memref<8x1xf32, #tpu.memory_space<vmem>>, vector<8x1xf32>
    %7 = vector.broadcast %6 : vector<8x1xf32> to vector<8x100xf32>
    %8 = arith.addf %5, %7 : vector<8x100xf32>
    %9 = arith.truncf %8 : vector<8x100xf32> to vector<8x100xbf16>
    %c0_8 = arith.constant 0 : index
    %c0_9 = arith.constant 0 : index
    %c0_10 = arith.constant 0 : index
    %10 = vector.load %arg5[%c0_8, %c0_9, %c0_10] : memref<4x100x384xbf16, #tpu.memory_space<vmem>>, vector<1x100x384xbf16>
    %11 = vector.shape_cast %10 : vector<1x100x384xbf16> to vector<100x384xbf16>
    %cst_11 = arith.constant dense<0.000000e+00> : vector<8x384xf32>
    %12 = tpu.matmul %9, %11, %cst_11 {dimension_numbers = #tpu.dot_dimension_numbers<[1], [0], [0], [1], [0, 0, 1, 1], [], []>} : vector<8x100xbf16>, vector<100x384xbf16>, vector<8x384xf32> -> vector<8x384xf32>
    %c1 = arith.constant 1 : index
    %c0_12 = arith.constant 0 : index
    %c0_13 = arith.constant 0 : index
    %13 = vector.load %arg3[%c1, %c0_12, %c0_13] : memref<4x8x16xbf16, #tpu.memory_space<vmem>>, vector<1x8x16xbf16>
    %14 = vector.shape_cast %13 : vector<1x8x16xbf16> to vector<8x16xbf16>
    %cst_14 = arith.constant dense<0.000000e+00> : vector<8x100xf32>
    %15 = tpu.matmul %14, %2, %cst_14 {dimension_numbers = #tpu.dot_dimension_numbers<[1], [0], [0], [1], [0, 0, 1, 1], [], []>} : vector<8x16xbf16>, vector<16x100xbf16>, vector<8x100xf32> -> vector<8x100xf32>
    %c0_15 = arith.constant 0 : index
    %c0_16 = arith.constant 0 : index
    %16 = vector.load %arg4[%c0_15, %c0_16] : memref<8x1xf32, #tpu.memory_space<vmem>>, vector<8x1xf32>
    %17 = vector.broadcast %16 : vector<8x1xf32> to vector<8x100xf32>
    %18 = arith.addf %15, %17 : vector<8x100xf32>
    %19 = arith.truncf %18 : vector<8x100xf32> to vector<8x100xbf16>
    %c1_17 = arith.constant 1 : index
    %c0_18 = arith.constant 0 : index
    %c0_19 = arith.constant 0 : index
    %20 = vector.load %arg5[%c1_17, %c0_18, %c0_19] : memref<4x100x384xbf16, #tpu.memory_space<vmem>>, vector<1x100x384xbf16>
    %21 = vector.shape_cast %20 : vector<1x100x384xbf16> to vector<100x384xbf16>
    %cst_20 = arith.constant dense<0.000000e+00> : vector<8x384xf32>
    %22 = tpu.matmul %19, %21, %cst_20 {dimension_numbers = #tpu.dot_dimension_numbers<[1], [0], [0], [1], [0, 0, 1, 1], [], []>} : vector<8x100xbf16>, vector<100x384xbf16>, vector<8x384xf32> -> vector<8x384xf32>
    %23 = arith.addf %12, %22 : vector<8x384xf32>
    %c2 = arith.constant 2 : index
    %c0_21 = arith.constant 0 : index
    %c0_22 = arith.constant 0 : index
    %24 = vector.load %arg3[%c2, %c0_21, %c0_22] : memref<4x8x16xbf16, #tpu.memory_space<vmem>>, vector<1x8x16xbf16>
    %25 = vector.shape_cast %24 : vector<1x8x16xbf16> to vector<8x16xbf16>
    %cst_23 = arith.constant dense<0.000000e+00> : vector<8x100xf32>
    %26 = tpu.matmul %25, %2, %cst_23 {dimension_numbers = #tpu.dot_dimension_numbers<[1], [0], [0], [1], [0, 0, 1, 1], [], []>} : vector<8x16xbf16>, vector<16x100xbf16>, vector<8x100xf32> -> vector<8x100xf32>
    %c0_24 = arith.constant 0 : index
    %c0_25 = arith.constant 0 : index
    %27 = vector.load %arg4[%c0_24, %c0_25] : memref<8x1xf32, #tpu.memory_space<vmem>>, vector<8x1xf32>
    %28 = vector.broadcast %27 : vector<8x1xf32> to vector<8x100xf32>
    %29 = arith.addf %26, %28 : vector<8x100xf32>
    %30 = arith.truncf %29 : vector<8x100xf32> to vector<8x100xbf16>
    %c2_26 = arith.constant 2 : index
    %c0_27 = arith.constant 0 : index
    %c0_28 = arith.constant 0 : index
    %31 = vector.load %arg5[%c2_26, %c0_27, %c0_28] : memref<4x100x384xbf16, #tpu.memory_space<vmem>>, vector<1x100x384xbf16>
    %32 = vector.shape_cast %31 : vector<1x100x384xbf16> to vector<100x384xbf16>
    %cst_29 = arith.constant dense<0.000000e+00> : vector<8x384xf32>
    %33 = tpu.matmul %30, %32, %cst_29 {dimension_numbers = #tpu.dot_dimension_numbers<[1], [0], [0], [1], [0, 0, 1, 1], [], []>} : vector<8x100xbf16>, vector<100x384xbf16>, vector<8x384xf32> -> vector<8x384xf32>
    %34 = arith.addf %23, %33 : vector<8x384xf32>
    %c3 = arith.constant 3 : index
    %c0_30 = arith.constant 0 : index
    %c0_31 = arith.constant 0 : index
    %35 = vector.load %arg3[%c3, %c0_30, %c0_31] : memref<4x8x16xbf16, #tpu.memory_space<vmem>>, vector<1x8x16xbf16>
    %36 = vector.shape_cast %35 : vector<1x8x16xbf16> to vector<8x16xbf16>
    %cst_32 = arith.constant dense<0.000000e+00> : vector<8x100xf32>
    %37 = tpu.matmul %36, %2, %cst_32 {dimension_numbers = #tpu.dot_dimension_numbers<[1], [0], [0], [1], [0, 0, 1, 1], [], []>} : vector<8x16xbf16>, vector<16x100xbf16>, vector<8x100xf32> -> vector<8x100xf32>
    %c0_33 = arith.constant 0 : index
    %c0_34 = arith.constant 0 : index
    %38 = vector.load %arg4[%c0_33, %c0_34] : memref<8x1xf32, #tpu.memory_space<vmem>>, vector<8x1xf32>
    %39 = vector.broadcast %38 : vector<8x1xf32> to vector<8x100xf32>
    %40 = arith.addf %37, %39 : vector<8x100xf32>
    %41 = arith.truncf %40 : vector<8x100xf32> to vector<8x100xbf16>
    %c3_35 = arith.constant 3 : index
    %c0_36 = arith.constant 0 : index
    %c0_37 = arith.constant 0 : index
    %42 = vector.load %arg5[%c3_35, %c0_36, %c0_37] : memref<4x100x384xbf16, #tpu.memory_space<vmem>>, vector<1x100x384xbf16>
    %43 = vector.shape_cast %42 : vector<1x100x384xbf16> to vector<100x384xbf16>
    %cst_38 = arith.constant dense<0.000000e+00> : vector<8x384xf32>
    %44 = tpu.matmul %41, %43, %cst_38 {dimension_numbers = #tpu.dot_dimension_numbers<[1], [0], [0], [1], [0, 0, 1, 1], [], []>} : vector<8x100xbf16>, vector<100x384xbf16>, vector<8x384xf32> -> vector<8x384xf32>
    %45 = arith.addf %34, %44 : vector<8x384xf32>
    %46 = arith.truncf %45 : vector<8x384xf32> to vector<8x384xbf16>
    %c0_39 = arith.constant 0 : index
    %c0_40 = arith.constant 0 : index
    %47 = vector.load %arg14[%c0_39, %c0_40] : memref<8x384xbf16, #tpu.memory_space<vmem>>, vector<8x384xbf16>
    tpu.vector_store %arg14[%c0_39, %c0_40], %46 {strides = array<i32>} : memref<8x384xbf16, #tpu.memory_space<vmem>>, vector<8x384xbf16>,
    %c0_41 = arith.constant 0 : index
    %c0_42 = arith.constant 0 : index
    %c0_43 = arith.constant 0 : index
    %48 = vector.load %arg6[%c0_41, %c0_42, %c0_43] : memref<9x8x8xbf16, #tpu.memory_space<vmem>>, vector<1x8x8xbf16>
    %49 = vector.shape_cast %48 : vector<1x8x8xbf16> to vector<8x8xbf16>
    %c0_44 = arith.constant 0 : index
    %c0_45 = arith.constant 0 : index
    %50 = vector.load %arg14[%c0_44, %c0_45] : memref<8x384xbf16, #tpu.memory_space<vmem>>, vector<8x324xbf16>
    %cst_46 = arith.constant dense<0.000000e+00> : vector<8x324xf32>
    %51 = tpu.matmul %49, %50, %cst_46 {dimension_numbers = #tpu.dot_dimension_numbers<[1], [0], [0], [1], [0, 0, 1, 1], [], []>} : vector<8x8xbf16>, vector<8x324xbf16>, vector<8x324xf32> -> vector<8x324xf32>
    %c1_47 = arith.constant 1 : index
    %c0_48 = arith.constant 0 : index
    %c0_49 = arith.constant 0 : index
    %52 = vector.load %arg6[%c1_47, %c0_48, %c0_49] : memref<9x8x8xbf16, #tpu.memory_space<vmem>>, vector<1x8x8xbf16>
    %53 = vector.shape_cast %52 : vector<1x8x8xbf16> to vector<8x8xbf16>
    %c0_50 = arith.constant 0 : index
    %c1_51 = arith.constant 1 : index
    %54 = vector.load %arg14[%c0_50, %c1_51] : memref<8x384xbf16, #tpu.memory_space<vmem>>, vector<8x324xbf16>
    %cst_52 = arith.constant dense<0.000000e+00> : vector<8x324xf32>
    %55 = tpu.matmul %53, %54, %cst_52 {dimension_numbers = #tpu.dot_dimension_numbers<[1], [0], [0], [1], [0, 0, 1, 1], [], []>} : vector<8x8xbf16>, vector<8x324xbf16>, vector<8x324xf32> -> vector<8x324xf32>
    %56 = arith.addf %51, %55 : vector<8x324xf32>
    %c2_53 = arith.constant 2 : index
    %c0_54 = arith.constant 0 : index
    %c0_55 = arith.constant 0 : index
    %57 = vector.load %arg6[%c2_53, %c0_54, %c0_55] : memref<9x8x8xbf16, #tpu.memory_space<vmem>>, vector<1x8x8xbf16>
    %58 = vector.shape_cast %57 : vector<1x8x8xbf16> to vector<8x8xbf16>
    %c0_56 = arith.constant 0 : index
    %c2_57 = arith.constant 2 : index
    %59 = vector.load %arg14[%c0_56, %c2_57] : memref<8x384xbf16, #tpu.memory_space<vmem>>, vector<8x324xbf16>
    %cst_58 = arith.constant dense<0.000000e+00> : vector<8x324xf32>
    %60 = tpu.matmul %58, %59, %cst_58 {dimension_numbers = #tpu.dot_dimension_numbers<[1], [0], [0], [1], [0, 0, 1, 1], [], []>} : vector<8x8xbf16>, vector<8x324xbf16>, vector<8x324xf32> -> vector<8x324xf32>
    %61 = arith.addf %56, %60 : vector<8x324xf32>
    %c3_59 = arith.constant 3 : index
    %c0_60 = arith.constant 0 : index
    %c0_61 = arith.constant 0 : index
    %62 = vector.load %arg6[%c3_59, %c0_60, %c0_61] : memref<9x8x8xbf16, #tpu.memory_space<vmem>>, vector<1x8x8xbf16>
    %63 = vector.shape_cast %62 : vector<1x8x8xbf16> to vector<8x8xbf16>
    %c0_62 = arith.constant 0 : index
    %c18 = arith.constant 18 : index
    %64 = vector.load %arg14[%c0_62, %c18] : memref<8x384xbf16, #tpu.memory_space<vmem>>, vector<8x324xbf16>
    %cst_63 = arith.constant dense<0.000000e+00> : vector<8x324xf32>
    %65 = tpu.matmul %63, %64, %cst_63 {dimension_numbers = #tpu.dot_dimension_numbers<[1], [0], [0], [1], [0, 0, 1, 1], [], []>} : vector<8x8xbf16>, vector<8x324xbf16>, vector<8x324xf32> -> vector<8x324xf32>
    %66 = arith.addf %61, %65 : vector<8x324xf32>
    %c4 = arith.constant 4 : index
    %c0_64 = arith.constant 0 : index
    %c0_65 = arith.constant 0 : index
    %67 = vector.load %arg6[%c4, %c0_64, %c0_65] : memref<9x8x8xbf16, #tpu.memory_space<vmem>>, vector<1x8x8xbf16>
    %68 = vector.shape_cast %67 : vector<1x8x8xbf16> to vector<8x8xbf16>
    %c0_66 = arith.constant 0 : index
    %c19 = arith.constant 19 : index
    %69 = vector.load %arg14[%c0_66, %c19] : memref<8x384xbf16, #tpu.memory_space<vmem>>, vector<8x324xbf16>
    %cst_67 = arith.constant dense<0.000000e+00> : vector<8x324xf32>
    %70 = tpu.matmul %68, %69, %cst_67 {dimension_numbers = #tpu.dot_dimension_numbers<[1], [0], [0], [1], [0, 0, 1, 1], [], []>} : vector<8x8xbf16>, vector<8x324xbf16>, vector<8x324xf32> -> vector<8x324xf32>
    %71 = arith.addf %66, %70 : vector<8x324xf32>
    %c5 = arith.constant 5 : index
    %c0_68 = arith.constant 0 : index
    %c0_69 = arith.constant 0 : index
    %72 = vector.load %arg6[%c5, %c0_68, %c0_69] : memref<9x8x8xbf16, #tpu.memory_space<vmem>>, vector<1x8x8xbf16>
    %73 = vector.shape_cast %72 : vector<1x8x8xbf16> to vector<8x8xbf16>
    %c0_70 = arith.constant 0 : index
    %c20 = arith.constant 20 : index
    %74 = vector.load %arg14[%c0_70, %c20] : memref<8x384xbf16, #tpu.memory_space<vmem>>, vector<8x324xbf16>
    %cst_71 = arith.constant dense<0.000000e+00> : vector<8x324xf32>
    %75 = tpu.matmul %73, %74, %cst_71 {dimension_numbers = #tpu.dot_dimension_numbers<[1], [0], [0], [1], [0, 0, 1, 1], [], []>} : vector<8x8xbf16>, vector<8x324xbf16>, vector<8x324xf32> -> vector<8x324xf32>
    %76 = arith.addf %71, %75 : vector<8x324xf32>
    %c6 = arith.constant 6 : index
    %c0_72 = arith.constant 0 : index
    %c0_73 = arith.constant 0 : index
    %77 = vector.load %arg6[%c6, %c0_72, %c0_73] : memref<9x8x8xbf16, #tpu.memory_space<vmem>>, vector<1x8x8xbf16>
    %78 = vector.shape_cast %77 : vector<1x8x8xbf16> to vector<8x8xbf16>
    %c0_74 = arith.constant 0 : index
    %c36 = arith.constant 36 : index
    %79 = vector.load %arg14[%c0_74, %c36] : memref<8x384xbf16, #tpu.memory_space<vmem>>, vector<8x324xbf16>
    %cst_75 = arith.constant dense<0.000000e+00> : vector<8x324xf32>
    %80 = tpu.matmul %78, %79, %cst_75 {dimension_numbers = #tpu.dot_dimension_numbers<[1], [0], [0], [1], [0, 0, 1, 1], [], []>} : vector<8x8xbf16>, vector<8x324xbf16>, vector<8x324xf32> -> vector<8x324xf32>
    %81 = arith.addf %76, %80 : vector<8x324xf32>
    %c7 = arith.constant 7 : index
    %c0_76 = arith.constant 0 : index
    %c0_77 = arith.constant 0 : index
    %82 = vector.load %arg6[%c7, %c0_76, %c0_77] : memref<9x8x8xbf16, #tpu.memory_space<vmem>>, vector<1x8x8xbf16>
    %83 = vector.shape_cast %82 : vector<1x8x8xbf16> to vector<8x8xbf16>
    %c0_78 = arith.constant 0 : index
    %c37 = arith.constant 37 : index
    %84 = vector.load %arg14[%c0_78, %c37] : memref<8x384xbf16, #tpu.memory_space<vmem>>, vector<8x324xbf16>
    %cst_79 = arith.constant dense<0.000000e+00> : vector<8x324xf32>
    %85 = tpu.matmul %83, %84, %cst_79 {dimension_numbers = #tpu.dot_dimension_numbers<[1], [0], [0], [1], [0, 0, 1, 1], [], []>} : vector<8x8xbf16>, vector<8x324xbf16>, vector<8x324xf32> -> vector<8x324xf32>
    %86 = arith.addf %81, %85 : vector<8x324xf32>
    %c8 = arith.constant 8 : index
    %c0_80 = arith.constant 0 : index
    %c0_81 = arith.constant 0 : index
    %87 = vector.load %arg6[%c8, %c0_80, %c0_81] : memref<9x8x8xbf16, #tpu.memory_space<vmem>>, vector<1x8x8xbf16>
    %88 = vector.shape_cast %87 : vector<1x8x8xbf16> to vector<8x8xbf16>
    %c0_82 = arith.constant 0 : index
    %c38 = arith.constant 38 : index
    %89 = vector.load %arg14[%c0_82, %c38] : memref<8x384xbf16, #tpu.memory_space<vmem>>, vector<8x324xbf16>
    %cst_83 = arith.constant dense<0.000000e+00> : vector<8x324xf32>
    %90 = tpu.matmul %88, %89, %cst_83 {dimension_numbers = #tpu.dot_dimension_numbers<[1], [0], [0], [1], [0, 0, 1, 1], [], []>} : vector<8x8xbf16>, vector<8x324xbf16>, vector<8x324xf32> -> vector<8x324xf32>
    %91 = arith.addf %86, %90 : vector<8x324xf32>
    %c0_84 = arith.constant 0 : index
    %c0_85 = arith.constant 0 : index
    %c0_86 = arith.constant 0 : index
    %92 = vector.load %arg7[%c0_84, %c0_85, %c0_86] : memref<9x8x8xbf16, #tpu.memory_space<vmem>>, vector<1x8x8xbf16>
    %93 = vector.shape_cast %92 : vector<1x8x8xbf16> to vector<8x8xbf16>
    %c0_87 = arith.constant 0 : index
    %c0_88 = arith.constant 0 : index
    %c0_89 = arith.constant 0 : index
    %94 = vector.load %arg2[%c0_87, %c0_88, %c0_89] : memref<1x8x384xbf16, #tpu.memory_space<vmem>>, vector<1x8x324xbf16>
    %95 = vector.shape_cast %94 : vector<1x8x324xbf16> to vector<8x324xbf16>
    %cst_90 = arith.constant dense<0.000000e+00> : vector<8x324xf32>
    %96 = tpu.matmul %93, %95, %cst_90 {dimension_numbers = #tpu.dot_dimension_numbers<[1], [0], [0], [1], [0, 0, 1, 1], [], []>} : vector<8x8xbf16>, vector<8x324xbf16>, vector<8x324xf32> -> vector<8x324xf32>
    %c1_91 = arith.constant 1 : index
    %c0_92 = arith.constant 0 : index
    %c0_93 = arith.constant 0 : index
    %97 = vector.load %arg7[%c1_91, %c0_92, %c0_93] : memref<9x8x8xbf16, #tpu.memory_space<vmem>>, vector<1x8x8xbf16>
    %98 = vector.shape_cast %97 : vector<1x8x8xbf16> to vector<8x8xbf16>
    %c0_94 = arith.constant 0 : index
    %c0_95 = arith.constant 0 : index
    %c1_96 = arith.constant 1 : index
    %99 = vector.load %arg2[%c0_94, %c0_95, %c1_96] : memref<1x8x384xbf16, #tpu.memory_space<vmem>>, vector<1x8x324xbf16>
    %100 = vector.shape_cast %99 : vector<1x8x324xbf16> to vector<8x324xbf16>
    %cst_97 = arith.constant dense<0.000000e+00> : vector<8x324xf32>
    %101 = tpu.matmul %98, %100, %cst_97 {dimension_numbers = #tpu.dot_dimension_numbers<[1], [0], [0], [1], [0, 0, 1, 1], [], []>} : vector<8x8xbf16>, vector<8x324xbf16>, vector<8x324xf32> -> vector<8x324xf32>
    %102 = arith.addf %96, %101 : vector<8x324xf32>
    %c2_98 = arith.constant 2 : index
    %c0_99 = arith.constant 0 : index
    %c0_100 = arith.constant 0 : index
    %103 = vector.load %arg7[%c2_98, %c0_99, %c0_100] : memref<9x8x8xbf16, #tpu.memory_space<vmem>>, vector<1x8x8xbf16>
    %104 = vector.shape_cast %103 : vector<1x8x8xbf16> to vector<8x8xbf16>
    %c0_101 = arith.constant 0 : index
    %c0_102 = arith.constant 0 : index
    %c2_103 = arith.constant 2 : index
    %105 = vector.load %arg2[%c0_101, %c0_102, %c2_103] : memref<1x8x384xbf16, #tpu.memory_space<vmem>>, vector<1x8x324xbf16>
    %106 = vector.shape_cast %105 : vector<1x8x324xbf16> to vector<8x324xbf16>
    %cst_104 = arith.constant dense<0.000000e+00> : vector<8x324xf32>
    %107 = tpu.matmul %104, %106, %cst_104 {dimension_numbers = #tpu.dot_dimension_numbers<[1], [0], [0], [1], [0, 0, 1, 1], [], []>} : vector<8x8xbf16>, vector<8x324xbf16>, vector<8x324xf32> -> vector<8x324xf32>
    %108 = arith.addf %102, %107 : vector<8x324xf32>
    %c3_105 = arith.constant 3 : index
    %c0_106 = arith.constant 0 : index
    %c0_107 = arith.constant 0 : index
    %109 = vector.load %arg7[%c3_105, %c0_106, %c0_107] : memref<9x8x8xbf16, #tpu.memory_space<vmem>>, vector<1x8x8xbf16>
    %110 = vector.shape_cast %109 : vector<1x8x8xbf16> to vector<8x8xbf16>
    %c0_108 = arith.constant 0 : index
    %c0_109 = arith.constant 0 : index
    %c18_110 = arith.constant 18 : index
    %111 = vector.load %arg2[%c0_108, %c0_109, %c18_110] : memref<1x8x384xbf16, #tpu.memory_space<vmem>>, vector<1x8x324xbf16>
    %112 = vector.shape_cast %111 : vector<1x8x324xbf16> to vector<8x324xbf16>
    %cst_111 = arith.constant dense<0.000000e+00> : vector<8x324xf32>
    %113 = tpu.matmul %110, %112, %cst_111 {dimension_numbers = #tpu.dot_dimension_numbers<[1], [0], [0], [1], [0, 0, 1, 1], [], []>} : vector<8x8xbf16>, vector<8x324xbf16>, vector<8x324xf32> -> vector<8x324xf32>
    %114 = arith.addf %108, %113 : vector<8x324xf32>
    %c4_112 = arith.constant 4 : index
    %c0_113 = arith.constant 0 : index
    %c0_114 = arith.constant 0 : index
    %115 = vector.load %arg7[%c4_112, %c0_113, %c0_114] : memref<9x8x8xbf16, #tpu.memory_space<vmem>>, vector<1x8x8xbf16>
    %116 = vector.shape_cast %115 : vector<1x8x8xbf16> to vector<8x8xbf16>
    %c0_115 = arith.constant 0 : index
    %c0_116 = arith.constant 0 : index
    %c19_117 = arith.constant 19 : index
    %117 = vector.load %arg2[%c0_115, %c0_116, %c19_117] : memref<1x8x384xbf16, #tpu.memory_space<vmem>>, vector<1x8x324xbf16>
    %118 = vector.shape_cast %117 : vector<1x8x324xbf16> to vector<8x324xbf16>
    %cst_118 = arith.constant dense<0.000000e+00> : vector<8x324xf32>
    %119 = tpu.matmul %116, %118, %cst_118 {dimension_numbers = #tpu.dot_dimension_numbers<[1], [0], [0], [1], [0, 0, 1, 1], [], []>} : vector<8x8xbf16>, vector<8x324xbf16>, vector<8x324xf32> -> vector<8x324xf32>
    %120 = arith.addf %114, %119 : vector<8x324xf32>
    %c5_119 = arith.constant 5 : index
    %c0_120 = arith.constant 0 : index
    %c0_121 = arith.constant 0 : index
    %121 = vector.load %arg7[%c5_119, %c0_120, %c0_121] : memref<9x8x8xbf16, #tpu.memory_space<vmem>>, vector<1x8x8xbf16>
    %122 = vector.shape_cast %121 : vector<1x8x8xbf16> to vector<8x8xbf16>
    %c0_122 = arith.constant 0 : index
    %c0_123 = arith.constant 0 : index
    %c20_124 = arith.constant 20 : index
    %123 = vector.load %arg2[%c0_122, %c0_123, %c20_124] : memref<1x8x384xbf16, #tpu.memory_space<vmem>>, vector<1x8x324xbf16>
    %124 = vector.shape_cast %123 : vector<1x8x324xbf16> to vector<8x324xbf16>
    %cst_125 = arith.constant dense<0.000000e+00> : vector<8x324xf32>
    %125 = tpu.matmul %122, %124, %cst_125 {dimension_numbers = #tpu.dot_dimension_numbers<[1], [0], [0], [1], [0, 0, 1, 1], [], []>} : vector<8x8xbf16>, vector<8x324xbf16>, vector<8x324xf32> -> vector<8x324xf32>
    %126 = arith.addf %120, %125 : vector<8x324xf32>
    %c6_126 = arith.constant 6 : index
    %c0_127 = arith.constant 0 : index
    %c0_128 = arith.constant 0 : index
    %127 = vector.load %arg7[%c6_126, %c0_127, %c0_128] : memref<9x8x8xbf16, #tpu.memory_space<vmem>>, vector<1x8x8xbf16>
    %128 = vector.shape_cast %127 : vector<1x8x8xbf16> to vector<8x8xbf16>
    %c0_129 = arith.constant 0 : index
    %c0_130 = arith.constant 0 : index
    %c36_131 = arith.constant 36 : index
    %129 = vector.load %arg2[%c0_129, %c0_130, %c36_131] : memref<1x8x384xbf16, #tpu.memory_space<vmem>>, vector<1x8x324xbf16>
    %130 = vector.shape_cast %129 : vector<1x8x324xbf16> to vector<8x324xbf16>
    %cst_132 = arith.constant dense<0.000000e+00> : vector<8x324xf32>
    %131 = tpu.matmul %128, %130, %cst_132 {dimension_numbers = #tpu.dot_dimension_numbers<[1], [0], [0], [1], [0, 0, 1, 1], [], []>} : vector<8x8xbf16>, vector<8x324xbf16>, vector<8x324xf32> -> vector<8x324xf32>
    %132 = arith.addf %126, %131 : vector<8x324xf32>
    %c7_133 = arith.constant 7 : index
    %c0_134 = arith.constant 0 : index
    %c0_135 = arith.constant 0 : index
    %133 = vector.load %arg7[%c7_133, %c0_134, %c0_135] : memref<9x8x8xbf16, #tpu.memory_space<vmem>>, vector<1x8x8xbf16>
    %134 = vector.shape_cast %133 : vector<1x8x8xbf16> to vector<8x8xbf16>
    %c0_136 = arith.constant 0 : index
    %c0_137 = arith.constant 0 : index
    %c37_138 = arith.constant 37 : index
    %135 = vector.load %arg2[%c0_136, %c0_137, %c37_138] : memref<1x8x384xbf16, #tpu.memory_space<vmem>>, vector<1x8x324xbf16>
    %136 = vector.shape_cast %135 : vector<1x8x324xbf16> to vector<8x324xbf16>
    %cst_139 = arith.constant dense<0.000000e+00> : vector<8x324xf32>
    %137 = tpu.matmul %134, %136, %cst_139 {dimension_numbers = #tpu.dot_dimension_numbers<[1], [0], [0], [1], [0, 0, 1, 1], [], []>} : vector<8x8xbf16>, vector<8x324xbf16>, vector<8x324xf32> -> vector<8x324xf32>
    %138 = arith.addf %132, %137 : vector<8x324xf32>
    %c8_140 = arith.constant 8 : index
    %c0_141 = arith.constant 0 : index
    %c0_142 = arith.constant 0 : index
    %139 = vector.load %arg7[%c8_140, %c0_141, %c0_142] : memref<9x8x8xbf16, #tpu.memory_space<vmem>>, vector<1x8x8xbf16>
    %140 = vector.shape_cast %139 : vector<1x8x8xbf16> to vector<8x8xbf16>
    %c0_143 = arith.constant 0 : index
    %c0_144 = arith.constant 0 : index
    %c38_145 = arith.constant 38 : index
    %141 = vector.load %arg2[%c0_143, %c0_144, %c38_145] : memref<1x8x384xbf16, #tpu.memory_space<vmem>>, vector<1x8x324xbf16>
    %142 = vector.shape_cast %141 : vector<1x8x324xbf16> to vector<8x324xbf16>
    %cst_146 = arith.constant dense<0.000000e+00> : vector<8x324xf32>
    %143 = tpu.matmul %140, %142, %cst_146 {dimension_numbers = #tpu.dot_dimension_numbers<[1], [0], [0], [1], [0, 0, 1, 1], [], []>} : vector<8x8xbf16>, vector<8x324xbf16>, vector<8x324xf32> -> vector<8x324xf32>
    %144 = arith.addf %138, %143 : vector<8x324xf32>
    %145 = arith.addf %91, %144 : vector<8x324xf32>
    %c0_147 = arith.constant 0 : index
    %c0_148 = arith.constant 0 : index
    %146 = vector.load %arg8[%c0_147, %c0_148] : memref<8x4xf32, #tpu.memory_space<vmem>>, vector<8x1xf32>
    %c0_149 = arith.constant 0 : index
    %c1_150 = arith.constant 1 : index
    %147 = vector.load %arg8[%c0_149, %c1_150] : memref<8x4xf32, #tpu.memory_space<vmem>>, vector<8x1xf32>
    %148 = vector.broadcast %0 : vector<1x324xf32> to vector<8x324xf32>
    %149 = arith.mulf %145, %148 : vector<8x324xf32>
    %cst_151 = arith.constant dense<0.000000e+00> : vector<8xf32>
    %150 = vector.multi_reduction <add>, %149, %cst_151 [1] : vector<8x324xf32> to vector<8xf32>
    %151 = vector.shape_cast %150 : vector<8xf32> to vector<8x1xf32>
    %cst_152 = arith.constant 3.906250e-03 : f32
    %152 = vector.broadcast %cst_152 : f32 to vector<8x1xf32>
    %153 = arith.mulf %151, %152 : vector<8x1xf32>
    %154 = vector.broadcast %153 : vector<8x1xf32> to vector<8x324xf32>
    %155 = arith.subf %145, %154 : vector<8x324xf32>
    %156 = vector.broadcast %0 : vector<1x324xf32> to vector<8x324xf32>
    %157 = arith.mulf %155, %156 : vector<8x324xf32>
    %158 = arith.mulf %157, %157 : vector<8x324xf32>
    %cst_153 = arith.constant dense<0.000000e+00> : vector<8xf32>
    %159 = vector.multi_reduction <add>, %158, %cst_153 [1] : vector<8x324xf32> to vector<8xf32>
    %160 = vector.shape_cast %159 : vector<8xf32> to vector<8x1xf32>
    %cst_154 = arith.constant 3.906250e-03 : f32
    %161 = vector.broadcast %cst_154 : f32 to vector<8x1xf32>
    %162 = arith.mulf %160, %161 : vector<8x1xf32>
    %cst_155 = arith.constant 9.99999974E-6 : f32
    %163 = vector.broadcast %cst_155 : f32 to vector<8x1xf32>
    %164 = arith.addf %162, %163 : vector<8x1xf32>
    %165 = math.rsqrt %164 : vector<8x1xf32>
    %166 = vector.broadcast %165 : vector<8x1xf32> to vector<8x324xf32>
    %167 = arith.mulf %157, %166 : vector<8x324xf32>
    %168 = vector.broadcast %146 : vector<8x1xf32> to vector<8x324xf32>
    %169 = arith.mulf %167, %168 : vector<8x324xf32>
    %170 = vector.broadcast %147 : vector<8x1xf32> to vector<8x324xf32>
    %171 = arith.addf %169, %170 : vector<8x324xf32>
    %cst_156 = arith.constant 0.000000e+00 : f32
    %172 = vector.broadcast %cst_156 : f32 to vector<8x324xf32>
    %173 = arith.cmpf ogt, %171, %172 : vector<8x324xf32>
    %cst_157 = arith.constant 0.00999999977 : f32
    %174 = vector.broadcast %cst_157 : f32 to vector<8x324xf32>
    %175 = arith.mulf %174, %171 : vector<8x324xf32>
    %176 = arith.select %173, %171, %175 : vector<8x324xi1>, vector<8x324xf32>
    %177 = vector.broadcast %0 : vector<1x324xf32> to vector<8x324xf32>
    %178 = arith.mulf %176, %177 : vector<8x324xf32>
    %cst_158 = arith.constant 0.000000e+00 : bf16
    %179 = vector.broadcast %cst_158 : bf16 to vector<8x384xbf16>
    %c0_159 = arith.constant 0 : index
    %c0_160 = arith.constant 0 : index
    %180 = vector.load %arg15[%c0_159, %c0_160] : memref<8x384xbf16, #tpu.memory_space<vmem>>, vector<8x384xbf16>
    tpu.vector_store %arg15[%c0_159, %c0_160], %179 {strides = array<i32>} : memref<8x384xbf16, #tpu.memory_space<vmem>>, vector<8x384xbf16>,
    %181 = arith.truncf %178 : vector<8x324xf32> to vector<8x324xbf16>
    %c0_161 = arith.constant 0 : index
    %c19_162 = arith.constant 19 : index
    %182 = vector.load %arg15[%c0_161, %c19_162] : memref<8x384xbf16, #tpu.memory_space<vmem>>, vector<8x324xbf16>
    tpu.vector_store %arg15[%c0_161, %c19_162], %181 {strides = array<i32>} : memref<8x384xbf16, #tpu.memory_space<vmem>>, vector<8x324xbf16>,
    %c0_163 = arith.constant 0 : index
    %c0_164 = arith.constant 0 : index
    %c0_165 = arith.constant 0 : index
    %183 = vector.load %arg9[%c0_163, %c0_164, %c0_165] : memref<9x8x8xbf16, #tpu.memory_space<vmem>>, vector<1x8x8xbf16>
    %184 = vector.shape_cast %183 : vector<1x8x8xbf16> to vector<8x8xbf16>
    %c0_166 = arith.constant 0 : index
    %c0_167 = arith.constant 0 : index
    %185 = vector.load %arg15[%c0_166, %c0_167] : memref<8x384xbf16, #tpu.memory_space<vmem>>, vector<8x324xbf16>
    %cst_168 = arith.constant dense<0.000000e+00> : vector<8x324xf32>
    %186 = tpu.matmul %184, %185, %cst_168 {dimension_numbers = #tpu.dot_dimension_numbers<[1], [0], [0], [1], [0, 0, 1, 1], [], []>} : vector<8x8xbf16>, vector<8x324xbf16>, vector<8x324xf32> -> vector<8x324xf32>
    %c1_169 = arith.constant 1 : index
    %c0_170 = arith.constant 0 : index
    %c0_171 = arith.constant 0 : index
    %187 = vector.load %arg9[%c1_169, %c0_170, %c0_171] : memref<9x8x8xbf16, #tpu.memory_space<vmem>>, vector<1x8x8xbf16>
    %188 = vector.shape_cast %187 : vector<1x8x8xbf16> to vector<8x8xbf16>
    %c0_172 = arith.constant 0 : index
    %c1_173 = arith.constant 1 : index
    %189 = vector.load %arg15[%c0_172, %c1_173] : memref<8x384xbf16, #tpu.memory_space<vmem>>, vector<8x324xbf16>
    %cst_174 = arith.constant dense<0.000000e+00> : vector<8x324xf32>
    %190 = tpu.matmul %188, %189, %cst_174 {dimension_numbers = #tpu.dot_dimension_numbers<[1], [0], [0], [1], [0, 0, 1, 1], [], []>} : vector<8x8xbf16>, vector<8x324xbf16>, vector<8x324xf32> -> vector<8x324xf32>
    %191 = arith.addf %186, %190 : vector<8x324xf32>
    %c2_175 = arith.constant 2 : index
    %c0_176 = arith.constant 0 : index
    %c0_177 = arith.constant 0 : index
    %192 = vector.load %arg9[%c2_175, %c0_176, %c0_177] : memref<9x8x8xbf16, #tpu.memory_space<vmem>>, vector<1x8x8xbf16>
    %193 = vector.shape_cast %192 : vector<1x8x8xbf16> to vector<8x8xbf16>
    %c0_178 = arith.constant 0 : index
    %c2_179 = arith.constant 2 : index
    %194 = vector.load %arg15[%c0_178, %c2_179] : memref<8x384xbf16, #tpu.memory_space<vmem>>, vector<8x324xbf16>
    %cst_180 = arith.constant dense<0.000000e+00> : vector<8x324xf32>
    %195 = tpu.matmul %193, %194, %cst_180 {dimension_numbers = #tpu.dot_dimension_numbers<[1], [0], [0], [1], [0, 0, 1, 1], [], []>} : vector<8x8xbf16>, vector<8x324xbf16>, vector<8x324xf32> -> vector<8x324xf32>
    %196 = arith.addf %191, %195 : vector<8x324xf32>
    %c3_181 = arith.constant 3 : index
    %c0_182 = arith.constant 0 : index
    %c0_183 = arith.constant 0 : index
    %197 = vector.load %arg9[%c3_181, %c0_182, %c0_183] : memref<9x8x8xbf16, #tpu.memory_space<vmem>>, vector<1x8x8xbf16>
    %198 = vector.shape_cast %197 : vector<1x8x8xbf16> to vector<8x8xbf16>
    %c0_184 = arith.constant 0 : index
    %c18_185 = arith.constant 18 : index
    %199 = vector.load %arg15[%c0_184, %c18_185] : memref<8x384xbf16, #tpu.memory_space<vmem>>, vector<8x324xbf16>
    %cst_186 = arith.constant dense<0.000000e+00> : vector<8x324xf32>
    %200 = tpu.matmul %198, %199, %cst_186 {dimension_numbers = #tpu.dot_dimension_numbers<[1], [0], [0], [1], [0, 0, 1, 1], [], []>} : vector<8x8xbf16>, vector<8x324xbf16>, vector<8x324xf32> -> vector<8x324xf32>
    %201 = arith.addf %196, %200 : vector<8x324xf32>
    %c4_187 = arith.constant 4 : index
    %c0_188 = arith.constant 0 : index
    %c0_189 = arith.constant 0 : index
    %202 = vector.load %arg9[%c4_187, %c0_188, %c0_189] : memref<9x8x8xbf16, #tpu.memory_space<vmem>>, vector<1x8x8xbf16>
    %203 = vector.shape_cast %202 : vector<1x8x8xbf16> to vector<8x8xbf16>
    %c0_190 = arith.constant 0 : index
    %c19_191 = arith.constant 19 : index
    %204 = vector.load %arg15[%c0_190, %c19_191] : memref<8x384xbf16, #tpu.memory_space<vmem>>, vector<8x324xbf16>
    %cst_192 = arith.constant dense<0.000000e+00> : vector<8x324xf32>
    %205 = tpu.matmul %203, %204, %cst_192 {dimension_numbers = #tpu.dot_dimension_numbers<[1], [0], [0], [1], [0, 0, 1, 1], [], []>} : vector<8x8xbf16>, vector<8x324xbf16>, vector<8x324xf32> -> vector<8x324xf32>
    %206 = arith.addf %201, %205 : vector<8x324xf32>
    %c5_193 = arith.constant 5 : index
    %c0_194 = arith.constant 0 : index
    %c0_195 = arith.constant 0 : index
    %207 = vector.load %arg9[%c5_193, %c0_194, %c0_195] : memref<9x8x8xbf16, #tpu.memory_space<vmem>>, vector<1x8x8xbf16>
    %208 = vector.shape_cast %207 : vector<1x8x8xbf16> to vector<8x8xbf16>
    %c0_196 = arith.constant 0 : index
    %c20_197 = arith.constant 20 : index
    %209 = vector.load %arg15[%c0_196, %c20_197] : memref<8x384xbf16, #tpu.memory_space<vmem>>, vector<8x324xbf16>
    %cst_198 = arith.constant dense<0.000000e+00> : vector<8x324xf32>
    %210 = tpu.matmul %208, %209, %cst_198 {dimension_numbers = #tpu.dot_dimension_numbers<[1], [0], [0], [1], [0, 0, 1, 1], [], []>} : vector<8x8xbf16>, vector<8x324xbf16>, vector<8x324xf32> -> vector<8x324xf32>
    %211 = arith.addf %206, %210 : vector<8x324xf32>
    %c6_199 = arith.constant 6 : index
    %c0_200 = arith.constant 0 : index
    %c0_201 = arith.constant 0 : index
    %212 = vector.load %arg9[%c6_199, %c0_200, %c0_201] : memref<9x8x8xbf16, #tpu.memory_space<vmem>>, vector<1x8x8xbf16>
    %213 = vector.shape_cast %212 : vector<1x8x8xbf16> to vector<8x8xbf16>
    %c0_202 = arith.constant 0 : index
    %c36_203 = arith.constant 36 : index
    %214 = vector.load %arg15[%c0_202, %c36_203] : memref<8x384xbf16, #tpu.memory_space<vmem>>, vector<8x324xbf16>
    %cst_204 = arith.constant dense<0.000000e+00> : vector<8x324xf32>
    %215 = tpu.matmul %213, %214, %cst_204 {dimension_numbers = #tpu.dot_dimension_numbers<[1], [0], [0], [1], [0, 0, 1, 1], [], []>} : vector<8x8xbf16>, vector<8x324xbf16>, vector<8x324xf32> -> vector<8x324xf32>
    %216 = arith.addf %211, %215 : vector<8x324xf32>
    %c7_205 = arith.constant 7 : index
    %c0_206 = arith.constant 0 : index
    %c0_207 = arith.constant 0 : index
    %217 = vector.load %arg9[%c7_205, %c0_206, %c0_207] : memref<9x8x8xbf16, #tpu.memory_space<vmem>>, vector<1x8x8xbf16>
    %218 = vector.shape_cast %217 : vector<1x8x8xbf16> to vector<8x8xbf16>
    %c0_208 = arith.constant 0 : index
    %c37_209 = arith.constant 37 : index
    %219 = vector.load %arg15[%c0_208, %c37_209] : memref<8x384xbf16, #tpu.memory_space<vmem>>, vector<8x324xbf16>
    %cst_210 = arith.constant dense<0.000000e+00> : vector<8x324xf32>
    %220 = tpu.matmul %218, %219, %cst_210 {dimension_numbers = #tpu.dot_dimension_numbers<[1], [0], [0], [1], [0, 0, 1, 1], [], []>} : vector<8x8xbf16>, vector<8x324xbf16>, vector<8x324xf32> -> vector<8x324xf32>
    %221 = arith.addf %216, %220 : vector<8x324xf32>
    %c8_211 = arith.constant 8 : index
    %c0_212 = arith.constant 0 : index
    %c0_213 = arith.constant 0 : index
    %222 = vector.load %arg9[%c8_211, %c0_212, %c0_213] : memref<9x8x8xbf16, #tpu.memory_space<vmem>>, vector<1x8x8xbf16>
    %223 = vector.shape_cast %222 : vector<1x8x8xbf16> to vector<8x8xbf16>
    %c0_214 = arith.constant 0 : index
    %c38_215 = arith.constant 38 : index
    %224 = vector.load %arg15[%c0_214, %c38_215] : memref<8x384xbf16, #tpu.memory_space<vmem>>, vector<8x324xbf16>
    %cst_216 = arith.constant dense<0.000000e+00> : vector<8x324xf32>
    %225 = tpu.matmul %223, %224, %cst_216 {dimension_numbers = #tpu.dot_dimension_numbers<[1], [0], [0], [1], [0, 0, 1, 1], [], []>} : vector<8x8xbf16>, vector<8x324xbf16>, vector<8x324xf32> -> vector<8x324xf32>
    %226 = arith.addf %221, %225 : vector<8x324xf32>
    %c0_217 = arith.constant 0 : index
    %c2_218 = arith.constant 2 : index
    %227 = vector.load %arg8[%c0_217, %c2_218] : memref<8x4xf32, #tpu.memory_space<vmem>>, vector<8x1xf32>
    %c0_219 = arith.constant 0 : index
    %c3_220 = arith.constant 3 : index
    %228 = vector.load %arg8[%c0_219, %c3_220] : memref<8x4xf32, #tpu.memory_space<vmem>>, vector<8x1xf32>
    %229 = vector.broadcast %0 : vector<1x324xf32> to vector<8x324xf32>
    %230 = arith.mulf %226, %229 : vector<8x324xf32>
    %cst_221 = arith.constant dense<0.000000e+00> : vector<8xf32>
    %231 = vector.multi_reduction <add>, %230, %cst_221 [1] : vector<8x324xf32> to vector<8xf32>
    %232 = vector.shape_cast %231 : vector<8xf32> to vector<8x1xf32>
    %cst_222 = arith.constant 3.906250e-03 : f32
    %233 = vector.broadcast %cst_222 : f32 to vector<8x1xf32>
    %234 = arith.mulf %232, %233 : vector<8x1xf32>
    %235 = vector.broadcast %234 : vector<8x1xf32> to vector<8x324xf32>
    %236 = arith.subf %226, %235 : vector<8x324xf32>
    %237 = vector.broadcast %0 : vector<1x324xf32> to vector<8x324xf32>
    %238 = arith.mulf %236, %237 : vector<8x324xf32>
    %239 = arith.mulf %238, %238 : vector<8x324xf32>
    %cst_223 = arith.constant dense<0.000000e+00> : vector<8xf32>
    %240 = vector.multi_reduction <add>, %239, %cst_223 [1] : vector<8x324xf32> to vector<8xf32>
    %241 = vector.shape_cast %240 : vector<8xf32> to vector<8x1xf32>
    %cst_224 = arith.constant 3.906250e-03 : f32
    %242 = vector.broadcast %cst_224 : f32 to vector<8x1xf32>
    %243 = arith.mulf %241, %242 : vector<8x1xf32>
    %cst_225 = arith.constant 9.99999974E-6 : f32
    %244 = vector.broadcast %cst_225 : f32 to vector<8x1xf32>
    %245 = arith.addf %243, %244 : vector<8x1xf32>
    %246 = math.rsqrt %245 : vector<8x1xf32>
    %247 = vector.broadcast %246 : vector<8x1xf32> to vector<8x324xf32>
    %248 = arith.mulf %238, %247 : vector<8x324xf32>
    %249 = vector.broadcast %227 : vector<8x1xf32> to vector<8x324xf32>
    %250 = arith.mulf %248, %249 : vector<8x324xf32>
    %251 = vector.broadcast %228 : vector<8x1xf32> to vector<8x324xf32>
    %252 = arith.addf %250, %251 : vector<8x324xf32>
    %cst_226 = arith.constant 0.000000e+00 : f32
    %253 = vector.broadcast %cst_226 : f32 to vector<8x324xf32>
    %254 = arith.cmpf ogt, %252, %253 : vector<8x324xf32>
    %cst_227 = arith.constant 0.00999999977 : f32
    %255 = vector.broadcast %cst_227 : f32 to vector<8x324xf32>
    %256 = arith.mulf %255, %252 : vector<8x324xf32>
    %257 = arith.select %254, %252, %256 : vector<8x324xi1>, vector<8x324xf32>
    %258 = vector.broadcast %0 : vector<1x324xf32> to vector<8x324xf32>
    %259 = arith.mulf %257, %258 : vector<8x324xf32>
    %c0_228 = arith.constant 0 : index
    %c0_229 = arith.constant 0 : index
    %260 = vector.load %arg11[%c0_228, %c0_229] : memref<8x8xbf16, #tpu.memory_space<vmem>>, vector<8x8xbf16>
    %261 = arith.truncf %259 : vector<8x324xf32> to vector<8x324xbf16>
    %cst_230 = arith.constant dense<0.000000e+00> : vector<8x324xf32>
    %262 = tpu.matmul %260, %261, %cst_230 {dimension_numbers = #tpu.dot_dimension_numbers<[1], [0], [0], [1], [0, 0, 1, 1], [], []>} : vector<8x8xbf16>, vector<8x324xbf16>, vector<8x324xf32> -> vector<8x324xf32>
    %c0_231 = arith.constant 0 : index
    %c0_232 = arith.constant 0 : index
    %263 = vector.load %arg12[%c0_231, %c0_232] : memref<8x1xf32, #tpu.memory_space<vmem>>, vector<8x1xf32>
    %264 = vector.broadcast %263 : vector<8x1xf32> to vector<8x324xf32>
    %265 = arith.addf %262, %264 : vector<8x324xf32>
    %c0_233 = arith.constant 0 : index
    %c0_234 = arith.constant 0 : index
    %c0_235 = arith.constant 0 : index
    %266 = vector.load %arg13[%c0_233, %c0_234, %c0_235] : memref<1x8x324xf32, #tpu.memory_space<vmem>>, vector<1x8x324xf32>
    %267 = vector.shape_cast %266 : vector<1x8x324xf32> to vector<8x324xf32>
    %268 = vector.shape_cast %265 : vector<8x324xf32> to vector<1x8x324xf32>
    tpu.vector_store %arg13[%c0_233, %c0_234, %c0_235], %268 {strides = array<i32>} : memref<1x8x324xf32, #tpu.memory_space<vmem>>, vector<1x8x324xf32>,
    return
  }
  func.func @transform_0(%arg0: i32) -> (i32, i32, i32) {
    %c0_i32 = arith.constant 0 : i32
    %c0_i32_0 = arith.constant 0 : i32
    %c0_i32_1 = arith.constant 0 : i32
    return %arg0, %c0_i32, %c0_i32_0 : i32, i32, i32
  }
  func.func @transform_1(%arg0: i32) -> (i32, i32, i32) {
    %c0_i32 = arith.constant 0 : i32
    %c0_i32_0 = arith.constant 0 : i32
    %c0_i32_1 = arith.constant 0 : i32
    return %arg0, %c0_i32, %c0_i32_0 : i32, i32, i32
  }
  func.func @transform_2(%arg0: i32) -> (i32, i32, i32) {
    %c0_i32 = arith.constant 0 : i32
    %c0_i32_0 = arith.constant 0 : i32
    %c0_i32_1 = arith.constant 0 : i32
    %c0_i32_2 = arith.constant 0 : i32
    return %c0_i32, %c0_i32_0, %c0_i32_1 : i32, i32, i32
  }
  func.func @transform_3(%arg0: i32) -> (i32, i32) {
    %c0_i32 = arith.constant 0 : i32
    %c0_i32_0 = arith.constant 0 : i32
    %c0_i32_1 = arith.constant 0 : i32
    return %c0_i32, %c0_i32_0 : i32, i32
  }
  func.func @transform_4(%arg0: i32) -> (i32, i32, i32) {
    %c0_i32 = arith.constant 0 : i32
    %c0_i32_0 = arith.constant 0 : i32
    %c0_i32_1 = arith.constant 0 : i32
    %c0_i32_2 = arith.constant 0 : i32
    return %c0_i32, %c0_i32_0, %c0_i32_1 : i32, i32, i32
  }
  func.func @transform_5(%arg0: i32) -> (i32, i32, i32) {
    %c0_i32 = arith.constant 0 : i32
    %c0_i32_0 = arith.constant 0 : i32
    %c0_i32_1 = arith.constant 0 : i32
    %c0_i32_2 = arith.constant 0 : i32
    return %c0_i32, %c0_i32_0, %c0_i32_1 : i32, i32, i32
  }
  func.func @transform_6(%arg0: i32) -> (i32, i32, i32) {
    %c0_i32 = arith.constant 0 : i32
    %c0_i32_0 = arith.constant 0 : i32
    %c0_i32_1 = arith.constant 0 : i32
    %c0_i32_2 = arith.constant 0 : i32
    return %c0_i32, %c0_i32_0, %c0_i32_1 : i32, i32, i32
  }
  func.func @transform_7(%arg0: i32) -> (i32, i32) {
    %c0_i32 = arith.constant 0 : i32
    %c0_i32_0 = arith.constant 0 : i32
    %c0_i32_1 = arith.constant 0 : i32
    return %c0_i32, %c0_i32_0 : i32, i32
  }
  func.func @transform_8(%arg0: i32) -> (i32, i32, i32) {
    %c0_i32 = arith.constant 0 : i32
    %c0_i32_0 = arith.constant 0 : i32
    %c0_i32_1 = arith.constant 0 : i32
    %c0_i32_2 = arith.constant 0 : i32
    return %c0_i32, %c0_i32_0, %c0_i32_1 : i32, i32, i32
  }
  func.func @transform_9(%arg0: i32) -> (i32, i32) {
    %c0_i32 = arith.constant 0 : i32
    %c0_i32_0 = arith.constant 0 : i32
    %c0_i32_1 = arith.constant 0 : i32
    return %c0_i32, %c0_i32_0 : i32, i32
  }
  func.func @transform_10(%arg0: i32) -> (i32, i32) {
    %c0_i32 = arith.constant 0 : i32
    %c0_i32_0 = arith.constant 0 : i32
    %c0_i32_1 = arith.constant 0 : i32
    return %c0_i32, %c0_i32_0 : i32, i32
  }
  func.func @transform_11(%arg0: i32) -> (i32, i32) {
    %c0_i32 = arith.constant 0 : i32
    %c0_i32_0 = arith.constant 0 : i32
    %c0_i32_1 = arith.constant 0 : i32
    return %c0_i32, %c0_i32_0 : i32, i32
  }
  func.func @transform_12(%arg0: i32) -> (i32, i32, i32) {
    %c0_i32 = arith.constant 0 : i32
    %c0_i32_0 = arith.constant 0 : i32
    %c0_i32_1 = arith.constant 0 : i32
    return %arg0, %c0_i32, %c0_i32_0 : i32, i32, i32
  }
}

</mosaic_0001>

<bundles_post_ra>
// kernel: plain_conv_unet_forward.7
= control target key start
LH: loop header
LB: loop body
LE: loop exit
PB: predicated region body
PF: predicated region fallthrough
CT: control target
= control target key end

     0   :  { %s2766_s21 = smov 0   ;;  %s3097_s0 = inlined_call_operand.vmem [shape: bf16[2,16,128], index: 0, kind: input, shape index: {}]   ;;  %s3098_s1 = inlined_call_operand.vmem [shape: bf16[9,32,16], index: 1, kind: input, shape index: {}]   ;;  %s3099_s2 = inlined_call_operand.vmem [shape: f32[100,36], index: 2, kind: input, shape index: {}]   ;;  %s3100_s3 = inlined_call_operand.vmem [shape: f32[32,4], index: 3, kind: input, shape index: {}]   ;;  %s3101_s4 = inlined_call_operand.vmem [shape: bf16[9,32,32], index: 4, kind: input, shape index: {}]   ;;  %s3102_s5 = inlined_call_operand.vmem [shape: f32[1,36], index: 5, kind: input, shape index: {}]   ;;  %s3103_s6 = inlined_call_operand.vmem [shape: bf16[2,32,128], index: 6, kind: output, shape index: {}]  }
   0x1 LB: > { %s2127_s22 = sadd.s32 4294967295, %s2711_s21   ;;  %p2131_p0 = scmp.ge.s32.totalorder %s2711_s21, 1  ;;  %s2711_s21 = sphi %s2766_s21, %s16_s21  }
   0x2   : > { %p212_p1 = scmp.lt.s32.totalorder %s2711_s21, 3 }
   0x4   : > { %p213_p2 = pnand %p2131_p0, %p212_p1 }
   0x5   : > { %p242_p3 = scmp.lt.s32.totalorder (!%p213_p2), %s2127_s22, 1  ;;  %v2653_v0 = vld [vmem:[%s3098_s1 + $0x10] sm:$0xff] (!%p213_p2)   ;;  %vm283_vm0 = vcmask (!%p213_p2), 130048   ;;  %s2713_s29 = smov (!%p213_p2), 127   ;;  %v944_v2 = vld [vmem:[%s3099_s2] sm:$0xff] (!%p213_p2)  ;;  %v945_v3 = vld [vmem:[%s3099_s2 + $0x8] sm:$0xff] (!%p213_p2) }
   0x6   : > { %216 = sbr.rel (%p213_p2) target bundleno = 2039 (0x7f7), region = 44  ;;  %2373 = vmatprep.mubr.msk.bf16.mxu0 (!%p213_p2), %vm283_vm0, %v2653_v0  ;;  %s2714_s30 = smov (!%p213_p2), 118   ;;  %v946_v4 = vld [vmem:[%s3099_s2 + $0x10] sm:$0xff] (!%p213_p2)  ;;  %v2529_v5 = vpack.c.bf16 (!%p213_p2), %v945_v3, %v944_v2  ;;  %v947_v6 = vld [vmem:[%s3099_s2 + $0x18] sm:$0xff] (!%p213_p2)  ;;  %v948_v8 = vld [vmem:[%s3099_s2 + $0x20] sm:$0xff] (!%p213_p2)  ;;  %vm970_vm1 = vcmask (!%p213_p2), 1043456  }
   0x7   : > { %s2715_s7 = smov (!%p213_p2), 126   ;;  %s2716_s8 = smov (!%p213_p2), 117   ;;  %v2533_v7 = vpack.c.bf16 (!%p213_p2), %v947_v6, %v946_v4  ;;  %v949_v9 = vld [vmem:[%s3099_s2 + $0x28] sm:$0xff] (!%p213_p2)  ;;  %v950_v11 = vld [vmem:[%s3099_s2 + $0x30] sm:$0xff] (!%p213_p2)  ;;  %v951_v12 = vld [vmem:[%s3099_s2 + $0x38] sm:$0xff] (!%p213_p2)  ;;  %vm957_vm2 = vcmask (!%p213_p2), 818176  }
   0x8   : > { %s2717_s9 = smov (!%p213_p2), 116   ;;  %s2718_s10 = smov (!%p213_p2), 108   ;;  %2530 = vmatprep.subr.bf16.mxu1 (!%p213_p2), %v2529_v5  ;;  %v2537_v10 = vpack.c.bf16 (!%p213_p2), %v949_v9, %v948_v8  ;;  %v2541_v13 = vpack.c.bf16 (!%p213_p2), %v951_v12, %v950_v11  ;;  %v952_v14 = vld [vmem:[%s3099_s2 + $0x40] sm:$0xff] (!%p213_p2)  ;;  %v953_v15 = vld [vmem:[%s3099_s2 + $0x48] sm:$0xff] (!%p213_p2)  ;;  %v954_v17 = vld [vmem:[%s3099_s2 + $0x50] sm:$0xff] (!%p213_p2)  ;;  %v2721_v50 = vmov (!%p213_p2), 0  }
   0x9   : > { %s2719_s11 = smov (!%p213_p2), 107   ;;  %s2720_s12 = smov (!%p213_p2), 106   ;;  %2532 = vmatpush3.bf16.msra.mxu1 (!%p213_p2), %v2529_v5  ;;  %v2545_v16 = vpack.c.bf16 (!%p213_p2), %v953_v15, %v952_v14  ;;  %v955_v18 = vld [vmem:[%s3099_s2 + $0x58] sm:$0xff] (!%p213_p2)  ;;  %v2655_v22 = vld [vmem:[%s3098_s1] sm:$0xff] (!%p213_p2)   ;;  %v2656_v24 = vld [vmem:[%s3098_s1 + $0x8] sm:$0xff] (!%p213_p2)   ;;  %2643 = vset.pattern.permute.xlu1 (!%p213_p2), %v2721_v50  ;;  %1190 = vst [vmem:[#allocation2] sm:$0xff] (!%p213_p2), %v2721_v50 }
   0xa   : > { %2534 = vmatprep.subr.bf16.mxu1 (!%p213_p2), %v2533_v7  ;;  %v2549_v19 = vpack.c.bf16 (!%p213_p2), %v955_v18, %v954_v17  ;;  %v2654_v21 = vld [vmem:[%s3098_s1 + $0x18] sm:$0xff] (!%p213_p2)   ;;  %v2657_v25 = vld [vmem:[%s3098_s1 + $0x20] sm:$0xff] (!%p213_p2)   ;;  %v2658_v27 = vld [vmem:[%s3098_s1 + $0x28] sm:$0xff] (!%p213_p2)   ;;  %1191 = vst [vmem:[#allocation2 + $0x8] sm:$0xff] (!%p213_p2), %v2721_v50  ;;  %2644 = vset.pattern.permute.xlu0 (!%p213_p2), %v2721_v50  ;;  %vm1073_vm3 = vcmask (!%p213_p2), 293888   ;;  %vm1202_vm8 = vcmask (!%p213_p2), 351288  }
   0xb   : > { %v2659_v28 = vld [vmem:[%s3098_s1 + $0x30] sm:$0xff] (!%p213_p2)   ;;  %v2660_v30 = vld [vmem:[%s3098_s1 + $0x38] sm:$0xff] (!%p213_p2)   ;;  %v2661_v31 = vld [vmem:[%s3098_s1 + $0x40] sm:$0xff] (!%p213_p2)   ;;  %vm1234_vm9 = vcmask (!%p213_p2), 261120   ;;  %s2727_s15 = smov (!%p213_p2), 114   ;;  %s2728_s16 = smov (!%p213_p2), 115  }
   0xc   : > { %v2662_v33 = vld [vmem:[%s3098_s1 + $0x48] sm:$0xff] (!%p213_p2)   ;;  %v2663_v34 = vld [vmem:[%s3098_s1 + $0x50] sm:$0xff] (!%p213_p2)   ;;  %v2664_v36 = vld [vmem:[%s3098_s1 + $0x58] sm:$0xff] (!%p213_p2)   ;;  %vm2067_vm14 = vcmask (!%p213_p2), 347192  }
   0xd   : > { %s3105_s22 = smov (!%p242_p3, %s2127_s22), 1  ;;  %2536 = vmatpush3.bf16.msra.mxu1 %v2533_v7  ;;  %v2665_v37 = vld [vmem:[%s3098_s1 + $0x60] sm:$0xff]   ;;  %v2666_v39 = vld [vmem:[%s3098_s1 + $0x68] sm:$0xff]   ;;  %v2667_v40 = vld [vmem:[%s3098_s1 + $0x70] sm:$0xff]  }
   0xe   : > { %s2285_s25 = sshll.u32 %s3105_s22, 3  ;;  %2538 = vmatprep.subr.bf16.mxu1 %v2537_v10  ;;  %v2668_v42 = vld [vmem:[%s3098_s1 + $0x78] sm:$0xff]   ;;  %v2669_v43 = vld [vmem:[%s3098_s1 + $0x80] sm:$0xff]   ;;  %v2670_v44 = vld [vmem:[%s3098_s1 + $0x88] sm:$0xff]   ;;  %s2286_s27 = sshll.u32 %s3105_s22, 4 }
   0xf   : > { %s246_s28 = scalar_lea.vmem %s3097_s0, %s2285_s25  ;;  %v956_v45 = vld [vmem:[%s3099_s2 + $0x60] sm:$0xf] }
  0x10   : > { %v2652_v1 = vld [vmem:[%s246_s28] sm:$0xff]   ;;  %s2723_s28 = smov 7  }
  0x11   : > { %280 = vrot.lane.b32.xlu0 %v2652_v1, %s2713_s29  ;;  %497 = vrot.lane.b32.xlu1 %v2652_v1, %s2714_s30  ;;  %v2901_v51 = vld [vmem:[%s3102_s5] ss:$0 sm:$0xff]  ;;  %s2724_s30 = smov 122  }
  0x12   : > { %2540 = vmatpush3.bf16.msra.mxu1 %v2537_v10  ;;  %v2914_v0 = vld [vmem:[%s3100_s3] sm:$0xff] }
  0x13   : > { %2542 = vmatprep.subr.bf16.mxu1 %v2541_v13 }
  0x15   : > { %420 = vrot.lane.b32.xlu0 %v2652_v1, %s2715_s7  ;;  %574 = vrot.lane.b32.xlu1 %v2652_v1, %s2716_s8  ;;  %s2725_s8 = smov 121  }
  0x16   : > { %2544 = vmatpush3.bf16.msra.mxu1 %v2541_v13 }
  0x17   : > { %2546 = vmatprep.subr.bf16.mxu1 %v2545_v16 }
  0x19   : > { %651 = vrot.lane.b32.xlu0 %v2652_v1, %s2717_s9  ;;  %728 = vrot.lane.b32.xlu1 %v2652_v1, %s2718_s10  ;;  %s2726_s10 = smov 120  }
  0x1a   : > { %2548 = vmatpush3.bf16.msra.mxu1 %v2545_v16 }
  0x1b   : > { %2550 = vmatprep.subr.bf16.mxu1 %v2549_v19 }
  0x1d   : > { %805 = vrot.lane.b32.xlu0 %v2652_v1, %s2719_s11  ;;  %882 = vrot.lane.b32.xlu1 %v2652_v1, %s2720_s12 }
  0x1e   : > { %2552 = vmatpush3.bf16.msra.mxu1 %v2549_v19 }
  0x1f   : > { %2449 = vmatprep.subr.msk.mxu1 %vm970_vm1, %v956_v45 }
  0x22   : > { %2450 = vmatpush3.msk.msra.mxu1 %vm970_vm1, %v956_v45 }
  0x83   : > { %v281_v20 = vpop.permute.xlu0 %280  ;;  %v498_v26 = vpop.permute.xlu1 %497 }
  0x84   : > { %2371 = vmatprep.subr.bf16.mxu0 %v281_v20 }
  0x85   : > { %2372 = vmatpush3.bf16.msra.mxu0 %v281_v20 }
  0x86   : > { %2377 = vmatprep.subr.bf16.mxu0 %v2652_v1 }
  0x87   : > { %v421_v23 = vpop.permute.xlu0 %420  ;;  %v575_v29 = vpop.permute.xlu1 %574 }
  0x88   : > { %2374 = vmatmul.mubr.msk.bf16.vlgmr.msra.gmra.mrb[0].mxu0 %vm283_vm0, %v2654_v21 }
  0x89   : > { %2378 = vmatpush3.bf16.msra.mxu0 %v2652_v1  ;;  %2379 = vmatprep.mubr.msk.bf16.mxu0 %vm283_vm0, %v2655_v22  ;;  %v2722_v1 = vmov 1  }
  0x8a   : > { %2383 = vmatprep.subr.bf16.mxu0 %v421_v23 }
  0x8b   : > { %v652_v32 = vpop.permute.xlu0 %651  ;;  %v729_v35 = vpop.permute.xlu1 %728 }
  0x8f   : > { %v806_v38 = vpop.permute.xlu0 %805  ;;  %v883_v41 = vpop.permute.xlu1 %882 }
  0x94   : > { %2380 = vmatmul.mubr.msk.bf16.vlgmr.msra.gmra.mrb[0].mxu0 %vm283_vm0, %v2656_v24  ;;  %v2937_v24 = vld [vmem:[%s3100_s3 + $0x10] sm:$0xff] }
  0x95   : > { %2384 = vmatpush3.bf16.msra.mxu0 %v421_v23  ;;  %2385 = vmatprep.mubr.msk.bf16.mxu0 %vm283_vm0, %v2657_v25  ;;  %v2931_v23 = vld [vmem:[%s3100_s3 + $0x8] sm:$0xff]  ;;  %v2944_v25 = vld [vmem:[%s3100_s3 + $0x18] sm:$0xff] }
  0x96   : > { %2389 = vmatprep.subr.bf16.mxu0 %v498_v26 }
  0xa0   : > { %2386 = vmatmul.mubr.msk.bf16.vlgmr.msra.gmra.mrb[0].mxu0 %vm283_vm0, %v2658_v27 }
  0xa1   : > { %2390 = vmatpush3.bf16.msra.mxu0 %v498_v26  ;;  %2391 = vmatprep.mubr.msk.bf16.mxu0 %vm283_vm0, %v2659_v28 }
  0xa2   : > { %2395 = vmatprep.subr.bf16.mxu0 %v575_v29 }
  0xac   : > { %2392 = vmatmul.mubr.msk.bf16.vlgmr.msra.gmra.mrb[0].mxu0 %vm283_vm0, %v2660_v30 }
  0xad   : > { %2396 = vmatpush3.bf16.msra.mxu0 %v575_v29  ;;  %2397 = vmatprep.mubr.msk.bf16.mxu0 %vm283_vm0, %v2661_v31 }
  0xae   : > { %2401 = vmatprep.subr.bf16.mxu0 %v652_v32 }
  0xb8   : > { %2398 = vmatmul.mubr.msk.bf16.vlgmr.msra.gmra.mrb[0].mxu0 %vm283_vm0, %v2662_v33 }
  0xb9   : > { %2402 = vmatpush3.bf16.msra.mxu0 %v652_v32  ;;  %2403 = vmatprep.mubr.msk.bf16.mxu0 %vm283_vm0, %v2663_v34 }
  0xba   : > { %2407 = vmatprep.subr.bf16.mxu0 %v729_v35 }
  0xc4   : > { %2404 = vmatmul.mubr.msk.bf16.vlgmr.msra.gmra.mrb[0].mxu0 %vm283_vm0, %v2664_v36 }
  0xc5   : > { %2408 = vmatpush3.bf16.msra.mxu0 %v729_v35  ;;  %2409 = vmatprep.mubr.msk.bf16.mxu0 %vm283_vm0, %v2665_v37 }
  0xc6   : > { %2413 = vmatprep.subr.bf16.mxu0 %v806_v38 }
  0xd0   : > { %2410 = vmatmul.mubr.msk.bf16.vlgmr.msra.gmra.mrb[0].mxu0 %vm283_vm0, %v2666_v39 }
  0xd1   : > { %2414 = vmatpush3.bf16.msra.mxu0 %v806_v38  ;;  %2415 = vmatprep.mubr.msk.bf16.mxu0 %vm283_vm0, %v2667_v40 }
  0xd2   : > { %2419 = vmatprep.subr.bf16.mxu0 %v883_v41 }
  0xdc   : > { %2416 = vmatmul.mubr.msk.bf16.vlgmr.msra.gmra.mrb[0].mxu0 %vm283_vm0, %v2668_v42 }
  0xdd   : > { %2420 = vmatpush3.bf16.msra.mxu0 %v883_v41  ;;  %2421 = vmatprep.mubr.msk.bf16.mxu0 %vm283_vm0, %v2669_v43 }
  0xe8   : > { %2422 = vmatmul.mubr.msk.bf16.vlgmr.msra.gmra.mrb[0].mxu0 %vm283_vm0, %v2670_v44 }
 0x1bb   : > { %v2423_v46 = vpop.f32.mrb[0].mxu0 }
 0x1bc   : > { %v925_v47 = vpop.f32.mrb[1].mxu0 }
 0x1bd   : > { %v2424_v48 = vpop.f32.mrb[2].mxu0  ;;  %2451 = vmatprep.mubr.msk.f32.mxu1 %vm957_vm2, %v925_v47 }
 0x1be   : > { %v928_v49 = vpop.f32.mrb[3].mxu0 }
 0x1bf   : > { %2452 = vmatmul.mubr.msk.f32.vlgmr.msra.gmra.mrb[0].mxu1 %vm957_vm2, %v928_v49 }
 0x1c0   : > { %2454 = vmatprep.mubr.msk.f32.mxu1 %vm957_vm2, %v2423_v46 }
 0x1c3   : > { %2455 = vmatmul.mubr.msk.f32.gmra.mrb[2].mxu1 %vm957_vm2, %v2424_v48 }
 0x292   : > { %v2453_v52 = vpop.f32.mrb[0].mxu1 }
 0x293   : > { %v1070_v53 = vmul.f32 %v2453_v52, %v2901_v51  ;;  %v1040_v54 = vpop.f32.mrb[1].mxu1 }
 0x294   : > { %v1069_v55 = vmul.f32 %v2901_v51, %v1040_v54 }
 0x295   : > { %v1077_v56 = vsel %vm1073_vm3, %v1070_v53, 0.0 }
 0x296   : > { %1078 = vadd.xlane.f32.xlu1 %v1077_v56  ;;  %v2456_v57 = vpop.f32.mrb[2].mxu1  ;;  %v1074_v58 = vsel %vm1073_vm3, %v1069_v55, 0.0 }
 0x297   : > { %1075 = vadd.xlane.f32.xlu0 %v1074_v58  ;;  %v1050_v59 = vpop.f32.mrb[3].mxu1  ;;  %v1072_v61 = vmul.f32 %v2456_v57, %v2901_v51 }
 0x298   : > { %v1071_v60 = vmul.f32 %v2901_v51, %v1050_v59 }
 0x299   : > { %v1083_v63 = vsel %vm1073_vm3, %v1072_v61, 0.0 }
 0x29a   : > { %v1080_v62 = vsel %vm1073_vm3, %v1071_v60, 0.0 }
 0x29b   : > { %1081 = vadd.xlane.f32.xlu0 %v1080_v62 }
 0x29f   : > { %1084 = vadd.xlane.f32.xlu0 %v1083_v63 }
 0x2a7   : > { %1132 = vperm.xlu1 %2643, %v2914_v0  }
 0x2ab   : > { %2645 = vset.pattern.permute.xlu1 %v2722_v1 }
 0x323   : > { %v1079_v2 = vpop.xlane.xlu1 %1078 }
 0x324   : > { %v1087_v3 = vmul.f32 0.0625, %v1079_v2  ;;  %v1076_v4 = vpop.xlane.xlu0 %1075 }
 0x325   : > { %v1086_v5 = vmul.f32 0.0625, %v1076_v4 }
 0x326   : > { %v1091_v6 = vsub.f32 %v2453_v52, %v1087_v3 }
 0x327   : > { %v1090_v7 = vsub.f32 %v1040_v54, %v1086_v5  ;;  %v1133_v29 = vpop.permute.xlu1 %1132 }
 0x328   : > { %v1082_v8 = vpop.xlane.xlu0 %1081  ;;  %v1095_v9 = vmul.f32 %v2901_v51, %v1091_v6 }
 0x329   : > { %v1088_v10 = vmul.f32 0.0625, %v1082_v8  ;;  %v1094_v11 = vmul.f32 %v2901_v51, %v1090_v7 }
 0x32a   : > { %v1099_v12 = vmul.f32 %v1095_v9, %v1095_v9 }
 0x32b   : > { %v1092_v13 = vsub.f32 %v1050_v59, %v1088_v10  ;;  %v1098_v14 = vmul.f32 %v1094_v11, %v1094_v11 }
 0x32c   : > { %v1085_v15 = vpop.xlane.xlu0 %1084  ;;  %v1105_v16 = vsel %vm1073_vm3, %v1099_v12, 0.0 }
 0x32d   : > { %v1089_v17 = vmul.f32 0.0625, %v1085_v15  ;;  %1106 = vadd.xlane.f32.xlu0 %v1105_v16  ;;  %v1102_v18 = vsel %vm1073_vm3, %v1098_v14, 0.0  ;;  %v1096_v26 = vmul.f32 %v2901_v51, %v1092_v13 }
 0x32e   : > { %1103 = vadd.xlane.f32.xlu1 %v1102_v18 }
 0x32f   : > { %v1093_v19 = vsub.f32 %v2456_v57, %v1089_v17  ;;  %v1100_v27 = vmul.f32 %v1096_v26, %v1096_v26 }
 0x331   : > { %v2922_v20 = vmul.f32 %v2901_v51, %v1093_v19  ;;  %v1108_v28 = vsel %vm1073_vm3, %v1100_v27, 0.0 }
 0x333   : > { %v1101_v21 = vmul.f32 %v2922_v20, %v2922_v20 }
 0x335   : > { %v1111_v22 = vsel %vm1073_vm3, %v1101_v21, 0.0  ;;  %v2672_v21 = vld [vmem:[%s3101_s4 + $0x10] sm:$0xff]  }
 0x336   : > { %1112 = vadd.xlane.f32.xlu0 %v1111_v22  ;;  %2461 = vmatprep.mubr.msk.bf16.mxu0 %vm1234_vm9, %v2672_v21 }
 0x33f   : > { %1155 = vperm.xlu1 %2645, %v2914_v0  }
 0x343   : > { %1159 = vperm.xlu1 %2645, %v2931_v23  }
 0x347   : > { %2646 = vset.pattern.permute.xlu1 %v2721_v50 }
 0x348   : > { %1142 = vperm.xlu1 %2646, %v2937_v24  }
 0x34c   : > { %1147 = vperm.xlu1 %2646, %v2944_v25   ;;  %1137 = vperm.xlu0 %2644, %v2931_v23  }
 0x350   : > { %2647 = vset.pattern.permute.xlu1 %v2722_v1 }
 0x351   : > { %1163 = vperm.xlu1 %2647, %v2937_v24  }
 0x375   : > { %1109 = vadd.xlane.f32.xlu1 %v1108_v28 }
 0x386   : > { %1167 = vperm.xlu1 %2647, %v2944_v25  }
 0x3ba   : > { %v1107_v30 = vpop.xlane.xlu0 %1106 }
 0x3bb   : > { %v1115_v31 = vmul.f32 0.0625, %v1107_v30  ;;  %v1104_v32 = vpop.xlane.xlu1 %1103 }
 0x3bc   : > { %v1114_v33 = vmul.f32 0.0625, %v1104_v32 }
 0x3bd   : > { %v1119_v34 = vadd.f32 1e-05, %v1115_v31 }
 0x3be   : > { %v1118_v35 = vadd.f32 1e-05, %v1114_v33 }
 0x3bf   : > { %2689 = vrsqrt.f32 %v1119_v34  ;;  %v1156_v36 = vpop.permute.xlu1 %1155 }
 0x3c0   : > { %2691 = vrsqrt.f32 %v1118_v35  ;;  %v2673_v35 = vld [vmem:[%s3101_s4 + $0x28] sm:$0xff]  }
 0x3c3   : > { %v1113_v37 = vpop.xlane.xlu0 %1112  ;;  %v1160_v45 = vpop.permute.xlu1 %1159 }
 0x3c4   : > { %v1117_v58 = vmul.f32 0.0625, %v1113_v37  ;;  %v2675_v37 = vld [vmem:[%s3101_s4 + $0x30] sm:$0xff]  }
 0x3c6   : > { %v1121_v60 = vadd.f32 1e-05, %v1117_v58  ;;  %v2687_v58 = vld [vmem:[%s3101_s4 + $0x80] sm:$0xff]  }
 0x3c7   : > { %v1143_v57 = vpop.permute.xlu1 %1142 }
 0x3c8   : > { %2693 = vrsqrt.f32 %v1121_v60  ;;  %v2688_v60 = vld [vmem:[%s3101_s4 + $0x88] sm:$0xff]  }
 0x3c9   : > { %v2690_v38 = vpop.eup %2689 }
 0x3ca   : > { %v2692_v39 = vpop.eup %2691  ;;  %v1127_v40 = vmul.f32 %v2690_v38, %v1095_v9  ;;  %v2683_v38 = vld [vmem:[%s3101_s4] sm:$0xff]  }
 0x3cb   : > { %v1126_v41 = vmul.f32 %v2692_v39, %v1094_v11  ;;  %v1138_v42 = vpop.permute.xlu0 %1137  ;;  %v1148_v59 = vpop.permute.xlu1 %1147 }
 0x3cc   : > { %v1151_v43 = vmul.f32 %v1138_v42, %v1127_v40  ;;  %v2676_v40 = vld [vmem:[%s3101_s4 + $0x38] sm:$0xff]   ;;  %v2677_v42 = vld [vmem:[%s3101_s4 + $0x40] sm:$0xff]  }
 0x3cd   : > { %v1150_v44 = vmul.f32 %v1133_v29, %v1126_v41  ;;  %v2684_v41 = vld [vmem:[%s3101_s4 + $0x8] sm:$0xff]  }
 0x3ce   : > { %v1171_v46 = vadd.f32 %v1160_v45, %v1151_v43  ;;  %v2679_v45 = vld [vmem:[%s3101_s4 + $0x50] sm:$0xff]  }
 0x3cf   : > { %v1170_v47 = vadd.f32 %v1156_v36, %v1150_v44  ;;  %v2674_v36 = vld [vmem:[%s3101_s4 + $0x18] sm:$0xff]   ;;  %v2678_v44 = vld [vmem:[%s3101_s4 + $0x48] sm:$0xff]  }
 0x3d0   : > { %vm1175_vm4 = vcmp.gt.f32.partialorder %v1171_v46, 0.0  ;;  %v1179_v48 = vmul.f32 0.01, %v1171_v46  ;;  %v1164_v61 = vpop.permute.xlu1 %1163 }
 0x3d1   : > { %vm1174_vm5 = vcmp.gt.f32.partialorder %v1170_v47, 0.0  ;;  %v1178_v49 = vmul.f32 0.01, %v1170_v47 }
 0x3d2   : > { %v1183_v52 = vsel %vm1175_vm4, %v1171_v46, %v1179_v48  ;;  %v2694_v2 = vpop.eup %2693  ;;  %v2681_v48 = vld [vmem:[%s3101_s4 + $0x60] sm:$0xff]  }
 0x3d3   : > { %v1182_v53 = vsel %vm1174_vm5, %v1170_v47, %v1178_v49  ;;  %v1187_v54 = vmul.f32 %v2901_v51, %v1183_v52  ;;  %v1129_v3 = vmul.f32 %v2694_v2, %v2922_v20  ;;  %v2671_v20 = vld [vmem:[%s3101_s4 + $0x20] sm:$0xff]   ;;  %v2680_v47 = vld [vmem:[%s3101_s4 + $0x58] sm:$0xff]  }
 0x3d4   : > { %v1186_v55 = vmul.f32 %v2901_v51, %v1182_v53  ;;  %2477 = vmatprep.mubr.msk.bf16.mxu1 %vm1234_vm9, %v2671_v20  ;;  %v2682_v53 = vld [vmem:[%s3101_s4 + $0x68] sm:$0xff]  }
 0x3d5   : > { %v1153_v5 = vmul.f32 %v1148_v59, %v1129_v3 }
 0x3d6   : > { %v1192_v56 = vpack.c.bf16 %v1187_v54, %v1186_v55  ;;  %v2685_v54 = vld [vmem:[%s3101_s4 + $0x70] sm:$0xff]  }
 0x3d8   : > { %1196 = vrot.lane.b32.xlu1 %v1192_v56, %s2723_s28 }
 0x402   : > { %v1110_v62 = vpop.xlane.xlu1 %1109 }
 0x403   : > { %v1116_v63 = vmul.f32 0.0625, %v1110_v62 }
 0x405   : > { %v1120_v1 = vadd.f32 1e-05, %v1116_v63 }
 0x406   : > { %v1168_v4 = vpop.permute.xlu1 %1167 }
 0x407   : > { %2695 = vrsqrt.f32 %v1120_v1  ;;  %v1173_v6 = vadd.f32 %v1168_v4, %v1153_v5 }
 0x409   : > { %v1181_v9 = vmul.f32 0.01, %v1173_v6  ;;  %vm1177_vm6 = vcmp.gt.f32.partialorder %v1173_v6, 0.0 }
 0x40b   : > { %v1185_v12 = vsel %vm1177_vm6, %v1173_v6, %v1181_v9 }
 0x40c   : > { %v1189_v16 = vmul.f32 %v2901_v51, %v1185_v12 }
 0x411   : > { %v2696_v7 = vpop.eup %2695 }
 0x412   : > { %v1128_v8 = vmul.f32 %v2696_v7, %v1096_v26 }
 0x414   : > { %v1152_v10 = vmul.f32 %v1143_v57, %v1128_v8  ;;  %v2686_v57 = vld [vmem:[%s3101_s4 + $0x78] sm:$0xff]  }
 0x416   : > { %v1172_v11 = vadd.f32 %v1164_v61, %v1152_v10  ;;  %v2729_v61 = vmov 2  }
 0x417   : > { %2648 = vset.pattern.permute.xlu1 %v2729_v61  ;;  %2649 = vset.pattern.permute.xlu0 %v2729_v61 }
 0x418   : > { %vm1176_vm7 = vcmp.gt.f32.partialorder %v1172_v11, 0.0  ;;  %v1180_v13 = vmul.f32 0.01, %v1172_v11 }
 0x41a   : > { %v1184_v14 = vsel %vm1176_vm7, %v1172_v11, %v1180_v13 }
 0x41b   : > { %v1188_v15 = vmul.f32 %v2901_v51, %v1184_v14 }
 0x41d   : > { %v1193_v17 = vpack.c.bf16 %v1189_v16, %v1188_v15 }
 0x41f   : > { %1198 = vrot.lane.b32.xlu1 %v1193_v17, %s2723_s28 }
 0x44a   : > { %v1197_v18 = vpop.permute.xlu1 %1196 }
 0x44b   : > { %1203 = vst.msk [vmem:[#allocation2] sm:$0xff] %vm1202_vm8, %v1197_v18 }
 0x452   : > { %v1209_v19 = vld [vmem:[#allocation2] sm:$0xff] }
 0x453   : > { %1370 = vrot.lane.b32.xlu0 %v1209_v19, %s2715_s7 }
 0x457   : > { %1450 = vrot.lane.b32.xlu0 %v1209_v19, %s2724_s30 }
 0x45b   : > { %1530 = vrot.lane.b32.xlu0 %v1209_v19, %s2725_s8 }
 0x45f   : > { %1610 = vrot.lane.b32.xlu0 %v1209_v19, %s2726_s10 }
 0x463   : > { %1690 = vrot.lane.b32.xlu0 %v1209_v19, %s2717_s9 }
 0x467   : > { %1228 = vrot.lane.b32.xlu0 %v1209_v19, %s2713_s29 }
 0x491   : > { %v1199_v22 = vpop.permute.xlu1 %1198 }
 0x492   : > { %1204 = vst.msk [vmem:[#allocation2 + $0x8] sm:$0xff] %vm1202_vm8, %v1199_v22 }
 0x499   : > { %v1210_v26 = vld [vmem:[#allocation2 + $0x8] sm:$0xff] }
 0x49a   : > { %1230 = vrot.lane.b32.xlu0 %v1210_v26, %s2713_s29  ;;  %1372 = vrot.lane.b32.xlu1 %v1210_v26, %s2715_s7 }
 0x49e   : > { %1850 = vrot.lane.b32.xlu0 %v1209_v19, %s2727_s15  ;;  %1452 = vrot.lane.b32.xlu1 %v1210_v26, %s2724_s30 }
 0x4a2   : > { %1532 = vrot.lane.b32.xlu1 %v1210_v26, %s2725_s8 }
 0x4a6   : > { %1612 = vrot.lane.b32.xlu1 %v1210_v26, %s2726_s10  ;;  %s3071_s10 = scalar_lea.vmem %s3103_s6, %s2286_s27 }
 0x4a7   : > { %2039 = vst [vmem:[%s3071_s10] sm:$0xf] %v2721_v50  ;;  %2040 = vst [vmem:[%s3071_s10 + $0x4] sm:$0xf] %v2721_v50 }
 0x4a8   : > { %2041 = vst [vmem:[%s3071_s10 + $0x8] sm:$0xf] %v2721_v50  ;;  %2042 = vst [vmem:[%s3071_s10 + $0xc] sm:$0xf] %v2721_v50 }
 0x4aa   : > { %1692 = vrot.lane.b32.xlu1 %v1210_v26, %s2717_s9 }
 0x4ae   : > { %1770 = vrot.lane.b32.xlu1 %v1209_v19, %s2728_s16 }
 0x4b2   : > { %1772 = vrot.lane.b32.xlu1 %v1210_v26, %s2728_s16 }
 0x4b6   : > { %1852 = vrot.lane.b32.xlu1 %v1210_v26, %s2727_s15 }
 0x4c5   : > { %v1371_v27 = vpop.permute.xlu0 %1370 }
 0x4c6   : > { %2473 = vmatprep.subr.bf16.mxu1 %v1371_v27 }
 0x4c7   : > { %2474 = vmatpush3.bf16.msra.mxu1 %v1371_v27 }
 0x4c9   : > { %v1451_v28 = vpop.permute.xlu0 %1450 }
 0x4cd   : > { %v1531_v29 = vpop.permute.xlu0 %1530 }
 0x4d1   : > { %v1611_v30 = vpop.permute.xlu0 %1610 }
 0x4d5   : > { %v1691_v31 = vpop.permute.xlu0 %1690 }
 0x4d9   : > { %v1229_v32 = vpop.permute.xlu0 %1228 }
 0x4da   : > { %2457 = vmatprep.subr.bf16.mxu0 %v1229_v32 }
 0x4db   : > { %2458 = vmatpush3.bf16.msra.mxu0 %v1229_v32 }
 0x50c   : > { %v1231_v33 = vpop.permute.xlu0 %1230  ;;  %v1373_v34 = vpop.permute.xlu1 %1372 }
 0x50d   : > { %2459 = vmatprep.subr.bf16.mxu0 %v1231_v33  ;;  %2475 = vmatprep.subr.bf16.mxu1 %v1373_v34 }
 0x50e   : > { %2460 = vmatpush3.bf16.msra.mxu0 %v1231_v33  ;;  %2476 = vmatpush3.bf16.msra.mxu1 %v1373_v34 }
 0x50f   : > { %2465 = vmatprep.subr.bf16.mxu0 %v1209_v19  ;;  %2481 = vmatprep.subr.bf16.mxu1 %v1451_v28 }
 0x510   : > { %v1453_v39 = vpop.permute.xlu1 %1452  ;;  %v1851_v56 = vpop.permute.xlu0 %1850 }
 0x511   : > { %2478 = vmatmul.mubr.msk.bf16.vlgmr.msra.gmra.mrb[4].mxu1 %vm1234_vm9, %v2673_v35  ;;  %2462 = vmatmul.mubr.msk.bf16.vlgmr.msra.gmra.mrb[4].mxu0 %vm1234_vm9, %v2674_v36 }
 0x512   : > { %2466 = vmatpush3.bf16.msra.mxu0 %v1209_v19  ;;  %2482 = vmatpush3.bf16.msra.mxu1 %v1451_v28 }
 0x513   : > { %2467 = vmatprep.subr.bf16.mxu0 %v1210_v26  ;;  %2483 = vmatprep.subr.bf16.mxu1 %v1453_v39 }
 0x514   : > { %2485 = vmatprep.mubr.msk.bf16.mxu1 %vm1234_vm9, %v2675_v37  ;;  %2469 = vmatprep.mubr.msk.bf16.mxu0 %vm1234_vm9, %v2683_v38  ;;  %v1533_v43 = vpop.permute.xlu1 %1532 }
 0x516   : > { %2468 = vmatpush3.bf16.msra.mxu0 %v1210_v26  ;;  %2484 = vmatpush3.bf16.msra.mxu1 %v1453_v39 }
 0x517   : > { %2489 = vmatprep.subr.bf16.mxu1 %v1531_v29 }
 0x518   : > { %v1613_v46 = vpop.permute.xlu1 %1612 }
 0x51c   : > { %v1693_v49 = vpop.permute.xlu1 %1692 }
 0x51d   : > { %2486 = vmatmul.mubr.msk.bf16.vlgmr.msra.gmra.mrb[4].mxu1 %vm1234_vm9, %v2676_v40  ;;  %2470 = vmatmul.mubr.msk.bf16.vlgmr.msra.gmra.mrb[4].mxu0 %vm1234_vm9, %v2684_v41 }
 0x51e   : > { %2490 = vmatpush3.bf16.msra.mxu1 %v1531_v29  ;;  %2493 = vmatprep.mubr.msk.bf16.mxu1 %vm1234_vm9, %v2677_v42 }
 0x51f   : > { %2491 = vmatprep.subr.bf16.mxu1 %v1533_v43 }
 0x520   : > { %v1771_v52 = vpop.permute.xlu1 %1770 }
 0x522   : > { %2492 = vmatpush3.bf16.msra.mxu1 %v1533_v43 }
 0x523   : > { %2497 = vmatprep.subr.bf16.mxu1 %v1611_v30 }
 0x524   : > { %v1773_v55 = vpop.permute.xlu1 %1772 }
 0x528   : > { %v1853_v59 = vpop.permute.xlu1 %1852 }
 0x529   : > { %2494 = vmatmul.mubr.msk.bf16.vlgmr.msra.gmra.mrb[4].mxu1 %vm1234_vm9, %v2678_v44 }
 0x52a   : > { %2498 = vmatpush3.bf16.msra.mxu1 %v1611_v30  ;;  %2501 = vmatprep.mubr.msk.bf16.mxu1 %vm1234_vm9, %v2679_v45 }
 0x52b   : > { %2499 = vmatprep.subr.bf16.mxu1 %v1613_v46 }
 0x52e   : > { %2500 = vmatpush3.bf16.msra.mxu1 %v1613_v46  ;;  %v2730_v46 = vmov 3  }
 0x52f   : > { %2505 = vmatprep.subr.bf16.mxu1 %v1691_v31 }
 0x535   : > { %2502 = vmatmul.mubr.msk.bf16.vlgmr.msra.gmra.mrb[4].mxu1 %vm1234_vm9, %v2680_v47 }
 0x536   : > { %2506 = vmatpush3.bf16.msra.mxu1 %v1691_v31  ;;  %2509 = vmatprep.mubr.msk.bf16.mxu1 %vm1234_vm9, %v2681_v48 }
 0x537   : > { %2507 = vmatprep.subr.bf16.mxu1 %v1693_v49 }
 0x53a   : > { %2508 = vmatpush3.bf16.msra.mxu1 %v1693_v49 }
 0x53b   : > { %2513 = vmatprep.subr.bf16.mxu1 %v1771_v52 }
 0x541   : > { %2510 = vmatmul.mubr.msk.bf16.vlgmr.msra.gmra.mrb[4].mxu1 %vm1234_vm9, %v2682_v53 }
 0x542   : > { %2514 = vmatpush3.bf16.msra.mxu1 %v1771_v52  ;;  %2517 = vmatprep.mubr.msk.bf16.mxu1 %vm1234_vm9, %v2685_v54 }
 0x543   : > { %2515 = vmatprep.subr.bf16.mxu1 %v1773_v55 }
 0x546   : > { %2516 = vmatpush3.bf16.msra.mxu1 %v1773_v55 }
 0x547   : > { %2521 = vmatprep.subr.bf16.mxu1 %v1851_v56 }
 0x54d   : > { %2518 = vmatmul.mubr.msk.bf16.vlgmr.msra.gmra.mrb[4].mxu1 %vm1234_vm9, %v2686_v57 }
 0x54e   : > { %2522 = vmatpush3.bf16.msra.mxu1 %v1851_v56  ;;  %2525 = vmatprep.mubr.msk.bf16.mxu1 %vm1234_vm9, %v2687_v58 }
 0x54f   : > { %2523 = vmatprep.subr.bf16.mxu1 %v1853_v59 }
 0x552   : > { %2524 = vmatpush3.bf16.msra.mxu1 %v1853_v59 }
 0x559   : > { %2526 = vmatmul.mubr.msk.bf16.vlgmr.msra.gmra.mrb[4].mxu1 %vm1234_vm9, %v2688_v60 }
 0x5f0   : > { %v2471_v62 = vpop.f32.mrb[4].mxu0 }
 0x5f1   : > { %v1340_v63 = vpop.f32.mrb[5].mxu0 }
 0x5f2   : > { %v2472_v1 = vpop.f32.mrb[6].mxu0 }
 0x5f3   : > { %v1343_v2 = vpop.f32.mrb[7].mxu0 }
 0x62c   : > { %v2527_v3 = vpop.f32.mrb[4].mxu1 }
 0x62d   : > { %v2553_v4 = vadd.f32 %v2527_v3, %v2471_v62  ;;  %v1896_v5 = vpop.f32.mrb[5].mxu1 }
 0x62e   : > { %v2554_v6 = vadd.f32 %v1896_v5, %v1340_v63  ;;  %v2528_v7 = vpop.f32.mrb[6].mxu1 }
 0x62f   : > { %v2555_v8 = vadd.f32 %v2528_v7, %v2472_v1  ;;  %v1899_v9 = vpop.f32.mrb[7].mxu1  ;;  %v1921_v10 = vmul.f32 %v2553_v4, %v2901_v51 }
 0x630   : > { %v2556_v11 = vadd.f32 %v1899_v9, %v1343_v2  ;;  %v1919_v13 = vmul.f32 %v2554_v6, %v2901_v51 }
 0x631   : > { %v1929_v12 = vsel %vm1073_vm3, %v1921_v10, 0.0  ;;  %v1922_v17 = vmul.f32 %v2555_v8, %v2901_v51 }
 0x632   : > { %1930 = vadd.xlane.f32.xlu0 %v1929_v12  ;;  %v1920_v14 = vmul.f32 %v2556_v11, %v2901_v51  ;;  %v1923_v16 = vsel %vm1073_vm3, %v1919_v13, 0.0 }
 0x633   : > { %v1932_v18 = vsel %vm1073_vm3, %v1922_v17, 0.0 }
 0x634   : > { %v1926_v15 = vsel %vm1073_vm3, %v1920_v14, 0.0 }
 0x635   : > { %1927 = vadd.xlane.f32.xlu1 %v1926_v15 }
 0x636   : > { %1924 = vadd.xlane.f32.xlu0 %v1923_v16 }
 0x63a   : > { %1933 = vadd.xlane.f32.xlu0 %v1932_v18 }
 0x646   : > { %1981 = vperm.xlu1 %2648, %v2914_v0  }
 0x6bf   : > { %v1931_v19 = vpop.xlane.xlu0 %1930 }
 0x6c0   : > { %v1937_v20 = vmul.f32 0.0625, %v1931_v19 }
 0x6c2   : > { %v1941_v21 = vsub.f32 %v2553_v4, %v1937_v20  ;;  %v1928_v22 = vpop.xlane.xlu1 %1927 }
 0x6c3   : > { %v1925_v26 = vpop.xlane.xlu0 %1924  ;;  %v1936_v27 = vmul.f32 0.0625, %v1928_v22 }
 0x6c4   : > { %v1935_v28 = vmul.f32 0.0625, %v1925_v26  ;;  %v1945_v29 = vmul.f32 %v2901_v51, %v1941_v21 }
 0x6c5   : > { %v1940_v33 = vsub.f32 %v2556_v11, %v1936_v27 }
 0x6c6   : > { %v1939_v30 = vsub.f32 %v2554_v6, %v1935_v28  ;;  %v1949_v31 = vmul.f32 %v1945_v29, %v1945_v29 }
 0x6c7   : > { %v1934_v32 = vpop.xlane.xlu0 %1933  ;;  %v3054_v41 = vmul.f32 %v2901_v51, %v1940_v33 }
 0x6c8   : > { %v1938_v34 = vmul.f32 0.0625, %v1934_v32  ;;  %v1957_v35 = vsel %vm1073_vm3, %v1949_v31, 0.0  ;;  %v1943_v36 = vmul.f32 %v2901_v51, %v1939_v30 }
 0x6c9   : > { %1958 = vadd.xlane.f32.xlu1 %v1957_v35  ;;  %v1948_v44 = vmul.f32 %v3054_v41, %v3054_v41 }
 0x6ca   : > { %v1942_v37 = vsub.f32 %v2555_v8, %v1938_v34  ;;  %v1947_v38 = vmul.f32 %v1943_v36, %v1943_v36 }
 0x6cb   : > { %v1954_v45 = vsel %vm1073_vm3, %v1948_v44, 0.0 }
 0x6cc   : > { %v1951_v39 = vsel %vm1073_vm3, %v1947_v38, 0.0  ;;  %v1946_v40 = vmul.f32 %v2901_v51, %v1942_v37 }
 0x6cd   : > { %1952 = vadd.xlane.f32.xlu1 %v1951_v39 }
 0x6ce   : > { %v1950_v42 = vmul.f32 %v1946_v40, %v1946_v40 }
 0x6d0   : > { %v1960_v43 = vsel %vm1073_vm3, %v1950_v42, 0.0 }
 0x6d1   : > { %1961 = vadd.xlane.f32.xlu0 %v1960_v43 }
 0x6d5   : > { %1955 = vadd.xlane.f32.xlu0 %v1954_v45 }
 0x6de   : > { %1991 = vperm.xlu1 %2648, %v2937_v24  }
 0x6e2   : > { %1996 = vperm.xlu1 %2648, %v2944_v25  }
 0x6e6   : > { %2650 = vset.pattern.permute.xlu1 %v2730_v46 }
 0x6e7   : > { %2004 = vperm.xlu1 %2650, %v2914_v0   ;;  %v1982_v0 = vpop.permute.xlu1 %1981 }
 0x6eb   : > { %2008 = vperm.xlu1 %2650, %v2931_v23   ;;  %1986 = vperm.xlu0 %2649, %v2931_v23  }
 0x6ef   : > { %2012 = vperm.xlu1 %2650, %v2937_v24   ;;  %2651 = vset.pattern.permute.xlu0 %v2730_v46 }
 0x6f3   : > { %2016 = vperm.xlu1 %2650, %v2944_v25  }
 0x756   : > { %v1959_v23 = vpop.xlane.xlu1 %1958 }
 0x757   : > { %v1965_v24 = vmul.f32 0.0625, %v1959_v23 }
 0x759   : > { %v1969_v25 = vadd.f32 1e-05, %v1965_v24 }
 0x75a   : > { %v1953_v47 = vpop.xlane.xlu1 %1952 }
 0x75b   : > { %v1963_v48 = vmul.f32 0.0625, %v1953_v47  ;;  %2697 = vrsqrt.f32 %v1969_v25 }
 0x75d   : > { %v1967_v49 = vadd.f32 1e-05, %v1963_v48 }
 0x75e   : > { %v1962_v52 = vpop.xlane.xlu0 %1961  ;;  %v1992_v53 = vpop.permute.xlu1 %1991 }
 0x75f   : > { %2699 = vrsqrt.f32 %v1967_v49  ;;  %v1966_v54 = vmul.f32 0.0625, %v1962_v52 }
 0x761   : > { %v1970_v55 = vadd.f32 1e-05, %v1966_v54 }
 0x762   : > { %v1956_v56 = vpop.xlane.xlu0 %1955  ;;  %v1997_v57 = vpop.permute.xlu1 %1996 }
 0x763   : > { %2701 = vrsqrt.f32 %v1970_v55  ;;  %v1964_v58 = vmul.f32 0.0625, %v1956_v56 }
 0x765   : > { %v1968_v59 = vadd.f32 1e-05, %v1964_v58  ;;  %v2698_v60 = vpop.eup %2697 }
 0x766   : > { %v2005_v50 = vpop.permute.xlu1 %2004  ;;  %v1977_v62 = vmul.f32 %v2698_v60, %v1945_v29 }
 0x767   : > { %2703 = vrsqrt.f32 %v1968_v59 }
 0x768   : > { %v2001_v4 = vmul.f32 %v1992_v53, %v1977_v62 }
 0x769   : > { %v2700_v61 = vpop.eup %2699 }
 0x76a   : > { %v1975_v63 = vmul.f32 %v2700_v61, %v1943_v36  ;;  %v2009_v1 = vpop.permute.xlu1 %2008  ;;  %v1987_v13 = vpop.permute.xlu0 %1986 }
 0x76c   : > { %v1999_v2 = vmul.f32 %v1982_v0, %v1975_v63 }
 0x76d   : > { %v2702_v3 = vpop.eup %2701 }
 0x76e   : > { %v1978_v5 = vmul.f32 %v2702_v3, %v1946_v40  ;;  %v2019_v6 = vadd.f32 %v2005_v50, %v1999_v2  ;;  %v2013_v7 = vpop.permute.xlu1 %2012 }
 0x76f   : > { %v2021_v8 = vadd.f32 %v2013_v7, %v2001_v4 }
 0x770   : > { %v2002_v9 = vmul.f32 %v1997_v57, %v1978_v5  ;;  %vm2023_vm10 = vcmp.gt.f32.partialorder %v2019_v6, 0.0  ;;  %v2027_v10 = vmul.f32 0.01, %v2019_v6 }
 0x771   : > { %v2704_v11 = vpop.eup %2703  ;;  %vm2025_vm11 = vcmp.gt.f32.partialorder %v2021_v8, 0.0  ;;  %v2029_v12 = vmul.f32 0.01, %v2021_v8 }
 0x772   : > { %v2031_v14 = vsel %vm2023_vm10, %v2019_v6, %v2027_v10  ;;  %v2017_v15 = vpop.permute.xlu1 %2016  ;;  %v1976_v16 = vmul.f32 %v2704_v11, %v3054_v41 }
 0x773   : > { %v2033_v17 = vsel %vm2025_vm11, %v2021_v8, %v2029_v12  ;;  %v2022_v18 = vadd.f32 %v2017_v15, %v2002_v9  ;;  %v2035_v19 = vmul.f32 %v2901_v51, %v2031_v14 }
 0x774   : > { %v2000_v20 = vmul.f32 %v1987_v13, %v1976_v16  ;;  %v2037_v22 = vmul.f32 %v2901_v51, %v2033_v17 }
 0x775   : > { %v2287_v21 = vpack.c.bf16 %v2035_v19, %v2035_v19  ;;  %v2030_v26 = vmul.f32 0.01, %v2022_v18  ;;  %vm2026_vm12 = vcmp.gt.f32.partialorder %v2022_v18, 0.0 }
 0x776   : > { %v2020_v27 = vadd.f32 %v2009_v1, %v2000_v20  ;;  %v2289_v29 = vpack.c.bf16 %v2037_v22, %v2037_v22 }
 0x777   : > { %2055 = vrot.lane.b32.xlu1 %v2287_v21, %s2723_s28  ;;  %v2034_v30 = vsel %vm2026_vm12, %v2022_v18, %v2030_v26 }
 0x778   : > { %vm2024_vm13 = vcmp.gt.f32.partialorder %v2020_v27, 0.0  ;;  %v2028_v28 = vmul.f32 0.01, %v2020_v27  ;;  %v2038_v34 = vmul.f32 %v2901_v51, %v2034_v30 }
 0x77a   : > { %v2032_v31 = vsel %vm2024_vm13, %v2020_v27, %v2028_v28  ;;  %v2290_v35 = vpack.c.bf16 %v2038_v34, %v2038_v34 }
 0x77b   : > { %2059 = vrot.lane.b32.xlu1 %v2289_v29, %s2723_s28  ;;  %v2036_v32 = vmul.f32 %v2901_v51, %v2032_v31 }
 0x77d   : > { %v2288_v33 = vpack.c.bf16 %v2036_v32, %v2036_v32 }
 0x77f   : > { %2057 = vrot.lane.b32.xlu0 %v2288_v33, %s2723_s28 }
 0x783   : > { %2061 = vrot.lane.b32.xlu0 %v2290_v35, %s2723_s28 }
 0x7e9   : > { %v2056_v36 = vpop.permute.xlu1 %2055 }
 0x7ea   : > { %2068 = vst.msk [vmem:[%s3071_s10] sm:$0xf] %vm2067_vm14, %v2056_v36 }
 0x7ed   : > { %v2060_v37 = vpop.permute.xlu1 %2059 }
 0x7ee   : > { %2070 = vst.msk [vmem:[%s3071_s10 + $0x8] sm:$0xf] %vm2067_vm14, %v2060_v37 }
 0x7f1   : > { %v2058_v38 = vpop.permute.xlu0 %2057 }
 0x7f2   : > { %2069 = vst.msk [vmem:[%s3071_s10 + $0x4] sm:$0xf] %vm2067_vm14, %v2058_v38 }
 0x7f5   : > { %v2062_v39 = vpop.permute.xlu0 %2061 }
 0x7f6   : > { %2071 = vst.msk [vmem:[%s3071_s10 + $0xc] sm:$0xf] %vm2067_vm14, %v2062_v39 }
 0x7f7 PF: > { %s16_s21 = sadd.s32 1, %s2711_s21  }
 0x7f8   : > { %p13_p4 = scmp.ge.s32.totalorder %s16_s21, 4  }
 0x7fa   :  { %15 = sbr.rel (!%p13_p4) target bundleno = 1 (0x1), region = 90 }

// kernel: plain_conv_unet_forward.6
= control target key start
LH: loop header
LB: loop body
LE: loop exit
PB: predicated region body
PF: predicated region fallthrough
CT: control target
= control target key end

     0   :  { %s2827_s21 = smov 0   ;;  %s3235_s0 = inlined_call_operand.vmem [shape: bf16[2,8,384], index: 0, kind: input, shape index: {}]   ;;  %s3236_s1 = inlined_call_operand.vmem [shape: bf16[9,16,8], index: 1, kind: input, shape index: {}]   ;;  %s3237_s2 = inlined_call_operand.vmem [shape: f32[324,100], index: 2, kind: input, shape index: {}]   ;;  %s3238_s3 = inlined_call_operand.vmem [shape: f32[16,4], index: 3, kind: input, shape index: {}]   ;;  %s3239_s4 = inlined_call_operand.vmem [shape: bf16[9,16,16], index: 4, kind: input, shape index: {}]   ;;  %s3240_s5 = inlined_call_operand.vmem [shape: f32[1,100], index: 5, kind: input, shape index: {}]   ;;  %s3241_s6 = inlined_call_operand.vmem [shape: bf16[2,16,128], index: 6, kind: output, shape index: {}]  }
   0x1 LB: > { %s2235_s22 = sadd.s32 4294967295, %s2770_s21   ;;  %p2239_p0 = scmp.ge.s32.totalorder %s2770_s21, 1  ;;  %s2770_s21 = sphi %s2827_s21, %s16_s21  }
   0x2   : > { %p212_p1 = scmp.lt.s32.totalorder %s2770_s21, 3 }
   0x4   : > { %p213_p2 = pnand %p2239_p0, %p212_p1 }
   0x5   : > { %p242_p3 = scmp.lt.s32.totalorder (!%p213_p2), %s2235_s22, 1  ;;  %v2772_v0 = vmov (!%p213_p2), 0   ;;  %v2773_v1 = vmov (!%p213_p2), 0.0   ;;  %vm2774_vm0 = vmmov (!%p213_p2), 0   ;;  %s2775_s27 = smov (!%p213_p2), 127   ;;  %vm280_vm1 = vcmask (!%p213_p2), 1039360  }
   0x6   : > { %216 = sbr.rel (%p213_p2) target bundleno = 2015 (0x7df), region = 44  ;;  %329 = vmatprep.mubr.bf16.mxu0 (!%p213_p2), %v2772_v0  ;;  %1585 = vst [vmem:[#allocation2] sm:$0xff] (!%p213_p2), %v2772_v0  ;;  %2440 = vmatprep.subr.bf16.mxu1 (!%p213_p2), %v2773_v1  ;;  %s2776_s28 = smov (!%p213_p2), 126   ;;  %vm287_vm2 = vcmask (!%p213_p2), 1043456   ;;  %v2738_v13 = vld [vmem:[%s3236_s1 + $0x8] sm:$0xff] (!%p213_p2)   ;;  %vm283_vm3 = vcmask (!%p213_p2), 64512  }
   0x7   : > { %2728 = vset.pattern.permute.xlu1 (!%p213_p2), %v2772_v0  ;;  %2729 = vset.pattern.permute.xlu0 (!%p213_p2), %v2772_v0  ;;  %s2777_s29 = smov (!%p213_p2), 110   ;;  %s2778_s30 = smov (!%p213_p2), 109   ;;  %v2739_v17 = vld [vmem:[%s3236_s1 + $0x10] sm:$0xff] (!%p213_p2)   ;;  %v2740_v26 = vld [vmem:[%s3236_s1 + $0x18] sm:$0xff] (!%p213_p2)   ;;  %vm496_vm4 = vcmask (!%p213_p2), 1031168   ;;  %v2741_v28 = vld [vmem:[%s3236_s1] sm:$0xff] (!%p213_p2)  }
   0x8   : > { %2442 = vmatprep.mubr.msk.bf16.mxu1 (!%p213_p2), %vm2774_vm0, %v2773_v1  ;;  %s2779_s7 = smov (!%p213_p2), 108   ;;  %s2780_s8 = smov (!%p213_p2), 92   ;;  %vm615_vm5 = vcmask (!%p213_p2), 900096   ;;  %v2742_v37 = vld [vmem:[%s3236_s1 + $0x20] sm:$0xff] (!%p213_p2)   ;;  %vm734_vm6 = vcmask (!%p213_p2), 891904   ;;  %v2743_v46 = vld [vmem:[%s3236_s1 + $0x28] sm:$0xff] (!%p213_p2)  }
   0x9   : > { %s2781_s9 = smov (!%p213_p2), 91   ;;  %s2782_s10 = smov (!%p213_p2), 90   ;;  %vm853_vm7 = vcmask (!%p213_p2), 883712   ;;  %v2744_v54 = vld [vmem:[%s3236_s1 + $0x30] sm:$0xff] (!%p213_p2)   ;;  %vm972_vm8 = vcmask (!%p213_p2), 752640   ;;  %v2745_v61 = vld [vmem:[%s3236_s1 + $0x38] sm:$0xff] (!%p213_p2)  }
   0xa   : > { %vm1091_vm9 = vcmask (!%p213_p2), 744448   ;;  %vm1210_vm10 = vcmask (!%p213_p2), 736256   ;;  %vm1356_vm11 = vcmask (!%p213_p2), 556032   ;;  %vm1526_vm12 = vcmask (!%p213_p2), 818176   ;;  %s2784_s24 = smov (!%p213_p2), 11   ;;  %s2785_s25 = smov (!%p213_p2), 106  }
   0xb   : > { %vm1591_vm15 = vcmask (!%p213_p2), 908376  }
   0xd   : > { %s3243_s22 = smov (!%p242_p3, %s2235_s22), 1 }
   0xe   : > { %s2699_s23 = smul.u32 12, %s3243_s22 }
  0x10   : > { %s246_s26 = scalar_lea.vmem %s3235_s0, %s2699_s23 }
  0x11   : > { %v2846_v2 = vld [vmem:[%s246_s26 + $0x8] ss:$0 sps:$4 sm:$0xff]   ;;  %v256_v3 = vld [vmem:[%s246_s26] sm:$0xff]  ;;  %s2786_s26 = smov 118  }
  0x12   : > { %v2850_v4 = vcombine.low %v256_v3, %v256_v3  ;;  %278 = vrot.lane.b32.xlu1 %v2846_v2, %s2775_s27  ;;  %v2247_v5 = vcombine.high %v256_v3, %v256_v3  ;;  %v396_v30 = vsel %vm287_vm2, %v2846_v2, 0 }
  0x14   : > { %274 = vrot.lane.b32.xlu0 %v2850_v4, %s2775_s27  ;;  %v390_v23 = vsel %vm287_vm2, %v2850_v4, 0 }
  0x16   : > { %490 = vrot.lane.b32.xlu1 %v2850_v4, %s2776_s28 }
  0x18   : > { %276 = vrot.lane.b32.xlu0 %v2247_v5, %s2775_s27 }
  0x1a   : > { %494 = vrot.lane.b32.xlu1 %v2846_v2, %s2776_s28 }
  0x1c   : > { %492 = vrot.lane.b32.xlu0 %v2247_v5, %s2776_s28 }
  0x1e   : > { %611 = vrot.lane.b32.xlu1 %v2247_v5, %s2777_s29 }
  0x20   : > { %609 = vrot.lane.b32.xlu0 %v2850_v4, %s2777_s29 }
  0x22   : > { %728 = vrot.lane.b32.xlu1 %v2850_v4, %s2778_s30 }
  0x24   : > { %613 = vrot.lane.b32.xlu0 %v2846_v2, %s2777_s29  ;;  %s2787_s29 = smov 117  }
  0x26   : > { %732 = vrot.lane.b32.xlu1 %v2846_v2, %s2778_s30 }
  0x28   : > { %730 = vrot.lane.b32.xlu0 %v2247_v5, %s2778_s30  ;;  %s2788_s30 = smov 116  }
  0x2a   : > { %849 = vrot.lane.b32.xlu1 %v2247_v5, %s2779_s7 }
  0x2c   : > { %847 = vrot.lane.b32.xlu0 %v2850_v4, %s2779_s7 }
  0x2e   : > { %966 = vrot.lane.b32.xlu1 %v2850_v4, %s2780_s8 }
  0x30   : > { %851 = vrot.lane.b32.xlu0 %v2846_v2, %s2779_s7 }
  0x32   : > { %970 = vrot.lane.b32.xlu1 %v2846_v2, %s2780_s8 }
  0x34   : > { %968 = vrot.lane.b32.xlu0 %v2247_v5, %s2780_s8  ;;  %s2789_s8 = smov 107  }
  0x36   : > { %1087 = vrot.lane.b32.xlu1 %v2247_v5, %s2781_s9 }
  0x38   : > { %1085 = vrot.lane.b32.xlu0 %v2850_v4, %s2781_s9 }
  0x3a   : > { %1204 = vrot.lane.b32.xlu1 %v2850_v4, %s2782_s10  ;;  %v2746_v4 = vld [vmem:[%s3236_s1 + $0x40] sm:$0xff]  }
  0x3c   : > { %1089 = vrot.lane.b32.xlu0 %v2846_v2, %s2781_s9 }
  0x3e   : > { %1208 = vrot.lane.b32.xlu1 %v2846_v2, %s2782_s10 }
  0x40   : > { %1206 = vrot.lane.b32.xlu0 %v2247_v5, %s2782_s10 }
  0x84   : > { %v279_v6 = vpop.permute.xlu1 %278 }
  0x85   : > { %v295_v18 = vsel %vm287_vm2, %v279_v6, 0 }
  0x86   : > { %v275_v7 = vpop.permute.xlu0 %274 }
  0x88   : > { %v491_v8 = vpop.permute.xlu1 %490 }
  0x8a   : > { %v277_v9 = vpop.permute.xlu0 %276 }
  0x8b   : > { %v282_v10 = vsel %vm280_vm1, %v277_v9, %v279_v6  ;;  %v281_v11 = vsel %vm280_vm1, %v275_v7, %v277_v9  ;;  %vm1608_vm1 = vcmask 130048  }
  0x8c   : > { %2249 = vmatprep.subr.msk.bf16.mxu0 %vm287_vm2, %v282_v10  ;;  %v289_v12 = vsel %vm287_vm2, %v281_v11, 0  ;;  %v495_v14 = vpop.permute.xlu1 %494  ;;  %v1331_v11 = vld [vmem:[%s3237_s2 + $0x80] sm:$0xff] }
  0x8d   : > { %298 = vmatpush1.bf16.msra.mxu0 %v289_v12  ;;  %v509_v15 = vsel %vm287_vm2, %v495_v14, 0  ;;  %v1332_v12 = vld [vmem:[%s3237_s2 + $0x88] sm:$0xff] }
  0x8e   : > { %2428 = vmatprep.subr.bf16.mxu0 %v2773_v1  ;;  %v493_v16 = vpop.permute.xlu0 %492  ;;  %2441 = vmatpush3.bf16.msra.mxu1 %v509_v15  ;;  %v1316_v15 = vld [vmem:[%s3237_s2 + $0x8] sm:$0xff] }
  0x8f   : > { %2446 = vmatprep.subr.bf16.mxu1 %v2773_v1  ;;  %v498_v31 = vsel %vm496_vm4, %v493_v16, %v495_v14  ;;  %v497_v33 = vsel %vm496_vm4, %v491_v8, %v493_v16  ;;  %v1315_v14 = vld [vmem:[%s3237_s2] sm:$0xff] }
  0x90   : > { %2250 = vmatmul.mubr.msk.bf16.vlgmr.msra.gmra.mrb[0].mxu0 %vm283_vm3, %v2738_v13  ;;  %v612_v19 = vpop.permute.xlu1 %611  ;;  %v503_v36 = vsel %vm287_vm2, %v497_v33, 0  ;;  %v2559_v16 = vpack.c.bf16 %v1316_v15, %v1315_v14  ;;  %v1322_v33 = vld [vmem:[%s3237_s2 + $0x38] sm:$0xff] }
  0x91   : > { %2429 = vmatpush3.bf16.msra.mxu0 %v295_v18  ;;  %2430 = vmatprep.mubr.msk.bf16.mxu0 %vm2774_vm0, %v2773_v1  ;;  %v1334_v18 = vld [vmem:[%s3237_s2 + $0x98] sm:$0xff] }
  0x92   : > { %2443 = vmatmul.mubr.msk.bf16.vlgmr.msra.gmra.mrb[0].mxu1 %vm283_vm3, %v2739_v17  ;;  %v610_v20 = vpop.permute.xlu0 %609  ;;  %2253 = vmatprep.subr.msk.bf16.mxu0 %vm287_vm2, %v2247_v5 }
  0x93   : > { %2448 = vmatprep.mubr.msk.bf16.mxu1 %vm2774_vm0, %v2773_v1  ;;  %v616_v40 = vsel %vm615_vm5, %v610_v20, %v612_v19  ;;  %v1317_v20 = vld [vmem:[%s3237_s2 + $0x10] sm:$0xff] }
  0x94   : > { %v729_v21 = vpop.permute.xlu1 %728  ;;  %v622_v42 = vsel %vm287_vm2, %v616_v40, 0  ;;  %v1341_v40 = vld [vmem:[%s3237_s2 + $0xd0] sm:$0xff] }
  0x96   : > { %v614_v22 = vpop.permute.xlu0 %613 }
  0x97   : > { %v628_v24 = vsel %vm287_vm2, %v614_v22, 0  ;;  %v617_v38 = vsel %vm615_vm5, %v612_v19, %v614_v22 }
  0x98   : > { %2431 = vmatmul.mubr.msk.bf16.vlgmr.msra.gmra.mrb[4].mxu0 %vm283_vm3, %v2738_v13  ;;  %2447 = vmatpush3.bf16.msra.mxu1 %v628_v24  ;;  %v733_v25 = vpop.permute.xlu1 %732  ;;  %v2557_v13 = vpack.c.bf16 %v1332_v12, %v1331_v11  ;;  %v1336_v24 = vld [vmem:[%s3237_s2 + $0xa8] sm:$0xff]  ;;  %v1350_v11 = vld [vmem:[%s3237_s2 + $0x118] sm:$0xff] }
  0x99   : > { %399 = vmatpush1.bf16.msra.mxu0 %v390_v23  ;;  %430 = vmatprep.mubr.bf16.mxu0 %v2772_v0  ;;  %v747_v29 = vsel %vm287_vm2, %v733_v25, 0  ;;  %v1335_v23 = vld [vmem:[%s3237_s2 + $0xa0] sm:$0xff] }
  0x9a   : > { %2434 = vmatprep.subr.bf16.mxu0 %v2773_v1  ;;  %2452 = vmatprep.subr.bf16.mxu1 %v2773_v1  ;;  %v731_v27 = vpop.permute.xlu0 %730 }
  0x9b   : > { %v736_v43 = vsel %vm734_vm6, %v731_v27, %v733_v25  ;;  %v735_v48 = vsel %vm734_vm6, %v729_v21, %v731_v27  ;;  %v1318_v21 = vld [vmem:[%s3237_s2 + $0x18] sm:$0xff]  ;;  %v1319_v25 = vld [vmem:[%s3237_s2 + $0x20] sm:$0xff]  ;;  %v1320_v27 = vld [vmem:[%s3237_s2 + $0x28] sm:$0xff] }
  0x9c   : > { %v850_v35 = vpop.permute.xlu1 %849  ;;  %v741_v50 = vsel %vm287_vm2, %v735_v48, 0  ;;  %v2563_v22 = vpack.c.bf16 %v1318_v21, %v1317_v20  ;;  %v1353_v20 = vld [vmem:[%s3237_s2 + $0x130] sm:$0xff]  ;;  %v1354_v21 = vld [vmem:[%s3237_s2 + $0x138] sm:$0xff] }
  0x9e   : > { %2449 = vmatmul.mubr.msk.bf16.vlgmr.msra.gmra.mrb[0].mxu1 %vm283_vm3, %v2740_v26  ;;  %v848_v32 = vpop.permute.xlu0 %847 }
  0x9f   : > { %2453 = vmatpush3.bf16.msra.mxu1 %v747_v29  ;;  %2454 = vmatprep.mubr.msk.bf16.mxu1 %vm2774_vm0, %v2773_v1  ;;  %v854_v56 = vsel %vm853_vm7, %v848_v32, %v850_v35  ;;  %v1338_v29 = vld [vmem:[%s3237_s2 + $0xb8] sm:$0xff]  ;;  %v1321_v32 = vld [vmem:[%s3237_s2 + $0x30] sm:$0xff] }
  0xa0   : > { %2254 = vmatmul.mubr.msk.bf16.vlgmr.msra.gmra.mrb[0].mxu0 %vm283_vm3, %v2741_v28  ;;  %2458 = vmatprep.subr.bf16.mxu1 %v2773_v1  ;;  %v967_v41 = vpop.permute.xlu1 %966  ;;  %v860_v58 = vsel %vm287_vm2, %v854_v56, 0  ;;  %v1329_v56 = vld [vmem:[%s3237_s2 + $0x70] sm:$0xff] }
  0xa1   : > { %2435 = vmatpush3.bf16.msra.mxu0 %v396_v30  ;;  %2436 = vmatprep.mubr.msk.bf16.mxu0 %vm2774_vm0, %v2773_v1  ;;  %v2567_v30 = vpack.c.bf16 %v1320_v27, %v1319_v25 }
  0xa2   : > { %2259 = vmatprep.subr.msk.bf16.mxu0 %vm287_vm2, %v498_v31  ;;  %v852_v34 = vpop.permute.xlu0 %851 }
  0xa3   : > { %v866_v39 = vsel %vm287_vm2, %v852_v34, 0  ;;  %v855_v51 = vsel %vm853_vm7, %v850_v35, %v852_v34  ;;  %v1339_v34 = vld [vmem:[%s3237_s2 + $0xc0] sm:$0xff]  ;;  %v1340_v35 = vld [vmem:[%s3237_s2 + $0xc8] sm:$0xff] }
  0xa4   : > { %v971_v44 = vpop.permute.xlu1 %970 }
  0xa5   : > { %v985_v47 = vsel %vm287_vm2, %v971_v44, 0 }
  0xa6   : > { %v969_v45 = vpop.permute.xlu0 %968 }
  0xa7   : > { %v974_v59 = vsel %vm972_vm8, %v969_v45, %v971_v44  ;;  %v973_v63 = vsel %vm972_vm8, %v967_v41, %v969_v45  ;;  %v1342_v41 = vld [vmem:[%s3237_s2 + $0xd8] sm:$0xff]  ;;  %v1325_v44 = vld [vmem:[%s3237_s2 + $0x50] sm:$0xff] }
  0xa8   : > { %2437 = vmatmul.mubr.msk.bf16.vlgmr.msra.gmra.mrb[4].mxu0 %vm283_vm3, %v2741_v28  ;;  %v1088_v53 = vpop.permute.xlu1 %1087  ;;  %v979_v2 = vsel %vm287_vm2, %v973_v63, 0  ;;  %v1337_v28 = vld [vmem:[%s3237_s2 + $0xb0] sm:$0xff]  ;;  %v1326_v45 = vld [vmem:[%s3237_s2 + $0x58] sm:$0xff] }
  0xa9   : > { %512 = vmatpush1.bf16.msra.mxu0 %v503_v36  ;;  %543 = vmatprep.mubr.bf16.mxu0 %v2772_v0  ;;  %v2569_v31 = vpack.c.bf16 %v1338_v29, %v1337_v28  ;;  %v2571_v36 = vpack.c.bf16 %v1322_v33, %v1321_v32  ;;  %v2579_v48 = vpack.c.bf16 %v1326_v45, %v1325_v44 }
  0xaa   : > { %2455 = vmatmul.mubr.msk.bf16.vlgmr.msra.gmra.mrb[0].mxu1 %vm283_vm3, %v2742_v37  ;;  %2265 = vmatprep.subr.msk.bf16.mxu0 %vm287_vm2, %v617_v38  ;;  %v1086_v49 = vpop.permute.xlu0 %1085  ;;  %v1323_v38 = vld [vmem:[%s3237_s2 + $0x40] sm:$0xff] }
  0xab   : > { %2459 = vmatpush3.bf16.msra.mxu1 %v866_v39  ;;  %2460 = vmatprep.mubr.msk.bf16.mxu1 %vm2774_vm0, %v2773_v1  ;;  %v1092_v5 = vsel %vm1091_vm9, %v1086_v49, %v1088_v53  ;;  %v1324_v39 = vld [vmem:[%s3237_s2 + $0x48] sm:$0xff] }
  0xac   : > { %2464 = vmatprep.subr.bf16.mxu1 %v2773_v1  ;;  %v1205_v57 = vpop.permute.xlu1 %1204  ;;  %v1098_v7 = vsel %vm287_vm2, %v1092_v5, 0 }
  0xae   : > { %v1090_v52 = vpop.permute.xlu0 %1089 }
  0xaf   : > { %v1104_v55 = vsel %vm287_vm2, %v1090_v52, 0  ;;  %v1093_v3 = vsel %vm1091_vm9, %v1088_v53, %v1090_v52  ;;  %v1345_v52 = vld [vmem:[%s3237_s2 + $0xf0] sm:$0xff]  ;;  %v1346_v53 = vld [vmem:[%s3237_s2 + $0xf8] sm:$0xff] }
  0xb0   : > { %2260 = vmatmul.mubr.msk.bf16.vlgmr.msra.gmra.mrb[0].mxu0 %vm283_vm3, %v2739_v17  ;;  %v1209_v60 = vpop.permute.xlu1 %1208  ;;  %v1333_v17 = vld [vmem:[%s3237_s2 + $0x90] sm:$0xff] }
  0xb1   : > { %631 = vmatpush1.bf16.msra.mxu0 %v622_v42  ;;  %662 = vmatprep.mubr.bf16.mxu0 %v2772_v0  ;;  %v1223_v62 = vsel %vm287_vm2, %v1209_v60, 0  ;;  %v2561_v19 = vpack.c.bf16 %v1334_v18, %v1333_v17  ;;  %v2575_v42 = vpack.c.bf16 %v1324_v39, %v1323_v38  ;;  %v1352_v17 = vld [vmem:[%s3237_s2 + $0x128] sm:$0xff]  ;;  %v3123_v39 = vld [vmem:[%s3238_s3] sm:$0xff] }
  0xb2   : > { %2271 = vmatprep.subr.msk.bf16.mxu0 %vm287_vm2, %v736_v43  ;;  %v1207_v6 = vpop.permute.xlu0 %1206  ;;  %v2577_v43 = vpack.c.bf16 %v1342_v41, %v1341_v40  ;;  %v2783_v40 = vmov 1   ;;  %v3130_v41 = vld [vmem:[%s3238_s3 + $0x8] sm:$0xff] }
  0xb3   : > { %v1212_v8 = vsel %vm1210_vm10, %v1207_v6, %v1209_v60  ;;  %v1211_v9 = vsel %vm1210_vm10, %v1205_v57, %v1207_v6  ;;  %v1330_v57 = vld [vmem:[%s3237_s2 + $0x78] sm:$0xff]  ;;  %v1348_v60 = vld [vmem:[%s3237_s2 + $0x108] sm:$0xff] }
  0xb4   : > { %v1217_v10 = vsel %vm287_vm2, %v1211_v9, 0 }
  0xb6   : > { %2461 = vmatmul.mubr.msk.bf16.vlgmr.msra.gmra.mrb[0].mxu1 %vm283_vm3, %v2743_v46 }
  0xb7   : > { %2465 = vmatpush3.bf16.msra.mxu1 %v985_v47  ;;  %2466 = vmatprep.mubr.msk.bf16.mxu1 %vm2774_vm0, %v2773_v1  ;;  %v1344_v47 = vld [vmem:[%s3237_s2 + $0xe8] sm:$0xff] }
  0xb8   : > { %2470 = vmatprep.subr.bf16.mxu1 %v2773_v1 }
  0xbc   : > { %2266 = vmatmul.mubr.msk.bf16.vlgmr.msra.gmra.mrb[0].mxu0 %vm283_vm3, %v2740_v26  ;;  %v2565_v26 = vpack.c.bf16 %v1336_v24, %v1335_v23  ;;  %v1355_v23 = vld [vmem:[%s3237_s2 + $0x140] sm:$0xf] }
  0xbd   : > { %750 = vmatpush1.bf16.msra.mxu0 %v741_v50  ;;  %781 = vmatprep.mubr.bf16.mxu0 %v2772_v0  ;;  %v1327_v50 = vld [vmem:[%s3237_s2 + $0x60] sm:$0xff] }
  0xbe   : > { %2277 = vmatprep.subr.msk.bf16.mxu0 %vm287_vm2, %v855_v51  ;;  %v1328_v51 = vld [vmem:[%s3237_s2 + $0x68] sm:$0xff] }
  0xc2   : > { %2467 = vmatmul.mubr.msk.bf16.vlgmr.msra.gmra.mrb[0].mxu1 %vm283_vm3, %v2744_v54 }
  0xc3   : > { %2471 = vmatpush3.bf16.msra.mxu1 %v1104_v55  ;;  %2472 = vmatprep.mubr.msk.bf16.mxu1 %vm2774_vm0, %v2773_v1  ;;  %v2585_v55 = vpack.c.bf16 %v1346_v53, %v1345_v52 }
  0xc4   : > { %2476 = vmatprep.subr.bf16.mxu1 %v2773_v1 }
  0xc8   : > { %2272 = vmatmul.mubr.msk.bf16.vlgmr.msra.gmra.mrb[0].mxu0 %vm283_vm3, %v2742_v37  ;;  %v2573_v37 = vpack.c.bf16 %v1340_v35, %v1339_v34 }
  0xc9   : > { %869 = vmatpush1.bf16.msra.mxu0 %v860_v58  ;;  %900 = vmatprep.mubr.bf16.mxu0 %v2772_v0  ;;  %v2587_v58 = vpack.c.bf16 %v1330_v57, %v1329_v56 }
  0xca   : > { %2283 = vmatprep.subr.msk.bf16.mxu0 %vm287_vm2, %v974_v59  ;;  %v1347_v59 = vld [vmem:[%s3237_s2 + $0x100] sm:$0xff] }
  0xce   : > { %2473 = vmatmul.mubr.msk.bf16.vlgmr.msra.gmra.mrb[0].mxu1 %vm283_vm3, %v2745_v61 }
  0xcf   : > { %2477 = vmatpush3.bf16.msra.mxu1 %v1223_v62  ;;  %2478 = vmatprep.mubr.msk.bf16.mxu1 %vm2774_vm0, %v2773_v1 }
  0xd0   : > { %2503 = vmatprep.subr.bf16.mxu1 %v2773_v1 }
  0xd4   : > { %2278 = vmatmul.mubr.msk.bf16.vlgmr.msra.gmra.mrb[0].mxu0 %vm283_vm3, %v2743_v46  ;;  %v1343_v46 = vld [vmem:[%s3237_s2 + $0xe0] sm:$0xff] }
  0xd5   : > { %988 = vmatpush1.bf16.msra.mxu0 %v979_v2  ;;  %1019 = vmatprep.mubr.bf16.mxu0 %v2772_v0  ;;  %v2581_v49 = vpack.c.bf16 %v1344_v47, %v1343_v46 }
  0xd6   : > { %2289 = vmatprep.subr.msk.bf16.mxu0 %vm287_vm2, %v1093_v3 }
  0xda   : > { %2479 = vmatmul.mubr.msk.bf16.vlgmr.msra.gmra.mrb[0].mxu1 %vm283_vm3, %v2746_v4 }
  0xdb   : > { %2505 = vmatprep.mubr.msk.bf16.mxu1 %vm2774_vm0, %v2773_v1 }
  0xe0   : > { %2284 = vmatmul.mubr.msk.bf16.vlgmr.msra.gmra.mrb[0].mxu0 %vm283_vm3, %v2744_v54  ;;  %v2583_v54 = vpack.c.bf16 %v1328_v51, %v1327_v50 }
  0xe1   : > { %1107 = vmatpush1.bf16.msra.mxu0 %v1098_v7  ;;  %1138 = vmatprep.mubr.bf16.mxu0 %v2772_v0 }
  0xe2   : > { %2295 = vmatprep.subr.msk.bf16.mxu0 %vm287_vm2, %v1212_v8 }
  0xec   : > { %2290 = vmatmul.mubr.msk.bf16.vlgmr.msra.gmra.mrb[0].mxu0 %vm283_vm3, %v2745_v61  ;;  %v2589_v61 = vpack.c.bf16 %v1348_v60, %v1347_v59 }
  0xed   : > { %1226 = vmatpush1.bf16.msra.mxu0 %v1217_v10  ;;  %1257 = vmatprep.mubr.bf16.mxu0 %v2772_v0  ;;  %v1349_v10 = vld [vmem:[%s3237_s2 + $0x110] sm:$0xff] }
  0xee   : > { %2558 = vmatprep.subr.bf16.mxu0 %v2557_v13  ;;  %v2593_v14 = vpack.c.bf16 %v1350_v11, %v1349_v10 }
  0xf8   : > { %2296 = vmatmul.mubr.msk.bf16.vlgmr.msra.gmra.mrb[0].mxu0 %vm283_vm3, %v2746_v4  ;;  %vm2177_vm3 = vcmask 904280  }
  0xf9   : > { %2560 = vmatpush3.bf16.msra.mxu0 %v2559_v16  ;;  %v1351_v16 = vld [vmem:[%s3237_s2 + $0x120] sm:$0xff] }
  0xfa   : > { %2562 = vmatprep.subr.bf16.mxu0 %v2561_v19  ;;  %v2597_v19 = vpack.c.bf16 %v1352_v17, %v1351_v16 }
  0xfd   : > { %2564 = vmatpush3.bf16.msra.mxu0 %v2563_v22  ;;  %v2601_v22 = vpack.c.bf16 %v1354_v21, %v1353_v20  ;;  %v2747_v20 = vld [vmem:[%s3239_s4 + $0x8] sm:$0xff]   ;;  %v2748_v21 = vld [vmem:[%s3239_s4] sm:$0xff]  }
  0xfe   : > { %2566 = vmatprep.subr.bf16.mxu0 %v2565_v26 }
 0x101   : > { %2568 = vmatpush3.bf16.msra.mxu0 %v2567_v30 }
 0x102   : > { %2570 = vmatprep.subr.bf16.mxu0 %v2569_v31  ;;  %v3114_v31 = vld [vmem:[%s3240_s5] ss:$0 sm:$0xff] }
 0x105   : > { %2572 = vmatpush3.bf16.msra.mxu0 %v2571_v36 }
 0x106   : > { %2574 = vmatprep.subr.bf16.mxu0 %v2573_v37 }
 0x109   : > { %2576 = vmatpush3.bf16.msra.mxu0 %v2575_v42 }
 0x10a   : > { %2578 = vmatprep.subr.bf16.mxu0 %v2577_v43 }
 0x10d   : > { %2580 = vmatpush3.bf16.msra.mxu0 %v2579_v48 }
 0x10e   : > { %2582 = vmatprep.subr.bf16.mxu0 %v2581_v49 }
 0x111   : > { %2584 = vmatpush3.bf16.msra.mxu0 %v2583_v54 }
 0x112   : > { %2586 = vmatprep.subr.bf16.mxu0 %v2585_v55 }
 0x115   : > { %2588 = vmatpush3.bf16.msra.mxu0 %v2587_v58 }
 0x116   : > { %2590 = vmatprep.subr.bf16.mxu0 %v2589_v61 }
 0x17b   : > { %v475_v62 = vpop.f32.mrb[4].mxu0 }
 0x17c   : > { %v2438_v63 = vpop.f32.mrb[5].mxu0 }
 0x17d   : > { %v478_v2 = vpop.f32.mrb[6].mxu0 }
 0x17e   : > { %v2439_v3 = vpop.f32.mrb[7].mxu0 }
 0x1ad   : > { %v1302_v4 = vpop.f32.mrb[0].mxu1 }
 0x1ae   : > { %v2605_v5 = vadd.f32 %v1302_v4, %v475_v62  ;;  %v2480_v6 = vpop.f32.mrb[1].mxu1 }
 0x1af   : > { %v1305_v7 = vpop.f32.mrb[2].mxu1 }
 0x1b0   : > { %v2606_v8 = vadd.f32 %v1305_v7, %v478_v2  ;;  %v2481_v9 = vpop.f32.mrb[3].mxu1 }
 0x1cb   : > { %v1259_v12 = vpop.f32.mrb[0].mxu0 }
 0x1cc   : > { %v1261_v13 = vpop.f32.mrb[1].mxu0 }
 0x1cd   : > { %v1263_v15 = vpop.f32.mrb[2].mxu0  ;;  %1430 = vmatprep.mubr.f32.mxu0 %v1261_v13 }
 0x1ce   : > { %v1265_v18 = vpop.f32.mrb[3].mxu0  ;;  %1431 = vmatmul.mubr.f32.vlgmr.msra.gmra.mrb[8].mxu0 %v1259_v12 }
 0x1cf   : > { %2592 = vmatpush3.bf16.msra.mxu0 %v2589_v61  ;;  %1435 = vmatprep.mubr.f32.mxu0 %v1265_v18 }
 0x1d0   : > { %2594 = vmatprep.subr.bf16.mxu0 %v2593_v14 }
 0x1d2   : > { %1436 = vmatmul.mubr.f32.gmra.mrb[10].mxu0 %v1263_v15 }
 0x1d3   : > { %2596 = vmatpush3.bf16.msra.mxu0 %v2593_v14  ;;  %2500 = vmatprep.mubr.msk.f32.mxu0 %vm1356_vm11, %v2605_v5 }
 0x1d4   : > { %2598 = vmatprep.subr.bf16.mxu0 %v2597_v19 }
 0x1d7   : > { %2600 = vmatpush3.bf16.msra.mxu0 %v2597_v19 }
 0x1d8   : > { %2602 = vmatprep.subr.bf16.mxu0 %v2601_v22 }
 0x1db   : > { %2604 = vmatpush3.bf16.msra.mxu0 %v2601_v22 }
 0x1dc   : > { %2498 = vmatprep.subr.msk.mxu0 %vm287_vm2, %v1355_v23 }
 0x1df   : > { %2499 = vmatpush3.msk.msra.mxu0 %vm287_vm2, %v1355_v23  ;;  %v2749_v23 = vld [vmem:[%s3239_s4 + $0x10] sm:$0xff]  }
 0x1e0   : > { %2501 = vmatmul.mubr.msk.f32.vlgmr.msra.gmra.mrb[12].mxu0 %vm1356_vm11, %v2606_v8 }
 0x2a1   : > { %v2393_v24 = vpop.f32.mrb[8].mxu0 }
 0x2a2   : > { %v2394_v25 = vpop.f32.mrb[9].mxu0 }
 0x2a3   : > { %v2395_v26 = vadd.f32 %v2394_v25, %v2393_v24  ;;  %v2750_v25 = vld [vmem:[%s3239_s4 + $0x18] sm:$0xff]  }
 0x2a5   : > { %v2396_v27 = vpop.f32.mrb[10].mxu0 }
 0x2a6   : > { %v2397_v28 = vpop.f32.mrb[11].mxu0 }
 0x2a7   : > { %v2398_v29 = vadd.f32 %v2397_v28, %v2396_v27  ;;  %v2751_v27 = vld [vmem:[%s3239_s4 + $0x20] sm:$0xff]  }
 0x2b3   : > { %v2502_v30 = vpop.f32.mrb[12].mxu0 }
 0x2b4   : > { %v1513_v32 = vadd.f32 %v2502_v30, %v2398_v29  ;;  %v1507_v33 = vpop.f32.mrb[13].mxu0  ;;  %v2752_v29 = vld [vmem:[%s3239_s4 + $0x28] sm:$0xff]  }
 0x2b5   : > { %v1508_v34 = vadd.f32 %v2395_v26, %v1507_v33 }
 0x2b6   : > { %v1525_v35 = vmul.f32 %v3114_v31, %v1513_v32 }
 0x2b7   : > { %v1524_v36 = vmul.f32 %v3114_v31, %v1508_v34 }
 0x2b8   : > { %v1530_v37 = vsel %vm1526_vm12, %v1525_v35, 0.0 }
 0x2b9   : > { %1531 = vadd.xlane.f32.xlu1 %v1530_v37  ;;  %v1527_v38 = vsel %vm1526_vm12, %v1524_v36, 0.0  ;;  %v2755_v36 = vld [vmem:[%s3239_s4 + $0x40] sm:$0xff]   ;;  %v2790_v37 = vmov 2  }
 0x2ba   : > { %1528 = vadd.xlane.f32.xlu0 %v1527_v38 }
 0x2ca   : > { %1557 = vperm.xlu1 %2728, %v3123_v39  }
 0x2ce   : > { %2730 = vset.pattern.permute.xlu1 %v2783_v40 }
 0x2cf   : > { %1568 = vperm.xlu1 %2730, %v3123_v39  }
 0x2d3   : > { %1572 = vperm.xlu1 %2730, %v3130_v41  }
 0x2d7   : > { %2732 = vset.pattern.permute.xlu1 %v2790_v37 }
 0x346   : > { %v1532_v42 = vpop.xlane.xlu1 %1531 }
 0x347   : > { %v1534_v43 = vmul.f32 0.015625, %v1532_v42  ;;  %v1529_v44 = vpop.xlane.xlu0 %1528 }
 0x348   : > { %v1533_v45 = vmul.f32 0.015625, %v1529_v44 }
 0x349   : > { %v1536_v46 = vsub.f32 %v1513_v32, %v1534_v43  ;;  %v2753_v32 = vld [vmem:[%s3239_s4 + $0x30] sm:$0xff]  }
 0x34a   : > { %v1535_v47 = vsub.f32 %v1508_v34, %v1533_v45  ;;  %v1558_v59 = vpop.permute.xlu1 %1557  ;;  %v2754_v34 = vld [vmem:[%s3239_s4 + $0x38] sm:$0xff]  }
 0x34b   : > { %v1538_v48 = vmul.f32 %v3114_v31, %v1536_v46 }
 0x34c   : > { %v1537_v49 = vmul.f32 %v3114_v31, %v1535_v47  ;;  %v2791_v47 = vmov 3  }
 0x34d   : > { %v1540_v50 = vmul.f32 %v1538_v48, %v1538_v48 }
 0x34e   : > { %v1539_v52 = vmul.f32 %v1537_v49, %v1537_v49  ;;  %v1569_v61 = vpop.permute.xlu1 %1568 }
 0x34f   : > { %v1544_v51 = vsel %vm1526_vm12, %v1540_v50, 0.0 }
 0x350   : > { %1545 = vadd.xlane.f32.xlu0 %v1544_v51  ;;  %v1541_v53 = vsel %vm1526_vm12, %v1539_v52, 0.0 }
 0x352   : > { %v1573_v3 = vpop.permute.xlu1 %1572 }
 0x354   : > { %1542 = vadd.xlane.f32.xlu0 %v1541_v53 }
 0x36a   : > { %1562 = vperm.xlu0 %2729, %v3130_v41  }
 0x36e   : > { %2731 = vset.pattern.permute.xlu0 %v2790_v37 }
 0x3dd   : > { %v1546_v54 = vpop.xlane.xlu0 %1545 }
 0x3de   : > { %v1548_v55 = vmul.f32 0.015625, %v1546_v54 }
 0x3e0   : > { %v1550_v56 = vadd.f32 1e-05, %v1548_v55 }
 0x3e1   : > { %v1543_v57 = vpop.xlane.xlu0 %1542 }
 0x3e2   : > { %2756 = vrsqrt.f32 %v1550_v56  ;;  %v1547_v58 = vmul.f32 0.015625, %v1543_v57 }
 0x3e4   : > { %v1549_v60 = vadd.f32 1e-05, %v1547_v58 }
 0x3e6   : > { %2758 = vrsqrt.f32 %v1549_v60 }
 0x3e9   : > { %v1563_v63 = vpop.permute.xlu0 %1562 }
 0x3ec   : > { %v2757_v62 = vpop.eup %2756 }
 0x3ed   : > { %v1554_v2 = vmul.f32 %v2757_v62, %v1538_v48 }
 0x3ef   : > { %v1566_v4 = vmul.f32 %v1563_v63, %v1554_v2 }
 0x3f0   : > { %v2759_v5 = vpop.eup %2758 }
 0x3f1   : > { %v1553_v6 = vmul.f32 %v2759_v5, %v1537_v49  ;;  %v1576_v7 = vadd.f32 %v1573_v3, %v1566_v4 }
 0x3f3   : > { %v1565_v8 = vmul.f32 %v1558_v59, %v1553_v6  ;;  %v1580_v9 = vmul.f32 0.01, %v1576_v7  ;;  %vm1578_vm13 = vcmp.gt.f32.partialorder %v1576_v7, 0.0 }
 0x3f5   : > { %v1575_v10 = vadd.f32 %v1569_v61, %v1565_v8  ;;  %v1582_v12 = vsel %vm1578_vm13, %v1576_v7, %v1580_v9 }
 0x3f6   : > { %v1584_v15 = vmul.f32 %v3114_v31, %v1582_v12 }
 0x3f7   : > { %vm1577_vm14 = vcmp.gt.f32.partialorder %v1575_v10, 0.0  ;;  %v1579_v11 = vmul.f32 0.01, %v1575_v10 }
 0x3f9   : > { %v1581_v13 = vsel %vm1577_vm14, %v1575_v10, %v1579_v11 }
 0x3fa   : > { %v1583_v14 = vmul.f32 %v3114_v31, %v1581_v13 }
 0x3fc   : > { %v1586_v16 = vpack.c.bf16 %v1584_v15, %v1583_v14 }
 0x3fe   : > { %1588 = vrot.lane.b32.xlu1 %v1586_v16, %s2784_s24 }
 0x470   : > { %v1589_v17 = vpop.permute.xlu1 %1588 }
 0x471   : > { %1592 = vst.msk [vmem:[#allocation2] sm:$0xff] %vm1591_vm15, %v1589_v17 }
 0x478   : > { %v1595_v18 = vld [vmem:[#allocation2] sm:$0xff] }
 0x479   : > { %1938 = vrot.lane.b32.xlu0 %v1595_v18, %s2779_s7  ;;  %1605 = vrot.lane.b32.xlu1 %v1595_v18, %s2775_s27 }
 0x47d   : > { %2052 = vrot.lane.b32.xlu0 %v1595_v18, %s2785_s25  ;;  %1710 = vrot.lane.b32.xlu1 %v1595_v18, %s2776_s28 }
 0x481   : > { %1767 = vrot.lane.b32.xlu1 %v1595_v18, %s2786_s26 }
 0x485   : > { %1824 = vrot.lane.b32.xlu1 %v1595_v18, %s2787_s29  ;;  %s2340_s29 = sshll.u32 %s3243_s22, 3 }
 0x486   : > { %s3220_s9 = scalar_lea.vmem %s3241_s6, %s2340_s29 }
 0x487   : > { %2163 = vst [vmem:[%s3220_s9] sm:$0xf] %v2772_v0  ;;  %2164 = vst [vmem:[%s3220_s9 + $0x4] sm:$0xf] %v2772_v0 }
 0x489   : > { %1881 = vrot.lane.b32.xlu1 %v1595_v18, %s2788_s30 }
 0x48d   : > { %1995 = vrot.lane.b32.xlu1 %v1595_v18, %s2789_s8 }
 0x4eb   : > { %v1606_v19 = vpop.permute.xlu1 %1605  ;;  %v1939_v30 = vpop.permute.xlu0 %1938 }
 0x4ec   : > { %2504 = vmatpush3.bf16.msra.mxu1 %v1606_v19 }
 0x4ed   : > { %2509 = vmatprep.subr.bf16.mxu1 %v2773_v1 }
 0x4ef   : > { %2506 = vmatmul.mubr.msk.bf16.vlgmr.msra.gmra.mrb[4].mxu1 %vm1608_vm1, %v2747_v20  ;;  %v1711_v22 = vpop.permute.xlu1 %1710  ;;  %v2053_v35 = vpop.permute.xlu0 %2052 }
 0x4f0   : > { %2510 = vmatpush3.bf16.msra.mxu1 %v1595_v18  ;;  %2511 = vmatprep.mubr.msk.bf16.mxu1 %vm2774_vm0, %v2773_v1 }
 0x4f1   : > { %2515 = vmatprep.subr.bf16.mxu1 %v2773_v1 }
 0x4f3   : > { %v1768_v24 = vpop.permute.xlu1 %1767 }
 0x4f7   : > { %v1825_v26 = vpop.permute.xlu1 %1824 }
 0x4fb   : > { %2512 = vmatmul.mubr.msk.bf16.vlgmr.msra.gmra.mrb[4].mxu1 %vm1608_vm1, %v2748_v21  ;;  %v1882_v28 = vpop.permute.xlu1 %1881 }
 0x4fc   : > { %2516 = vmatpush3.bf16.msra.mxu1 %v1711_v22  ;;  %2517 = vmatprep.mubr.msk.bf16.mxu1 %vm2774_vm0, %v2773_v1 }
 0x4fd   : > { %2521 = vmatprep.subr.bf16.mxu1 %v2773_v1 }
 0x4ff   : > { %v1996_v33 = vpop.permute.xlu1 %1995 }
 0x507   : > { %2518 = vmatmul.mubr.msk.bf16.vlgmr.msra.gmra.mrb[4].mxu1 %vm1608_vm1, %v2749_v23 }
 0x508   : > { %2522 = vmatpush3.bf16.msra.mxu1 %v1768_v24  ;;  %2523 = vmatprep.mubr.msk.bf16.mxu1 %vm2774_vm0, %v2773_v1 }
 0x509   : > { %2527 = vmatprep.subr.bf16.mxu1 %v2773_v1 }
 0x513   : > { %2524 = vmatmul.mubr.msk.bf16.vlgmr.msra.gmra.mrb[4].mxu1 %vm1608_vm1, %v2750_v25 }
 0x514   : > { %2528 = vmatpush3.bf16.msra.mxu1 %v1825_v26  ;;  %2529 = vmatprep.mubr.msk.bf16.mxu1 %vm2774_vm0, %v2773_v1 }
 0x515   : > { %2533 = vmatprep.subr.bf16.mxu1 %v2773_v1 }
 0x51f   : > { %2530 = vmatmul.mubr.msk.bf16.vlgmr.msra.gmra.mrb[4].mxu1 %vm1608_vm1, %v2751_v27 }
 0x520   : > { %2534 = vmatpush3.bf16.msra.mxu1 %v1882_v28  ;;  %2535 = vmatprep.mubr.msk.bf16.mxu1 %vm2774_vm0, %v2773_v1 }
 0x521   : > { %2539 = vmatprep.subr.bf16.mxu1 %v2773_v1 }
 0x52b   : > { %2536 = vmatmul.mubr.msk.bf16.vlgmr.msra.gmra.mrb[4].mxu1 %vm1608_vm1, %v2752_v29 }
 0x52c   : > { %2540 = vmatpush3.bf16.msra.mxu1 %v1939_v30  ;;  %2541 = vmatprep.mubr.msk.bf16.mxu1 %vm2774_vm0, %v2773_v1 }
 0x52d   : > { %2545 = vmatprep.subr.bf16.mxu1 %v2773_v1 }
 0x537   : > { %2542 = vmatmul.mubr.msk.bf16.vlgmr.msra.gmra.mrb[4].mxu1 %vm1608_vm1, %v2753_v32 }
 0x538   : > { %2546 = vmatpush3.bf16.msra.mxu1 %v1996_v33  ;;  %2547 = vmatprep.mubr.msk.bf16.mxu1 %vm2774_vm0, %v2773_v1 }
 0x539   : > { %2551 = vmatprep.subr.bf16.mxu1 %v2773_v1 }
 0x543   : > { %2548 = vmatmul.mubr.msk.bf16.vlgmr.msra.gmra.mrb[4].mxu1 %vm1608_vm1, %v2754_v34 }
 0x544   : > { %2552 = vmatpush3.bf16.msra.mxu1 %v2053_v35  ;;  %2553 = vmatprep.mubr.msk.bf16.mxu1 %vm2774_vm0, %v2773_v1 }
 0x54f   : > { %2554 = vmatmul.mubr.msk.bf16.vlgmr.msra.gmra.mrb[4].mxu1 %vm1608_vm1, %v2755_v36 }
 0x622   : > { %v2092_v38 = vpop.f32.mrb[4].mxu1 }
 0x623   : > { %v2103_v40 = vmul.f32 %v3114_v31, %v2092_v38  ;;  %v2555_v42 = vpop.f32.mrb[5].mxu1 }
 0x624   : > { %v2095_v43 = vpop.f32.mrb[6].mxu1 }
 0x625   : > { %v2104_v44 = vmul.f32 %v3114_v31, %v2095_v43  ;;  %v2556_v45 = vpop.f32.mrb[7].mxu1  ;;  %v2105_v46 = vsel %vm1526_vm12, %v2103_v40, 0.0 }
 0x626   : > { %2106 = vadd.xlane.f32.xlu1 %v2105_v46 }
 0x627   : > { %v2108_v1 = vsel %vm1526_vm12, %v2104_v44, 0.0 }
 0x628   : > { %2109 = vadd.xlane.f32.xlu0 %v2108_v1 }
 0x637   : > { %2140 = vperm.xlu1 %2732, %v3130_v41  }
 0x63b   : > { %2733 = vset.pattern.permute.xlu1 %v2791_v47 }
 0x63c   : > { %2146 = vperm.xlu1 %2733, %v3123_v39  }
 0x6b3   : > { %v2107_v48 = vpop.xlane.xlu1 %2106 }
 0x6b4   : > { %v2111_v49 = vmul.f32 0.015625, %v2107_v48 }
 0x6b5   : > { %v2110_v50 = vpop.xlane.xlu0 %2109 }
 0x6b6   : > { %v2113_v51 = vsub.f32 %v2092_v38, %v2111_v49  ;;  %v2112_v52 = vmul.f32 0.015625, %v2110_v50 }
 0x6b7   : > { %v2141_v60 = vpop.permute.xlu1 %2140 }
 0x6b8   : > { %v2114_v53 = vsub.f32 %v2095_v43, %v2112_v52  ;;  %v2115_v54 = vmul.f32 %v3114_v31, %v2113_v51 }
 0x6ba   : > { %v2117_v55 = vmul.f32 %v2115_v54, %v2115_v54  ;;  %v2116_v56 = vmul.f32 %v3114_v31, %v2114_v53 }
 0x6bb   : > { %v2147_v61 = vpop.permute.xlu1 %2146 }
 0x6bc   : > { %v2119_v57 = vsel %vm1526_vm12, %v2117_v55, 0.0  ;;  %v2118_v58 = vmul.f32 %v2116_v56, %v2116_v56 }
 0x6bd   : > { %2120 = vadd.xlane.f32.xlu0 %v2119_v57 }
 0x6be   : > { %v2122_v59 = vsel %vm1526_vm12, %v2118_v58, 0.0 }
 0x6bf   : > { %2123 = vadd.xlane.f32.xlu1 %v2122_v59 }
 0x6d0   : > { %2150 = vperm.xlu1 %2733, %v3130_v41  }
 0x6d3   : > { %2135 = vperm.xlu0 %2731, %v3123_v39  }
 0x6d7   : > { %2734 = vset.pattern.permute.xlu0 %v2791_v47 }
 0x74a   : > { %v2121_v62 = vpop.xlane.xlu0 %2120 }
 0x74b   : > { %v2125_v63 = vmul.f32 0.015625, %v2121_v62 }
 0x74c   : > { %v2124_v41 = vpop.xlane.xlu1 %2123 }
 0x74d   : > { %v2127_v2 = vadd.f32 1e-05, %v2125_v63  ;;  %v2126_v39 = vmul.f32 0.015625, %v2124_v41 }
 0x74f   : > { %2760 = vrsqrt.f32 %v2127_v2  ;;  %v2128_v3 = vadd.f32 1e-05, %v2126_v39 }
 0x750   : > { %v2151_v12 = vpop.permute.xlu1 %2150 }
 0x751   : > { %2762 = vrsqrt.f32 %v2128_v3 }
 0x752   : > { %v2136_v5 = vpop.permute.xlu0 %2135 }
 0x759   : > { %v2761_v4 = vpop.eup %2760 }
 0x75a   : > { %v2131_v6 = vmul.f32 %v2761_v4, %v2115_v54 }
 0x75b   : > { %v2763_v7 = vpop.eup %2762 }
 0x75c   : > { %v2132_v8 = vmul.f32 %v2763_v7, %v2116_v56  ;;  %v2143_v9 = vmul.f32 %v2136_v5, %v2131_v6 }
 0x75e   : > { %v2144_v10 = vmul.f32 %v2141_v60, %v2132_v8  ;;  %v2153_v11 = vadd.f32 %v2147_v61, %v2143_v9 }
 0x760   : > { %v2154_v0 = vadd.f32 %v2151_v12, %v2144_v10  ;;  %vm2155_vm0 = vcmp.gt.f32.partialorder %v2153_v11, 0.0  ;;  %v2157_v13 = vmul.f32 0.01, %v2153_v11 }
 0x762   : > { %vm2156_vm2 = vcmp.gt.f32.partialorder %v2154_v0, 0.0  ;;  %v2158_v14 = vmul.f32 0.01, %v2154_v0  ;;  %v2159_v15 = vsel %vm2155_vm0, %v2153_v11, %v2157_v13 }
 0x763   : > { %v2161_v16 = vmul.f32 %v3114_v31, %v2159_v15 }
 0x764   : > { %v2160_v17 = vsel %vm2156_vm2, %v2154_v0, %v2158_v14 }
 0x765   : > { %v2341_v18 = vpack.c.bf16 %v2161_v16, %v2161_v16  ;;  %v2162_v19 = vmul.f32 %v3114_v31, %v2160_v17 }
 0x767   : > { %2171 = vrot.lane.b32.xlu1 %v2341_v18, %s2784_s24  ;;  %v2342_v20 = vpack.c.bf16 %v2162_v19, %v2162_v19 }
 0x76b   : > { %2173 = vrot.lane.b32.xlu1 %v2342_v20, %s2784_s24 }
 0x7d9   : > { %v2172_v21 = vpop.permute.xlu1 %2171 }
 0x7da   : > { %2178 = vst.msk [vmem:[%s3220_s9] sm:$0xf] %vm2177_vm3, %v2172_v21 }
 0x7dd   : > { %v2174_v22 = vpop.permute.xlu1 %2173 }
 0x7de   : > { %2179 = vst.msk [vmem:[%s3220_s9 + $0x4] sm:$0xf] %vm2177_vm3, %v2174_v22 }
 0x7df PF: > { %s16_s21 = sadd.s32 1, %s2770_s21  }
 0x7e0   : > { %p13_p4 = scmp.ge.s32.totalorder %s16_s21, 4  }
 0x7e2   :  { %15 = sbr.rel (!%p13_p4) target bundleno = 1 (0x1), region = 90 }

// kernel: plain_conv_unet_forward.5
= control target key start
LH: loop header
LB: loop body
LE: loop exit
PB: predicated region body
PF: predicated region fallthrough
CT: control target
= control target key end

     0   :  { %s2972_s18 = smov 0   ;;  %s3406_s0 = inlined_call_operand.vmem [shape: bf16[2,4,384], index: 0, kind: input, shape index: {}]   ;;  %s3407_s1 = inlined_call_operand.vmem [shape: bf16[9,8,4], index: 1, kind: input, shape index: {}]   ;;  %s3408_s2 = inlined_call_operand.vmem [shape: f32[8,4], index: 2, kind: input, shape index: {}]   ;;  %s3409_s3 = inlined_call_operand.vmem [shape: bf16[9,8,8], index: 3, kind: input, shape index: {}]   ;;  %s3410_s4 = inlined_call_operand.vmem [shape: f32[1,324], index: 4, kind: input, shape index: {}]   ;;  %s3411_s5 = inlined_call_operand.vmem [shape: bf16[2,8,384], index: 5, kind: output, shape index: {}]  }
   0x1 LB: > { %s2510_s19 = sadd.s32 4294967295, %s2924_s18   ;;  %p2514_p0 = scmp.ge.s32.totalorder %s2924_s18, 1  ;;  %s2924_s18 = sphi %s2972_s18, %s15_s18  }
   0x2   : > { %p187_p1 = scmp.lt.s32.totalorder %s2924_s18, 3 }
   0x4   : > { %p188_p2 = pnand %p2514_p0, %p187_p1 }
   0x5   : > { %p215_p3 = scmp.lt.s32.totalorder (!%p188_p2), %s2510_s19, 1  ;;  %v236_v0 = vlaneseq (!%p188_p2)  ;;  %v2926_v1 = vmov (!%p188_p2), 1983009808   ;;  %v2927_v3 = vmov (!%p188_p2), 0.0   ;;  %vm2928_vm0 = vmmov (!%p188_p2), 0   ;;  %s2930_s24 = smov (!%p188_p2), 127  }
   0x6   : > { %191 = sbr.rel (%p188_p2) target bundleno = 1799 (0x707), region = 40  ;;  %v234_v2 = vunpack.c.l.s4 (!%p188_p2), %v2926_v1  ;;  %2636 = vmatprep.subr.bf16.mxu1 (!%p188_p2), %v2927_v3  ;;  %2638 = vmatprep.mubr.msk.bf16.mxu1 (!%p188_p2), %vm2928_vm0, %v2927_v3  ;;  %v2929_v6 = vmov (!%p188_p2), 0   ;;  %s2931_s25 = smov (!%p188_p2), 126   ;;  %vm261_vm1 = vcmask (!%p188_p2), 1041408   ;;  %vm254_vm2 = vcmask (!%p188_p2), 1039360  }
   0x7   : > { %v2983_v4 = vshrl.u32 (!%p188_p2), %v236_v0, 7  ;;  %303 = vmatprep.mubr.bf16.mxu0 (!%p188_p2), %v2929_v6  ;;  %1394 = vst [vmem:[#allocation2] sm:$0xff] (!%p188_p2), %v2929_v6  ;;  %1395 = vst [vmem:[#allocation2 + $0x8] sm:$0xf] (!%p188_p2), %v2929_v6  ;;  %2898 = vset.pattern.permute.xlu0 (!%p188_p2), %v2929_v6  ;;  %s2932_s26 = smov (!%p188_p2), 110   ;;  %s2933_s27 = smov (!%p188_p2), 109  }
   0x8   : > { %v235_v5 = vunpack.c.0.s8 (!%p188_p2), %v234_v2  ;;  %s2934_s28 = smov (!%p188_p2), 108   ;;  %s2935_s29 = smov (!%p188_p2), 92   ;;  %v2517_v52 = vld [vmem:[%s3407_s1 + $0x4] sm:$0xf] (!%p188_p2)  ;;  %vm257_vm3 = vcmask (!%p188_p2), 31744   ;;  %vm471_vm4 = vcmask (!%p188_p2), 1031168  }
   0x9   : > { %s2936_s30 = smov (!%p188_p2), 91   ;;  %s2937_s6 = smov (!%p188_p2), 90   ;;  %v227_v63 = vld [vmem:[%s3407_s1] sm:$0xf] (!%p188_p2)  ;;  %vm596_vm5 = vcmask (!%p188_p2), 900096   ;;  %vm721_vm6 = vcmask (!%p188_p2), 891904  }
   0xa   : > { %v2993_v7 = vsub.s32 (!%p188_p2), %v235_v5, %v2983_v4  ;;  %vm846_vm7 = vcmask (!%p188_p2), 883712   ;;  %vm971_vm8 = vcmask (!%p188_p2), 752640   ;;  %vm1096_vm9 = vcmask (!%p188_p2), 744448   ;;  %s2939_s14 = smov (!%p188_p2), 19  }
   0xb   : > { %vm1221_vm10 = vcmask (!%p188_p2), 736256   ;;  %vm1341_vm11 = vcmask (!%p188_p2), 556032   ;;  %vm1417_vm15 = vcmask (!%p188_p2), 1043608  }
   0xd   : > { %s3415_s19 = smov (!%p215_p3, %s2510_s19), 1 }
   0xe   : > { %s2872_s20 = smul.u32 6, %s3415_s19 }
   0xf   : > { %s2873_s10 = smul.u32 12, %s3415_s19 }
  0x10   : > { %s2998_s23 = scalar_lea.vmem %s3406_s0, %s2872_s20 }
  0x11   : > { %v228_v8 = vld [vmem:[%s2998_s23] sm:$0x3f]  ;;  %s3385_s13 = scalar_lea.vmem %s3411_s5, %s2873_s10 }
  0x12   : > { %v3002_v9 = vrot.slane %v228_v8, %v2993_v7  ;;  %v232_v10 = vcombine.high %v228_v8, %v228_v8  ;;  %v447_v11 = vld [vmem:[%s2998_s23] sm:$0x3f]  ;;  %2431 = vst [vmem:[%s3385_s13] sm:$0xff] %v2929_v6  ;;  %2432 = vst [vmem:[%s3385_s13 + $0x8] sm:$0xf] %v2929_v6 }
  0x13   : > { %v456_v14 = vrot.slane %v447_v11, %v2993_v7  ;;  %v449_v15 = vcombine.high %v447_v11, %v447_v11  ;;  %v572_v17 = vld [vmem:[%s2998_s23] sm:$0x3f] }
  0x14   : > { %248 = vrot.lane.b32.xlu0 %v3002_v9, %s2930_s24  ;;  %v3008_v12 = vrot.slane %v232_v10, %v2993_v7  ;;  %v3012_v13 = vcombine.high %v3002_v9, %v3002_v9  ;;  %v581_v19 = vrot.slane %v572_v17, %v2993_v7  ;;  %v574_v20 = vcombine.high %v572_v17, %v572_v17  ;;  %v697_v22 = vld [vmem:[%s2998_s23] sm:$0x3f]  ;;  %v2524_v10 = vld [vmem:[%s3407_s1 + $0x8] sm:$0xf] }
  0x15   : > { %v464_v16 = vcombine.high %v456_v14, %v456_v14  ;;  %v463_v18 = vrot.slane %v449_v15, %v2993_v7  ;;  %v706_v24 = vrot.slane %v697_v22, %v2993_v7  ;;  %v699_v25 = vcombine.high %v697_v22, %v697_v22  ;;  %v822_v27 = vld [vmem:[%s2998_s23] sm:$0x3f] }
  0x16   : > { %252 = vrot.lane.b32.xlu1 %v3008_v12, %s2930_s24  ;;  %v589_v21 = vcombine.high %v581_v19, %v581_v19  ;;  %v588_v23 = vrot.slane %v574_v20, %v2993_v7  ;;  %v831_v29 = vrot.slane %v822_v27, %v2993_v7  ;;  %v824_v30 = vcombine.high %v822_v27, %v822_v27  ;;  %v947_v32 = vld [vmem:[%s2998_s23] sm:$0x3f] }
  0x17   : > { %v714_v26 = vcombine.high %v706_v24, %v706_v24  ;;  %v713_v28 = vrot.slane %v699_v25, %v2993_v7  ;;  %v956_v34 = vrot.slane %v947_v32, %v2993_v7  ;;  %v949_v35 = vcombine.high %v947_v32, %v947_v32  ;;  %v1072_v37 = vld [vmem:[%s2998_s23] sm:$0x3f] }
  0x18   : > { %250 = vrot.lane.b32.xlu0 %v3012_v13, %s2930_s24  ;;  %v839_v31 = vcombine.high %v831_v29, %v831_v29  ;;  %v838_v33 = vrot.slane %v824_v30, %v2993_v7  ;;  %v1081_v39 = vrot.slane %v1072_v37, %v2993_v7  ;;  %v1074_v40 = vcombine.high %v1072_v37, %v1072_v37  ;;  %v1197_v42 = vld [vmem:[%s2998_s23] sm:$0x3f] }
  0x19   : > { %v964_v36 = vcombine.high %v956_v34, %v956_v34  ;;  %v963_v38 = vrot.slane %v949_v35, %v2993_v7  ;;  %v1206_v44 = vrot.slane %v1197_v42, %v2993_v7  ;;  %v1199_v45 = vcombine.high %v1197_v42, %v1197_v42  ;;  %v2540_v42 = vld [vmem:[%s3407_s1 + $0x18] sm:$0xf] }
  0x1a   : > { %465 = vrot.lane.b32.xlu1 %v456_v14, %s2931_s25  ;;  %v1089_v41 = vcombine.high %v1081_v39, %v1081_v39  ;;  %v1088_v43 = vrot.slane %v1074_v40, %v2993_v7  ;;  %v362_v55 = vsel %vm261_vm1, %v3008_v12, 0  ;;  %v356_v58 = vsel %vm261_vm1, %v3002_v9, 0 }
  0x1b   : > { %v1214_v46 = vcombine.high %v1206_v44, %v1206_v44  ;;  %v1213_v47 = vrot.slane %v1199_v45, %v2993_v7 }
  0x1c   : > { %467 = vrot.lane.b32.xlu0 %v464_v16, %s2931_s25 }
  0x1e   : > { %469 = vrot.lane.b32.xlu1 %v463_v18, %s2931_s25  ;;  %v2528_v18 = vld [vmem:[%s3407_s1 + $0xc] sm:$0xf] }
  0x20   : > { %590 = vrot.lane.b32.xlu0 %v581_v19, %s2932_s26 }
  0x22   : > { %592 = vrot.lane.b32.xlu1 %v589_v21, %s2932_s26 }
  0x24   : > { %594 = vrot.lane.b32.xlu0 %v588_v23, %s2932_s26 }
  0x26   : > { %715 = vrot.lane.b32.xlu1 %v706_v24, %s2933_s27 }
  0x28   : > { %717 = vrot.lane.b32.xlu0 %v714_v26, %s2933_s27  ;;  %v2532_v26 = vld [vmem:[%s3407_s1 + $0x10] sm:$0xf] }
  0x2a   : > { %719 = vrot.lane.b32.xlu1 %v713_v28, %s2933_s27 }
  0x2c   : > { %840 = vrot.lane.b32.xlu0 %v831_v29, %s2934_s28 }
  0x2e   : > { %842 = vrot.lane.b32.xlu1 %v839_v31, %s2934_s28 }
  0x30   : > { %844 = vrot.lane.b32.xlu0 %v838_v33, %s2934_s28 }
  0x32   : > { %965 = vrot.lane.b32.xlu1 %v956_v34, %s2935_s29  ;;  %v2536_v34 = vld [vmem:[%s3407_s1 + $0x14] sm:$0xf] }
  0x34   : > { %967 = vrot.lane.b32.xlu0 %v964_v36, %s2935_s29 }
  0x36   : > { %969 = vrot.lane.b32.xlu1 %v963_v38, %s2935_s29 }
  0x38   : > { %1090 = vrot.lane.b32.xlu0 %v1081_v39, %s2936_s30 }
  0x3a   : > { %1092 = vrot.lane.b32.xlu1 %v1089_v41, %s2936_s30 }
  0x3c   : > { %1094 = vrot.lane.b32.xlu0 %v1088_v43, %s2936_s30 }
  0x3e   : > { %1215 = vrot.lane.b32.xlu1 %v1206_v44, %s2937_s6 }
  0x40   : > { %1217 = vrot.lane.b32.xlu0 %v1214_v46, %s2937_s6 }
  0x42   : > { %1219 = vrot.lane.b32.xlu1 %v1213_v47, %s2937_s6 }
  0x86   : > { %v249_v48 = vpop.permute.xlu0 %248 }
  0x88   : > { %v253_v49 = vpop.permute.xlu1 %252 }
  0x89   : > { %v269_v50 = vsel %vm261_vm1, %v253_v49, 0 }
  0x8a   : > { %v251_v51 = vpop.permute.xlu0 %250  ;;  %2637 = vmatpush3.bf16.msra.mxu1 %v269_v50 }
  0x8b   : > { %v256_v53 = vsel %vm254_vm2, %v251_v51, %v253_v49  ;;  %v255_v54 = vsel %vm254_vm2, %v249_v48, %v251_v51  ;;  %2642 = vmatprep.subr.bf16.mxu1 %v2927_v3  ;;  %v2544_v49 = vld [vmem:[%s3407_s1 + $0x1c] sm:$0xf] }
  0x8c   : > { %2518 = vmatprep.subr.msk.bf16.mxu0 %vm261_vm1, %v256_v53  ;;  %v263_v56 = vsel %vm261_vm1, %v255_v54, 0  ;;  %v466_v57 = vpop.permute.xlu1 %465  ;;  %v2548_v53 = vld [vmem:[%s3407_s1 + $0x20] sm:$0xf]  ;;  %v1332_v54 = vsub.s32 2, %v2983_v4 }
  0x8d   : > { %272 = vmatpush1.bf16.msra.mxu0 %v263_v56  ;;  %2639 = vmatmul.mubr.msk.bf16.vlgmr.msra.gmra.mrb[0].mxu1 %vm257_vm3, %v2517_v52  ;;  %v226_v56 = vld [vmem:[%s3410_s4] sm:$0x7] }
  0x8e   : > { %2521 = vmatprep.subr.msk.bf16.mxu0 %vm261_vm1, %v3012_v13  ;;  %2643 = vmatpush3.bf16.msra.mxu1 %v362_v55  ;;  %v468_v59 = vpop.permute.xlu0 %467  ;;  %v1324_v55 = vsub.s32 0, %v2983_v4 }
  0x8f   : > { %2644 = vmatprep.mubr.msk.bf16.mxu1 %vm2928_vm0, %v2927_v3  ;;  %2648 = vmatprep.subr.bf16.mxu1 %v2927_v3  ;;  %v472_v0 = vsel %vm471_vm4, %v466_v57, %v468_v59  ;;  %v1328_v57 = vsub.s32 1, %v2983_v4 }
  0x90   : > { %2519 = vmatmul.mubr.msk.bf16.vlgmr.msra.gmra.mrb[0].mxu0 %vm257_vm3, %v2517_v52  ;;  %v470_v60 = vpop.permute.xlu1 %469  ;;  %v478_v7 = vsel %vm261_vm1, %v472_v0, 0 }
  0x91   : > { %365 = vmatpush1.bf16.msra.mxu0 %v356_v58  ;;  %v473_v61 = vsel %vm471_vm4, %v468_v59, %v470_v60  ;;  %396 = vmatprep.mubr.bf16.mxu0 %v2929_v6  ;;  %v484_v1 = vsel %vm261_vm1, %v470_v60, 0  ;;  %v3192_v59 = vrot.slane %v226_v56, %v1332_v54  ;;  %v3194_v60 = vrot.slane %v226_v56, %v1324_v55 }
  0x92   : > { %2525 = vmatprep.subr.msk.bf16.mxu0 %vm261_vm1, %v473_v61  ;;  %v591_v62 = vpop.permute.xlu0 %590 }
  0x94   : > { %v593_v5 = vpop.permute.xlu1 %592 }
  0x95   : > { %v597_v12 = vsel %vm596_vm5, %v591_v62, %v593_v5  ;;  %v3196_v62 = vrot.slane %v226_v56, %v1328_v57 }
  0x96   : > { %v595_v2 = vpop.permute.xlu0 %594  ;;  %v603_v15 = vsel %vm261_vm1, %v597_v12, 0 }
  0x97   : > { %v598_v8 = vsel %vm596_vm5, %v593_v5, %v595_v2  ;;  %v609_v11 = vsel %vm261_vm1, %v595_v2, 0 }
  0x98   : > { %v716_v9 = vpop.permute.xlu1 %715 }
  0x99   : > { %2645 = vmatmul.mubr.msk.bf16.vlgmr.msra.gmra.mrb[0].mxu1 %vm257_vm3, %v227_v63 }
  0x9a   : > { %2649 = vmatpush3.bf16.msra.mxu1 %v484_v1  ;;  %2650 = vmatprep.mubr.msk.bf16.mxu1 %vm2928_vm0, %v2927_v3  ;;  %v718_v13 = vpop.permute.xlu0 %717 }
  0x9b   : > { %2654 = vmatprep.subr.bf16.mxu1 %v2927_v3  ;;  %v722_v19 = vsel %vm721_vm6, %v716_v9, %v718_v13 }
  0x9c   : > { %2522 = vmatmul.mubr.msk.bf16.vlgmr.msra.gmra.mrb[0].mxu0 %vm257_vm3, %v227_v63  ;;  %v720_v14 = vpop.permute.xlu1 %719  ;;  %v728_v23 = vsel %vm261_vm1, %v722_v19, 0 }
  0x9d   : > { %487 = vmatpush1.bf16.msra.mxu0 %v478_v7  ;;  %518 = vmatprep.mubr.bf16.mxu0 %v2929_v6  ;;  %v723_v16 = vsel %vm721_vm6, %v718_v13, %v720_v14  ;;  %v734_v20 = vsel %vm261_vm1, %v720_v14, 0  ;;  %v3205_v13 = vld [vmem:[%s3408_s2] sm:$0xff]  ;;  %v2938_v14 = vmov 1  }
  0x9e   : > { %2529 = vmatprep.subr.msk.bf16.mxu0 %vm261_vm1, %v598_v8  ;;  %v841_v17 = vpop.permute.xlu0 %840  ;;  %2899 = vset.pattern.permute.xlu1 %v2938_v14  ;;  %v2554_v14 = vld [vmem:[%s3409_s3 + $0x4] sm:$0xf] }
  0xa0   : > { %v843_v22 = vpop.permute.xlu1 %842 }
  0xa1   : > { %v847_v28 = vsel %vm846_vm7, %v841_v17, %v843_v22 }
  0xa2   : > { %v845_v21 = vpop.permute.xlu0 %844  ;;  %v853_v31 = vsel %vm261_vm1, %v847_v28, 0 }
  0xa3   : > { %v848_v24 = vsel %vm846_vm7, %v843_v22, %v845_v21  ;;  %v859_v27 = vsel %vm261_vm1, %v845_v21, 0 }
  0xa4   : > { %v966_v25 = vpop.permute.xlu1 %965 }
  0xa5   : > { %2651 = vmatmul.mubr.msk.bf16.vlgmr.msra.gmra.mrb[0].mxu1 %vm257_vm3, %v2524_v10 }
  0xa6   : > { %2655 = vmatpush3.bf16.msra.mxu1 %v609_v11  ;;  %2656 = vmatprep.mubr.msk.bf16.mxu1 %vm2928_vm0, %v2927_v3  ;;  %v968_v29 = vpop.permute.xlu0 %967 }
  0xa7   : > { %2660 = vmatprep.subr.bf16.mxu1 %v2927_v3  ;;  %v972_v35 = vsel %vm971_vm8, %v966_v25, %v968_v29 }
  0xa8   : > { %2526 = vmatmul.mubr.msk.bf16.vlgmr.msra.gmra.mrb[0].mxu0 %vm257_vm3, %v2524_v10  ;;  %v970_v30 = vpop.permute.xlu1 %969  ;;  %v978_v39 = vsel %vm261_vm1, %v972_v35, 0 }
  0xa9   : > { %612 = vmatpush1.bf16.msra.mxu0 %v603_v15  ;;  %643 = vmatprep.mubr.bf16.mxu0 %v2929_v6  ;;  %v973_v32 = vsel %vm971_vm8, %v968_v29, %v970_v30  ;;  %v984_v36 = vsel %vm261_vm1, %v970_v30, 0 }
  0xaa   : > { %2533 = vmatprep.subr.msk.bf16.mxu0 %vm261_vm1, %v723_v16  ;;  %v1091_v33 = vpop.permute.xlu0 %1090 }
  0xac   : > { %v1093_v38 = vpop.permute.xlu1 %1092 }
  0xad   : > { %v1097_v44 = vsel %vm1096_vm9, %v1091_v33, %v1093_v38 }
  0xae   : > { %v1095_v37 = vpop.permute.xlu0 %1094  ;;  %v1103_v47 = vsel %vm261_vm1, %v1097_v44, 0 }
  0xaf   : > { %v1098_v40 = vsel %vm1096_vm9, %v1093_v38, %v1095_v37  ;;  %v1109_v43 = vsel %vm261_vm1, %v1095_v37, 0 }
  0xb0   : > { %v1216_v41 = vpop.permute.xlu1 %1215 }
  0xb1   : > { %2657 = vmatmul.mubr.msk.bf16.vlgmr.msra.gmra.mrb[0].mxu1 %vm257_vm3, %v2528_v18 }
  0xb2   : > { %2661 = vmatpush3.bf16.msra.mxu1 %v734_v20  ;;  %2662 = vmatprep.mubr.msk.bf16.mxu1 %vm2928_vm0, %v2927_v3  ;;  %v1218_v45 = vpop.permute.xlu0 %1217 }
  0xb3   : > { %2666 = vmatprep.subr.bf16.mxu1 %v2927_v3  ;;  %v1222_v50 = vsel %vm1221_vm10, %v1216_v41, %v1218_v45 }
  0xb4   : > { %2530 = vmatmul.mubr.msk.bf16.vlgmr.msra.gmra.mrb[0].mxu0 %vm257_vm3, %v2528_v18  ;;  %v1220_v46 = vpop.permute.xlu1 %1219  ;;  %v1228_v52 = vsel %vm261_vm1, %v1222_v50, 0 }
  0xb5   : > { %737 = vmatpush1.bf16.msra.mxu0 %v728_v23  ;;  %768 = vmatprep.mubr.bf16.mxu0 %v2929_v6  ;;  %v1223_v48 = vsel %vm1221_vm10, %v1218_v45, %v1220_v46  ;;  %v1234_v51 = vsel %vm261_vm1, %v1220_v46, 0 }
  0xb6   : > { %2537 = vmatprep.subr.msk.bf16.mxu0 %vm261_vm1, %v848_v24 }
  0xbd   : > { %2663 = vmatmul.mubr.msk.bf16.vlgmr.msra.gmra.mrb[0].mxu1 %vm257_vm3, %v2532_v26 }
  0xbe   : > { %2667 = vmatpush3.bf16.msra.mxu1 %v859_v27  ;;  %2668 = vmatprep.mubr.msk.bf16.mxu1 %vm2928_vm0, %v2927_v3 }
  0xbf   : > { %2672 = vmatprep.subr.bf16.mxu1 %v2927_v3 }
  0xc0   : > { %2534 = vmatmul.mubr.msk.bf16.vlgmr.msra.gmra.mrb[0].mxu0 %vm257_vm3, %v2532_v26 }
  0xc1   : > { %862 = vmatpush1.bf16.msra.mxu0 %v853_v31  ;;  %893 = vmatprep.mubr.bf16.mxu0 %v2929_v6 }
  0xc2   : > { %2541 = vmatprep.subr.msk.bf16.mxu0 %vm261_vm1, %v973_v32 }
  0xc9   : > { %2669 = vmatmul.mubr.msk.bf16.vlgmr.msra.gmra.mrb[0].mxu1 %vm257_vm3, %v2536_v34 }
  0xca   : > { %2673 = vmatpush3.bf16.msra.mxu1 %v984_v36  ;;  %2674 = vmatprep.mubr.msk.bf16.mxu1 %vm2928_vm0, %v2927_v3 }
  0xcb   : > { %2678 = vmatprep.subr.bf16.mxu1 %v2927_v3 }
  0xcc   : > { %2538 = vmatmul.mubr.msk.bf16.vlgmr.msra.gmra.mrb[0].mxu0 %vm257_vm3, %v2536_v34 }
  0xcd   : > { %987 = vmatpush1.bf16.msra.mxu0 %v978_v39  ;;  %1018 = vmatprep.mubr.bf16.mxu0 %v2929_v6 }
  0xce   : > { %2545 = vmatprep.subr.msk.bf16.mxu0 %vm261_vm1, %v1098_v40 }
  0xd5   : > { %2675 = vmatmul.mubr.msk.bf16.vlgmr.msra.gmra.mrb[0].mxu1 %vm257_vm3, %v2540_v42 }
  0xd6   : > { %2679 = vmatpush3.bf16.msra.mxu1 %v1109_v43  ;;  %2680 = vmatprep.mubr.msk.bf16.mxu1 %vm2928_vm0, %v2927_v3 }
  0xd7   : > { %2684 = vmatprep.subr.bf16.mxu1 %v2927_v3 }
  0xd8   : > { %2542 = vmatmul.mubr.msk.bf16.vlgmr.msra.gmra.mrb[0].mxu0 %vm257_vm3, %v2540_v42 }
  0xd9   : > { %1112 = vmatpush1.bf16.msra.mxu0 %v1103_v47  ;;  %1143 = vmatprep.mubr.bf16.mxu0 %v2929_v6 }
  0xda   : > { %2549 = vmatprep.subr.msk.bf16.mxu0 %vm261_vm1, %v1223_v48  ;;  %vm1418_vm1 = vcmask 1047556  }
  0xe1   : > { %2681 = vmatmul.mubr.msk.bf16.vlgmr.msra.gmra.mrb[0].mxu1 %vm257_vm3, %v2544_v49 }
  0xe2   : > { %2685 = vmatpush3.bf16.msra.mxu1 %v1234_v51  ;;  %2686 = vmatprep.mubr.msk.bf16.mxu1 %vm2928_vm0, %v2927_v3 }
  0xe3   : > { %2690 = vmatprep.subr.bf16.mxu1 %v2927_v3 }
  0xe4   : > { %2546 = vmatmul.mubr.msk.bf16.vlgmr.msra.gmra.mrb[0].mxu0 %vm257_vm3, %v2544_v49 }
  0xe5   : > { %1237 = vmatpush1.bf16.msra.mxu0 %v1228_v52  ;;  %1268 = vmatprep.mubr.bf16.mxu0 %v2929_v6 }
  0xed   : > { %2687 = vmatmul.mubr.msk.bf16.vlgmr.msra.gmra.mrb[0].mxu1 %vm257_vm3, %v2548_v53 }
  0xee   : > { %2692 = vmatprep.mubr.msk.bf16.mxu1 %vm2928_vm0, %v2927_v3 }
  0xf0   : > { %2550 = vmatmul.mubr.msk.bf16.vlgmr.msra.gmra.mrb[0].mxu0 %vm257_vm3, %v2548_v53  ;;  %vm1412_vm3 = vcmask 154624  }
  0xf1   : > { %1490 = vmatprep.mubr.bf16.mxu0 %v2929_v6 }
 0x1c0   : > { %v1311_v58 = vpop.f32.mrb[0].mxu1 }
 0x1c1   : > { %v2688_v61 = vpop.f32.mrb[1].mxu1  ;;  %v1339_v2 = vmul.f32 %v3192_v59, %v1311_v58 }
 0x1c2   : > { %v1314_v63 = vpop.f32.mrb[2].mxu1 }
 0x1c3   : > { %v1270_v0 = vpop.f32.mrb[0].mxu0  ;;  %v2689_v1 = vpop.f32.mrb[3].mxu1  ;;  %v1342_v11 = vsel %vm1341_vm11, %v1339_v2, 0.0 }
 0x1c4   : > { %v1337_v5 = vmul.f32 %v3194_v60, %v1270_v0  ;;  %v1272_v7 = vpop.f32.mrb[1].mxu0 }
 0x1c5   : > { %v1338_v8 = vmul.f32 %v3196_v62, %v1272_v7  ;;  %v1274_v9 = vpop.f32.mrb[2].mxu0 }
 0x1c6   : > { %v1275_v4 = vpop.f32.mrb[3].mxu0 }
 0x1c7   : > { %v1340_v10 = vadd.f32 %v1338_v8, %v1337_v5 }
 0x1c9   : > { %v1343_v12 = vadd.f32 %v1342_v11, %v1340_v10 }
 0x1cb   : > { %1344 = vadd.xlane.f32.xlu0 %v1343_v12 }
 0x1e1   : > { %1369 = vperm.xlu0 %2898, %v3205_v13  }
 0x258   : > { %v1345_v15 = vpop.xlane.xlu0 %1344 }
 0x259   : > { %v1346_v16 = vmul.f32 0.00390625, %v1345_v15 }
 0x25b   : > { %v1347_v17 = vsub.f32 %v1270_v0, %v1346_v16  ;;  %v1348_v18 = vsub.f32 %v1272_v7, %v1346_v16  ;;  %v1349_v19 = vsub.f32 %v1311_v58, %v1346_v16 }
 0x25d   : > { %v1350_v20 = vmul.f32 %v1347_v17, %v3194_v60  ;;  %v1351_v21 = vmul.f32 %v1348_v18, %v3196_v62  ;;  %v1352_v22 = vmul.f32 %v1349_v19, %v3192_v59 }
 0x25f   : > { %v1353_v23 = vmul.f32 %v1350_v20, %v1350_v20  ;;  %v1354_v24 = vmul.f32 %v1351_v21, %v1351_v21  ;;  %v1355_v25 = vmul.f32 %v1352_v22, %v1352_v22 }
 0x260   : > { %v1370_v33 = vpop.permute.xlu0 %1369 }
 0x261   : > { %v1356_v26 = vadd.f32 %v1354_v24, %v1353_v23  ;;  %v1357_v27 = vsel %vm1341_vm11, %v1355_v25, 0.0 }
 0x263   : > { %v1358_v28 = vadd.f32 %v1357_v27, %v1356_v26 }
 0x265   : > { %1359 = vadd.xlane.f32.xlu1 %v1358_v28 }
 0x276   : > { %1376 = vperm.xlu1 %2899, %v3205_v13  }
 0x2f2   : > { %v1360_v29 = vpop.xlane.xlu1 %1359 }
 0x2f3   : > { %v1361_v30 = vmul.f32 0.00390625, %v1360_v29 }
 0x2f5   : > { %v1362_v31 = vadd.f32 1e-05, %v1361_v30  ;;  %v2564_v30 = vld [vmem:[%s3409_s3 + $0x8] sm:$0xf] }
 0x2f6   : > { %v1377_v37 = vpop.permute.xlu1 %1376 }
 0x2f7   : > { %2914 = vrsqrt.f32 %v1362_v31 }
 0x301   : > { %v2915_v32 = vpop.eup %2914 }
 0x302   : > { %v1364_v34 = vmul.f32 %v2915_v32, %v1350_v20  ;;  %v1365_v35 = vmul.f32 %v2915_v32, %v1351_v21  ;;  %v1366_v36 = vmul.f32 %v2915_v32, %v1352_v22  ;;  %v1423_v22 = vld [vmem:[%s3409_s3] sm:$0xf] }
 0x304   : > { %v1372_v38 = vmul.f32 %v1370_v33, %v1364_v34  ;;  %v1373_v39 = vmul.f32 %v1370_v33, %v1365_v35  ;;  %v1374_v40 = vmul.f32 %v1370_v33, %v1366_v36 }
 0x306   : > { %v1379_v41 = vadd.f32 %v1377_v37, %v1372_v38  ;;  %v1380_v42 = vadd.f32 %v1377_v37, %v1373_v39  ;;  %v1381_v43 = vadd.f32 %v1377_v37, %v1374_v40  ;;  %v2568_v38 = vld [vmem:[%s3409_s3 + $0xc] sm:$0xf] }
 0x308   : > { %vm1382_vm12 = vcmp.gt.f32.partialorder %v1379_v41, 0.0  ;;  %vm1383_vm13 = vcmp.gt.f32.partialorder %v1380_v42, 0.0  ;;  %v1385_v44 = vmul.f32 0.01, %v1379_v41  ;;  %v1386_v45 = vmul.f32 0.01, %v1380_v42 }
 0x309   : > { %v1387_v46 = vmul.f32 0.01, %v1381_v43  ;;  %vm1384_vm14 = vcmp.gt.f32.partialorder %v1381_v43, 0.0 }
 0x30a   : > { %v1388_v47 = vsel %vm1382_vm12, %v1379_v41, %v1385_v44  ;;  %v1389_v48 = vsel %vm1383_vm13, %v1380_v42, %v1386_v45  ;;  %vm3218_vm12 = vmor %vm1418_vm1, %vm1417_vm15  ;;  %vm1421_vm13 = vcmask 707584   ;;  %vm1444_vm15 = vcmask 64512  }
 0x30b   : > { %v1391_v49 = vmul.f32 %v1388_v47, %v3194_v60  ;;  %v1392_v50 = vmul.f32 %v1389_v48, %v3196_v62  ;;  %v1390_v51 = vsel %vm1384_vm14, %v1381_v43, %v1387_v46  ;;  %vm1448_vm14 = vcmask 1043456   ;;  %v2572_v46 = vld [vmem:[%s3409_s3 + $0x10] sm:$0xf] }
 0x30c   : > { %v1393_v53 = vmul.f32 %v1390_v51, %v3192_v59 }
 0x30d   : > { %v2596_v52 = vpack.c.bf16 %v1392_v50, %v1391_v49 }
 0x30e   : > { %v2597_v54 = vpack.c.bf16 %v1393_v53, %v1393_v53 }
 0x30f   : > { %1407 = vrot.lane.b32.xlu1 %v2596_v52, %s2939_s14 }
 0x313   : > { %1409 = vrot.lane.b32.xlu1 %v2597_v54, %s2939_s14  ;;  %v2576_v54 = vld [vmem:[%s3409_s3 + $0x14] sm:$0xf] }
 0x381   : > { %v1408_v55 = vpop.permute.xlu1 %1407 }
 0x382   : > { %v1411_v57 = vrot.slane %v1408_v55, 4 }
 0x384   : > { %v1413_v58 = vsel %vm1412_vm3, %v1411_v57, %v1408_v55 }
 0x385   : > { %1420 = vst.msk [vmem:[#allocation2] sm:$0xff] %vm3218_vm12, %v1413_v58  ;;  %v1410_v61 = vpop.permute.xlu1 %1409 }
 0x386   : > { %v1414_v63 = vsel %vm1412_vm3, %v1411_v57, %v1410_v61 }
 0x387   : > { %1422 = vst.msk [vmem:[#allocation2 + $0x8] sm:$0xf] %vm1421_vm13, %v1414_v63 }
 0x38c   : > { %v1424_v0 = vld [vmem:[#allocation2] sm:$0xff] }
 0x38d   : > { %v2555_v1 = vcombine.low %v1424_v0, %v1424_v0  ;;  %v2556_v2 = vcombine.high %v1424_v0, %v1424_v0 }
 0x38e   : > { %v2913_v5 = vld [vmem:[#allocation2 + $0x8] ss:$0 sps:$4 sm:$0xff]  }
 0x38f   : > { %1636 = vrot.lane.b32.xlu0 %v2556_v2, %s2931_s25  ;;  %1436 = vrot.lane.b32.xlu1 %v2555_v1, %s2930_s24  ;;  %v1549_v16 = vsel %vm1448_vm14, %v2913_v5, 0  ;;  %v1543_v18 = vsel %vm1448_vm14, %v2555_v1, 0 }
 0x393   : > { %1740 = vrot.lane.b32.xlu0 %v2555_v1, %s2932_s26  ;;  %1438 = vrot.lane.b32.xlu1 %v2556_v2, %s2930_s24 }
 0x397   : > { %1744 = vrot.lane.b32.xlu0 %v2913_v5, %s2932_s26  ;;  %1440 = vrot.lane.b32.xlu1 %v2913_v5, %s2930_s24 }
 0x39b   : > { %1848 = vrot.lane.b32.xlu0 %v2556_v2, %s2933_s27  ;;  %1634 = vrot.lane.b32.xlu1 %v2555_v1, %s2931_s25 }
 0x39f   : > { %1952 = vrot.lane.b32.xlu0 %v2555_v1, %s2934_s28  ;;  %1638 = vrot.lane.b32.xlu1 %v2913_v5, %s2931_s25 }
 0x3a3   : > { %1956 = vrot.lane.b32.xlu0 %v2913_v5, %s2934_s28  ;;  %1742 = vrot.lane.b32.xlu1 %v2556_v2, %s2932_s26 }
 0x3a7   : > { %2060 = vrot.lane.b32.xlu0 %v2556_v2, %s2935_s29  ;;  %1846 = vrot.lane.b32.xlu1 %v2555_v1, %s2933_s27 }
 0x3ab   : > { %2164 = vrot.lane.b32.xlu0 %v2555_v1, %s2936_s30  ;;  %1850 = vrot.lane.b32.xlu1 %v2913_v5, %s2933_s27 }
 0x3af   : > { %2168 = vrot.lane.b32.xlu0 %v2913_v5, %s2936_s30  ;;  %1954 = vrot.lane.b32.xlu1 %v2556_v2, %s2934_s28 }
 0x3b3   : > { %2272 = vrot.lane.b32.xlu0 %v2556_v2, %s2937_s6  ;;  %2058 = vrot.lane.b32.xlu1 %v2555_v1, %s2935_s29 }
 0x3b7   : > { %2062 = vrot.lane.b32.xlu1 %v2913_v5, %s2935_s29 }
 0x3bb   : > { %2166 = vrot.lane.b32.xlu1 %v2556_v2, %s2936_s30 }
 0x3bf   : > { %2270 = vrot.lane.b32.xlu1 %v2555_v1, %s2937_s6 }
 0x3c3   : > { %2274 = vrot.lane.b32.xlu1 %v2913_v5, %s2937_s6 }
 0x401   : > { %v1437_v7 = vpop.permute.xlu1 %1436  ;;  %v1637_v17 = vpop.permute.xlu0 %1636 }
 0x405   : > { %v1439_v8 = vpop.permute.xlu1 %1438  ;;  %v1741_v21 = vpop.permute.xlu0 %1740 }
 0x406   : > { %v1442_v9 = vsel %vm254_vm2, %v1437_v7, %v1439_v8 }
 0x407   : > { %v1450_v12 = vsel %vm1448_vm14, %v1442_v9, 0 }
 0x409   : > { %v1441_v4 = vpop.permute.xlu1 %1440  ;;  %v1745_v26 = vpop.permute.xlu0 %1744 }
 0x40a   : > { %v1443_v10 = vsel %vm254_vm2, %v1439_v8, %v1441_v4  ;;  %v1456_v11 = vsel %vm1448_vm14, %v1441_v4, 0  ;;  %v1758_v33 = vsel %vm1448_vm14, %v1745_v26, 0 }
 0x40b   : > { %2558 = vmatprep.subr.msk.bf16.mxu0 %vm1448_vm14, %v1443_v10  ;;  %2691 = vmatpush3.bf16.msra.mxu1 %v1456_v11  ;;  %v2584_v11 = vld [vmem:[%s3409_s3 + $0x1c] sm:$0xf] }
 0x40c   : > { %1459 = vmatpush1.bf16.msra.mxu0 %v1450_v12  ;;  %2696 = vmatprep.subr.bf16.mxu1 %v2927_v3 }
 0x40d   : > { %2561 = vmatprep.subr.msk.bf16.mxu0 %vm1448_vm14, %v2556_v2  ;;  %v1635_v15 = vpop.permute.xlu1 %1634  ;;  %v1849_v34 = vpop.permute.xlu0 %1848  ;;  %v2580_v2 = vld [vmem:[%s3409_s3 + $0x18] sm:$0xf] }
 0x40e   : > { %2693 = vmatmul.mubr.msk.bf16.vlgmr.msra.gmra.mrb[4].mxu1 %vm1444_vm15, %v2554_v14  ;;  %v1640_v23 = vsel %vm471_vm4, %v1635_v15, %v1637_v17 }
 0x40f   : > { %2559 = vmatmul.mubr.msk.bf16.vlgmr.msra.gmra.mrb[4].mxu0 %vm1444_vm15, %v2554_v14  ;;  %2697 = vmatpush3.bf16.msra.mxu1 %v1549_v16  ;;  %v1646_v27 = vsel %vm1448_vm14, %v1640_v23, 0  ;;  %v2588_v16 = vld [vmem:[%s3409_s3 + $0x20] sm:$0xf] }
 0x410   : > { %1552 = vmatpush1.bf16.msra.mxu0 %v1543_v18  ;;  %2698 = vmatprep.mubr.msk.bf16.mxu1 %vm2928_vm0, %v2927_v3 }
 0x411   : > { %v1639_v19 = vpop.permute.xlu1 %1638  ;;  %2702 = vmatprep.subr.bf16.mxu1 %v2927_v3  ;;  %1583 = vmatprep.mubr.bf16.mxu0 %v2929_v6  ;;  %v1953_v37 = vpop.permute.xlu0 %1952 }
 0x412   : > { %v1641_v20 = vsel %vm471_vm4, %v1637_v17, %v1639_v19  ;;  %v1652_v25 = vsel %vm1448_vm14, %v1639_v19, 0 }
 0x413   : > { %2565 = vmatprep.subr.msk.bf16.mxu0 %vm1448_vm14, %v1641_v20 }
 0x415   : > { %v1743_v24 = vpop.permute.xlu1 %1742  ;;  %v1957_v42 = vpop.permute.xlu0 %1956 }
 0x416   : > { %v1747_v28 = vsel %vm596_vm5, %v1743_v24, %v1745_v26  ;;  %v1746_v31 = vsel %vm596_vm5, %v1741_v21, %v1743_v24  ;;  %v1970_v49 = vsel %vm1448_vm14, %v1957_v42, 0 }
 0x417   : > { %v1752_v35 = vsel %vm1448_vm14, %v1746_v31, 0  ;;  %v2941_v31 = vmov 3  }
 0x418   : > { %2901 = vset.pattern.permute.xlu1 %v2941_v31 }
 0x419   : > { %v1847_v29 = vpop.permute.xlu1 %1846  ;;  %v2061_v50 = vpop.permute.xlu0 %2060 }
 0x41a   : > { %2699 = vmatmul.mubr.msk.bf16.vlgmr.msra.gmra.mrb[4].mxu1 %vm1444_vm15, %v1423_v22  ;;  %v1852_v39 = vsel %vm721_vm6, %v1847_v29, %v1849_v34 }
 0x41b   : > { %2703 = vmatpush3.bf16.msra.mxu1 %v1652_v25  ;;  %2562 = vmatmul.mubr.msk.bf16.vlgmr.msra.gmra.mrb[4].mxu0 %vm1444_vm15, %v1423_v22  ;;  %v1858_v43 = vsel %vm1448_vm14, %v1852_v39, 0 }
 0x41c   : > { %1655 = vmatpush1.bf16.msra.mxu0 %v1646_v27  ;;  %2704 = vmatprep.mubr.msk.bf16.mxu1 %vm2928_vm0, %v2927_v3 }
 0x41d   : > { %2569 = vmatprep.subr.msk.bf16.mxu0 %vm1448_vm14, %v1747_v28  ;;  %2708 = vmatprep.subr.bf16.mxu1 %v2927_v3  ;;  %v1851_v32 = vpop.permute.xlu1 %1850  ;;  %v2165_v53 = vpop.permute.xlu0 %2164 }
 0x41e   : > { %1686 = vmatprep.mubr.bf16.mxu0 %v2929_v6  ;;  %v1853_v36 = vsel %vm721_vm6, %v1849_v34, %v1851_v32  ;;  %v1864_v41 = vsel %vm1448_vm14, %v1851_v32, 0 }
 0x421   : > { %v1955_v40 = vpop.permute.xlu1 %1954  ;;  %v2169_v61 = vpop.permute.xlu0 %2168 }
 0x422   : > { %v1959_v44 = vsel %vm846_vm7, %v1955_v40, %v1957_v42  ;;  %v1958_v47 = vsel %vm846_vm7, %v1953_v37, %v1955_v40  ;;  %v2182_v8 = vsel %vm1448_vm14, %v2169_v61, 0 }
 0x423   : > { %v1964_v51 = vsel %vm1448_vm14, %v1958_v47, 0 }
 0x425   : > { %v2059_v45 = vpop.permute.xlu1 %2058  ;;  %v2273_v9 = vpop.permute.xlu0 %2272 }
 0x426   : > { %2705 = vmatmul.mubr.msk.bf16.vlgmr.msra.gmra.mrb[4].mxu1 %vm1444_vm15, %v2564_v30  ;;  %v2064_v55 = vsel %vm971_vm8, %v2059_v45, %v2061_v50 }
 0x427   : > { %2709 = vmatpush3.bf16.msra.mxu1 %v1758_v33  ;;  %2566 = vmatmul.mubr.msk.bf16.vlgmr.msra.gmra.mrb[4].mxu0 %vm1444_vm15, %v2564_v30  ;;  %v2070_v63 = vsel %vm1448_vm14, %v2064_v55, 0  ;;  %v2940_v30 = vmov 2  }
 0x428   : > { %1761 = vmatpush1.bf16.msra.mxu0 %v1752_v35  ;;  %2710 = vmatprep.mubr.msk.bf16.mxu1 %vm2928_vm0, %v2927_v3 }
 0x429   : > { %2573 = vmatprep.subr.msk.bf16.mxu0 %vm1448_vm14, %v1853_v36  ;;  %2714 = vmatprep.subr.bf16.mxu1 %v2927_v3  ;;  %v2063_v48 = vpop.permute.xlu1 %2062 }
 0x42a   : > { %1792 = vmatprep.mubr.bf16.mxu0 %v2929_v6  ;;  %v2065_v52 = vsel %vm971_vm8, %v2061_v50, %v2063_v48  ;;  %v2076_v58 = vsel %vm1448_vm14, %v2063_v48, 0  ;;  %2900 = vset.pattern.permute.xlu0 %v2940_v30 }
 0x42d   : > { %v2167_v57 = vpop.permute.xlu1 %2166 }
 0x42e   : > { %v2171_v0 = vsel %vm1096_vm9, %v2167_v57, %v2169_v61  ;;  %v2170_v5 = vsel %vm1096_vm9, %v2165_v53, %v2167_v57 }
 0x42f   : > { %v2176_v4 = vsel %vm1448_vm14, %v2170_v5, 0 }
 0x431   : > { %v2271_v1 = vpop.permute.xlu1 %2270 }
 0x432   : > { %2711 = vmatmul.mubr.msk.bf16.vlgmr.msra.gmra.mrb[4].mxu1 %vm1444_vm15, %v2568_v38  ;;  %v2276_v12 = vsel %vm1221_vm10, %v2271_v1, %v2273_v9 }
 0x433   : > { %2715 = vmatpush3.bf16.msra.mxu1 %v1864_v41  ;;  %2570 = vmatmul.mubr.msk.bf16.vlgmr.msra.gmra.mrb[4].mxu0 %vm1444_vm15, %v2568_v38  ;;  %v2282_v15 = vsel %vm1448_vm14, %v2276_v12, 0 }
 0x434   : > { %1867 = vmatpush1.bf16.msra.mxu0 %v1858_v43  ;;  %2716 = vmatprep.mubr.msk.bf16.mxu1 %vm2928_vm0, %v2927_v3 }
 0x435   : > { %2577 = vmatprep.subr.msk.bf16.mxu0 %vm1448_vm14, %v1959_v44  ;;  %2720 = vmatprep.subr.bf16.mxu1 %v2927_v3  ;;  %v2275_v7 = vpop.permute.xlu1 %2274 }
 0x436   : > { %1898 = vmatprep.mubr.bf16.mxu0 %v2929_v6  ;;  %v2277_v10 = vsel %vm1221_vm10, %v2273_v9, %v2275_v7  ;;  %v2288_v14 = vsel %vm1448_vm14, %v2275_v7, 0 }
 0x43e   : > { %2717 = vmatmul.mubr.msk.bf16.vlgmr.msra.gmra.mrb[4].mxu1 %vm1444_vm15, %v2572_v46 }
 0x43f   : > { %2721 = vmatpush3.bf16.msra.mxu1 %v1970_v49  ;;  %2574 = vmatmul.mubr.msk.bf16.vlgmr.msra.gmra.mrb[4].mxu0 %vm1444_vm15, %v2572_v46 }
 0x440   : > { %1973 = vmatpush1.bf16.msra.mxu0 %v1964_v51  ;;  %2722 = vmatprep.mubr.msk.bf16.mxu1 %vm2928_vm0, %v2927_v3 }
 0x441   : > { %2581 = vmatprep.subr.msk.bf16.mxu0 %vm1448_vm14, %v2065_v52  ;;  %2726 = vmatprep.subr.bf16.mxu1 %v2927_v3 }
 0x442   : > { %2004 = vmatprep.mubr.bf16.mxu0 %v2929_v6 }
 0x44a   : > { %2723 = vmatmul.mubr.msk.bf16.vlgmr.msra.gmra.mrb[4].mxu1 %vm1444_vm15, %v2576_v54 }
 0x44b   : > { %2727 = vmatpush3.bf16.msra.mxu1 %v2076_v58  ;;  %2578 = vmatmul.mubr.msk.bf16.vlgmr.msra.gmra.mrb[4].mxu0 %vm1444_vm15, %v2576_v54 }
 0x44c   : > { %2079 = vmatpush1.bf16.msra.mxu0 %v2070_v63  ;;  %2728 = vmatprep.mubr.msk.bf16.mxu1 %vm2928_vm0, %v2927_v3 }
 0x44d   : > { %2585 = vmatprep.subr.msk.bf16.mxu0 %vm1448_vm14, %v2171_v0  ;;  %2732 = vmatprep.subr.bf16.mxu1 %v2927_v3 }
 0x44e   : > { %2110 = vmatprep.mubr.bf16.mxu0 %v2929_v6 }
 0x456   : > { %2729 = vmatmul.mubr.msk.bf16.vlgmr.msra.gmra.mrb[4].mxu1 %vm1444_vm15, %v2580_v2 }
 0x457   : > { %2733 = vmatpush3.bf16.msra.mxu1 %v2182_v8  ;;  %2582 = vmatmul.mubr.msk.bf16.vlgmr.msra.gmra.mrb[4].mxu0 %vm1444_vm15, %v2580_v2 }
 0x458   : > { %2185 = vmatpush1.bf16.msra.mxu0 %v2176_v4  ;;  %2734 = vmatprep.mubr.msk.bf16.mxu1 %vm2928_vm0, %v2927_v3 }
 0x459   : > { %2589 = vmatprep.subr.msk.bf16.mxu0 %vm1448_vm14, %v2277_v10  ;;  %2738 = vmatprep.subr.bf16.mxu1 %v2927_v3 }
 0x45a   : > { %2216 = vmatprep.mubr.bf16.mxu0 %v2929_v6 }
 0x462   : > { %2735 = vmatmul.mubr.msk.bf16.vlgmr.msra.gmra.mrb[4].mxu1 %vm1444_vm15, %v2584_v11 }
 0x463   : > { %2739 = vmatpush3.bf16.msra.mxu1 %v2288_v14  ;;  %2586 = vmatmul.mubr.msk.bf16.vlgmr.msra.gmra.mrb[4].mxu0 %vm1444_vm15, %v2584_v11 }
 0x464   : > { %2291 = vmatpush1.bf16.msra.mxu0 %v2282_v15  ;;  %2740 = vmatprep.mubr.msk.bf16.mxu1 %vm2928_vm0, %v2927_v3 }
 0x465   : > { %2322 = vmatprep.mubr.bf16.mxu0 %v2929_v6 }
 0x46e   : > { %2741 = vmatmul.mubr.msk.bf16.vlgmr.msra.gmra.mrb[4].mxu1 %vm1444_vm15, %v2588_v16 }
 0x46f   : > { %2590 = vmatmul.mubr.msk.bf16.vlgmr.msra.gmra.mrb[4].mxu0 %vm1444_vm15, %v2588_v16 }
 0x541   : > { %v2365_v17 = vpop.f32.mrb[4].mxu1 }
 0x542   : > { %v2324_v18 = vpop.f32.mrb[4].mxu0  ;;  %v2742_v19 = vpop.f32.mrb[5].mxu1  ;;  %v2377_v20 = vmul.f32 %v2365_v17, %v3192_v59 }
 0x543   : > { %v2375_v21 = vmul.f32 %v2324_v18, %v3194_v60  ;;  %v2326_v22 = vpop.f32.mrb[5].mxu0  ;;  %v2368_v23 = vpop.f32.mrb[6].mxu1 }
 0x544   : > { %v2376_v3 = vmul.f32 %v2326_v22, %v3196_v62  ;;  %v2328_v24 = vpop.f32.mrb[6].mxu0  ;;  %v2743_v25 = vpop.f32.mrb[7].mxu1  ;;  %v2379_v28 = vsel %vm1341_vm11, %v2377_v20, 0.0 }
 0x545   : > { %v2329_v26 = vpop.f32.mrb[7].mxu0 }
 0x546   : > { %v2378_v27 = vadd.f32 %v2376_v3, %v2375_v21 }
 0x548   : > { %v2380_v29 = vadd.f32 %v2379_v28, %v2378_v27 }
 0x54a   : > { %2381 = vadd.xlane.f32.xlu0 %v2380_v29 }
 0x560   : > { %2406 = vperm.xlu0 %2900, %v3205_v13  }
 0x564   : > { %2902 = vset.pattern.permute.xlu0 %v2941_v31 }
 0x5d7   : > { %v2382_v32 = vpop.xlane.xlu0 %2381 }
 0x5d8   : > { %v2383_v33 = vmul.f32 0.00390625, %v2382_v32 }
 0x5da   : > { %v2384_v34 = vsub.f32 %v2324_v18, %v2383_v33  ;;  %v2385_v35 = vsub.f32 %v2326_v22, %v2383_v33  ;;  %v2386_v36 = vsub.f32 %v2365_v17, %v2383_v33 }
 0x5dc   : > { %v2387_v37 = vmul.f32 %v2384_v34, %v3194_v60  ;;  %v2388_v38 = vmul.f32 %v2385_v35, %v3196_v62  ;;  %v2389_v39 = vmul.f32 %v2386_v36, %v3192_v59 }
 0x5de   : > { %v2390_v40 = vmul.f32 %v2387_v37, %v2387_v37  ;;  %v2391_v41 = vmul.f32 %v2388_v38, %v2388_v38  ;;  %v2392_v42 = vmul.f32 %v2389_v39, %v2389_v39 }
 0x5df   : > { %v2407_v50 = vpop.permute.xlu0 %2406 }
 0x5e0   : > { %v2393_v43 = vadd.f32 %v2391_v41, %v2390_v40  ;;  %v2394_v44 = vsel %vm1341_vm11, %v2392_v42, 0.0 }
 0x5e2   : > { %v2395_v45 = vadd.f32 %v2394_v44, %v2393_v43 }
 0x5e4   : > { %2396 = vadd.xlane.f32.xlu1 %v2395_v45 }
 0x5f5   : > { %2413 = vperm.xlu1 %2901, %v3205_v13  }
 0x671   : > { %v2397_v46 = vpop.xlane.xlu1 %2396 }
 0x672   : > { %v2398_v47 = vmul.f32 0.00390625, %v2397_v46 }
 0x674   : > { %v2399_v48 = vadd.f32 1e-05, %v2398_v47 }
 0x675   : > { %v2414_v53 = vpop.permute.xlu1 %2413 }
 0x676   : > { %2916 = vrsqrt.f32 %v2399_v48 }
 0x680   : > { %v2917_v49 = vpop.eup %2916 }
 0x681   : > { %v2401_v51 = vmul.f32 %v2917_v49, %v2387_v37  ;;  %v2402_v13 = vmul.f32 %v2917_v49, %v2388_v38  ;;  %v2403_v52 = vmul.f32 %v2917_v49, %v2389_v39 }
 0x683   : > { %v2409_v54 = vmul.f32 %v2407_v50, %v2401_v51  ;;  %v2410_v55 = vmul.f32 %v2407_v50, %v2402_v13  ;;  %v2411_v57 = vmul.f32 %v2407_v50, %v2403_v52 }
 0x685   : > { %v2416_v58 = vadd.f32 %v2414_v53, %v2409_v54  ;;  %v2417_v61 = vadd.f32 %v2414_v53, %v2410_v55  ;;  %v2418_v63 = vadd.f32 %v2414_v53, %v2411_v57 }
 0x687   : > { %vm2419_vm0 = vcmp.gt.f32.partialorder %v2416_v58, 0.0  ;;  %vm2420_vm2 = vcmp.gt.f32.partialorder %v2417_v61, 0.0  ;;  %v2422_v0 = vmul.f32 0.01, %v2416_v58  ;;  %v2423_v6 = vmul.f32 0.01, %v2417_v61 }
 0x688   : > { %v2424_v1 = vmul.f32 0.01, %v2418_v63  ;;  %vm2421_vm4 = vcmp.gt.f32.partialorder %v2418_v63, 0.0 }
 0x689   : > { %v2425_v2 = vsel %vm2419_vm0, %v2416_v58, %v2422_v0  ;;  %v2426_v5 = vsel %vm2420_vm2, %v2417_v61, %v2423_v6 }
 0x68a   : > { %v2428_v7 = vmul.f32 %v2425_v2, %v3194_v60  ;;  %v2429_v8 = vmul.f32 %v2426_v5, %v3196_v62  ;;  %v2427_v9 = vsel %vm2421_vm4, %v2418_v63, %v2424_v1 }
 0x68b   : > { %v2430_v10 = vmul.f32 %v2427_v9, %v3192_v59 }
 0x68c   : > { %v2598_v4 = vpack.c.bf16 %v2429_v8, %v2428_v7 }
 0x68d   : > { %v2599_v11 = vpack.c.bf16 %v2430_v10, %v2430_v10 }
 0x68e   : > { %2444 = vrot.lane.b32.xlu1 %v2598_v4, %s2939_s14 }
 0x692   : > { %2446 = vrot.lane.b32.xlu1 %v2599_v11, %s2939_s14 }
 0x700   : > { %v2445_v12 = vpop.permute.xlu1 %2444 }
 0x701   : > { %v2448_v14 = vrot.slane %v2445_v12, 4 }
 0x703   : > { %v2449_v15 = vsel %vm1412_vm3, %v2448_v14, %v2445_v12 }
 0x704   : > { %2453 = vst.msk [vmem:[%s3385_s13] sm:$0xff] %vm3218_vm12, %v2449_v15  ;;  %v2447_v16 = vpop.permute.xlu1 %2446 }
 0x705   : > { %v2450_v60 = vsel %vm1412_vm3, %v2448_v14, %v2447_v16 }
 0x706   : > { %2454 = vst.msk [vmem:[%s3385_s13 + $0x8] sm:$0xf] %vm1421_vm13, %v2450_v60 }
 0x707 PF: > { %s15_s18 = sadd.s32 1, %s2924_s18  }
 0x708   : > { %p12_p4 = scmp.ge.s32.totalorder %s15_s18, 4  }
 0x70a   :  { %14 = sbr.rel (!%p12_p4) target bundleno = 1 (0x1), region = 86 }

// kernel: plain_conv_unet_forward.8
= control target key start
LH: loop header
LB: loop body
LE: loop exit
PB: predicated region body
PF: predicated region fallthrough
CT: control target
= control target key end

     0   :  { %s3421_s13 = smov 0   ;;  %s3853_s0 = inlined_call_operand.vmem [shape: bf16[2,32,128], index: 0, kind: input, shape index: {}]   ;;  %s3854_s1 = inlined_call_operand.vmem [shape: bf16[2,16,128], index: 1, kind: input, shape index: {}]   ;;  %s3855_s2 = inlined_call_operand.vmem [shape: bf16[4,16,32], index: 2, kind: input, shape index: {}]   ;;  %s3856_s3 = inlined_call_operand.vmem [shape: f32[16,1], index: 3, kind: input, shape index: {}]   ;;  %s3857_s4 = inlined_call_operand.vmem [shape: bf16[4,36,128], index: 4, kind: input, shape index: {}]   ;;  %s3858_s5 = inlined_call_operand.vmem [shape: bf16[9,16,16], index: 5, kind: input, shape index: {}]   ;;  %s3859_s6 = inlined_call_operand.vmem [shape: bf16[9,16,16], index: 6, kind: input, shape index: {}]   ;;  %s3860_s7 = inlined_call_operand.vmem [shape: f32[16,4], index: 7, kind: input, shape index: {}]   ;;  %s3861_s8 = inlined_call_operand.vmem [shape: bf16[9,16,16], index: 8, kind: input, shape index: {}]   ;;  %s3862_s9 = inlined_call_operand.vmem [shape: f32[1,100], index: 9, kind: input, shape index: {}]   ;;  %s3863_s10 = inlined_call_operand.vmem [shape: bf16[2,16,128], index: 10, kind: output, shape index: {}]  }
   0x1 LB: > { %s2658_s14 = sadd.s32 4294967295, %s3348_s13   ;;  %p2662_p0 = scmp.ge.s32.totalorder %s3348_s13, 1  ;;  %s3348_s13 = sphi %s3421_s13, %s20_s13  }
   0x2   : > { %p322_p1 = scmp.lt.s32.totalorder %s3348_s13, 3 }
   0x4   : > { %p323_p2 = pnand %p2662_p0, %p322_p1 }
   0x5   : > { %p365_p3 = scmp.lt.s32.totalorder (!%p323_p2), %s2658_s14, 1  ;;  %v3350_v0 = vmov (!%p323_p2), 0.0   ;;  %vm3351_vm0 = vmmov (!%p323_p2), 0   ;;  %s3352_s23 = smov (!%p323_p2), 121   ;;  %v388_v3 = vld [vmem:[%s3856_s3] sm:$0xff] (!%p323_p2)  ;;  %v3353_v4 = vmov (!%p323_p2), 0  }
   0x6   : > { %326 = sbr.rel (%p323_p2) target bundleno = 2686 (0xa7e), region = 60  ;;  %2911 = vmatprep.subr.bf16.mxu0 (!%p323_p2), %v3350_v0  ;;  %2965 = vmatprep.subr.bf16.mxu1 (!%p323_p2), %v3350_v0  ;;  %1997 = vst [vmem:[#allocation3] sm:$0xff] (!%p323_p2), %v3353_v4  ;;  %v389_v5 = vld [vmem:[%s3856_s3 + $0x8] sm:$0xff] (!%p323_p2)  ;;  %v3291_v8 = vld [vmem:[%s3855_s2] sm:$0xff] (!%p323_p2)   ;;  %v3292_v9 = vld [vmem:[%s3855_s2 + $0x18] sm:$0xff] (!%p323_p2)   ;;  %vm421_vm1 = vcmask (!%p323_p2), 261120  }
   0x7   : > { %2915 = vmatprep.mubr.msk.bf16.mxu0 (!%p323_p2), %vm3351_vm0, %v3350_v0  ;;  %2969 = vmatprep.mubr.msk.bf16.mxu1 (!%p323_p2), %vm3351_vm0, %v3350_v0  ;;  %v3293_v10 = vld [vmem:[%s3855_s2 + $0x8] sm:$0xff] (!%p323_p2)   ;;  %v3294_v11 = vld [vmem:[%s3857_s4 + $0x14] sm:$0xff] (!%p323_p2)   ;;  %v3295_v12 = vld [vmem:[%s3857_s4 + $0x1c] sm:$0xff] (!%p323_p2)   ;;  %vm550_vm2 = vcmask (!%p323_p2), 1041408   ;;  %vm546_vm3 = vcmask (!%p323_p2), 293888   ;;  %s3354_s28 = smov (!%p323_p2), 126  }
   0x8   : > { %3281 = vset.pattern.permute.xlu1 (!%p323_p2), %v3353_v4  ;;  %3282 = vset.pattern.permute.xlu0 (!%p323_p2), %v3353_v4  ;;  %v3296_v13 = vld [vmem:[%s3857_s4 + $0x24] ss:$0 sps:$4 sm:$0x33] (!%p323_p2)   ;;  %v3298_v39 = vld [vmem:[%s3857_s4 + $0x8] sm:$0xff] (!%p323_p2)   ;;  %v3300_v42 = vld [vmem:[%s3855_s2 + $0x10] sm:$0xff] (!%p323_p2)   ;;  %s3355_s29 = smov (!%p323_p2), 127  }
   0x9   : > { %392 = vperm.xlu1 (!%p323_p2), %3281, %v388_v3   ;;  %v552_v14 = vsel (!%p323_p2), %vm550_vm2, %v3296_v13, 0  ;;  %v3297_v37 = vld [vmem:[%s3857_s4] sm:$0xff] (!%p323_p2)   ;;  %v3299_v40 = vld [vmem:[%s3857_s4 + $0x10] ss:$0 sps:$4 sm:$0x33] (!%p323_p2)   ;;  %v3301_v43 = vld [vmem:[%s3857_s4 + $0x28] sm:$0xff] (!%p323_p2)  }
   0xa   : > { %v614_v41 = vsel (!%p323_p2), %vm550_vm2, %v3299_v40, 0  ;;  %v3302_v44 = vld [vmem:[%s3857_s4 + $0x30] sm:$0xff] (!%p323_p2)   ;;  %v3303_v45 = vld [vmem:[%s3857_s4 + $0x38] ss:$0 sps:$4 sm:$0x33] (!%p323_p2)   ;;  %v3304_v53 = vld [vmem:[%s3857_s4 + $0x3c] sm:$0xff] (!%p323_p2)  }
   0xb   : > { %v735_v46 = vsel (!%p323_p2), %vm550_vm2, %v3303_v45, 0  ;;  %v3305_v55 = vld [vmem:[%s3857_s4 + $0x44] sm:$0xff] (!%p323_p2)   ;;  %v3306_v56 = vld [vmem:[%s3857_s4 + $0x4c] ss:$0 sps:$4 sm:$0x33] (!%p323_p2)   ;;  %s3356_s30 = smov (!%p323_p2), 117  }
   0xc   : > { %v858_v57 = vsel (!%p323_p2), %vm550_vm2, %v3306_v56, 0  ;;  %s3357_s11 = smov (!%p323_p2), 118   ;;  %s3358_s12 = smov (!%p323_p2), 108   ;;  %vm920_vm4 = vcmask (!%p323_p2), 130048   ;;  %v3308_v3 = vld [vmem:[%s3858_s5] sm:$0xff] (!%p323_p2)   ;;  %vm1938_vm5 = vcmask (!%p323_p2), 818176  }
   0xd   : > { %s3865_s14 = smov (!%p365_p3, %s2658_s14), 1  ;;  %397 = vperm.xlu1 %3281, %v389_v5   ;;  %s3360_s17 = smov 106   ;;  %v3735_v45 = vld [vmem:[%s3860_s7] sm:$0xff]  ;;  %vm2003_vm8 = vcmask 908376   ;;  %vm2588_vm11 = vcmask 904280  }
   0xe   : > { %s2824_s15 = sshll.u32 %s3865_s14, 4  ;;  %s2825_s16 = sshll.u32 %s3865_s14, 3 }
   0xf   : > { %s369_s19 = scalar_lea.vmem %s3853_s0, %s2824_s15  ;;  %s3447_s22 = scalar_lea.vmem %s3854_s1, %s2825_s16 }
  0x10   : > { %v3288_v1 = vld [vmem:[%s369_s19] sm:$0xff]   ;;  %v3290_v2 = vld [vmem:[%s369_s19 + $0x8] sm:$0xff]   ;;  %s3359_s15 = smov 116   ;;  %s3361_s18 = smov 107  }
  0x11   : > { %415 = vrot.lane.b32.xlu0 %v3288_v1, %s3352_s23  ;;  %v3579_v63 = vld [vmem:[%s3447_s22] sm:$0xff]   ;;  %s3363_s25 = smov 11  }
  0x15   : > { %417 = vrot.lane.b32.xlu0 %v3290_v2, %s3352_s23  ;;  %v3307_v2 = vld [vmem:[%s3858_s5 + $0x8] sm:$0xff]  }
  0x83   : > { %v3458_v6 = vpop.permute.xlu0 %415 }
  0x84   : > { %2912 = vmatpush3.bf16.msra.mxu0 %v3458_v6  ;;  %2966 = vmatpush3.bf16.msra.mxu1 %v3458_v6 }
  0x85   : > { %2913 = vmatprep.subr.bf16.mxu0 %v3350_v0  ;;  %2967 = vmatprep.subr.bf16.mxu1 %v3350_v0 }
  0x87   : > { %v3464_v7 = vpop.permute.xlu0 %417 }
  0x88   : > { %2914 = vmatpush3.bf16.msra.mxu0 %v3464_v7  ;;  %2968 = vmatpush3.bf16.msra.mxu1 %v3464_v7  ;;  %v393_v15 = vpop.permute.xlu1 %392 }
  0x89   : > { %2919 = vmatprep.subr.bf16.mxu0 %v3350_v0  ;;  %2983 = vmatprep.subr.bf16.mxu1 %v3350_v0 }
  0x8b   : > { %2916 = vmatmul.mubr.msk.bf16.vlgmr.msra.gmra.mrb[0].mxu0 %vm421_vm1, %v3291_v8  ;;  %2970 = vmatmul.mubr.msk.bf16.vlgmr.msra.gmra.mrb[0].mxu1 %vm421_vm1, %v3292_v9  ;;  %v3310_v8 = vld [vmem:[%s3858_s5 + $0x18] sm:$0xff]  }
  0x8c   : > { %2920 = vmatpush3.bf16.msra.mxu0 %v3458_v6  ;;  %2923 = vmatprep.mubr.msk.bf16.mxu0 %vm3351_vm0, %v3350_v0  ;;  %v398_v16 = vpop.permute.xlu1 %397 }
  0x8d   : > { %2921 = vmatprep.subr.bf16.mxu0 %v3350_v0  ;;  %2985 = vmatprep.mubr.msk.bf16.mxu1 %vm3351_vm0, %v3350_v0 }
  0x90   : > { %2922 = vmatpush3.bf16.msra.mxu0 %v3464_v7 }
  0x91   : > { %2927 = vmatprep.subr.bf16.mxu0 %v3350_v0 }
  0x93   : > { %2924 = vmatmul.mubr.msk.bf16.vlgmr.msra.gmra.mrb[4].mxu0 %vm421_vm1, %v3293_v10  ;;  %v3311_v10 = vld [vmem:[%s3858_s5 + $0x20] sm:$0xff]  }
  0x94   : > { %2933 = vmatprep.mubr.msk.bf16.mxu0 %vm3351_vm0, %v3350_v0  ;;  %2928 = vmatpush3.bf16.msra.mxu0 %v3294_v11 }
  0x95   : > { %2929 = vmatprep.subr.bf16.mxu0 %v3350_v0 }
  0x98   : > { %2930 = vmatpush3.bf16.msra.mxu0 %v3295_v12  ;;  %v3312_v12 = vld [vmem:[%s3858_s5 + $0x28] sm:$0xff]  }
  0x99   : > { %2931 = vmatprep.subr.bf16.mxu0 %v3350_v0 }
  0x9c   : > { %2932 = vmatpush3.bf16.msra.mxu0 %v552_v14  ;;  %v3313_v14 = vld [vmem:[%s3858_s5 + $0x30] sm:$0xff]  }
  0x9d   : > { %2937 = vmatprep.subr.bf16.mxu0 %v3350_v0 }
 0x15e   : > { %v459_v17 = vpop.f32.mrb[0].mxu0  ;;  %v825_v18 = vpop.f32.mrb[0].mxu1 }
 0x15f   : > { %v2917_v19 = vpop.f32.mrb[1].mxu0  ;;  %v3505_v20 = vadd.f32 %v825_v18, %v393_v15  ;;  %v2971_v21 = vpop.f32.mrb[1].mxu1  ;;  %v460_v24 = vadd.f32 %v459_v17, %v393_v15  ;;  %v3315_v18 = vld [vmem:[%s3858_s5 + $0x40] sm:$0xff]  }
 0x160   : > { %v462_v22 = vpop.f32.mrb[2].mxu0  ;;  %v828_v23 = vpop.f32.mrb[2].mxu1  ;;  %v3317_v21 = vld [vmem:[%s3859_s6] sm:$0xff]  }
 0x161   : > { %v463_v25 = vadd.f32 %v462_v22, %v398_v16  ;;  %v2918_v26 = vpop.f32.mrb[3].mxu0  ;;  %v3507_v27 = vadd.f32 %v828_v23, %v398_v16  ;;  %v2972_v28 = vpop.f32.mrb[3].mxu1  ;;  %v3318_v23 = vld [vmem:[%s3859_s6 + $0x10] sm:$0xff]  }
 0x163   : > { %v466_v29 = vpack.c.bf16 %v463_v25, %v460_v24  ;;  %v832_v30 = vpack.c.bf16 %v3507_v27, %v3505_v20  ;;  %v3316_v20 = vld [vmem:[%s3859_s6 + $0x8] sm:$0xff]   ;;  %v3319_v25 = vld [vmem:[%s3859_s6 + $0x18] sm:$0xff]   ;;  %v3320_v27 = vld [vmem:[%s3859_s6 + $0x20] sm:$0xff]  }
 0x166   : > { %v517_v31 = vpop.f32.mrb[4].mxu0 }
 0x167   : > { %v2925_v32 = vpop.f32.mrb[5].mxu0  ;;  %v518_v34 = vadd.f32 %v517_v31, %v393_v15  ;;  %v3322_v31 = vld [vmem:[%s3859_s6 + $0x30] sm:$0xff]  }
 0x168   : > { %v520_v33 = vpop.f32.mrb[6].mxu0 }
 0x169   : > { %v521_v35 = vadd.f32 %v520_v33, %v398_v16  ;;  %v2926_v36 = vpop.f32.mrb[7].mxu0  ;;  %v3323_v33 = vld [vmem:[%s3859_s6 + $0x38] sm:$0xff]  }
 0x16a   : > { %v3726_v36 = vld [vmem:[%s3862_s9] ss:$0 sm:$0xff] }
 0x16b   : > { %v524_v38 = vpack.c.bf16 %v521_v35, %v518_v34  ;;  %v3324_v35 = vld [vmem:[%s3859_s6 + $0x40] sm:$0xff]  }
 0x16d   : > { %2934 = vmatmul.mubr.msk.bf16.vlgmr.msra.gmra.mrb[8].mxu0 %vm546_vm3, %v524_v38 }
 0x16e   : > { %2938 = vmatpush3.bf16.msra.mxu0 %v3297_v37  ;;  %2943 = vmatprep.mubr.msk.bf16.mxu0 %vm3351_vm0, %v3350_v0 }
 0x16f   : > { %2939 = vmatprep.subr.bf16.mxu0 %v3350_v0 }
 0x172   : > { %2940 = vmatpush3.bf16.msra.mxu0 %v3298_v39 }
 0x173   : > { %2941 = vmatprep.subr.bf16.mxu0 %v3350_v0 }
 0x176   : > { %2942 = vmatpush3.bf16.msra.mxu0 %v614_v41 }
 0x177   : > { %2947 = vmatprep.subr.bf16.mxu0 %v3350_v0 }
 0x179   : > { %2944 = vmatmul.mubr.msk.bf16.vlgmr.msra.gmra.mrb[8].mxu0 %vm546_vm3, %v466_v29  ;;  %v3321_v29 = vld [vmem:[%s3859_s6 + $0x28] sm:$0xff]  }
 0x17a   : > { %2948 = vmatpush3.bf16.msra.mxu0 %v3458_v6  ;;  %2951 = vmatprep.mubr.msk.bf16.mxu0 %vm3351_vm0, %v3350_v0  ;;  %v3309_v6 = vld [vmem:[%s3858_s5 + $0x10] sm:$0xff]  }
 0x17b   : > { %2949 = vmatprep.subr.bf16.mxu0 %v3350_v0 }
 0x17e   : > { %2950 = vmatpush3.bf16.msra.mxu0 %v3464_v7 }
 0x17f   : > { %2955 = vmatprep.subr.bf16.mxu0 %v3350_v0 }
 0x181   : > { %2952 = vmatmul.mubr.msk.bf16.vlgmr.msra.gmra.mrb[12].mxu0 %vm421_vm1, %v3300_v42 }
 0x182   : > { %2956 = vmatpush3.bf16.msra.mxu0 %v3301_v43  ;;  %2961 = vmatprep.mubr.msk.bf16.mxu0 %vm3351_vm0, %v3350_v0 }
 0x183   : > { %2957 = vmatprep.subr.bf16.mxu0 %v3350_v0 }
 0x186   : > { %2958 = vmatpush3.bf16.msra.mxu0 %v3302_v44 }
 0x187   : > { %2959 = vmatprep.subr.bf16.mxu0 %v3350_v0 }
 0x18a   : > { %2960 = vmatpush3.bf16.msra.mxu0 %v735_v46  ;;  %v3362_v46 = vmov 1  }
 0x18b   : > { %2973 = vmatprep.subr.bf16.mxu0 %v3350_v0 }
 0x254   : > { %v702_v47 = vpop.f32.mrb[12].mxu0 }
 0x255   : > { %v2953_v48 = vpop.f32.mrb[13].mxu0  ;;  %v703_v50 = vadd.f32 %v702_v47, %v393_v15  ;;  %v3742_v47 = vld [vmem:[%s3860_s7 + $0x8] sm:$0xff] }
 0x256   : > { %v705_v49 = vpop.f32.mrb[14].mxu0 }
 0x257   : > { %v706_v51 = vadd.f32 %v705_v49, %v398_v16  ;;  %v2954_v52 = vpop.f32.mrb[15].mxu0  ;;  %v3314_v16 = vld [vmem:[%s3858_s5 + $0x38] sm:$0xff]  }
 0x259   : > { %v709_v54 = vpack.c.bf16 %v706_v51, %v703_v50 }
 0x25b   : > { %2962 = vmatmul.mubr.msk.bf16.vlgmr.msra.gmra.mrb[8].mxu0 %vm546_vm3, %v709_v54 }
 0x25c   : > { %2974 = vmatpush3.bf16.msra.mxu0 %v3304_v53  ;;  %2979 = vmatprep.mubr.msk.bf16.mxu0 %vm3351_vm0, %v3350_v0 }
 0x25d   : > { %2975 = vmatprep.subr.bf16.mxu0 %v3350_v0 }
 0x260   : > { %2976 = vmatpush3.bf16.msra.mxu0 %v3305_v55 }
 0x261   : > { %2977 = vmatprep.subr.bf16.mxu0 %v3350_v0 }
 0x264   : > { %2978 = vmatpush3.bf16.msra.mxu0 %v858_v57 }
 0x265   : > { %3091 = vmatprep.subr.bf16.mxu0 %v3350_v0 }
 0x267   : > { %2980 = vmatmul.mubr.msk.bf16.vlgmr.msra.gmra.mrb[8].mxu0 %vm546_vm3, %v832_v30 }
 0x268   : > { %3093 = vmatprep.mubr.msk.bf16.mxu0 %vm3351_vm0, %v3350_v0 }
 0x33a   : > { %v894_v58 = vpop.f32.mrb[8].mxu0 }
 0x33b   : > { %v2981_v59 = vpop.f32.mrb[9].mxu0 }
 0x33c   : > { %v897_v60 = vpop.f32.mrb[10].mxu0 }
 0x33d   : > { %v903_v61 = vpack.c.bf16 %v897_v60, %v894_v58  ;;  %v2982_v62 = vpop.f32.mrb[11].mxu0 }
 0x33f   : > { %1022 = vrot.lane.b32.xlu1 %v903_v61, %s3354_s28  ;;  %917 = vrot.lane.b32.xlu0 %v903_v61, %s3355_s29 }
 0x343   : > { %1136 = vrot.lane.b32.xlu1 %v903_v61, %s3356_s30  ;;  %1079 = vrot.lane.b32.xlu0 %v903_v61, %s3357_s11 }
 0x347   : > { %1250 = vrot.lane.b32.xlu1 %v903_v61, %s3358_s12  ;;  %1193 = vrot.lane.b32.xlu0 %v903_v61, %s3359_s15 }
 0x34b   : > { %1364 = vrot.lane.b32.xlu1 %v903_v61, %s3360_s17  ;;  %1307 = vrot.lane.b32.xlu0 %v903_v61, %s3361_s18 }
 0x34f   : > { %1430 = vrot.lane.b32.xlu0 %v3579_v63, %s3355_s29  ;;  %1535 = vrot.lane.b32.xlu1 %v3579_v63, %s3354_s28 }
 0x353   : > { %1592 = vrot.lane.b32.xlu0 %v3579_v63, %s3357_s11  ;;  %1649 = vrot.lane.b32.xlu1 %v3579_v63, %s3356_s30 }
 0x357   : > { %1706 = vrot.lane.b32.xlu0 %v3579_v63, %s3359_s15  ;;  %1763 = vrot.lane.b32.xlu1 %v3579_v63, %s3358_s12 }
 0x35b   : > { %1820 = vrot.lane.b32.xlu0 %v3579_v63, %s3361_s18  ;;  %1877 = vrot.lane.b32.xlu1 %v3579_v63, %s3360_s17 }
 0x3b1   : > { %v918_v1 = vpop.permute.xlu0 %917  ;;  %v1023_v5 = vpop.permute.xlu1 %1022 }
 0x3b2   : > { %2984 = vmatpush3.bf16.msra.mxu1 %v918_v1 }
 0x3b3   : > { %2989 = vmatprep.subr.bf16.mxu1 %v3350_v0 }
 0x3b5   : > { %2986 = vmatmul.mubr.msk.bf16.vlgmr.msra.gmra.mrb[4].mxu1 %vm920_vm4, %v3307_v2  ;;  %v1080_v7 = vpop.permute.xlu0 %1079  ;;  %v1137_v9 = vpop.permute.xlu1 %1136 }
 0x3b6   : > { %2990 = vmatpush3.bf16.msra.mxu1 %v903_v61  ;;  %2991 = vmatprep.mubr.msk.bf16.mxu1 %vm3351_vm0, %v3350_v0 }
 0x3b7   : > { %2995 = vmatprep.subr.bf16.mxu1 %v3350_v0 }
 0x3b9   : > { %v1194_v11 = vpop.permute.xlu0 %1193  ;;  %v1251_v13 = vpop.permute.xlu1 %1250 }
 0x3bd   : > { %v1308_v15 = vpop.permute.xlu0 %1307  ;;  %v1365_v17 = vpop.permute.xlu1 %1364 }
 0x3c1   : > { %2992 = vmatmul.mubr.msk.bf16.vlgmr.msra.gmra.mrb[4].mxu1 %vm920_vm4, %v3308_v3  ;;  %v1431_v19 = vpop.permute.xlu0 %1430  ;;  %v1536_v22 = vpop.permute.xlu1 %1535 }
 0x3c2   : > { %2996 = vmatpush3.bf16.msra.mxu1 %v1023_v5  ;;  %2997 = vmatprep.mubr.msk.bf16.mxu1 %vm3351_vm0, %v3350_v0 }
 0x3c3   : > { %3001 = vmatprep.subr.bf16.mxu1 %v3350_v0 }
 0x3c5   : > { %v1593_v24 = vpop.permute.xlu0 %1592  ;;  %v1650_v26 = vpop.permute.xlu1 %1649 }
 0x3c9   : > { %v1707_v28 = vpop.permute.xlu0 %1706  ;;  %v1764_v30 = vpop.permute.xlu1 %1763 }
 0x3cd   : > { %2998 = vmatmul.mubr.msk.bf16.vlgmr.msra.gmra.mrb[4].mxu1 %vm920_vm4, %v3309_v6  ;;  %v1821_v32 = vpop.permute.xlu0 %1820  ;;  %v1878_v34 = vpop.permute.xlu1 %1877 }
 0x3ce   : > { %3002 = vmatpush3.bf16.msra.mxu1 %v1080_v7  ;;  %3003 = vmatprep.mubr.msk.bf16.mxu1 %vm3351_vm0, %v3350_v0 }
 0x3cf   : > { %3007 = vmatprep.subr.bf16.mxu1 %v3350_v0 }
 0x3d9   : > { %3004 = vmatmul.mubr.msk.bf16.vlgmr.msra.gmra.mrb[4].mxu1 %vm920_vm4, %v3310_v8 }
 0x3da   : > { %3008 = vmatpush3.bf16.msra.mxu1 %v1137_v9  ;;  %3009 = vmatprep.mubr.msk.bf16.mxu1 %vm3351_vm0, %v3350_v0 }
 0x3db   : > { %3013 = vmatprep.subr.bf16.mxu1 %v3350_v0 }
 0x3e5   : > { %3010 = vmatmul.mubr.msk.bf16.vlgmr.msra.gmra.mrb[4].mxu1 %vm920_vm4, %v3311_v10 }
 0x3e6   : > { %3014 = vmatpush3.bf16.msra.mxu1 %v1194_v11  ;;  %3015 = vmatprep.mubr.msk.bf16.mxu1 %vm3351_vm0, %v3350_v0 }
 0x3e7   : > { %3019 = vmatprep.subr.bf16.mxu1 %v3350_v0 }
 0x3f1   : > { %3016 = vmatmul.mubr.msk.bf16.vlgmr.msra.gmra.mrb[4].mxu1 %vm920_vm4, %v3312_v12 }
 0x3f2   : > { %3020 = vmatpush3.bf16.msra.mxu1 %v1251_v13  ;;  %3021 = vmatprep.mubr.msk.bf16.mxu1 %vm3351_vm0, %v3350_v0 }
 0x3f3   : > { %3025 = vmatprep.subr.bf16.mxu1 %v3350_v0 }
 0x3fd   : > { %3022 = vmatmul.mubr.msk.bf16.vlgmr.msra.gmra.mrb[4].mxu1 %vm920_vm4, %v3313_v14 }
 0x3fe   : > { %3026 = vmatpush3.bf16.msra.mxu1 %v1308_v15  ;;  %3027 = vmatprep.mubr.msk.bf16.mxu1 %vm3351_vm0, %v3350_v0 }
 0x3ff   : > { %3031 = vmatprep.subr.bf16.mxu1 %v3350_v0 }
 0x409   : > { %3028 = vmatmul.mubr.msk.bf16.vlgmr.msra.gmra.mrb[4].mxu1 %vm920_vm4, %v3314_v16 }
 0x40a   : > { %3032 = vmatpush3.bf16.msra.mxu1 %v1365_v17  ;;  %3033 = vmatprep.mubr.msk.bf16.mxu1 %vm3351_vm0, %v3350_v0 }
 0x40b   : > { %3037 = vmatprep.subr.bf16.mxu1 %v3350_v0 }
 0x415   : > { %3034 = vmatmul.mubr.msk.bf16.vlgmr.msra.gmra.mrb[4].mxu1 %vm920_vm4, %v3315_v18 }
 0x416   : > { %3038 = vmatpush3.bf16.msra.mxu1 %v1431_v19  ;;  %3039 = vmatprep.mubr.msk.bf16.mxu1 %vm3351_vm0, %v3350_v0 }
 0x417   : > { %3043 = vmatprep.subr.bf16.mxu1 %v3350_v0 }
 0x421   : > { %3040 = vmatmul.mubr.msk.bf16.vlgmr.msra.gmra.mrb[4].mxu1 %vm920_vm4, %v3316_v20 }
 0x422   : > { %3044 = vmatpush3.bf16.msra.mxu1 %v3579_v63  ;;  %3045 = vmatprep.mubr.msk.bf16.mxu1 %vm3351_vm0, %v3350_v0 }
 0x423   : > { %3049 = vmatprep.subr.bf16.mxu1 %v3350_v0 }
 0x42d   : > { %3046 = vmatmul.mubr.msk.bf16.vlgmr.msra.gmra.mrb[4].mxu1 %vm920_vm4, %v3317_v21 }
 0x42e   : > { %3050 = vmatpush3.bf16.msra.mxu1 %v1536_v22  ;;  %3051 = vmatprep.mubr.msk.bf16.mxu1 %vm3351_vm0, %v3350_v0 }
 0x42f   : > { %3055 = vmatprep.subr.bf16.mxu1 %v3350_v0 }
 0x439   : > { %3052 = vmatmul.mubr.msk.bf16.vlgmr.msra.gmra.mrb[4].mxu1 %vm920_vm4, %v3318_v23 }
 0x43a   : > { %3056 = vmatpush3.bf16.msra.mxu1 %v1593_v24  ;;  %3057 = vmatprep.mubr.msk.bf16.mxu1 %vm3351_vm0, %v3350_v0 }
 0x43b   : > { %3061 = vmatprep.subr.bf16.mxu1 %v3350_v0 }
 0x445   : > { %3058 = vmatmul.mubr.msk.bf16.vlgmr.msra.gmra.mrb[4].mxu1 %vm920_vm4, %v3319_v25 }
 0x446   : > { %3062 = vmatpush3.bf16.msra.mxu1 %v1650_v26  ;;  %3063 = vmatprep.mubr.msk.bf16.mxu1 %vm3351_vm0, %v3350_v0  ;;  %v3325_v26 = vld [vmem:[%s3861_s8 + $0x8] sm:$0xff]  }
 0x447   : > { %3067 = vmatprep.subr.bf16.mxu1 %v3350_v0 }
 0x451   : > { %3064 = vmatmul.mubr.msk.bf16.vlgmr.msra.gmra.mrb[4].mxu1 %vm920_vm4, %v3320_v27  ;;  %v3326_v27 = vld [vmem:[%s3861_s8] sm:$0xff]  }
 0x452   : > { %3068 = vmatpush3.bf16.msra.mxu1 %v1707_v28  ;;  %3069 = vmatprep.mubr.msk.bf16.mxu1 %vm3351_vm0, %v3350_v0 }
 0x453   : > { %3073 = vmatprep.subr.bf16.mxu1 %v3350_v0 }
 0x45d   : > { %3070 = vmatmul.mubr.msk.bf16.vlgmr.msra.gmra.mrb[4].mxu1 %vm920_vm4, %v3321_v29  ;;  %v3327_v29 = vld [vmem:[%s3861_s8 + $0x10] sm:$0xff]  }
 0x45e   : > { %3074 = vmatpush3.bf16.msra.mxu1 %v1764_v30  ;;  %3075 = vmatprep.mubr.msk.bf16.mxu1 %vm3351_vm0, %v3350_v0 }
 0x45f   : > { %3079 = vmatprep.subr.bf16.mxu1 %v3350_v0 }
 0x469   : > { %3076 = vmatmul.mubr.msk.bf16.vlgmr.msra.gmra.mrb[4].mxu1 %vm920_vm4, %v3322_v31  ;;  %v3328_v31 = vld [vmem:[%s3861_s8 + $0x18] sm:$0xff]  }
 0x46a   : > { %3080 = vmatpush3.bf16.msra.mxu1 %v1821_v32  ;;  %3081 = vmatprep.mubr.msk.bf16.mxu1 %vm3351_vm0, %v3350_v0 }
 0x46b   : > { %3085 = vmatprep.subr.bf16.mxu1 %v3350_v0 }
 0x475   : > { %3082 = vmatmul.mubr.msk.bf16.vlgmr.msra.gmra.mrb[4].mxu1 %vm920_vm4, %v3323_v33  ;;  %v3329_v33 = vld [vmem:[%s3861_s8 + $0x20] sm:$0xff]  }
 0x476   : > { %3086 = vmatpush3.bf16.msra.mxu1 %v1878_v34  ;;  %3087 = vmatprep.mubr.msk.bf16.mxu1 %vm3351_vm0, %v3350_v0 }
 0x481   : > { %3088 = vmatmul.mubr.msk.bf16.vlgmr.msra.gmra.mrb[4].mxu1 %vm920_vm4, %v3324_v35  ;;  %v3330_v35 = vld [vmem:[%s3861_s8 + $0x28] sm:$0xff]  }
 0x554   : > { %v1917_v37 = vpop.f32.mrb[4].mxu1 }
 0x555   : > { %v1936_v38 = vmul.f32 %v3726_v36, %v1917_v37  ;;  %v3089_v39 = vpop.f32.mrb[5].mxu1 }
 0x556   : > { %v1920_v40 = vpop.f32.mrb[6].mxu1 }
 0x557   : > { %v1937_v41 = vmul.f32 %v3726_v36, %v1920_v40  ;;  %v3090_v42 = vpop.f32.mrb[7].mxu1  ;;  %v1939_v43 = vsel %vm1938_vm5, %v1936_v38, 0.0  ;;  %v3331_v38 = vld [vmem:[%s3861_s8 + $0x30] sm:$0xff]  }
 0x558   : > { %1940 = vadd.xlane.f32.xlu0 %v1939_v43  ;;  %v3333_v42 = vld [vmem:[%s3861_s8 + $0x40] sm:$0xff]   ;;  %v3364_v43 = vmov 2  }
 0x559   : > { %v1942_v44 = vsel %vm1938_vm5, %v1937_v41, 0.0 }
 0x55a   : > { %1943 = vadd.xlane.f32.xlu1 %v1942_v44 }
 0x56b   : > { %1969 = vperm.xlu1 %3281, %v3735_v45  }
 0x56f   : > { %3283 = vset.pattern.permute.xlu1 %v3362_v46 }
 0x570   : > { %1980 = vperm.xlu1 %3283, %v3735_v45  }
 0x574   : > { %1984 = vperm.xlu1 %3283, %v3742_v47  }
 0x578   : > { %3285 = vset.pattern.permute.xlu1 %v3364_v43 }
 0x5e5   : > { %v1941_v48 = vpop.xlane.xlu0 %1940 }
 0x5e6   : > { %v1945_v49 = vmul.f32 0.015625, %v1941_v48 }
 0x5e7   : > { %v1944_v50 = vpop.xlane.xlu1 %1943 }
 0x5e8   : > { %v1947_v51 = vsub.f32 %v1917_v37, %v1945_v49  ;;  %v1946_v52 = vmul.f32 0.015625, %v1944_v50 }
 0x5ea   : > { %v1948_v53 = vsub.f32 %v1920_v40, %v1946_v52  ;;  %v1949_v54 = vmul.f32 %v3726_v36, %v1947_v51  ;;  %v3332_v40 = vld [vmem:[%s3861_s8 + $0x38] sm:$0xff]  }
 0x5eb   : > { %v1970_v3 = vpop.permute.xlu1 %1969 }
 0x5ec   : > { %v1951_v55 = vmul.f32 %v1949_v54, %v1949_v54  ;;  %v1950_v56 = vmul.f32 %v3726_v36, %v1948_v53  ;;  %v3365_v53 = vmov 3  }
 0x5ee   : > { %v1953_v57 = vsel %vm1938_vm5, %v1951_v55, 0.0  ;;  %v1952_v58 = vmul.f32 %v1950_v56, %v1950_v56 }
 0x5ef   : > { %1954 = vadd.xlane.f32.xlu0 %v1953_v57  ;;  %v1981_v7 = vpop.permute.xlu1 %1980 }
 0x5f0   : > { %v1956_v59 = vsel %vm1938_vm5, %v1952_v58, 0.0 }
 0x5f3   : > { %1957 = vadd.xlane.f32.xlu0 %v1956_v59  ;;  %v1985_v15 = vpop.permute.xlu1 %1984 }
 0x609   : > { %1974 = vperm.xlu0 %3282, %v3742_v47  }
 0x60d   : > { %3284 = vset.pattern.permute.xlu0 %v3364_v43 }
 0x67c   : > { %v1955_v60 = vpop.xlane.xlu0 %1954 }
 0x67d   : > { %v1959_v61 = vmul.f32 0.015625, %v1955_v60 }
 0x67f   : > { %v1961_v62 = vadd.f32 1e-05, %v1959_v61 }
 0x680   : > { %v1958_v63 = vpop.xlane.xlu0 %1957 }
 0x681   : > { %3334 = vrsqrt.f32 %v1961_v62  ;;  %v1960_v1 = vmul.f32 0.015625, %v1958_v63 }
 0x683   : > { %v1962_v2 = vadd.f32 1e-05, %v1960_v1 }
 0x685   : > { %3336 = vrsqrt.f32 %v1962_v2 }
 0x688   : > { %v1975_v10 = vpop.permute.xlu0 %1974 }
 0x68b   : > { %v3335_v5 = vpop.eup %3334 }
 0x68c   : > { %v1965_v6 = vmul.f32 %v3335_v5, %v1949_v54 }
 0x68e   : > { %v1977_v8 = vmul.f32 %v1970_v3, %v1965_v6 }
 0x68f   : > { %v3337_v9 = vpop.eup %3336 }
 0x690   : > { %v1987_v11 = vadd.f32 %v1981_v7, %v1977_v8  ;;  %v1966_v12 = vmul.f32 %v3337_v9, %v1950_v56 }
 0x692   : > { %v1991_v13 = vmul.f32 0.01, %v1987_v11  ;;  %v1978_v14 = vmul.f32 %v1975_v10, %v1966_v12  ;;  %vm1989_vm6 = vcmp.gt.f32.partialorder %v1987_v11, 0.0 }
 0x694   : > { %v1988_v16 = vadd.f32 %v1985_v15, %v1978_v14  ;;  %v1993_v17 = vsel %vm1989_vm6, %v1987_v11, %v1991_v13 }
 0x695   : > { %v1995_v20 = vmul.f32 %v3726_v36, %v1993_v17 }
 0x696   : > { %vm1990_vm7 = vcmp.gt.f32.partialorder %v1988_v16, 0.0  ;;  %v1992_v18 = vmul.f32 0.01, %v1988_v16 }
 0x698   : > { %v1994_v19 = vsel %vm1990_vm7, %v1988_v16, %v1992_v18 }
 0x699   : > { %v1996_v21 = vmul.f32 %v3726_v36, %v1994_v19 }
 0x69b   : > { %v1998_v22 = vpack.c.bf16 %v1996_v21, %v1995_v20 }
 0x69d   : > { %2000 = vrot.lane.b32.xlu1 %v1998_v22, %s3363_s25 }
 0x70f   : > { %v2001_v23 = vpop.permute.xlu1 %2000 }
 0x710   : > { %2004 = vst.msk [vmem:[#allocation3] sm:$0xff] %vm2003_vm8, %v2001_v23 }
 0x717   : > { %v2007_v24 = vld [vmem:[#allocation3] sm:$0xff] }
 0x718   : > { %2349 = vrot.lane.b32.xlu0 %v2007_v24, %s3358_s12  ;;  %2017 = vrot.lane.b32.xlu1 %v2007_v24, %s3355_s29 }
 0x71c   : > { %2463 = vrot.lane.b32.xlu0 %v2007_v24, %s3360_s17  ;;  %2121 = vrot.lane.b32.xlu1 %v2007_v24, %s3354_s28 }
 0x720   : > { %2178 = vrot.lane.b32.xlu1 %v2007_v24, %s3357_s11 }
 0x724   : > { %2235 = vrot.lane.b32.xlu1 %v2007_v24, %s3356_s30  ;;  %s3838_s30 = scalar_lea.vmem %s3863_s10, %s2825_s16 }
 0x725   : > { %2574 = vst [vmem:[%s3838_s30] sm:$0xf] %v3353_v4  ;;  %2575 = vst [vmem:[%s3838_s30 + $0x4] sm:$0xf] %v3353_v4 }
 0x728   : > { %2292 = vrot.lane.b32.xlu1 %v2007_v24, %s3359_s15 }
 0x72c   : > { %2406 = vrot.lane.b32.xlu1 %v2007_v24, %s3361_s18 }
 0x78a   : > { %v2018_v25 = vpop.permute.xlu1 %2017  ;;  %v2350_v37 = vpop.permute.xlu0 %2349 }
 0x78b   : > { %3092 = vmatpush3.bf16.msra.mxu0 %v2018_v25 }
 0x78c   : > { %3097 = vmatprep.subr.bf16.mxu0 %v3350_v0 }
 0x78e   : > { %3094 = vmatmul.mubr.msk.bf16.vlgmr.msra.gmra.mrb[16].mxu0 %vm920_vm4, %v3325_v26  ;;  %v2122_v28 = vpop.permute.xlu1 %2121  ;;  %v2464_v41 = vpop.permute.xlu0 %2463 }
 0x78f   : > { %3098 = vmatpush3.bf16.msra.mxu0 %v2007_v24  ;;  %3099 = vmatprep.mubr.msk.bf16.mxu0 %vm3351_vm0, %v3350_v0 }
 0x790   : > { %3103 = vmatprep.subr.bf16.mxu0 %v3350_v0 }
 0x792   : > { %v2179_v30 = vpop.permute.xlu1 %2178 }
 0x796   : > { %v2236_v32 = vpop.permute.xlu1 %2235 }
 0x79a   : > { %3100 = vmatmul.mubr.msk.bf16.vlgmr.msra.gmra.mrb[16].mxu0 %vm920_vm4, %v3326_v27  ;;  %v2293_v34 = vpop.permute.xlu1 %2292 }
 0x79b   : > { %3104 = vmatpush3.bf16.msra.mxu0 %v2122_v28  ;;  %3105 = vmatprep.mubr.msk.bf16.mxu0 %vm3351_vm0, %v3350_v0 }
 0x79c   : > { %3109 = vmatprep.subr.bf16.mxu0 %v3350_v0 }
 0x79e   : > { %v2407_v39 = vpop.permute.xlu1 %2406 }
 0x7a6   : > { %3106 = vmatmul.mubr.msk.bf16.vlgmr.msra.gmra.mrb[16].mxu0 %vm920_vm4, %v3327_v29 }
 0x7a7   : > { %3110 = vmatpush3.bf16.msra.mxu0 %v2179_v30  ;;  %3111 = vmatprep.mubr.msk.bf16.mxu0 %vm3351_vm0, %v3350_v0 }
 0x7a8   : > { %3115 = vmatprep.subr.bf16.mxu0 %v3350_v0 }
 0x7b2   : > { %3112 = vmatmul.mubr.msk.bf16.vlgmr.msra.gmra.mrb[16].mxu0 %vm920_vm4, %v3328_v31 }
 0x7b3   : > { %3116 = vmatpush3.bf16.msra.mxu0 %v2236_v32  ;;  %3117 = vmatprep.mubr.msk.bf16.mxu0 %vm3351_vm0, %v3350_v0 }
 0x7b4   : > { %3121 = vmatprep.subr.bf16.mxu0 %v3350_v0 }
 0x7be   : > { %3118 = vmatmul.mubr.msk.bf16.vlgmr.msra.gmra.mrb[16].mxu0 %vm920_vm4, %v3329_v33 }
 0x7bf   : > { %3122 = vmatpush3.bf16.msra.mxu0 %v2293_v34  ;;  %3123 = vmatprep.mubr.msk.bf16.mxu0 %vm3351_vm0, %v3350_v0 }
 0x7c0   : > { %3127 = vmatprep.subr.bf16.mxu0 %v3350_v0 }
 0x7ca   : > { %3124 = vmatmul.mubr.msk.bf16.vlgmr.msra.gmra.mrb[16].mxu0 %vm920_vm4, %v3330_v35 }
 0x7cb   : > { %3128 = vmatpush3.bf16.msra.mxu0 %v2350_v37  ;;  %3129 = vmatprep.mubr.msk.bf16.mxu0 %vm3351_vm0, %v3350_v0 }
 0x7cc   : > { %3133 = vmatprep.subr.bf16.mxu0 %v3350_v0 }
 0x7d6   : > { %3130 = vmatmul.mubr.msk.bf16.vlgmr.msra.gmra.mrb[16].mxu0 %vm920_vm4, %v3331_v38 }
 0x7d7   : > { %3134 = vmatpush3.bf16.msra.mxu0 %v2407_v39  ;;  %3135 = vmatprep.mubr.msk.bf16.mxu0 %vm3351_vm0, %v3350_v0 }
 0x7d8   : > { %3139 = vmatprep.subr.bf16.mxu0 %v3350_v0 }
 0x7e2   : > { %3136 = vmatmul.mubr.msk.bf16.vlgmr.msra.gmra.mrb[16].mxu0 %vm920_vm4, %v3332_v40 }
 0x7e3   : > { %3140 = vmatpush3.bf16.msra.mxu0 %v2464_v41  ;;  %3141 = vmatprep.mubr.msk.bf16.mxu0 %vm3351_vm0, %v3350_v0 }
 0x7ee   : > { %3142 = vmatmul.mubr.msk.bf16.vlgmr.msra.gmra.mrb[16].mxu0 %vm920_vm4, %v3333_v42 }
 0x8c1   : > { %v2503_v44 = vpop.f32.mrb[16].mxu0 }
 0x8c2   : > { %v2514_v46 = vmul.f32 %v3726_v36, %v2503_v44  ;;  %v3143_v48 = vpop.f32.mrb[17].mxu0 }
 0x8c3   : > { %v2506_v49 = vpop.f32.mrb[18].mxu0 }
 0x8c4   : > { %v2515_v50 = vmul.f32 %v3726_v36, %v2506_v49  ;;  %v3144_v51 = vpop.f32.mrb[19].mxu0  ;;  %v2516_v52 = vsel %vm1938_vm5, %v2514_v46, 0.0 }
 0x8c5   : > { %2517 = vadd.xlane.f32.xlu1 %v2516_v52 }
 0x8c6   : > { %v2519_v0 = vsel %vm1938_vm5, %v2515_v50, 0.0 }
 0x8c7   : > { %2520 = vadd.xlane.f32.xlu0 %v2519_v0 }
 0x8d6   : > { %2551 = vperm.xlu1 %3285, %v3742_v47  }
 0x8da   : > { %3286 = vset.pattern.permute.xlu1 %v3365_v53 }
 0x8db   : > { %2557 = vperm.xlu1 %3286, %v3735_v45  }
 0x952   : > { %v2518_v54 = vpop.xlane.xlu1 %2517 }
 0x953   : > { %v2522_v55 = vmul.f32 0.015625, %v2518_v54 }
 0x954   : > { %v2521_v56 = vpop.xlane.xlu0 %2520 }
 0x955   : > { %v2524_v57 = vsub.f32 %v2503_v44, %v2522_v55  ;;  %v2523_v58 = vmul.f32 0.015625, %v2521_v56 }
 0x956   : > { %v2552_v3 = vpop.permute.xlu1 %2551 }
 0x957   : > { %v2525_v59 = vsub.f32 %v2506_v49, %v2523_v58  ;;  %v2526_v60 = vmul.f32 %v3726_v36, %v2524_v57 }
 0x959   : > { %v2528_v61 = vmul.f32 %v2526_v60, %v2526_v60  ;;  %v2527_v62 = vmul.f32 %v3726_v36, %v2525_v59 }
 0x95a   : > { %v2558_v5 = vpop.permute.xlu1 %2557 }
 0x95b   : > { %v2530_v63 = vsel %vm1938_vm5, %v2528_v61, 0.0  ;;  %v2529_v1 = vmul.f32 %v2527_v62, %v2527_v62 }
 0x95c   : > { %2531 = vadd.xlane.f32.xlu0 %v2530_v63 }
 0x95d   : > { %v2533_v2 = vsel %vm1938_vm5, %v2529_v1, 0.0 }
 0x95e   : > { %2534 = vadd.xlane.f32.xlu1 %v2533_v2 }
 0x96f   : > { %2561 = vperm.xlu1 %3286, %v3742_v47  }
 0x972   : > { %2546 = vperm.xlu0 %3284, %v3735_v45  }
 0x976   : > { %3287 = vset.pattern.permute.xlu0 %v3365_v53 }
 0x9e9   : > { %v2532_v6 = vpop.xlane.xlu0 %2531 }
 0x9ea   : > { %v2536_v7 = vmul.f32 0.015625, %v2532_v6 }
 0x9eb   : > { %v2535_v47 = vpop.xlane.xlu1 %2534 }
 0x9ec   : > { %v2538_v8 = vadd.f32 1e-05, %v2536_v7  ;;  %v2537_v45 = vmul.f32 0.015625, %v2535_v47 }
 0x9ee   : > { %3338 = vrsqrt.f32 %v2538_v8  ;;  %v2539_v9 = vadd.f32 1e-05, %v2537_v45 }
 0x9ef   : > { %v2562_v18 = vpop.permute.xlu1 %2561 }
 0x9f0   : > { %3340 = vrsqrt.f32 %v2539_v9 }
 0x9f1   : > { %v2547_v11 = vpop.permute.xlu0 %2546 }
 0x9f8   : > { %v3339_v10 = vpop.eup %3338 }
 0x9f9   : > { %v2542_v12 = vmul.f32 %v3339_v10, %v2526_v60 }
 0x9fa   : > { %v3341_v13 = vpop.eup %3340 }
 0x9fb   : > { %v2543_v14 = vmul.f32 %v3341_v13, %v2527_v62  ;;  %v2554_v15 = vmul.f32 %v2547_v11, %v2542_v12 }
 0x9fd   : > { %v2555_v16 = vmul.f32 %v2552_v3, %v2543_v14  ;;  %v2564_v17 = vadd.f32 %v2558_v5, %v2554_v15 }
 0x9ff   : > { %v2565_v4 = vadd.f32 %v2562_v18, %v2555_v16  ;;  %vm2566_vm9 = vcmp.gt.f32.partialorder %v2564_v17, 0.0  ;;  %v2568_v19 = vmul.f32 0.01, %v2564_v17 }
 0xa01   : > { %vm2567_vm10 = vcmp.gt.f32.partialorder %v2565_v4, 0.0  ;;  %v2569_v20 = vmul.f32 0.01, %v2565_v4  ;;  %v2570_v21 = vsel %vm2566_vm9, %v2564_v17, %v2568_v19 }
 0xa02   : > { %v2572_v22 = vmul.f32 %v3726_v36, %v2570_v21 }
 0xa03   : > { %v2571_v23 = vsel %vm2567_vm10, %v2565_v4, %v2569_v20 }
 0xa04   : > { %v2827_v24 = vpack.c.bf16 %v2572_v22, %v2572_v22  ;;  %v2573_v25 = vmul.f32 %v3726_v36, %v2571_v23 }
 0xa06   : > { %2582 = vrot.lane.b32.xlu1 %v2827_v24, %s3363_s25  ;;  %v2828_v26 = vpack.c.bf16 %v2573_v25, %v2573_v25 }
 0xa0a   : > { %2584 = vrot.lane.b32.xlu1 %v2828_v26, %s3363_s25 }
 0xa78   : > { %v2583_v27 = vpop.permute.xlu1 %2582 }
 0xa79   : > { %2589 = vst.msk [vmem:[%s3838_s30] sm:$0xf] %vm2588_vm11, %v2583_v27 }
 0xa7c   : > { %v2585_v28 = vpop.permute.xlu1 %2584 }
 0xa7d   : > { %2590 = vst.msk [vmem:[%s3838_s30 + $0x4] sm:$0xf] %vm2588_vm11, %v2585_v28 }
 0xa7e PF: > { %s20_s13 = sadd.s32 1, %s3348_s13  }
 0xa7f   : > { %p17_p4 = scmp.ge.s32.totalorder %s20_s13, 4  }
 0xa81   :  { %19 = sbr.rel (!%p17_p4) target bundleno = 1 (0x1), region = 123 }

// kernel: plain_conv_unet_forward.9
= control target key start
LH: loop header
LB: loop body
LE: loop exit
PB: predicated region body
PF: predicated region fallthrough
CT: control target
= control target key end

     0   :  { %s5894_s21 = smov 0   ;;  %s6839_s0 = inlined_call_operand.vmem [shape: bf16[2,16,128], index: 0, kind: input, shape index: {}]   ;;  %s6840_s1 = inlined_call_operand.vmem [shape: bf16[2,8,384], index: 1, kind: input, shape index: {}]   ;;  %s6841_s2 = inlined_call_operand.vmem [shape: bf16[4,8,16], index: 2, kind: input, shape index: {}]   ;;  %s6842_s3 = inlined_call_operand.vmem [shape: f32[8,1], index: 3, kind: input, shape index: {}]   ;;  %s6843_s4 = inlined_call_operand.vmem [shape: bf16[4,100,384], index: 4, kind: input, shape index: {}]   ;;  %s6844_s5 = inlined_call_operand.vmem [shape: bf16[9,8,8], index: 5, kind: input, shape index: {}]   ;;  %s6845_s6 = inlined_call_operand.vmem [shape: bf16[9,8,8], index: 6, kind: input, shape index: {}]   ;;  %s6846_s7 = inlined_call_operand.vmem [shape: f32[8,4], index: 7, kind: input, shape index: {}]   ;;  %s6847_s8 = inlined_call_operand.vmem [shape: bf16[9,8,8], index: 8, kind: input, shape index: {}]   ;;  %s6848_s9 = inlined_call_operand.vmem [shape: f32[1,324], index: 9, kind: input, shape index: {}]   ;;  %s6849_s10 = inlined_call_operand.vmem [shape: bf16[8,8], index: 10, kind: input, shape index: {}]   ;;  %s6850_s11 = inlined_call_operand.vmem [shape: f32[8,1], index: 11, kind: input, shape index: {}]   ;;  %s6851_s12 = inlined_call_operand.vmem [shape: f32[2,8,324], index: 12, kind: output, shape index: {}]  }
   0x1 LB: > { %s4747_s22 = sadd.s32 4294967295, %s5811_s21   ;;  %p4751_p0 = scmp.ge.s32.totalorder %s5811_s21, 1  ;;  %s5811_s21 = sphi %s5894_s21, %s22_s21  }
   0x2   : > { %p372_p1 = scmp.lt.s32.totalorder %s5811_s21, 3 }
   0x4   : > { %p373_p2 = pnand %p4751_p0, %p372_p1 }
   0x5   : > { %p419_p3 = scmp.lt.s32.totalorder (!%p373_p2), %s4747_s22, 1  ;;  %v5813_v0 = vmov (!%p373_p2), 0.0   ;;  %vm5814_vm0 = vmmov (!%p373_p2), 0   ;;  %v5815_v1 = vmov (!%p373_p2), 0   ;;  %s5816_s13 = smov (!%p373_p2), 117   ;;  %v439_v3 = vld [vmem:[%s6842_s3] sm:$0xff] (!%p373_p2) }
   0x6   : > { %376 = sbr.rel (%p373_p2) target bundleno = 3028 (0xbd4), region = 68  ;;  %5162 = vmatprep.subr.bf16.mxu0 (!%p373_p2), %v5813_v0  ;;  %5168 = vmatprep.subr.bf16.mxu1 (!%p373_p2), %v5813_v0  ;;  %3539 = vst [vmem:[#allocation3] sm:$0xff] (!%p373_p2), %v5815_v1  ;;  %3540 = vst [vmem:[#allocation3 + $0x8] sm:$0xf] (!%p373_p2), %v5815_v1  ;;  %v5688_v4 = vld [vmem:[%s6843_s4 + $0xa0] ss:$12 sps:$4 sm:$0xff] (!%p373_p2)  }
   0x7   : > { %5164 = vmatprep.mubr.msk.bf16.mxu0 (!%p373_p2), %vm5814_vm0, %v5813_v0  ;;  %5170 = vmatprep.mubr.msk.bf16.mxu1 (!%p373_p2), %vm5814_vm0, %v5813_v0  ;;  %v438_v6 = vld [vmem:[%s6841_s2] sm:$0xf] (!%p373_p2)  ;;  %vm453_vm1 = vcmask (!%p373_p2), 130048   ;;  %v4758_v7 = vld [vmem:[%s6841_s2 + $0x4] sm:$0xf] (!%p373_p2)  ;;  %vm705_vm2 = vcmask (!%p373_p2), 1041408  }
   0x8   : > { %5676 = vset.pattern.permute.xlu0 (!%p373_p2), %v5815_v1  ;;  %v5686_v8 = vld [vmem:[%s6843_s4 + $0x9c] ss:$12 sps:$4 sm:$0xff] (!%p373_p2)   ;;  %v5689_v9 = vld [vmem:[%s6843_s4 + $0xa4] ss:$12 sps:$4 sm:$0xff] (!%p373_p2)   ;;  %v5690_v11 = vld [vmem:[%s6843_s4 + $0xb4] ss:$12 sps:$4 sm:$0xff] (!%p373_p2)  }
   0x9   : > { %v5692_v10 = vld [vmem:[%s6843_s4 + $0xb8] ss:$12 sps:$4 sm:$0xff] (!%p373_p2)   ;;  %v5693_v12 = vld [vmem:[%s6843_s4 + $0xbc] ss:$12 sps:$4 sm:$0xff] (!%p373_p2)   ;;  %v5697_v15 = vld [vmem:[%s6843_s4 + $0xd4] ss:$12 sps:$4 sm:$0xff] (!%p373_p2)  }
   0xa   : > { %v5696_v13 = vld [vmem:[%s6843_s4 + $0xd0] ss:$12 sps:$4 sm:$0xff] (!%p373_p2)   ;;  %v5694_v14 = vld [vmem:[%s6843_s4 + $0xcc] ss:$12 sps:$4 sm:$0xff] (!%p373_p2)   ;;  %v5700_v16 = vld [vmem:[%s6843_s4 + $0xe8] ss:$12 sps:$4 sm:$0xff] (!%p373_p2)  }
   0xb   : > { %v5698_v17 = vld [vmem:[%s6843_s4 + $0xe4] ss:$12 sps:$4 sm:$0xff] (!%p373_p2)   ;;  %v5701_v18 = vld [vmem:[%s6843_s4 + $0xec] ss:$12 sps:$4 sm:$0xff] (!%p373_p2)   ;;  %v5702_v20 = vld [vmem:[%s6843_s4 + $0xfc] ss:$12 sps:$4 sm:$0xff] (!%p373_p2)  }
   0xc   : > { %v5704_v19 = vld [vmem:[%s6843_s4 + $0x100] ss:$12 sps:$4 sm:$0xff] (!%p373_p2)   ;;  %v5705_v21 = vld [vmem:[%s6843_s4 + $0x104] ss:$12 sps:$4 sm:$0xff] (!%p373_p2)   ;;  %v5709_v24 = vld [vmem:[%s6843_s4 + $0x11c] ss:$12 sps:$4 sm:$0xff] (!%p373_p2)  }
   0xd   : > { %s6866_s22 = smov (!%p419_p3, %s4747_s22), 1  ;;  %v5708_v22 = vld [vmem:[%s6843_s4 + $0x118] ss:$12 sps:$4 sm:$0xff]   ;;  %v5706_v23 = vld [vmem:[%s6843_s4 + $0x114] ss:$12 sps:$4 sm:$0xff]   ;;  %vm701_vm3 = vcmask 818176  }
   0xe   : > { %s5061_s23 = sshll.u32 %s6866_s22, 3  ;;  %s5650_s24 = smul.u32 12, %s6866_s22  ;;  %v4784_v25 = vld [vmem:[%s6843_s4 + $0x12c] sm:$0x33]  ;;  %v5716_v40 = vld [vmem:[%s6843_s4 + $0x8] ss:$12 sps:$4 sm:$0xff]  }
   0xf   : > { %s423_s27 = scalar_lea.vmem %s6839_s0, %s5061_s23  ;;  %v4805_v26 = vcombine.high %v4784_v25, %v4784_v25  ;;  %v4804_v27 = vcombine.low %v4784_v25, %v4784_v25  ;;  %v5712_v28 = vld [vmem:[%s6843_s4 + $0x134] ss:$0 sps:$4 sm:$0x33]   ;;  %v5715_v31 = vld [vmem:[%s6843_s4 + $0x4] ss:$12 sps:$4 sm:$0xff]   ;;  %s5817_s19 = smov 126  }
  0x10   : > { %s5921_s30 = scalar_lea.vmem %s6840_s1, %s5650_s24  ;;  %v5682_v2 = vld [vmem:[%s423_s27] sm:$0xff]   ;;  %v713_v30 = vsel %vm705_vm2, %v5712_v28, 0  ;;  %v5719_v44 = vld [vmem:[%s6843_s4 + $0x1c] ss:$12 sps:$4 sm:$0xff]   ;;  %v5727_v51 = vld [vmem:[%s6843_s4 + $0x4c] ss:$12 sps:$4 sm:$0xff]  }
  0x11   : > { %450 = vrot.lane.b32.xlu0 %v5682_v2, %s5816_s13  ;;  %v707_v29 = vsel %vm705_vm2, %v4804_v27, 0  ;;  %v5713_v37 = vld [vmem:[%s6843_s4] ss:$12 sps:$4 sm:$0xff]   ;;  %v5717_v46 = vld [vmem:[%s6843_s4 + $0x18] ss:$12 sps:$4 sm:$0xff]   ;;  %s5818_s20 = smov 127  }
  0x12   : > { %v5720_v47 = vld [vmem:[%s6843_s4 + $0x20] ss:$12 sps:$4 sm:$0xff]   ;;  %v5721_v49 = vld [vmem:[%s6843_s4 + $0x30] ss:$12 sps:$4 sm:$0xff]   ;;  %v5724_v50 = vld [vmem:[%s6843_s4 + $0x38] ss:$12 sps:$4 sm:$0xff]  }
  0x13   : > { %v5723_v48 = vld [vmem:[%s6843_s4 + $0x34] ss:$12 sps:$4 sm:$0xff]   ;;  %v5728_v53 = vld [vmem:[%s6843_s4 + $0x50] ss:$12 sps:$4 sm:$0xff]   ;;  %v5733_v59 = vld [vmem:[%s6843_s4 + $0x78] ss:$12 sps:$4 sm:$0xff]  }
  0x14   : > { %v5725_v52 = vld [vmem:[%s6843_s4 + $0x48] ss:$12 sps:$4 sm:$0xff]   ;;  %v5731_v54 = vld [vmem:[%s6843_s4 + $0x64] ss:$12 sps:$4 sm:$0xff]   ;;  %v5729_v55 = vld [vmem:[%s6843_s4 + $0x60] ss:$12 sps:$4 sm:$0xff]  }
  0x15   : > { %442 = vperm.xlu0 %5676, %v439_v3   ;;  %v5732_v56 = vld [vmem:[%s6843_s4 + $0x68] ss:$12 sps:$4 sm:$0xff]   ;;  %v5736_v60 = vld [vmem:[%s6843_s4 + $0x80] ss:$12 sps:$4 sm:$0xff]   ;;  %v5760_v25 = vld [vmem:[%s6843_s4 + $0x1b0] ss:$12 sps:$4 sm:$0xff]  }
  0x16   : > { %v5735_v57 = vld [vmem:[%s6843_s4 + $0x7c] ss:$12 sps:$4 sm:$0xff]   ;;  %v522_v58 = vld [vmem:[%s6843_s4 + $0x90] sm:$0x33]  ;;  %s5819_s23 = smov 110   ;;  %s5820_s24 = smov 109  }
  0x17   : > { %v4829_v61 = vcombine.high %v522_v58, %v522_v58  ;;  %v4828_v62 = vcombine.low %v522_v58, %v522_v58  ;;  %v5739_v63 = vld [vmem:[%s6843_s4 + $0x98] ss:$0 sps:$4 sm:$0x33]   ;;  %v5765_v27 = vld [vmem:[%s6843_s4 + $0x1d0] ss:$0 sps:$4 sm:$0x33]  }
  0x18   : > { %s5821_s25 = smov 108   ;;  %s5822_s26 = smov 92   ;;  %vm1573_vm4 = vcmask 1039360   ;;  %vm1580_vm5 = vcmask 1043456   ;;  %vm1576_vm6 = vcmask 64512   ;;  %vm1772_vm7 = vcmask 1031168  }
  0x19   : > { %v904_v3 = vsel %vm705_vm2, %v4828_v62, 0  ;;  %s5823_s27 = smov 91   ;;  %s5824_s28 = smov 90   ;;  %vm1879_vm8 = vcmask 900096   ;;  %vm1986_vm9 = vcmask 891904   ;;  %vm2093_vm10 = vcmask 883712  }
  0x1a   : > { %vm6855_vm11 = vcmask 752640   ;;  %vm6854_vm12 = vcmask 744448   ;;  %vm6853_vm13 = vcmask 736256   ;;  %vm6852_vm14 = vcmask 556032  }
  0x83   : > { %v5929_v5 = vpop.permute.xlu0 %450 }
  0x84   : > { %5163 = vmatpush3.bf16.msra.mxu0 %v5929_v5  ;;  %5169 = vmatpush3.bf16.msra.mxu1 %v5929_v5 }
  0x85   : > { %715 = vmatprep.subr.bf16.mxu0 %v5688_v4  ;;  %5174 = vmatprep.subr.bf16.mxu1 %v5813_v0  ;;  %v910_v4 = vsel %vm705_vm2, %v5739_v63, 0 }
  0x87   : > { %5165 = vmatmul.mubr.msk.bf16.vlgmr.msra.gmra.mrb[0].mxu0 %vm453_vm1, %v438_v6  ;;  %5171 = vmatmul.mubr.msk.bf16.vlgmr.msra.gmra.mrb[0].mxu1 %vm453_vm1, %v4758_v7  ;;  %v5742_v7 = vld [vmem:[%s6843_s4 + $0x13c] ss:$12 sps:$4 sm:$0xff]  }
  0x88   : > { %716 = vmatpush1.bf16.msra.mxu0 %v5686_v8  ;;  %5175 = vmatpush3.bf16.msra.mxu1 %v5689_v9  ;;  %v5743_v8 = vld [vmem:[%s6843_s4 + $0x140] ss:$12 sps:$4 sm:$0xff]   ;;  %v5747_v9 = vld [vmem:[%s6843_s4 + $0x158] ss:$12 sps:$4 sm:$0xff]  }
  0x89   : > { %717 = vmatprep.subr.bf16.mxu0 %v5692_v10  ;;  %5176 = vmatprep.subr.bf16.mxu1 %v5813_v0  ;;  %v4834_v10 = vld [vmem:[%s6841_s2 + $0x8] sm:$0xf] }
  0x8a   : > { %747 = vmatprep.mubr.bf16.mxu0 %v5815_v1  ;;  %5188 = vmatprep.mubr.msk.bf16.mxu1 %vm5814_vm0, %v5813_v0 }
  0x8c   : > { %718 = vmatpush1.bf16.msra.mxu0 %v5690_v11  ;;  %5177 = vmatpush3.bf16.msra.mxu1 %v5693_v12  ;;  %v5740_v11 = vld [vmem:[%s6843_s4 + $0x138] ss:$12 sps:$4 sm:$0xff]   ;;  %v5746_v12 = vld [vmem:[%s6843_s4 + $0x154] ss:$12 sps:$4 sm:$0xff]  }
  0x8d   : > { %719 = vmatprep.subr.bf16.mxu0 %v5696_v13  ;;  %5178 = vmatprep.subr.bf16.mxu1 %v5813_v0  ;;  %v5751_v13 = vld [vmem:[%s6843_s4 + $0x170] ss:$12 sps:$4 sm:$0xff]  }
  0x90   : > { %720 = vmatpush1.bf16.msra.mxu0 %v5694_v14  ;;  %5179 = vmatpush3.bf16.msra.mxu1 %v5697_v15  ;;  %v5744_v14 = vld [vmem:[%s6843_s4 + $0x150] ss:$12 sps:$4 sm:$0xff]   ;;  %v5750_v15 = vld [vmem:[%s6843_s4 + $0x16c] ss:$12 sps:$4 sm:$0xff]  }
  0x91   : > { %721 = vmatprep.subr.bf16.mxu0 %v5700_v16  ;;  %5180 = vmatprep.subr.bf16.mxu1 %v5813_v0  ;;  %v5755_v16 = vld [vmem:[%s6843_s4 + $0x188] ss:$12 sps:$4 sm:$0xff]  }
  0x94   : > { %722 = vmatpush1.bf16.msra.mxu0 %v5698_v17  ;;  %5181 = vmatpush3.bf16.msra.mxu1 %v5701_v18  ;;  %v6015_v32 = vpop.permute.xlu0 %442  ;;  %v5748_v17 = vld [vmem:[%s6843_s4 + $0x168] ss:$12 sps:$4 sm:$0xff]   ;;  %v5754_v18 = vld [vmem:[%s6843_s4 + $0x184] ss:$12 sps:$4 sm:$0xff]  }
  0x95   : > { %723 = vmatprep.subr.bf16.mxu0 %v5704_v19  ;;  %5182 = vmatprep.subr.bf16.mxu1 %v5813_v0  ;;  %v5759_v19 = vld [vmem:[%s6843_s4 + $0x1a0] ss:$12 sps:$4 sm:$0xff]  }
  0x98   : > { %724 = vmatpush1.bf16.msra.mxu0 %v5702_v20  ;;  %5183 = vmatpush3.bf16.msra.mxu1 %v5705_v21  ;;  %v5752_v20 = vld [vmem:[%s6843_s4 + $0x180] ss:$12 sps:$4 sm:$0xff]   ;;  %v5758_v21 = vld [vmem:[%s6843_s4 + $0x19c] ss:$12 sps:$4 sm:$0xff]  }
  0x99   : > { %725 = vmatprep.subr.bf16.mxu0 %v5708_v22  ;;  %5184 = vmatprep.subr.bf16.mxu1 %v5813_v0  ;;  %v5763_v22 = vld [vmem:[%s6843_s4 + $0x1b8] ss:$12 sps:$4 sm:$0xff]  }
  0x9c   : > { %726 = vmatpush1.bf16.msra.mxu0 %v5706_v23  ;;  %5185 = vmatpush3.bf16.msra.mxu1 %v5709_v24  ;;  %v5756_v23 = vld [vmem:[%s6843_s4 + $0x198] ss:$12 sps:$4 sm:$0xff]   ;;  %v5762_v24 = vld [vmem:[%s6843_s4 + $0x1b4] ss:$12 sps:$4 sm:$0xff]  }
  0x9d   : > { %5186 = vmatprep.subr.bf16.mxu1 %v5813_v0  ;;  %4807 = vmatprep.subr.msk.bf16.mxu0 %vm705_vm2, %v4805_v26  ;;  %v4860_v26 = vld [vmem:[%s6843_s4 + $0x1c8] sm:$0x33] }
  0x9e   : > { %v4881_v28 = vcombine.high %v4860_v26, %v4860_v26 }
  0xa0   : > { %728 = vmatpush1.bf16.msra.mxu0 %v707_v29  ;;  %5187 = vmatpush3.bf16.msra.mxu1 %v713_v30  ;;  %v4880_v29 = vcombine.low %v4860_v26, %v4860_v26  ;;  %v1180_v30 = vsel %vm705_vm2, %v5765_v27, 0 }
  0xa1   : > { %5192 = vmatprep.subr.bf16.mxu1 %v5813_v0  ;;  %912 = vmatprep.subr.bf16.mxu0 %v5715_v31 }
  0xa2   : > { %v1174_v31 = vsel %vm705_vm2, %v4880_v29, 0 }
 0x15a   : > { %v491_v33 = vpop.f32.mrb[0].mxu0  ;;  %v563_v34 = vpop.f32.mrb[0].mxu1 }
 0x15b   : > { %v564_v35 = vadd.f32 %v563_v34, %v6015_v32  ;;  %v5172_v36 = vpop.f32.mrb[1].mxu1  ;;  %v5166_v38 = vpop.f32.mrb[1].mxu0  ;;  %v492_v2 = vadd.f32 %v491_v33, %v6015_v32  ;;  %v5769_v33 = vld [vmem:[%s6843_s4 + $0x1d8] ss:$12 sps:$4 sm:$0xff]  }
 0x15c   : > { %v566_v39 = vpop.f32.mrb[2].mxu1  ;;  %v494_v41 = vpop.f32.mrb[2].mxu0 }
 0x15d   : > { %v569_v42 = vpack.c.bf16 %v564_v35, %v564_v35  ;;  %v5173_v43 = vpop.f32.mrb[3].mxu1  ;;  %v5167_v45 = vpop.f32.mrb[3].mxu0  ;;  %v497_v6 = vpack.c.bf16 %v492_v2, %v492_v2  ;;  %v5773_v41 = vld [vmem:[%s6843_s4 + $0x1f0] ss:$12 sps:$4 sm:$0xff]  }
 0x15e   : > { %v5777_v43 = vld [vmem:[%s6843_s4 + $0x208] ss:$12 sps:$4 sm:$0xff]   ;;  %v5775_v45 = vld [vmem:[%s6843_s4 + $0x204] ss:$12 sps:$4 sm:$0xff]  }
 0x15f   : > { %4808 = vmatmul.mubr.msk.bf16.vlgmr.msra.gmra.mrb[4].mxu0 %vm701_vm3, %v569_v42  ;;  %5189 = vmatmul.mubr.msk.bf16.vlgmr.msra.gmra.mrb[4].mxu1 %vm701_vm3, %v569_v42  ;;  %v5771_v42 = vld [vmem:[%s6843_s4 + $0x1ec] ss:$12 sps:$4 sm:$0xff]  }
 0x160   : > { %913 = vmatpush1.bf16.msra.mxu0 %v5713_v37  ;;  %5193 = vmatpush3.bf16.msra.mxu1 %v5716_v40  ;;  %v5767_v40 = vld [vmem:[%s6843_s4 + $0x1d4] ss:$12 sps:$4 sm:$0xff]  }
 0x161   : > { %914 = vmatprep.subr.bf16.mxu0 %v5719_v44  ;;  %5194 = vmatprep.subr.bf16.mxu1 %v5813_v0  ;;  %v5770_v44 = vld [vmem:[%s6843_s4 + $0x1dc] ss:$12 sps:$4 sm:$0xff]  }
 0x162   : > { %944 = vmatprep.mubr.bf16.mxu0 %v5815_v1  ;;  %5206 = vmatprep.mubr.msk.bf16.mxu1 %vm5814_vm0, %v5813_v0 }
 0x164   : > { %915 = vmatpush1.bf16.msra.mxu0 %v5717_v46  ;;  %5195 = vmatpush3.bf16.msra.mxu1 %v5720_v47  ;;  %v5781_v46 = vld [vmem:[%s6843_s4 + $0x220] ss:$12 sps:$4 sm:$0xff]  }
 0x165   : > { %916 = vmatprep.subr.bf16.mxu0 %v5723_v48  ;;  %5196 = vmatprep.subr.bf16.mxu1 %v5813_v0  ;;  %v5774_v47 = vld [vmem:[%s6843_s4 + $0x1f4] ss:$12 sps:$4 sm:$0xff]   ;;  %v5779_v48 = vld [vmem:[%s6843_s4 + $0x21c] ss:$12 sps:$4 sm:$0xff]  }
 0x168   : > { %917 = vmatpush1.bf16.msra.mxu0 %v5721_v49  ;;  %5197 = vmatpush3.bf16.msra.mxu1 %v5724_v50  ;;  %v5785_v49 = vld [vmem:[%s6843_s4 + $0x238] ss:$12 sps:$4 sm:$0xff]  }
 0x169   : > { %918 = vmatprep.subr.bf16.mxu0 %v5727_v51  ;;  %5198 = vmatprep.subr.bf16.mxu1 %v5813_v0  ;;  %v5778_v50 = vld [vmem:[%s6843_s4 + $0x20c] ss:$12 sps:$4 sm:$0xff]   ;;  %v5783_v51 = vld [vmem:[%s6843_s4 + $0x234] ss:$12 sps:$4 sm:$0xff]  }
 0x16c   : > { %919 = vmatpush1.bf16.msra.mxu0 %v5725_v52  ;;  %5199 = vmatpush3.bf16.msra.mxu1 %v5728_v53  ;;  %v5789_v52 = vld [vmem:[%s6843_s4 + $0x250] ss:$12 sps:$4 sm:$0xff]  }
 0x16d   : > { %920 = vmatprep.subr.bf16.mxu0 %v5731_v54  ;;  %5200 = vmatprep.subr.bf16.mxu1 %v5813_v0  ;;  %v5782_v53 = vld [vmem:[%s6843_s4 + $0x224] ss:$12 sps:$4 sm:$0xff]   ;;  %v5787_v54 = vld [vmem:[%s6843_s4 + $0x24c] ss:$12 sps:$4 sm:$0xff]  }
 0x170   : > { %921 = vmatpush1.bf16.msra.mxu0 %v5729_v55  ;;  %5201 = vmatpush3.bf16.msra.mxu1 %v5732_v56  ;;  %v5786_v55 = vld [vmem:[%s6843_s4 + $0x23c] ss:$12 sps:$4 sm:$0xff]   ;;  %v5790_v56 = vld [vmem:[%s6843_s4 + $0x254] ss:$12 sps:$4 sm:$0xff]  }
 0x171   : > { %922 = vmatprep.subr.bf16.mxu0 %v5735_v57  ;;  %5202 = vmatprep.subr.bf16.mxu1 %v5813_v0  ;;  %v4912_v57 = vld [vmem:[%s6843_s4 + $0x264] sm:$0x33] }
 0x172   : > { %v4933_v58 = vcombine.high %v4912_v57, %v4912_v57 }
 0x174   : > { %923 = vmatpush1.bf16.msra.mxu0 %v5733_v59  ;;  %5203 = vmatpush3.bf16.msra.mxu1 %v5736_v60  ;;  %v4932_v59 = vcombine.low %v4912_v57, %v4912_v57  ;;  %v5793_v60 = vld [vmem:[%s6843_s4 + $0x26c] ss:$0 sps:$4 sm:$0x33]  }
 0x175   : > { %4831 = vmatprep.subr.msk.bf16.mxu0 %vm705_vm2, %v4829_v61  ;;  %5204 = vmatprep.subr.bf16.mxu1 %v5813_v0  ;;  %v1453_v62 = vsel %vm705_vm2, %v5793_v60, 0 }
 0x176   : > { %v1447_v61 = vsel %vm705_vm2, %v4932_v59, 0 }
 0x178   : > { %925 = vmatpush1.bf16.msra.mxu0 %v904_v3  ;;  %5205 = vmatpush3.bf16.msra.mxu1 %v910_v4 }
 0x179   : > { %5210 = vmatprep.subr.bf16.mxu0 %v5813_v0  ;;  %5216 = vmatprep.subr.bf16.mxu1 %v5813_v0 }
 0x17b   : > { %4832 = vmatmul.mubr.msk.bf16.vlgmr.msra.gmra.mrb[4].mxu0 %vm701_vm3, %v497_v6  ;;  %5207 = vmatmul.mubr.msk.bf16.vlgmr.msra.gmra.mrb[4].mxu1 %vm701_vm3, %v497_v6 }
 0x17c   : > { %5211 = vmatpush3.bf16.msra.mxu0 %v5929_v5  ;;  %5212 = vmatprep.mubr.msk.bf16.mxu0 %vm5814_vm0, %v5813_v0 }
 0x17d   : > { %1182 = vmatprep.subr.bf16.mxu0 %v5742_v7  ;;  %5217 = vmatpush3.bf16.msra.mxu1 %v5743_v8 }
 0x17e   : > { %5218 = vmatprep.subr.bf16.mxu1 %v5813_v0  ;;  %5230 = vmatprep.mubr.msk.bf16.mxu1 %vm5814_vm0, %v5813_v0 }
 0x181   : > { %5219 = vmatpush3.bf16.msra.mxu1 %v5747_v9 }
 0x182   : > { %5220 = vmatprep.subr.bf16.mxu1 %v5813_v0 }
 0x183   : > { %5213 = vmatmul.mubr.msk.bf16.vlgmr.msra.gmra.mrb[8].mxu0 %vm453_vm1, %v4834_v10 }
 0x184   : > { %1183 = vmatpush1.bf16.msra.mxu0 %v5740_v11  ;;  %1214 = vmatprep.mubr.bf16.mxu0 %v5815_v1 }
 0x185   : > { %1184 = vmatprep.subr.bf16.mxu0 %v5746_v12  ;;  %5221 = vmatpush3.bf16.msra.mxu1 %v5751_v13 }
 0x186   : > { %5222 = vmatprep.subr.bf16.mxu1 %v5813_v0 }
 0x188   : > { %1185 = vmatpush1.bf16.msra.mxu0 %v5744_v14 }
 0x189   : > { %1186 = vmatprep.subr.bf16.mxu0 %v5750_v15  ;;  %5223 = vmatpush3.bf16.msra.mxu1 %v5755_v16 }
 0x18a   : > { %5224 = vmatprep.subr.bf16.mxu1 %v5813_v0 }
 0x18c   : > { %1187 = vmatpush1.bf16.msra.mxu0 %v5748_v17 }
 0x18d   : > { %1188 = vmatprep.subr.bf16.mxu0 %v5754_v18  ;;  %5225 = vmatpush3.bf16.msra.mxu1 %v5759_v19  ;;  %v2514_v19 = vld [vmem:[%s5921_s30] sm:$0xff] }
 0x18e   : > { %5226 = vmatprep.subr.bf16.mxu1 %v5813_v0 }
 0x190   : > { %1189 = vmatpush1.bf16.msra.mxu0 %v5752_v20  ;;  %v6313_v20 = vcombine.high %v2514_v19, %v2514_v19 }
 0x191   : > { %1190 = vmatprep.subr.bf16.mxu0 %v5758_v21  ;;  %5227 = vmatpush3.bf16.msra.mxu1 %v5763_v22  ;;  %v6321_v21 = vcombine.low %v2514_v19, %v2514_v19  ;;  %v6328_v22 = vld [vmem:[%s5921_s30 + $0x8] ss:$0 sps:$4 sm:$0xff]   ;;  %s5826_s30 = smov 19  }
 0x192   : > { %5228 = vmatprep.subr.bf16.mxu1 %v5813_v0 }
 0x194   : > { %1191 = vmatpush1.bf16.msra.mxu0 %v5756_v23 }
 0x195   : > { %1192 = vmatprep.subr.bf16.mxu0 %v5762_v24  ;;  %5229 = vmatpush3.bf16.msra.mxu1 %v1180_v30 }
 0x196   : > { %5234 = vmatprep.subr.bf16.mxu1 %v5813_v0 }
 0x198   : > { %1193 = vmatpush1.bf16.msra.mxu0 %v5760_v25 }
 0x199   : > { %4883 = vmatprep.subr.msk.bf16.mxu0 %vm705_vm2, %v4881_v28 }
 0x19c   : > { %1195 = vmatpush1.bf16.msra.mxu0 %v1174_v31  ;;  %v4940_v31 = vld [vmem:[%s6844_s5 + $0x4] sm:$0xf] }
 0x19d   : > { %1455 = vmatprep.subr.bf16.mxu0 %v5769_v33 }
 0x256   : > { %v1032_v34 = vpop.f32.mrb[8].mxu0 }
 0x257   : > { %v1033_v35 = vadd.f32 %v1032_v34, %v6015_v32  ;;  %v5214_v36 = vpop.f32.mrb[9].mxu0 }
 0x258   : > { %v1035_v37 = vpop.f32.mrb[10].mxu0 }
 0x259   : > { %v1038_v38 = vpack.c.bf16 %v1033_v35, %v1033_v35  ;;  %v5215_v39 = vpop.f32.mrb[11].mxu0 }
 0x25a   : > { %v1554_v39 = vld [vmem:[%s6844_s5] sm:$0xf] }
 0x25b   : > { %4884 = vmatmul.mubr.msk.bf16.vlgmr.msra.gmra.mrb[4].mxu0 %vm701_vm3, %v1038_v38  ;;  %5231 = vmatmul.mubr.msk.bf16.vlgmr.msra.gmra.mrb[4].mxu1 %vm701_vm3, %v1038_v38 }
 0x25c   : > { %5235 = vmatpush3.bf16.msra.mxu1 %v5929_v5  ;;  %5236 = vmatprep.mubr.msk.bf16.mxu1 %vm5814_vm0, %v5813_v0  ;;  %v4886_v5 = vld [vmem:[%s6841_s2 + $0xc] sm:$0xf] }
 0x25d   : > { %5240 = vmatprep.subr.bf16.mxu1 %v5813_v0  ;;  %1456 = vmatpush1.bf16.msra.mxu0 %v5767_v40 }
 0x25e   : > { %1457 = vmatprep.subr.bf16.mxu0 %v5773_v41  ;;  %1487 = vmatprep.mubr.bf16.mxu0 %v5815_v1 }
 0x261   : > { %1458 = vmatpush1.bf16.msra.mxu0 %v5771_v42 }
 0x262   : > { %1459 = vmatprep.subr.bf16.mxu0 %v5777_v43 }
 0x263   : > { %5237 = vmatmul.mubr.msk.bf16.vlgmr.msra.gmra.mrb[8].mxu1 %vm453_vm1, %v4886_v5 }
 0x264   : > { %5241 = vmatpush3.bf16.msra.mxu1 %v5770_v44  ;;  %5254 = vmatprep.mubr.msk.bf16.mxu1 %vm5814_vm0, %v5813_v0 }
 0x265   : > { %5242 = vmatprep.subr.bf16.mxu1 %v5813_v0  ;;  %1460 = vmatpush1.bf16.msra.mxu0 %v5775_v45 }
 0x266   : > { %1461 = vmatprep.subr.bf16.mxu0 %v5781_v46  ;;  %v4950_v46 = vld [vmem:[%s6844_s5 + $0x8] sm:$0xf] }
 0x268   : > { %5243 = vmatpush3.bf16.msra.mxu1 %v5774_v47 }
 0x269   : > { %5244 = vmatprep.subr.bf16.mxu1 %v5813_v0  ;;  %1462 = vmatpush1.bf16.msra.mxu0 %v5779_v48 }
 0x26a   : > { %1463 = vmatprep.subr.bf16.mxu0 %v5785_v49 }
 0x26c   : > { %5245 = vmatpush3.bf16.msra.mxu1 %v5778_v50 }
 0x26d   : > { %5246 = vmatprep.subr.bf16.mxu1 %v5813_v0  ;;  %1464 = vmatpush1.bf16.msra.mxu0 %v5783_v51 }
 0x26e   : > { %1465 = vmatprep.subr.bf16.mxu0 %v5789_v52  ;;  %v6424_v52 = vld [vmem:[#allocation3] sm:$0xff] }
 0x270   : > { %5247 = vmatpush3.bf16.msra.mxu1 %v5782_v53 }
 0x271   : > { %5248 = vmatprep.subr.bf16.mxu1 %v5813_v0  ;;  %1466 = vmatpush1.bf16.msra.mxu0 %v5787_v54  ;;  %v4954_v54 = vld [vmem:[%s6844_s5 + $0xc] sm:$0xf] }
 0x272   : > { %4935 = vmatprep.subr.msk.bf16.mxu0 %vm705_vm2, %v4933_v58 }
 0x274   : > { %5249 = vmatpush3.bf16.msra.mxu1 %v5786_v55 }
 0x275   : > { %5250 = vmatprep.subr.bf16.mxu1 %v5813_v0  ;;  %1468 = vmatpush1.bf16.msra.mxu0 %v1447_v61 }
 0x278   : > { %5251 = vmatpush3.bf16.msra.mxu1 %v5790_v56 }
 0x279   : > { %5252 = vmatprep.subr.bf16.mxu1 %v5813_v0 }
 0x27c   : > { %5253 = vmatpush3.bf16.msra.mxu1 %v1453_v62  ;;  %v4958_v62 = vld [vmem:[%s6844_s5 + $0x10] sm:$0xf] }
 0x27d   : > { %5258 = vmatprep.subr.bf16.mxu1 %v5813_v0 }
 0x336   : > { %v1305_v63 = vpop.f32.mrb[8].mxu1 }
 0x337   : > { %v1306_v2 = vadd.f32 %v1305_v63, %v6015_v32  ;;  %v5238_v3 = vpop.f32.mrb[9].mxu1 }
 0x338   : > { %v1308_v4 = vpop.f32.mrb[10].mxu1 }
 0x339   : > { %v1311_v6 = vpack.c.bf16 %v1306_v2, %v1306_v2  ;;  %v5239_v7 = vpop.f32.mrb[11].mxu1 }
 0x33b   : > { %4936 = vmatmul.mubr.msk.bf16.vlgmr.msra.gmra.mrb[4].mxu0 %vm701_vm3, %v1311_v6  ;;  %5255 = vmatmul.mubr.msk.bf16.vlgmr.msra.gmra.mrb[4].mxu1 %vm701_vm3, %v1311_v6  ;;  %vm3562_vm3 = vcmask 1043608  }
 0x33c   : > { %5260 = vmatprep.mubr.msk.bf16.mxu1 %vm5814_vm0, %v5813_v0  ;;  %1622 = vmatprep.mubr.bf16.mxu0 %v5815_v1 }
 0x40e   : > { %v1489_v8 = vpop.f32.mrb[4].mxu0  ;;  %v1530_v9 = vpop.f32.mrb[4].mxu1 }
 0x40f   : > { %v5063_v10 = vpack.c.bf16 %v1530_v9, %v1530_v9  ;;  %v1491_v11 = vpop.f32.mrb[5].mxu0  ;;  %v5256_v12 = vpop.f32.mrb[5].mxu1  ;;  %v6264_v16 = vpack.c.bf16 %v1489_v8, %v1489_v8  ;;  %v4962_v9 = vld [vmem:[%s6844_s5 + $0x14] sm:$0xf] }
 0x410   : > { %v1493_v13 = vpop.f32.mrb[6].mxu0  ;;  %v1533_v32 = vpop.f32.mrb[6].mxu1  ;;  %v6270_v17 = vpack.c.bf16 %v1491_v11, %v1491_v11 }
 0x411   : > { %1553 = vst [vmem:[#allocation2 + $0x8] sm:$0xf] %v5063_v10  ;;  %v1494_v14 = vpop.f32.mrb[7].mxu0  ;;  %v5257_v15 = vpop.f32.mrb[7].mxu1  ;;  %1766 = vrot.lane.b32.xlu0 %v6264_v16, %s5817_s19  ;;  %1567 = vrot.lane.b32.xlu1 %v6264_v16, %s5818_s20  ;;  %v1675_v36 = vsel %vm1580_vm5, %v6264_v16, 0 }
 0x415   : > { %1569 = vrot.lane.b32.xlu1 %v6270_v17, %s5818_s20 }
 0x418   : > { %v6272_v18 = vld [vmem:[#allocation2 + $0x8] ss:$0 sps:$4 sm:$0xff]  }
 0x419   : > { %1770 = vrot.lane.b32.xlu0 %v6272_v18, %s5817_s19  ;;  %1571 = vrot.lane.b32.xlu1 %v6272_v18, %s5818_s20  ;;  %v1681_v34 = vsel %vm1580_vm5, %v6272_v18, 0 }
 0x41d   : > { %1875 = vrot.lane.b32.xlu0 %v6270_v17, %s5819_s23  ;;  %1768 = vrot.lane.b32.xlu1 %v6270_v17, %s5817_s19 }
 0x421   : > { %1980 = vrot.lane.b32.xlu0 %v6264_v16, %s5820_s24  ;;  %1873 = vrot.lane.b32.xlu1 %v6264_v16, %s5819_s23 }
 0x425   : > { %1984 = vrot.lane.b32.xlu0 %v6272_v18, %s5820_s24  ;;  %1877 = vrot.lane.b32.xlu1 %v6272_v18, %s5819_s23 }
 0x429   : > { %2089 = vrot.lane.b32.xlu0 %v6270_v17, %s5821_s25  ;;  %1982 = vrot.lane.b32.xlu1 %v6270_v17, %s5820_s24 }
 0x42d   : > { %2194 = vrot.lane.b32.xlu0 %v6264_v16, %s5822_s26  ;;  %2087 = vrot.lane.b32.xlu1 %v6264_v16, %s5821_s25 }
 0x431   : > { %2198 = vrot.lane.b32.xlu0 %v6272_v18, %s5822_s26  ;;  %2091 = vrot.lane.b32.xlu1 %v6272_v18, %s5821_s25 }
 0x435   : > { %2303 = vrot.lane.b32.xlu0 %v6270_v17, %s5823_s27  ;;  %2196 = vrot.lane.b32.xlu1 %v6270_v17, %s5822_s26 }
 0x439   : > { %2408 = vrot.lane.b32.xlu0 %v6264_v16, %s5824_s28  ;;  %2301 = vrot.lane.b32.xlu1 %v6264_v16, %s5823_s27  ;;  %v4966_v16 = vld [vmem:[%s6844_s5 + $0x18] sm:$0xf] }
 0x43d   : > { %2412 = vrot.lane.b32.xlu0 %v6272_v18, %s5824_s28  ;;  %2305 = vrot.lane.b32.xlu1 %v6272_v18, %s5823_s27 }
 0x441   : > { %2528 = vrot.lane.b32.xlu0 %v6313_v20, %s5818_s20  ;;  %2410 = vrot.lane.b32.xlu1 %v6270_v17, %s5824_s28 }
 0x445   : > { %2722 = vrot.lane.b32.xlu0 %v6321_v21, %s5817_s19  ;;  %2526 = vrot.lane.b32.xlu1 %v6321_v21, %s5818_s20 }
 0x449   : > { %2726 = vrot.lane.b32.xlu0 %v6328_v22, %s5817_s19  ;;  %2530 = vrot.lane.b32.xlu1 %v6328_v22, %s5818_s20 }
 0x44d   : > { %2830 = vrot.lane.b32.xlu0 %v6313_v20, %s5819_s23  ;;  %2724 = vrot.lane.b32.xlu1 %v6313_v20, %s5817_s19 }
 0x451   : > { %2934 = vrot.lane.b32.xlu0 %v6321_v21, %s5820_s24  ;;  %2828 = vrot.lane.b32.xlu1 %v6321_v21, %s5819_s23 }
 0x455   : > { %2938 = vrot.lane.b32.xlu0 %v6328_v22, %s5820_s24  ;;  %2832 = vrot.lane.b32.xlu1 %v6328_v22, %s5819_s23 }
 0x459   : > { %3042 = vrot.lane.b32.xlu0 %v6313_v20, %s5821_s25  ;;  %2936 = vrot.lane.b32.xlu1 %v6313_v20, %s5820_s24 }
 0x45d   : > { %3146 = vrot.lane.b32.xlu0 %v6321_v21, %s5822_s26  ;;  %3040 = vrot.lane.b32.xlu1 %v6321_v21, %s5821_s25 }
 0x461   : > { %3150 = vrot.lane.b32.xlu0 %v6328_v22, %s5822_s26  ;;  %3044 = vrot.lane.b32.xlu1 %v6328_v22, %s5821_s25 }
 0x465   : > { %3254 = vrot.lane.b32.xlu0 %v6313_v20, %s5823_s27  ;;  %3148 = vrot.lane.b32.xlu1 %v6313_v20, %s5822_s26 }
 0x469   : > { %3358 = vrot.lane.b32.xlu0 %v6321_v21, %s5824_s28  ;;  %3252 = vrot.lane.b32.xlu1 %v6321_v21, %s5823_s27 }
 0x46d   : > { %3362 = vrot.lane.b32.xlu0 %v6328_v22, %s5824_s28  ;;  %3256 = vrot.lane.b32.xlu1 %v6328_v22, %s5823_s27 }
 0x471   : > { %3360 = vrot.lane.b32.xlu1 %v6313_v20, %s5824_s28 }
 0x483   : > { %v1568_v23 = vpop.permute.xlu1 %1567  ;;  %v1767_v29 = vpop.permute.xlu0 %1766 }
 0x487   : > { %v1570_v24 = vpop.permute.xlu1 %1569 }
 0x488   : > { %v1574_v25 = vsel %vm1573_vm4, %v1568_v23, %v1570_v24 }
 0x489   : > { %v1582_v30 = vsel %vm1580_vm5, %v1574_v25, 0 }
 0x48b   : > { %v1572_v26 = vpop.permute.xlu1 %1571  ;;  %v1771_v35 = vpop.permute.xlu0 %1770 }
 0x48c   : > { %v1575_v27 = vsel %vm1573_vm4, %v1570_v24, %v1572_v26  ;;  %v1588_v28 = vsel %vm1580_vm5, %v1572_v26, 0  ;;  %v1785_v42 = vsel %vm1580_vm5, %v1771_v35, 0 }
 0x48d   : > { %4944 = vmatprep.subr.msk.bf16.mxu0 %vm1580_vm5, %v1575_v27  ;;  %5259 = vmatpush3.bf16.msra.mxu1 %v1588_v28  ;;  %v4970_v27 = vld [vmem:[%s6844_s5 + $0x1c] sm:$0xf] }
 0x48e   : > { %1591 = vmatpush1.bf16.msra.mxu0 %v1582_v30  ;;  %5264 = vmatprep.subr.bf16.mxu1 %v5813_v0 }
 0x48f   : > { %4947 = vmatprep.subr.msk.bf16.mxu0 %vm1580_vm5, %v6270_v17  ;;  %v1769_v33 = vpop.permute.xlu1 %1768  ;;  %v1876_v43 = vpop.permute.xlu0 %1875 }
 0x490   : > { %5261 = vmatmul.mubr.msk.bf16.vlgmr.msra.gmra.mrb[12].mxu1 %vm1576_vm6, %v4940_v31  ;;  %v1774_v37 = vsel %vm1772_vm7, %v1769_v33, %v1771_v35  ;;  %v1773_v40 = vsel %vm1772_vm7, %v1767_v29, %v1769_v33 }
 0x491   : > { %4945 = vmatmul.mubr.msk.bf16.vlgmr.msra.gmra.mrb[12].mxu0 %vm1576_vm6, %v4940_v31  ;;  %5265 = vmatpush3.bf16.msra.mxu1 %v1681_v34  ;;  %v1779_v5 = vsel %vm1580_vm5, %v1773_v40, 0  ;;  %v4978_v40 = vld [vmem:[%s6845_s6 + $0x4] sm:$0xf] }
 0x492   : > { %1684 = vmatpush1.bf16.msra.mxu0 %v1675_v36  ;;  %5266 = vmatprep.mubr.msk.bf16.mxu1 %vm5814_vm0, %v5813_v0  ;;  %v4974_v36 = vld [vmem:[%s6844_s5 + $0x20] sm:$0xf] }
 0x493   : > { %4951 = vmatprep.subr.msk.bf16.mxu0 %vm1580_vm5, %v1774_v37  ;;  %5270 = vmatprep.subr.bf16.mxu1 %v5813_v0  ;;  %v1874_v38 = vpop.permute.xlu1 %1873  ;;  %v1981_v45 = vpop.permute.xlu0 %1980 }
 0x494   : > { %1715 = vmatprep.mubr.bf16.mxu0 %v5815_v1  ;;  %v1880_v47 = vsel %vm1879_vm8, %v1874_v38, %v1876_v43 }
 0x495   : > { %v1886_v51 = vsel %vm1580_vm5, %v1880_v47, 0 }
 0x497   : > { %v1878_v41 = vpop.permute.xlu1 %1877  ;;  %v1985_v50 = vpop.permute.xlu0 %1984 }
 0x498   : > { %v1881_v44 = vsel %vm1879_vm8, %v1876_v43, %v1878_v41  ;;  %v1892_v49 = vsel %vm1580_vm5, %v1878_v41, 0  ;;  %v1999_v57 = vsel %vm1580_vm5, %v1985_v50, 0  ;;  %v2637_v43 = vsel %vm1580_vm5, %v6328_v22, 0  ;;  %v2513_v22 = vld [vmem:[%s6845_s6] sm:$0xf] }
 0x49b   : > { %v1983_v48 = vpop.permute.xlu1 %1982  ;;  %v2090_v58 = vpop.permute.xlu0 %2089 }
 0x49c   : > { %5267 = vmatmul.mubr.msk.bf16.vlgmr.msra.gmra.mrb[12].mxu1 %vm1576_vm6, %v1554_v39  ;;  %v1987_v55 = vsel %vm1986_vm9, %v1981_v45, %v1983_v48 }
 0x49d   : > { %5271 = vmatpush3.bf16.msra.mxu1 %v1785_v42  ;;  %4948 = vmatmul.mubr.msk.bf16.vlgmr.msra.gmra.mrb[12].mxu0 %vm1576_vm6, %v1554_v39  ;;  %v1993_v59 = vsel %vm1580_vm5, %v1987_v55, 0 }
 0x49e   : > { %1788 = vmatpush1.bf16.msra.mxu0 %v1779_v5  ;;  %5272 = vmatprep.mubr.msk.bf16.mxu1 %vm5814_vm0, %v5813_v0  ;;  %v2631_v5 = vsel %vm1580_vm5, %v6321_v21, 0 }
 0x49f   : > { %4955 = vmatprep.subr.msk.bf16.mxu0 %vm1580_vm5, %v1881_v44  ;;  %5276 = vmatprep.subr.bf16.mxu1 %v5813_v0  ;;  %v2088_v53 = vpop.permute.xlu1 %2087  ;;  %v2195_v61 = vpop.permute.xlu0 %2194 }
 0x4a0   : > { %1819 = vmatprep.mubr.bf16.mxu0 %v5815_v1  ;;  %v1988_v1 = vsel %vm1986_vm9, %v1983_v48, %v1985_v50  ;;  %v2094_v63 = vsel %vm2093_vm10, %v2088_v53, %v2090_v58 }
 0x4a1   : > { %v2100_v6 = vsel %vm1580_vm5, %v2094_v63, 0 }
 0x4a3   : > { %v2092_v56 = vpop.permute.xlu1 %2091  ;;  %v2199_v4 = vpop.permute.xlu0 %2198 }
 0x4a4   : > { %v2095_v60 = vsel %vm2093_vm10, %v2090_v58, %v2092_v56  ;;  %v2106_v3 = vsel %vm1580_vm5, %v2092_v56, 0  ;;  %v2213_v12 = vsel %vm1580_vm5, %v2199_v4, 0 }
 0x4a7   : > { %v2197_v2 = vpop.permute.xlu1 %2196  ;;  %v2304_v13 = vpop.permute.xlu0 %2303 }
 0x4a8   : > { %5273 = vmatmul.mubr.msk.bf16.vlgmr.msra.gmra.mrb[12].mxu1 %vm1576_vm6, %v4950_v46  ;;  %v2202_v7 = vsel %vm6855_vm11, %v2197_v2, %v2199_v4  ;;  %v2201_v10 = vsel %vm6855_vm11, %v2195_v61, %v2197_v2 }
 0x4a9   : > { %5277 = vmatpush3.bf16.msra.mxu1 %v1892_v49  ;;  %4952 = vmatmul.mubr.msk.bf16.vlgmr.msra.gmra.mrb[12].mxu0 %vm1576_vm6, %v4950_v46  ;;  %v2207_v32 = vsel %vm1580_vm5, %v2201_v10, 0 }
 0x4aa   : > { %1895 = vmatpush1.bf16.msra.mxu0 %v1886_v51  ;;  %5278 = vmatprep.mubr.msk.bf16.mxu1 %vm5814_vm0, %v5813_v0 }
 0x4ab   : > { %4959 = vmatprep.subr.msk.bf16.mxu0 %vm1580_vm5, %v1988_v1  ;;  %5282 = vmatprep.subr.bf16.mxu1 %v5813_v0  ;;  %v2302_v8 = vpop.permute.xlu1 %2301  ;;  %v2409_v15 = vpop.permute.xlu0 %2408  ;;  %v4988_v1 = vld [vmem:[%s6845_s6 + $0x8] sm:$0xf] }
 0x4ac   : > { %1926 = vmatprep.mubr.bf16.mxu0 %v6424_v52  ;;  %v2308_v17 = vsel %vm6854_vm12, %v2302_v8, %v2304_v13 }
 0x4ad   : > { %v2314_v24 = vsel %vm1580_vm5, %v2308_v17, 0 }
 0x4af   : > { %v2306_v11 = vpop.permute.xlu1 %2305  ;;  %v2413_v23 = vpop.permute.xlu0 %2412 }
 0x4b0   : > { %v2309_v14 = vsel %vm6854_vm12, %v2304_v13, %v2306_v11  ;;  %v2320_v19 = vsel %vm1580_vm5, %v2306_v11, 0  ;;  %v2427_v31 = vsel %vm1580_vm5, %v2413_v23, 0 }
 0x4b3   : > { %v2411_v18 = vpop.permute.xlu1 %2410  ;;  %v2529_v28 = vpop.permute.xlu0 %2528 }
 0x4b4   : > { %5279 = vmatmul.mubr.msk.bf16.vlgmr.msra.gmra.mrb[12].mxu1 %vm1576_vm6, %v4954_v54  ;;  %v2416_v25 = vsel %vm6853_vm13, %v2411_v18, %v2413_v23  ;;  %v2415_v30 = vsel %vm6853_vm13, %v2409_v15, %v2411_v18 }
 0x4b5   : > { %5283 = vmatpush3.bf16.msra.mxu1 %v1999_v57  ;;  %4956 = vmatmul.mubr.msk.bf16.vlgmr.msra.gmra.mrb[12].mxu0 %vm1576_vm6, %v4954_v54  ;;  %v2421_v34 = vsel %vm1580_vm5, %v2415_v30, 0 }
 0x4b6   : > { %2002 = vmatpush1.bf16.msra.mxu0 %v1993_v59  ;;  %5284 = vmatprep.mubr.msk.bf16.mxu1 %vm5814_vm0, %v5813_v0 }
 0x4b7   : > { %4963 = vmatprep.subr.msk.bf16.mxu0 %vm1580_vm5, %v2095_v60  ;;  %5288 = vmatprep.subr.bf16.mxu1 %v5813_v0  ;;  %v2527_v26 = vpop.permute.xlu1 %2526  ;;  %v2723_v39 = vpop.permute.xlu0 %2722  ;;  %v4992_v60 = vld [vmem:[%s6845_s6 + $0xc] sm:$0xf] }
 0x4b8   : > { %2033 = vmatprep.mubr.bf16.mxu0 %v6424_v52  ;;  %v2532_v35 = vsel %vm1573_vm4, %v2527_v26, %v2529_v28 }
 0x4b9   : > { %v2538_v38 = vsel %vm1580_vm5, %v2532_v35, 0 }
 0x4bb   : > { %v2531_v29 = vpop.permute.xlu1 %2530  ;;  %v2727_v41 = vpop.permute.xlu0 %2726 }
 0x4bc   : > { %v2533_v33 = vsel %vm1573_vm4, %v2529_v28, %v2531_v29  ;;  %v2544_v37 = vsel %vm1580_vm5, %v2531_v29, 0  ;;  %v2740_v47 = vsel %vm1580_vm5, %v2727_v41, 0 }
 0x4bf   : > { %v2725_v42 = vpop.permute.xlu1 %2724  ;;  %v2831_v45 = vpop.permute.xlu0 %2830 }
 0x4c0   : > { %5285 = vmatmul.mubr.msk.bf16.vlgmr.msra.gmra.mrb[12].mxu1 %vm1576_vm6, %v4958_v62  ;;  %v2729_v44 = vsel %vm1772_vm7, %v2725_v42, %v2727_v41  ;;  %v2728_v21 = vsel %vm1772_vm7, %v2723_v39, %v2725_v42  ;;  %v435_v41 = vld [vmem:[%s6848_s9] sm:$0x7] }
 0x4c1   : > { %5289 = vmatpush3.bf16.msra.mxu1 %v2106_v3  ;;  %4960 = vmatmul.mubr.msk.bf16.vlgmr.msra.gmra.mrb[12].mxu0 %vm1576_vm6, %v4958_v62  ;;  %v2734_v48 = vsel %vm1580_vm5, %v2728_v21, 0 }
 0x4c2   : > { %2109 = vmatpush1.bf16.msra.mxu0 %v2100_v6  ;;  %5290 = vmatprep.mubr.msk.bf16.mxu1 %vm5814_vm0, %v5813_v0 }
 0x4c3   : > { %4967 = vmatprep.subr.msk.bf16.mxu0 %vm1580_vm5, %v2202_v7  ;;  %5294 = vmatprep.subr.bf16.mxu1 %v5813_v0  ;;  %v2935_v50 = vpop.permute.xlu0 %2934  ;;  %v4996_v7 = vld [vmem:[%s6845_s6 + $0x10] sm:$0xf] }
 0x4c4   : > { %2140 = vmatprep.mubr.bf16.mxu0 %v6424_v52 }
 0x4c7   : > { %v2939_v53 = vpop.permute.xlu0 %2938 }
 0x4c8   : > { %v2952_v63 = vsel %vm1580_vm5, %v2939_v53, 0 }
 0x4cb   : > { %v3043_v61 = vpop.permute.xlu0 %3042 }
 0x4cc   : > { %5291 = vmatmul.mubr.msk.bf16.vlgmr.msra.gmra.mrb[12].mxu1 %vm1576_vm6, %v4962_v9 }
 0x4cd   : > { %5295 = vmatpush3.bf16.msra.mxu1 %v2213_v12  ;;  %4964 = vmatmul.mubr.msk.bf16.vlgmr.msra.gmra.mrb[12].mxu0 %vm1576_vm6, %v4962_v9 }
 0x4ce   : > { %2216 = vmatpush1.bf16.msra.mxu0 %v2207_v32  ;;  %5296 = vmatprep.mubr.msk.bf16.mxu1 %vm5814_vm0, %v5813_v0 }
 0x4cf   : > { %4971 = vmatprep.subr.msk.bf16.mxu0 %vm1580_vm5, %v2309_v14  ;;  %5300 = vmatprep.subr.bf16.mxu1 %v5813_v0  ;;  %v3147_v4 = vpop.permute.xlu0 %3146  ;;  %v5000_v14 = vld [vmem:[%s6845_s6 + $0x14] sm:$0xf] }
 0x4d0   : > { %2247 = vmatprep.mubr.bf16.mxu0 %v6424_v52 }
 0x4d3   : > { %v3151_v8 = vpop.permute.xlu0 %3150 }
 0x4d4   : > { %v3164_v17 = vsel %vm1580_vm5, %v3151_v8, 0 }
 0x4d7   : > { %v3255_v15 = vpop.permute.xlu0 %3254 }
 0x4d8   : > { %5297 = vmatmul.mubr.msk.bf16.vlgmr.msra.gmra.mrb[12].mxu1 %vm1576_vm6, %v4966_v16 }
 0x4d9   : > { %5301 = vmatpush3.bf16.msra.mxu1 %v2320_v19  ;;  %4968 = vmatmul.mubr.msk.bf16.vlgmr.msra.gmra.mrb[12].mxu0 %vm1576_vm6, %v4966_v16 }
 0x4da   : > { %2323 = vmatpush1.bf16.msra.mxu0 %v2314_v24  ;;  %5302 = vmatprep.mubr.msk.bf16.mxu1 %vm5814_vm0, %v5813_v0 }
 0x4db   : > { %4975 = vmatprep.subr.msk.bf16.mxu0 %vm1580_vm5, %v2416_v25  ;;  %5306 = vmatprep.subr.bf16.mxu1 %v5813_v0  ;;  %v3359_v23 = vpop.permute.xlu0 %3358  ;;  %v5004_v25 = vld [vmem:[%s6845_s6 + $0x18] sm:$0xf] }
 0x4dc   : > { %2354 = vmatprep.mubr.bf16.mxu0 %v6424_v52 }
 0x4df   : > { %v3363_v26 = vpop.permute.xlu0 %3362 }
 0x4e4   : > { %5303 = vmatmul.mubr.msk.bf16.vlgmr.msra.gmra.mrb[12].mxu1 %vm1576_vm6, %v4970_v27 }
 0x4e5   : > { %5307 = vmatpush3.bf16.msra.mxu1 %v2427_v31  ;;  %4972 = vmatmul.mubr.msk.bf16.vlgmr.msra.gmra.mrb[12].mxu0 %vm1576_vm6, %v4970_v27 }
 0x4e6   : > { %2430 = vmatpush1.bf16.msra.mxu0 %v2421_v34  ;;  %5308 = vmatprep.mubr.msk.bf16.mxu1 %vm5814_vm0, %v5813_v0  ;;  %v3376_v34 = vsel %vm1580_vm5, %v3363_v26, 0 }
 0x4e7   : > { %2461 = vmatprep.mubr.bf16.mxu0 %v6424_v52  ;;  %4982 = vmatprep.subr.msk.bf16.mxu0 %vm1580_vm5, %v2533_v33  ;;  %v5008_v33 = vld [vmem:[%s6845_s6 + $0x1c] sm:$0xf] }
 0x4e8   : > { %5312 = vmatprep.subr.bf16.mxu1 %v5813_v0 }
 0x4f0   : > { %5309 = vmatmul.mubr.msk.bf16.vlgmr.msra.gmra.mrb[12].mxu1 %vm1576_vm6, %v4974_v36 }
 0x4f1   : > { %4976 = vmatmul.mubr.msk.bf16.vlgmr.msra.gmra.mrb[12].mxu0 %vm1576_vm6, %v4974_v36  ;;  %5313 = vmatpush3.bf16.msra.mxu1 %v2544_v37  ;;  %v5012_v36 = vld [vmem:[%s6845_s6 + $0x20] sm:$0xf]  ;;  %v3467_v37 = vlaneseq }
 0x4f2   : > { %2547 = vmatpush1.bf16.msra.mxu0 %v2538_v38  ;;  %5314 = vmatprep.mubr.msk.bf16.mxu1 %vm5814_vm0, %v5813_v0 }
 0x4f3   : > { %2578 = vmatprep.mubr.bf16.mxu0 %v6424_v52  ;;  %4985 = vmatprep.subr.msk.bf16.mxu0 %vm1580_vm5, %v6313_v20  ;;  %v2829_v20 = vpop.permute.xlu1 %2828  ;;  %v3468_v38 = vshrl.u32 %v3467_v37, 7 }
 0x4f4   : > { %5318 = vmatprep.subr.bf16.mxu1 %v5813_v0  ;;  %v2834_v51 = vsel %vm1879_vm8, %v2829_v20, %v2831_v45 }
 0x4f5   : > { %v2840_v56 = vsel %vm1580_vm5, %v2834_v51, 0  ;;  %v3477_v39 = vsub.s32 2, %v3468_v38  ;;  %v3473_v42 = vsub.s32 1, %v3468_v38 }
 0x4f7   : > { %v2833_v46 = vpop.permute.xlu1 %2832 }
 0x4f8   : > { %v2835_v49 = vsel %vm1879_vm8, %v2831_v45, %v2833_v46  ;;  %v2846_v55 = vsel %vm1580_vm5, %v2833_v46, 0 }
 0x4fb   : > { %v2937_v54 = vpop.permute.xlu1 %2936 }
 0x4fc   : > { %5315 = vmatmul.mubr.msk.bf16.vlgmr.msra.gmra.mrb[12].mxu1 %vm1576_vm6, %v4978_v40  ;;  %v2941_v57 = vsel %vm1986_vm9, %v2937_v54, %v2939_v53  ;;  %v2940_v59 = vsel %vm1986_vm9, %v2935_v50, %v2937_v54 }
 0x4fd   : > { %4983 = vmatmul.mubr.msk.bf16.vlgmr.msra.gmra.mrb[12].mxu0 %vm1576_vm6, %v4978_v40  ;;  %5319 = vmatpush3.bf16.msra.mxu1 %v2637_v43  ;;  %v2946_v2 = vsel %vm1580_vm5, %v2940_v59, 0  ;;  %v3469_v40 = vsub.s32 0, %v3468_v38  ;;  %v6633_v43 = vrot.slane %v435_v41, %v3477_v39 }
 0x4fe   : > { %2640 = vmatpush1.bf16.msra.mxu0 %v2631_v5  ;;  %5320 = vmatprep.mubr.msk.bf16.mxu1 %vm5814_vm0, %v5813_v0 }
 0x4ff   : > { %2671 = vmatprep.mubr.bf16.mxu0 %v6424_v52  ;;  %4989 = vmatprep.subr.msk.bf16.mxu0 %vm1580_vm5, %v2729_v44  ;;  %v3041_v58 = vpop.permute.xlu1 %3040  ;;  %v6635_v5 = vrot.slane %v435_v41, %v3469_v40  ;;  %v6637_v44 = vrot.slane %v435_v41, %v3473_v42 }
 0x500   : > { %5324 = vmatprep.subr.bf16.mxu1 %v5813_v0  ;;  %v3046_v6 = vsel %vm2093_vm10, %v3041_v58, %v3043_v61 }
 0x501   : > { %v3052_v11 = vsel %vm1580_vm5, %v3046_v6, 0 }
 0x503   : > { %v3045_v62 = vpop.permute.xlu1 %3044 }
 0x504   : > { %v3047_v3 = vsel %vm2093_vm10, %v3043_v61, %v3045_v62  ;;  %v3058_v10 = vsel %vm1580_vm5, %v3045_v62, 0 }
 0x507   : > { %v3149_v9 = vpop.permute.xlu1 %3148 }
 0x508   : > { %5321 = vmatmul.mubr.msk.bf16.vlgmr.msra.gmra.mrb[12].mxu1 %vm1576_vm6, %v2513_v22  ;;  %v3153_v12 = vsel %vm6855_vm11, %v3149_v9, %v3151_v8  ;;  %v3152_v32 = vsel %vm6855_vm11, %v3147_v4, %v3149_v9  ;;  %vm3566_vm11 = vcmask 707584  }
 0x509   : > { %4986 = vmatmul.mubr.msk.bf16.vlgmr.msra.gmra.mrb[12].mxu0 %vm1576_vm6, %v2513_v22  ;;  %5325 = vmatpush3.bf16.msra.mxu1 %v2740_v47  ;;  %v3158_v18 = vsel %vm1580_vm5, %v3152_v32, 0 }
 0x50a   : > { %2743 = vmatpush1.bf16.msra.mxu0 %v2734_v48  ;;  %5326 = vmatprep.mubr.msk.bf16.mxu1 %vm5814_vm0, %v5813_v0 }
 0x50b   : > { %2774 = vmatprep.mubr.bf16.mxu0 %v6424_v52  ;;  %4993 = vmatprep.subr.msk.bf16.mxu0 %vm1580_vm5, %v2835_v49  ;;  %v3253_v13 = vpop.permute.xlu1 %3252 }
 0x50c   : > { %5330 = vmatprep.subr.bf16.mxu1 %v5813_v0  ;;  %v3258_v24 = vsel %vm6854_vm12, %v3253_v13, %v3255_v15 }
 0x50d   : > { %v3264_v29 = vsel %vm1580_vm5, %v3258_v24, 0 }
 0x50f   : > { %v3257_v16 = vpop.permute.xlu1 %3256 }
 0x510   : > { %v3259_v19 = vsel %vm6854_vm12, %v3255_v15, %v3257_v16  ;;  %v3270_v28 = vsel %vm1580_vm5, %v3257_v16, 0 }
 0x513   : > { %v3361_v27 = vpop.permute.xlu1 %3360 }
 0x514   : > { %5327 = vmatmul.mubr.msk.bf16.vlgmr.msra.gmra.mrb[12].mxu1 %vm1576_vm6, %v4988_v1  ;;  %v3365_v30 = vsel %vm6853_vm13, %v3361_v27, %v3363_v26  ;;  %v3364_v31 = vsel %vm6853_vm13, %v3359_v23, %v3361_v27  ;;  %vm3557_vm13 = vcmask 154624  }
 0x515   : > { %4990 = vmatmul.mubr.msk.bf16.vlgmr.msra.gmra.mrb[12].mxu0 %vm1576_vm6, %v4988_v1  ;;  %5331 = vmatpush3.bf16.msra.mxu1 %v2846_v55  ;;  %v3370_v35 = vsel %vm1580_vm5, %v3364_v31, 0 }
 0x516   : > { %2849 = vmatpush1.bf16.msra.mxu0 %v2840_v56  ;;  %5332 = vmatprep.mubr.msk.bf16.mxu1 %vm5814_vm0, %v5813_v0  ;;  %v6646_v56 = vld [vmem:[%s6846_s7] sm:$0xff] }
 0x517   : > { %2880 = vmatprep.mubr.bf16.mxu0 %v6424_v52  ;;  %4997 = vmatprep.subr.msk.bf16.mxu0 %vm1580_vm5, %v2941_v57  ;;  %v5825_v57 = vmov 1  }
 0x518   : > { %5336 = vmatprep.subr.bf16.mxu1 %v5813_v0  ;;  %5677 = vset.pattern.permute.xlu1 %v5825_v57  ;;  %v5018_v57 = vld [vmem:[%s6847_s8 + $0x4] sm:$0xf] }
 0x520   : > { %5333 = vmatmul.mubr.msk.bf16.vlgmr.msra.gmra.mrb[12].mxu1 %vm1576_vm6, %v4992_v60 }
 0x521   : > { %4994 = vmatmul.mubr.msk.bf16.vlgmr.msra.gmra.mrb[12].mxu0 %vm1576_vm6, %v4992_v60  ;;  %5337 = vmatpush3.bf16.msra.mxu1 %v2952_v63 }
 0x522   : > { %2955 = vmatpush1.bf16.msra.mxu0 %v2946_v2  ;;  %5338 = vmatprep.mubr.msk.bf16.mxu1 %vm5814_vm0, %v5813_v0 }
 0x523   : > { %2986 = vmatprep.mubr.bf16.mxu0 %v6424_v52  ;;  %5001 = vmatprep.subr.msk.bf16.mxu0 %vm1580_vm5, %v3047_v3 }
 0x524   : > { %5342 = vmatprep.subr.bf16.mxu1 %v5813_v0 }
 0x52c   : > { %5339 = vmatmul.mubr.msk.bf16.vlgmr.msra.gmra.mrb[12].mxu1 %vm1576_vm6, %v4996_v7 }
 0x52d   : > { %4998 = vmatmul.mubr.msk.bf16.vlgmr.msra.gmra.mrb[12].mxu0 %vm1576_vm6, %v4996_v7  ;;  %5343 = vmatpush3.bf16.msra.mxu1 %v3058_v10 }
 0x52e   : > { %3061 = vmatpush1.bf16.msra.mxu0 %v3052_v11  ;;  %5344 = vmatprep.mubr.msk.bf16.mxu1 %vm5814_vm0, %v5813_v0 }
 0x52f   : > { %3092 = vmatprep.mubr.bf16.mxu0 %v6424_v52  ;;  %5005 = vmatprep.subr.msk.bf16.mxu0 %vm1580_vm5, %v3153_v12 }
 0x530   : > { %5348 = vmatprep.subr.bf16.mxu1 %v5813_v0 }
 0x538   : > { %5345 = vmatmul.mubr.msk.bf16.vlgmr.msra.gmra.mrb[12].mxu1 %vm1576_vm6, %v5000_v14 }
 0x539   : > { %5002 = vmatmul.mubr.msk.bf16.vlgmr.msra.gmra.mrb[12].mxu0 %vm1576_vm6, %v5000_v14  ;;  %5349 = vmatpush3.bf16.msra.mxu1 %v3164_v17 }
 0x53a   : > { %3167 = vmatpush1.bf16.msra.mxu0 %v3158_v18  ;;  %5350 = vmatprep.mubr.msk.bf16.mxu1 %vm5814_vm0, %v5813_v0 }
 0x53b   : > { %3198 = vmatprep.mubr.bf16.mxu0 %v6424_v52  ;;  %5009 = vmatprep.subr.msk.bf16.mxu0 %vm1580_vm5, %v3259_v19 }
 0x53c   : > { %5354 = vmatprep.subr.bf16.mxu1 %v5813_v0 }
 0x544   : > { %5351 = vmatmul.mubr.msk.bf16.vlgmr.msra.gmra.mrb[12].mxu1 %vm1576_vm6, %v5004_v25 }
 0x545   : > { %5006 = vmatmul.mubr.msk.bf16.vlgmr.msra.gmra.mrb[12].mxu0 %vm1576_vm6, %v5004_v25  ;;  %5355 = vmatpush3.bf16.msra.mxu1 %v3270_v28 }
 0x546   : > { %3273 = vmatpush1.bf16.msra.mxu0 %v3264_v29  ;;  %5356 = vmatprep.mubr.msk.bf16.mxu1 %vm5814_vm0, %v5813_v0 }
 0x547   : > { %3304 = vmatprep.mubr.bf16.mxu0 %v6424_v52  ;;  %5013 = vmatprep.subr.msk.bf16.mxu0 %vm1580_vm5, %v3365_v30 }
 0x548   : > { %5360 = vmatprep.subr.bf16.mxu1 %v5813_v0 }
 0x550   : > { %5357 = vmatmul.mubr.msk.bf16.vlgmr.msra.gmra.mrb[12].mxu1 %vm1576_vm6, %v5008_v33 }
 0x551   : > { %5010 = vmatmul.mubr.msk.bf16.vlgmr.msra.gmra.mrb[12].mxu0 %vm1576_vm6, %v5008_v33  ;;  %5361 = vmatpush3.bf16.msra.mxu1 %v3376_v34 }
 0x552   : > { %3379 = vmatpush1.bf16.msra.mxu0 %v3370_v35  ;;  %5362 = vmatprep.mubr.msk.bf16.mxu1 %vm5814_vm0, %v5813_v0 }
 0x553   : > { %3410 = vmatprep.mubr.bf16.mxu0 %v6424_v52  ;;  %5366 = vmatprep.subr.bf16.mxu1 %v5813_v0 }
 0x55c   : > { %5363 = vmatmul.mubr.msk.bf16.vlgmr.msra.gmra.mrb[12].mxu1 %vm1576_vm6, %v5012_v36 }
 0x55d   : > { %5014 = vmatmul.mubr.msk.bf16.vlgmr.msra.gmra.mrb[12].mxu0 %vm1576_vm6, %v5012_v36  ;;  %5368 = vmatprep.mubr.msk.bf16.mxu1 %vm5814_vm0, %v5813_v0 }
 0x55e   : > { %3633 = vmatprep.mubr.bf16.mxu0 %v6424_v52 }
 0x62f   : > { %v3453_v20 = vpop.f32.mrb[12].mxu1 }
 0x630   : > { %v3412_v21 = vpop.f32.mrb[12].mxu0  ;;  %v5364_v22 = vpop.f32.mrb[13].mxu1  ;;  %v3484_v45 = vmul.f32 %v6633_v43, %v3453_v20 }
 0x631   : > { %v3482_v46 = vmul.f32 %v6635_v5, %v3412_v21  ;;  %v3414_v47 = vpop.f32.mrb[13].mxu0  ;;  %v3456_v48 = vpop.f32.mrb[14].mxu1 }
 0x632   : > { %v3483_v49 = vmul.f32 %v6637_v44, %v3414_v47  ;;  %v3416_v50 = vpop.f32.mrb[14].mxu0  ;;  %v5365_v51 = vpop.f32.mrb[15].mxu1  ;;  %v3487_v54 = vsel %vm6852_vm14, %v3484_v45, 0.0 }
 0x633   : > { %v3417_v1 = vpop.f32.mrb[15].mxu0 }
 0x634   : > { %v3485_v53 = vadd.f32 %v3483_v49, %v3482_v46 }
 0x636   : > { %v3488_v55 = vadd.f32 %v3487_v54, %v3485_v53 }
 0x638   : > { %3489 = vadd.xlane.f32.xlu1 %v3488_v55 }
 0x649   : > { %3521 = vperm.xlu1 %5677, %v6646_v56  }
 0x6c5   : > { %v3490_v58 = vpop.xlane.xlu1 %3489 }
 0x6c6   : > { %v3491_v59 = vmul.f32 0.00390625, %v3490_v58 }
 0x6c8   : > { %v3492_v60 = vsub.f32 %v3412_v21, %v3491_v59  ;;  %v3493_v61 = vsub.f32 %v3414_v47, %v3491_v59  ;;  %v3494_v62 = vsub.f32 %v3453_v20, %v3491_v59 }
 0x6c9   : > { %v3522_v18 = vpop.permute.xlu1 %3521 }
 0x6ca   : > { %v3495_v63 = vmul.f32 %v3492_v60, %v6635_v5  ;;  %v3496_v2 = vmul.f32 %v3493_v61, %v6637_v44  ;;  %v3497_v3 = vmul.f32 %v3494_v62, %v6633_v43 }
 0x6cc   : > { %v3498_v4 = vmul.f32 %v3495_v63, %v3495_v63  ;;  %v3499_v6 = vmul.f32 %v3496_v2, %v3496_v2  ;;  %v3500_v7 = vmul.f32 %v3497_v3, %v3497_v3 }
 0x6ce   : > { %v3501_v8 = vadd.f32 %v3499_v6, %v3498_v4  ;;  %v3502_v9 = vsel %vm6852_vm14, %v3500_v7, 0.0  ;;  %vm3563_vm14 = vcmask 1047556  }
 0x6cf   : > { %vm3564_vm12 = vmor %vm3563_vm14, %vm3562_vm3 }
 0x6d0   : > { %v3503_v10 = vadd.f32 %v3502_v9, %v3501_v8 }
 0x6d2   : > { %3504 = vadd.xlane.f32.xlu0 %v3503_v10 }
 0x6e8   : > { %3514 = vperm.xlu0 %5676, %v6646_v56  }
 0x75f   : > { %v3505_v11 = vpop.xlane.xlu0 %3504 }
 0x760   : > { %v3506_v12 = vmul.f32 0.00390625, %v3505_v11  ;;  %v5028_v11 = vld [vmem:[%s6847_s8 + $0x8] sm:$0xf] }
 0x762   : > { %v3507_v13 = vadd.f32 1e-05, %v3506_v12 }
 0x764   : > { %5798 = vrsqrt.f32 %v3507_v13 }
 0x767   : > { %v3515_v17 = vpop.permute.xlu0 %3514 }
 0x76e   : > { %v5799_v32 = vpop.eup %5798 }
 0x76f   : > { %v3509_v14 = vmul.f32 %v5799_v32, %v3495_v63  ;;  %v3510_v15 = vmul.f32 %v5799_v32, %v3496_v2  ;;  %v3511_v16 = vmul.f32 %v5799_v32, %v3497_v3  ;;  %v3568_v2 = vld [vmem:[%s6847_s8] sm:$0xf] }
 0x771   : > { %v3517_v19 = vmul.f32 %v3515_v17, %v3509_v14  ;;  %v3518_v23 = vmul.f32 %v3515_v17, %v3510_v15  ;;  %v3519_v24 = vmul.f32 %v3515_v17, %v3511_v16 }
 0x773   : > { %v3524_v25 = vadd.f32 %v3522_v18, %v3517_v19  ;;  %v3525_v26 = vadd.f32 %v3522_v18, %v3518_v23  ;;  %v3526_v27 = vadd.f32 %v3522_v18, %v3519_v24  ;;  %v5032_v18 = vld [vmem:[%s6847_s8 + $0xc] sm:$0xf] }
 0x775   : > { %vm3527_vm15 = vcmp.gt.f32.partialorder %v3524_v25, 0.0  ;;  %vm3528_vm1 = vcmp.gt.f32.partialorder %v3525_v26, 0.0  ;;  %v3530_v28 = vmul.f32 0.01, %v3524_v25  ;;  %v3531_v29 = vmul.f32 0.01, %v3525_v26 }
 0x776   : > { %v3532_v30 = vmul.f32 0.01, %v3526_v27  ;;  %vm3529_vm2 = vcmp.gt.f32.partialorder %v3526_v27, 0.0 }
 0x777   : > { %v3533_v31 = vsel %vm3527_vm15, %v3524_v25, %v3530_v28  ;;  %v3534_v33 = vsel %vm3528_vm1, %v3525_v26, %v3531_v29  ;;  %v5036_v29 = vld [vmem:[%s6847_s8 + $0x10] sm:$0xf] }
 0x778   : > { %v3535_v34 = vsel %vm3529_vm2, %v3526_v27, %v3532_v30  ;;  %v3536_v35 = vmul.f32 %v3533_v31, %v6635_v5  ;;  %v3537_v36 = vmul.f32 %v3534_v33, %v6637_v44 }
 0x779   : > { %v3538_v37 = vmul.f32 %v3535_v34, %v6633_v43 }
 0x77a   : > { %v5064_v38 = vpack.c.bf16 %v3537_v36, %v3536_v35 }
 0x77b   : > { %v5065_v39 = vpack.c.bf16 %v3538_v37, %v3538_v37 }
 0x77c   : > { %3552 = vrot.lane.b32.xlu1 %v5064_v38, %s5826_s30  ;;  %v5040_v38 = vld [vmem:[%s6847_s8 + $0x14] sm:$0xf] }
 0x77d   : > { %3554 = vrot.lane.b32.xlu0 %v5065_v39, %s5826_s30 }
 0x7ee   : > { %v3553_v40 = vpop.permute.xlu1 %3552 }
 0x7ef   : > { %v3556_v41 = vrot.slane %v3553_v40, 4  ;;  %v3555_v42 = vpop.permute.xlu0 %3554 }
 0x7f1   : > { %v3558_v20 = vsel %vm3557_vm13, %v3556_v41, %v3553_v40  ;;  %v3559_v21 = vsel %vm3557_vm13, %v3556_v41, %v3555_v42 }
 0x7f2   : > { %3565 = vst.msk [vmem:[#allocation3] sm:$0xff] %vm3564_vm12, %v3558_v20  ;;  %vm6862_vm12 = vcmask 556032  }
 0x7f3   : > { %3567 = vst.msk [vmem:[#allocation3 + $0x8] sm:$0xf] %vm3566_vm11, %v3559_v21 }
 0x7f9   : > { %v3569_v22 = vld [vmem:[#allocation3] sm:$0xff] }
 0x7fa   : > { %v5019_v45 = vcombine.low %v3569_v22, %v3569_v22  ;;  %v5020_v46 = vcombine.high %v3569_v22, %v3569_v22  ;;  %v5797_v47 = vld [vmem:[#allocation3 + $0x8] ss:$0 sps:$4 sm:$0xff]  }
 0x7fb   : > { %v3692_v60 = vsel %vm1580_vm5, %v5797_v47, 0 }
 0x7fc   : > { %3583 = vrot.lane.b32.xlu0 %v5020_v46, %s5818_s20  ;;  %3581 = vrot.lane.b32.xlu1 %v5019_v45, %s5818_s20  ;;  %v3686_v61 = vsel %vm1580_vm5, %v5019_v45, 0 }
 0x800   : > { %3777 = vrot.lane.b32.xlu0 %v5019_v45, %s5817_s19  ;;  %3585 = vrot.lane.b32.xlu1 %v5797_v47, %s5818_s20 }
 0x804   : > { %3781 = vrot.lane.b32.xlu0 %v5797_v47, %s5817_s19  ;;  %3779 = vrot.lane.b32.xlu1 %v5020_v46, %s5817_s19 }
 0x808   : > { %3885 = vrot.lane.b32.xlu0 %v5020_v46, %s5819_s23  ;;  %3883 = vrot.lane.b32.xlu1 %v5019_v45, %s5819_s23 }
 0x80c   : > { %3989 = vrot.lane.b32.xlu0 %v5019_v45, %s5820_s24  ;;  %3887 = vrot.lane.b32.xlu1 %v5797_v47, %s5819_s23 }
 0x810   : > { %3993 = vrot.lane.b32.xlu0 %v5797_v47, %s5820_s24  ;;  %3991 = vrot.lane.b32.xlu1 %v5020_v46, %s5820_s24 }
 0x814   : > { %4097 = vrot.lane.b32.xlu0 %v5020_v46, %s5821_s25  ;;  %4095 = vrot.lane.b32.xlu1 %v5019_v45, %s5821_s25 }
 0x818   : > { %4201 = vrot.lane.b32.xlu0 %v5019_v45, %s5822_s26  ;;  %4099 = vrot.lane.b32.xlu1 %v5797_v47, %s5821_s25 }
 0x81c   : > { %4205 = vrot.lane.b32.xlu0 %v5797_v47, %s5822_s26  ;;  %4203 = vrot.lane.b32.xlu1 %v5020_v46, %s5822_s26 }
 0x820   : > { %4309 = vrot.lane.b32.xlu0 %v5020_v46, %s5823_s27  ;;  %4307 = vrot.lane.b32.xlu1 %v5019_v45, %s5823_s27 }
 0x824   : > { %4413 = vrot.lane.b32.xlu0 %v5019_v45, %s5824_s28  ;;  %4311 = vrot.lane.b32.xlu1 %v5797_v47, %s5823_s27  ;;  %v5044_v45 = vld [vmem:[%s6847_s8 + $0x18] sm:$0xf]  ;;  %s5651_s27 = smul.u32 24, %s6866_s22 }
 0x826   : > { %s433_s13 = scalar_lea.vmem %s6851_s12, %s5651_s27 }
 0x828   : > { %4417 = vrot.lane.b32.xlu0 %v5797_v47, %s5824_s28  ;;  %4415 = vrot.lane.b32.xlu1 %v5020_v46, %s5824_s28 }
 0x86e   : > { %v3584_v48 = vpop.permute.xlu0 %3583  ;;  %v3582_v49 = vpop.permute.xlu1 %3581 }
 0x86f   : > { %v3587_v50 = vsel %vm1573_vm4, %v3582_v49, %v3584_v48 }
 0x870   : > { %v3593_v55 = vsel %vm1580_vm5, %v3587_v50, 0 }
 0x872   : > { %v3778_v51 = vpop.permute.xlu0 %3777  ;;  %v3586_v1 = vpop.permute.xlu1 %3585 }
 0x873   : > { %v3588_v53 = vsel %vm1573_vm4, %v3584_v48, %v3586_v1  ;;  %v3599_v54 = vsel %vm1580_vm5, %v3586_v1, 0  ;;  %vm6856_vm4 = vcmask 752640   ;;  %v5048_v1 = vld [vmem:[%s6847_s8 + $0x1c] sm:$0xf] }
 0x874   : > { %5022 = vmatprep.subr.msk.bf16.mxu0 %vm1580_vm5, %v3588_v53  ;;  %5367 = vmatpush3.bf16.msra.mxu1 %v3599_v54 }
 0x875   : > { %3602 = vmatpush1.bf16.msra.mxu0 %v3593_v55  ;;  %5372 = vmatprep.subr.bf16.mxu1 %v5813_v0 }
 0x876   : > { %v3782_v58 = vpop.permute.xlu0 %3781  ;;  %5025 = vmatprep.subr.msk.bf16.mxu0 %vm1580_vm5, %v5020_v46  ;;  %v3780_v59 = vpop.permute.xlu1 %3779 }
 0x877   : > { %5369 = vmatmul.mubr.msk.bf16.vlgmr.msra.gmra.mrb[16].mxu1 %vm1576_vm6, %v5018_v57  ;;  %v3784_v62 = vsel %vm1772_vm7, %v3780_v59, %v3782_v58  ;;  %v3783_v3 = vsel %vm1772_vm7, %v3778_v51, %v3780_v59  ;;  %v3795_v7 = vsel %vm1580_vm5, %v3782_v58, 0  ;;  %vm6857_vm7 = vmmov %vm6856_vm4 }
 0x878   : > { %5023 = vmatmul.mubr.msk.bf16.vlgmr.msra.gmra.mrb[16].mxu0 %vm1576_vm6, %v5018_v57  ;;  %5373 = vmatpush3.bf16.msra.mxu1 %v3692_v60  ;;  %v3789_v8 = vsel %vm1580_vm5, %v3783_v3, 0  ;;  %v5052_v57 = vld [vmem:[%s6847_s8 + $0x20] sm:$0xf] }
 0x879   : > { %3695 = vmatpush1.bf16.msra.mxu0 %v3686_v61  ;;  %5374 = vmatprep.mubr.msk.bf16.mxu1 %vm5814_vm0, %v5813_v0 }
 0x87a   : > { %5029 = vmatprep.subr.msk.bf16.mxu0 %vm1580_vm5, %v3784_v62  ;;  %5378 = vmatprep.subr.bf16.mxu1 %v5813_v0  ;;  %v3884_v63 = vpop.permute.xlu1 %3883  ;;  %v3886_v4 = vpop.permute.xlu0 %3885 }
 0x87b   : > { %3726 = vmatprep.mubr.bf16.mxu0 %v6424_v52  ;;  %v3889_v12 = vsel %vm1879_vm8, %v3884_v63, %v3886_v4 }
 0x87c   : > { %v3895_v15 = vsel %vm1580_vm5, %v3889_v12, 0 }
 0x87e   : > { %v3888_v6 = vpop.permute.xlu1 %3887  ;;  %v3990_v10 = vpop.permute.xlu0 %3989 }
 0x87f   : > { %v3890_v9 = vsel %vm1879_vm8, %v3886_v4, %v3888_v6  ;;  %v3901_v14 = vsel %vm1580_vm5, %v3888_v6, 0  ;;  %vm6858_vm8 = vcmask 744448  }
 0x882   : > { %v3994_v13 = vpop.permute.xlu0 %3993  ;;  %v3992_v32 = vpop.permute.xlu1 %3991 }
 0x883   : > { %5375 = vmatmul.mubr.msk.bf16.vlgmr.msra.gmra.mrb[16].mxu1 %vm1576_vm6, %v3568_v2  ;;  %v3996_v16 = vsel %vm1986_vm9, %v3992_v32, %v3994_v13  ;;  %v3995_v19 = vsel %vm1986_vm9, %v3990_v10, %v3992_v32  ;;  %v4007_v25 = vsel %vm1580_vm5, %v3994_v13, 0  ;;  %vm6859_vm9 = vmmov %vm6858_vm8  ;;  %v5827_v10 = vmov 2  }
 0x884   : > { %5379 = vmatpush3.bf16.msra.mxu1 %v3795_v7  ;;  %5026 = vmatmul.mubr.msk.bf16.vlgmr.msra.gmra.mrb[16].mxu0 %vm1576_vm6, %v3568_v2  ;;  %v4001_v26 = vsel %vm1580_vm5, %v3995_v19, 0 }
 0x885   : > { %3798 = vmatpush1.bf16.msra.mxu0 %v3789_v8  ;;  %5380 = vmatprep.mubr.msk.bf16.mxu1 %vm5814_vm0, %v5813_v0 }
 0x886   : > { %5033 = vmatprep.subr.msk.bf16.mxu0 %vm1580_vm5, %v3890_v9  ;;  %5384 = vmatprep.subr.bf16.mxu1 %v5813_v0  ;;  %v4096_v17 = vpop.permute.xlu1 %4095  ;;  %v4098_v23 = vpop.permute.xlu0 %4097 }
 0x887   : > { %3829 = vmatprep.mubr.bf16.mxu0 %v6424_v52  ;;  %v4101_v30 = vsel %vm2093_vm10, %v4096_v17, %v4098_v23  ;;  %5678 = vset.pattern.permute.xlu0 %v5827_v10 }
 0x888   : > { %v4107_v35 = vsel %vm1580_vm5, %v4101_v30, 0 }
 0x88a   : > { %v4100_v24 = vpop.permute.xlu1 %4099  ;;  %v4202_v28 = vpop.permute.xlu0 %4201 }
 0x88b   : > { %v4102_v27 = vsel %vm2093_vm10, %v4098_v23, %v4100_v24  ;;  %v4113_v34 = vsel %vm1580_vm5, %v4100_v24, 0  ;;  %vm6860_vm10 = vcmask 736256  }
 0x88c   : > { %vm6861_vm11 = vmmov %vm6860_vm10 }
 0x88e   : > { %v4206_v31 = vpop.permute.xlu0 %4205  ;;  %v4204_v33 = vpop.permute.xlu1 %4203 }
 0x88f   : > { %5381 = vmatmul.mubr.msk.bf16.vlgmr.msra.gmra.mrb[16].mxu1 %vm1576_vm6, %v5028_v11  ;;  %v4208_v36 = vsel %vm6856_vm4, %v4204_v33, %v4206_v31  ;;  %v4207_v39 = vsel %vm6857_vm7, %v4202_v28, %v4204_v33  ;;  %v4219_v42 = vsel %vm1580_vm5, %v4206_v31, 0  ;;  %v4578_v28 = vld [vmem:[%s6850_s11] sm:$0xff] }
 0x890   : > { %5385 = vmatpush3.bf16.msra.mxu1 %v3901_v14  ;;  %5030 = vmatmul.mubr.msk.bf16.vlgmr.msra.gmra.mrb[16].mxu0 %vm1576_vm6, %v5028_v11  ;;  %v4213_v20 = vsel %vm1580_vm5, %v4207_v39, 0  ;;  %v5828_v11 = vmov 3  }
 0x891   : > { %3904 = vmatpush1.bf16.msra.mxu0 %v3895_v15  ;;  %5386 = vmatprep.mubr.msk.bf16.mxu1 %vm5814_vm0, %v5813_v0 }
 0x892   : > { %5037 = vmatprep.subr.msk.bf16.mxu0 %vm1580_vm5, %v3996_v16  ;;  %5390 = vmatprep.subr.bf16.mxu1 %v5813_v0  ;;  %v4308_v37 = vpop.permute.xlu1 %4307  ;;  %v4310_v40 = vpop.permute.xlu0 %4309 }
 0x893   : > { %3935 = vmatprep.mubr.bf16.mxu0 %v6424_v52  ;;  %v4313_v46 = vsel %vm6859_vm9, %v4308_v37, %v4310_v40  ;;  %5679 = vset.pattern.permute.xlu1 %v5828_v11 }
 0x894   : > { %v4319_v50 = vsel %vm1580_vm5, %v4313_v46, 0 }
 0x896   : > { %v4312_v41 = vpop.permute.xlu1 %4311  ;;  %v4414_v22 = vpop.permute.xlu0 %4413 }
 0x897   : > { %v4314_v21 = vsel %vm6858_vm8, %v4310_v40, %v4312_v41  ;;  %v4325_v49 = vsel %vm1580_vm5, %v4312_v41, 0 }
 0x89a   : > { %v4418_v47 = vpop.permute.xlu0 %4417  ;;  %v4416_v48 = vpop.permute.xlu1 %4415 }
 0x89b   : > { %5387 = vmatmul.mubr.msk.bf16.vlgmr.msra.gmra.mrb[16].mxu1 %vm1576_vm6, %v5032_v18  ;;  %v4420_v51 = vsel %vm6860_vm10, %v4416_v48, %v4418_v47  ;;  %v4419_v53 = vsel %vm6861_vm11, %v4414_v22, %v4416_v48  ;;  %v4431_v54 = vsel %vm1580_vm5, %v4418_v47, 0 }
 0x89c   : > { %5391 = vmatpush3.bf16.msra.mxu1 %v4007_v25  ;;  %5034 = vmatmul.mubr.msk.bf16.vlgmr.msra.gmra.mrb[16].mxu0 %vm1576_vm6, %v5032_v18  ;;  %v4425_v55 = vsel %vm1580_vm5, %v4419_v53, 0 }
 0x89d   : > { %4010 = vmatpush1.bf16.msra.mxu0 %v4001_v26  ;;  %5392 = vmatprep.mubr.msk.bf16.mxu1 %vm5814_vm0, %v5813_v0 }
 0x89e   : > { %5041 = vmatprep.subr.msk.bf16.mxu0 %vm1580_vm5, %v4102_v27  ;;  %5396 = vmatprep.subr.bf16.mxu1 %v5813_v0 }
 0x89f   : > { %4041 = vmatprep.mubr.bf16.mxu0 %v6424_v52 }
 0x8a7   : > { %5393 = vmatmul.mubr.msk.bf16.vlgmr.msra.gmra.mrb[16].mxu1 %vm1576_vm6, %v5036_v29 }
 0x8a8   : > { %5397 = vmatpush3.bf16.msra.mxu1 %v4113_v34  ;;  %5038 = vmatmul.mubr.msk.bf16.vlgmr.msra.gmra.mrb[16].mxu0 %vm1576_vm6, %v5036_v29 }
 0x8a9   : > { %4116 = vmatpush1.bf16.msra.mxu0 %v4107_v35  ;;  %5398 = vmatprep.mubr.msk.bf16.mxu1 %vm5814_vm0, %v5813_v0 }
 0x8aa   : > { %5045 = vmatprep.subr.msk.bf16.mxu0 %vm1580_vm5, %v4208_v36  ;;  %5402 = vmatprep.subr.bf16.mxu1 %v5813_v0 }
 0x8ab   : > { %4147 = vmatprep.mubr.bf16.mxu0 %v6424_v52 }
 0x8b3   : > { %5399 = vmatmul.mubr.msk.bf16.vlgmr.msra.gmra.mrb[16].mxu1 %vm1576_vm6, %v5040_v38 }
 0x8b4   : > { %5403 = vmatpush3.bf16.msra.mxu1 %v4219_v42  ;;  %5042 = vmatmul.mubr.msk.bf16.vlgmr.msra.gmra.mrb[16].mxu0 %vm1576_vm6, %v5040_v38 }
 0x8b5   : > { %4222 = vmatpush1.bf16.msra.mxu0 %v4213_v20  ;;  %5404 = vmatprep.mubr.msk.bf16.mxu1 %vm5814_vm0, %v5813_v0 }
 0x8b6   : > { %5049 = vmatprep.subr.msk.bf16.mxu0 %vm1580_vm5, %v4314_v21  ;;  %5408 = vmatprep.subr.bf16.mxu1 %v5813_v0 }
 0x8b7   : > { %4253 = vmatprep.mubr.bf16.mxu0 %v6424_v52 }
 0x8bf   : > { %5405 = vmatmul.mubr.msk.bf16.vlgmr.msra.gmra.mrb[16].mxu1 %vm1576_vm6, %v5044_v45 }
 0x8c0   : > { %5409 = vmatpush3.bf16.msra.mxu1 %v4325_v49  ;;  %5046 = vmatmul.mubr.msk.bf16.vlgmr.msra.gmra.mrb[16].mxu0 %vm1576_vm6, %v5044_v45 }
 0x8c1   : > { %4328 = vmatpush1.bf16.msra.mxu0 %v4319_v50  ;;  %5410 = vmatprep.mubr.msk.bf16.mxu1 %vm5814_vm0, %v5813_v0 }
 0x8c2   : > { %5053 = vmatprep.subr.msk.bf16.mxu0 %vm1580_vm5, %v4420_v51  ;;  %5414 = vmatprep.subr.bf16.mxu1 %v5813_v0 }
 0x8c3   : > { %4359 = vmatprep.mubr.bf16.mxu0 %v6424_v52 }
 0x8cb   : > { %5411 = vmatmul.mubr.msk.bf16.vlgmr.msra.gmra.mrb[16].mxu1 %vm1576_vm6, %v5048_v1 }
 0x8cc   : > { %5415 = vmatpush3.bf16.msra.mxu1 %v4431_v54  ;;  %5050 = vmatmul.mubr.msk.bf16.vlgmr.msra.gmra.mrb[16].mxu0 %vm1576_vm6, %v5048_v1 }
 0x8cd   : > { %4434 = vmatpush1.bf16.msra.mxu0 %v4425_v55  ;;  %5416 = vmatprep.mubr.msk.bf16.mxu1 %vm5814_vm0, %v5813_v0 }
 0x8ce   : > { %4465 = vmatprep.mubr.bf16.mxu0 %v6424_v52  ;;  %5420 = vmatprep.subr.bf16.mxu1 %v5813_v0 }
 0x8d7   : > { %5417 = vmatmul.mubr.msk.bf16.vlgmr.msra.gmra.mrb[16].mxu1 %vm1576_vm6, %v5052_v57 }
 0x8d8   : > { %5054 = vmatmul.mubr.msk.bf16.vlgmr.msra.gmra.mrb[16].mxu0 %vm1576_vm6, %v5052_v57  ;;  %5422 = vmatprep.mubr.msk.bf16.mxu1 %vm5814_vm0, %v5813_v0  ;;  %vm6863_vm0 = vmmov %vm6862_vm12 }
 0x8d9   : > { %4628 = vmatprep.mubr.bf16.mxu0 %v6424_v52 }
 0x9aa   : > { %v4508_v58 = vpop.f32.mrb[16].mxu1 }
 0x9ab   : > { %v4467_v59 = vpop.f32.mrb[16].mxu0  ;;  %v5418_v60 = vpop.f32.mrb[17].mxu1  ;;  %v4520_v61 = vmul.f32 %v4508_v58, %v6633_v43 }
 0x9ac   : > { %v4518_v62 = vmul.f32 %v4467_v59, %v6635_v5  ;;  %v4469_v63 = vpop.f32.mrb[17].mxu0  ;;  %v4511_v2 = vpop.f32.mrb[18].mxu1 }
 0x9ad   : > { %v4519_v3 = vmul.f32 %v4469_v63, %v6637_v44  ;;  %v4471_v4 = vpop.f32.mrb[18].mxu0  ;;  %v5419_v6 = vpop.f32.mrb[19].mxu1  ;;  %v4522_v9 = vsel %vm6862_vm12, %v4520_v61, 0.0 }
 0x9ae   : > { %v4472_v7 = vpop.f32.mrb[19].mxu0 }
 0x9af   : > { %v4521_v8 = vadd.f32 %v4519_v3, %v4518_v62 }
 0x9b1   : > { %v4523_v0 = vadd.f32 %v4522_v9, %v4521_v8 }
 0x9b3   : > { %4524 = vadd.xlane.f32.xlu1 %v4523_v0 }
 0x9c4   : > { %4556 = vperm.xlu1 %5679, %v6646_v56  }
 0x9c8   : > { %5680 = vset.pattern.permute.xlu1 %v6424_v52 }
 0x9c9   : > { %4581 = vperm.xlu1 %5680, %v4578_v28  }
 0xa40   : > { %v4525_v12 = vpop.xlane.xlu1 %4524 }
 0xa41   : > { %v4526_v13 = vmul.f32 0.00390625, %v4525_v12 }
 0xa43   : > { %v4527_v32 = vsub.f32 %v4467_v59, %v4526_v13  ;;  %v4528_v14 = vsub.f32 %v4469_v63, %v4526_v13  ;;  %v4529_v15 = vsub.f32 %v4508_v58, %v4526_v13 }
 0xa44   : > { %v4557_v38 = vpop.permute.xlu1 %4556 }
 0xa45   : > { %v4530_v16 = vmul.f32 %v4527_v32, %v6635_v5  ;;  %v4531_v17 = vmul.f32 %v4528_v14, %v6637_v44  ;;  %v4532_v18 = vmul.f32 %v4529_v15, %v6633_v43 }
 0xa47   : > { %v4533_v19 = vmul.f32 %v4530_v16, %v4530_v16  ;;  %v4534_v23 = vmul.f32 %v4531_v17, %v4531_v17  ;;  %v4535_v24 = vmul.f32 %v4532_v18, %v4532_v18 }
 0xa49   : > { %v4536_v25 = vadd.f32 %v4534_v23, %v4533_v19  ;;  %v4537_v26 = vsel %vm6863_vm0, %v4535_v24, 0.0 }
 0xa4b   : > { %v4538_v27 = vadd.f32 %v4537_v26, %v4536_v25 }
 0xa4d   : > { %4539 = vadd.xlane.f32.xlu0 %v4538_v27 }
 0xa63   : > { %4549 = vperm.xlu0 %5678, %v6646_v56  }
 0xa67   : > { %5681 = vset.pattern.permute.xlu0 %v6424_v52 }
 0xada   : > { %v4540_v29 = vpop.xlane.xlu0 %4539 }
 0xadb   : > { %v4541_v30 = vmul.f32 0.00390625, %v4540_v29 }
 0xadd   : > { %v4542_v31 = vadd.f32 1e-05, %v4541_v30 }
 0xadf   : > { %5800 = vrsqrt.f32 %v4542_v31 }
 0xae2   : > { %v4550_v34 = vpop.permute.xlu0 %4549 }
 0xae9   : > { %v5801_v33 = vpop.eup %5800 }
 0xaea   : > { %v4544_v35 = vmul.f32 %v5801_v33, %v4530_v16  ;;  %v4545_v36 = vmul.f32 %v5801_v33, %v4531_v17  ;;  %v4546_v37 = vmul.f32 %v5801_v33, %v4532_v18 }
 0xaec   : > { %v4552_v39 = vmul.f32 %v4550_v34, %v4544_v35  ;;  %v4553_v40 = vmul.f32 %v4550_v34, %v4545_v36  ;;  %v4554_v56 = vmul.f32 %v4550_v34, %v4546_v37 }
 0xaee   : > { %v4559_v41 = vadd.f32 %v4557_v38, %v4552_v39  ;;  %v4560_v52 = vadd.f32 %v4557_v38, %v4553_v40  ;;  %v4561_v42 = vadd.f32 %v4557_v38, %v4554_v56 }
 0xaf0   : > { %vm4562_vm13 = vcmp.gt.f32.partialorder %v4559_v41, 0.0  ;;  %vm4563_vm14 = vcmp.gt.f32.partialorder %v4560_v52, 0.0  ;;  %vm4564_vm15 = vcmp.gt.f32.partialorder %v4561_v42, 0.0  ;;  %v4565_v20 = vmul.f32 0.01, %v4559_v41 }
 0xaf1   : > { %v4566_v21 = vmul.f32 0.01, %v4560_v52  ;;  %v4567_v22 = vmul.f32 0.01, %v4561_v42 }
 0xaf2   : > { %v4568_v45 = vsel %vm4562_vm13, %v4559_v41, %v4565_v20 }
 0xaf3   : > { %v4569_v46 = vsel %vm4563_vm14, %v4560_v52, %v4566_v21  ;;  %v4571_v47 = vmul.f32 %v4568_v45, %v6635_v5  ;;  %v4570_v48 = vsel %vm4564_vm15, %v4561_v42, %v4567_v22  ;;  %v4574_v5 = vld [vmem:[%s6849_s10] sm:$0xf] }
 0xaf4   : > { %v4572_v49 = vmul.f32 %v4569_v46, %v6637_v44  ;;  %v4573_v50 = vmul.f32 %v4570_v48, %v6633_v43  ;;  %v4582_v43 = vpop.permute.xlu1 %4581 }
 0xaf5   : > { %v4575_v51 = vpack.c.bf16 %v4571_v47, %v4571_v47 }
 0xaf6   : > { %v4576_v1 = vpack.c.bf16 %v4572_v49, %v4572_v49  ;;  %v4577_v53 = vpack.c.bf16 %v4573_v50, %v4573_v50 }
 0xaf7   : > { %v4588_v54 = vsel %vm1580_vm5, %v4575_v51, 0 }
 0xaf8   : > { %5056 = vmatprep.subr.msk.bf16.mxu0 %vm1580_vm5, %v4576_v1  ;;  %v4594_v55 = vsel %vm1580_vm5, %v4577_v53, 0  ;;  %vm6864_vm5 = vmmov %vm6863_vm0 }
 0xaf9   : > { %4597 = vmatpush1.bf16.msra.mxu0 %v4588_v54  ;;  %5421 = vmatpush3.bf16.msra.mxu1 %v4594_v55 }
 0xafc   : > { %5057 = vmatmul.mubr.msk.bf16.vlgmr.msra.gmra.mrb[20].mxu0 %vm1576_vm6, %v4574_v5  ;;  %5423 = vmatmul.mubr.msk.bf16.vlgmr.msra.gmra.mrb[20].mxu1 %vm1576_vm6, %v4574_v5 }
 0xbcf   : > { %v4630_v44 = vpop.f32.mrb[20].mxu0  ;;  %v4671_v57 = vpop.f32.mrb[20].mxu1 }
 0xbd0   : > { %v4632_v58 = vpop.f32.mrb[21].mxu0  ;;  %v5424_v59 = vpop.f32.mrb[21].mxu1  ;;  %v4631_v60 = vadd.f32 %v4630_v44, %v4582_v43  ;;  %v4672_v61 = vadd.f32 %v4671_v57, %v4582_v43 }
 0xbd1   : > { %v4634_v62 = vpop.f32.mrb[22].mxu0  ;;  %v4674_v63 = vpop.f32.mrb[22].mxu1  ;;  %v4633_v2 = vadd.f32 %v4632_v58, %v4582_v43 }
 0xbd2   : > { %4677 = vst [vmem:[%s433_s13] sm:$0xff] %v4631_v60  ;;  %4679 = vst.msk [vmem:[%s433_s13 + $0x10] sm:$0xff] %vm6864_vm5, %v4672_v61  ;;  %v4635_v3 = vpop.f32.mrb[23].mxu0  ;;  %v5425_v4 = vpop.f32.mrb[23].mxu1 }
 0xbd3   : > { %4678 = vst [vmem:[%s433_s13 + $0x8] sm:$0xff] %v4633_v2 }
 0xbd4 PF: > { %s22_s21 = sadd.s32 1, %s5811_s21  }
 0xbd5   : > { %p19_p4 = scmp.ge.s32.totalorder %s22_s21, 4  }
 0xbd7   :  { %21 = sbr.rel (!%p19_p4) target bundleno = 1 (0x1), region = 131 }

</bundles_post_ra>
